<compile_context>
chip_gen: v6e
topology: v6e:2x2x1
jax: 0.10.0
libtpu: 0.0.40
codegen_flags: <defaults>
</compile_context>

<pallas_src>
import functools

import jax
import jax.numpy as jnp
from jax.experimental import pallas as pl
from jax.experimental.pallas import tpu as pltpu

EPS = 1e-5  # nn.InstanceNorm2d default eps (affine=False, no running stats)


def _round_up(x, m):
    return (x + m - 1) // m * m


# ---------------- Tiled MXU matmul with fused epilogues (Pallas) --------------

def _make_matmul_kernel(*, has_bias, has_res, do_inorm, relu, fuse_tanh):
    """A @ B with K-reduction grid axis, f32 accumulator and a fused epilogue:
    optional bias-add, per-tile InstanceNorm (tile rows == one image's HW),
    ReLU, residual-add and tanh."""

    def kernel(*refs):
        idx = 0
        a_ref = refs[idx]; idx += 1
        b_ref = refs[idx]; idx += 1
        bias_ref = None
        res_ref = None
        if has_bias:
            bias_ref = refs[idx]; idx += 1
        if has_res:
            res_ref = refs[idx]; idx += 1
        o_ref = refs[idx]
        acc_ref = refs[idx + 1]

        @pl.when(pl.program_id(2) == 0)
        def _():
            acc_ref[...] = jnp.zeros_like(acc_ref)

        acc_ref[...] += jnp.dot(a_ref[...], b_ref[...],
                                preferred_element_type=jnp.float32)

        @pl.when(pl.program_id(2) == pl.num_programs(2) - 1)
        def _():
            y = acc_ref[...]                                   # (tm, tn), f32
            if has_bias:
                y = y + bias_ref[...]
            if do_inorm:
                # InstanceNorm over the M rows of this tile (== one image's
                # HW) independently per channel column.  Padded (zero)
                # channel columns normalize to 0 and are sliced away outside.
                m = jnp.mean(y, axis=0, keepdims=True)         # (1, tn)
                yc = y - m
                var = jnp.mean(yc * yc, axis=0, keepdims=True) # biased var
                y = yc * jax.lax.rsqrt(var + EPS)
            if relu:
                y = jnp.maximum(y, 0.0)
            if has_res:
                y = y + res_ref[...]                           # resnet tail
            if fuse_tanh:
                y = jnp.tanh(y)                                # EUP slot
            o_ref[...] = y

    return kernel


def _pick_tiles(M, K, N):
    """MXU-friendly tiles (128-lane / 16-sublane multiples for bf16), sized
    far inside the 64 MiB VMEM of v7x (v5e/v6e have 128 MiB), so the default
    scoped-VMEM limit and 2-deep pipelining always hold."""
    tm = min(256, _round_up(M, 16))
    tn = min(256, _round_up(N, 128))
    K128 = _round_up(K, 128)
    if K128 <= 1024:
        tk = K128
    else:
        tk = 512
        for cand in (1024, 896, 768, 640, 512, 384, 256):
            if K128 % cand == 0:
                tk = cand
                break
    return tm, tn, tk


def pallas_matmul(a, b, *, bias=None, fuse_tanh=False, inorm=False,
                  relu=False, residual=None, rows_per_group=None):
    """(M, K) @ (K, N) -> (M, N) f32.  Operands are fed to the MXU as bf16,
    accumulation is f32.  Optional fused epilogues: bias, InstanceNorm (tile
    rows = one image, requires rows_per_group | M), ReLU, residual-add, tanh."""
    M, K = a.shape
    K2, N = b.shape
    assert K == K2
    tm, tn, tk = _pick_tiles(M, K, N)
    if inorm:
        assert rows_per_group is not None and M % rows_per_group == 0
        tm = rows_per_group                      # one image per M tile
    Mp, Kp, Np = _round_up(M, tm), _round_up(K, tk), _round_up(N, tn)

    a = a.astype(jnp.bfloat16)
    b = b.astype(jnp.bfloat16)
    if (Mp, Kp) != (M, K):
        a = jnp.pad(a, ((0, Mp - M), (0, Kp - K)))
    if (Kp, Np) != (K, N):
        b = jnp.pad(b, ((0, Kp - K), (0, Np - N)))

    in_specs = [pl.BlockSpec((tm, tk), lambda i, j, k: (i, k)),
                pl.BlockSpec((tk, tn), lambda i, j, k: (k, j))]
    args = [a, b]
    if bias is not None:
        bias_p = jnp.zeros((1, Np), jnp.float32).at[0, :N].set(
            bias.astype(jnp.float32))
        in_specs.append(pl.BlockSpec((1, tn), lambda i, j, k: (0, j)))
        args.append(bias_p)
    if residual is not None:
        res_p = residual.astype(jnp.float32)
        if res_p.shape != (Mp, Np):
            res_p = jnp.pad(res_p, ((0, Mp - M), (0, Np - N)))
        in_specs.append(pl.BlockSpec((tm, tn), lambda i, j, k: (i, j)))
        args.append(res_p)

    out = pl.pallas_call(
        _make_matmul_kernel(has_bias=bias is not None,
                            has_res=residual is not None,
                            do_inorm=inorm, relu=relu, fuse_tanh=fuse_tanh),
        out_shape=jax.ShapeDtypeStruct((Mp, Np), jnp.float32),
        grid_spec=pltpu.PrefetchScalarGridSpec(
            num_scalar_prefetch=0,
            grid=(Mp // tm, Np // tn, Kp // tk),
            in_specs=in_specs,
            out_specs=pl.BlockSpec((tm, tn), lambda i, j, k: (i, j)),
            scratch_shapes=[pltpu.VMEM((tm, tn), jnp.float32)]),
        compiler_params=pltpu.CompilerParams(
            dimension_semantics=("parallel", "parallel", "arbitrary")),
    )(*args)

    if (Mp, Np) != (M, N):
        out = out[:M, :N]
    return out


# ------------- Standalone InstanceNorm kernels (VPU, per image) ---------------
# Used after the transposed convolutions (the phase->pixel rearrangement sits
# between the matmul and the norm) and as a fallback for large resolutions.

def _make_in_kernel(apply_relu):
    def kern(x_ref, o_ref):
        x = x_ref[...]                                  # (1, HW, C), f32
        mean = jnp.mean(x, axis=1, keepdims=True)
        xc = x - mean
        var = jnp.mean(xc * xc, axis=1, keepdims=True)  # biased variance
        y = xc * jax.lax.rsqrt(var + EPS)
        if apply_relu:
            y = jnp.maximum(y, 0.0)
        o_ref[...] = y
    return kern


def instance_norm(x, apply_relu):
    """x: (N, HW, C); normalize over HW per (n, c); optional fused ReLU."""
    N, HW, C = x.shape
    return pl.pallas_call(
        _make_in_kernel(apply_relu),
        out_shape=jax.ShapeDtypeStruct((N, HW, C), jnp.float32),
        grid=(N,),
        in_specs=[pl.BlockSpec((1, HW, C), lambda n: (n, 0, 0))],
        out_specs=pl.BlockSpec((1, HW, C), lambda n: (n, 0, 0)),
        compiler_params=pltpu.CompilerParams(
            dimension_semantics=("parallel",)),
    )(x)


def _in_residual_kernel(x_ref, r_ref, o_ref):
    x = x_ref[...]                                      # (1, HW, C)
    mean = jnp.mean(x, axis=1, keepdims=True)
    xc = x - mean
    var = jnp.mean(xc * xc, axis=1, keepdims=True)
    o_ref[...] = r_ref[...] + xc * jax.lax.rsqrt(var + EPS)


def instance_norm_residual(x, res):
    """out = res + InstanceNorm(x); fallback tail of a ResnetBlock."""
    N, HW, C = x.shape
    return pl.pallas_call(
        _in_residual_kernel,
        out_shape=jax.ShapeDtypeStruct((N, HW, C), jnp.float32),
        grid=(N,),
        in_specs=[pl.BlockSpec((1, HW, C), lambda n: (n, 0, 0)),
                  pl.BlockSpec((1, HW, C), lambda n: (n, 0, 0))],
        out_specs=pl.BlockSpec((1, HW, C), lambda n: (n, 0, 0)),
        input_output_aliases={1: 0},
        compiler_params=pltpu.CompilerParams(
            dimension_semantics=("parallel",)),
    )(x, res)


# ------------------------------ JAX glue -------------------------------------

def _im2col(x, k, stride):
    """x: (N, Hp, Wp, C) already padded -> (N*Ho*Wo, k*k*C) patch matrix."""
    N, Hp, Wp, C = x.shape
    Ho = (Hp - k) // stride + 1
    Wo = (Wp - k) // stride + 1
    cols = []
    for di in range(k):
        for dj in range(k):
            cols.append(x[:, di:di + stride * Ho:stride,
                            dj:dj + stride * Wo:stride, :])
    p = jnp.stack(cols, axis=3)                 # (N, Ho, Wo, k*k, C)
    return p.reshape(N * Ho * Wo, k * k * C), (N, Ho, Wo)


def conv2d(x, w, stride=1, pad=0, pad_mode="constant", bias=None,
           fuse_tanh=False, inorm=False, relu=False, residual=None):
    """x: (N, H, W, Cin) NHWC; w: (Cout, Cin, k, k) (PyTorch layout).
    Optional fused InstanceNorm/ReLU/residual epilogue inside the matmul."""
    Cout, Cin, k, _ = w.shape
    if pad > 0:
        x = jnp.pad(x, ((0, 0), (pad, pad), (pad, pad), (0, 0)), mode=pad_mode)
    # Cast to bf16 *before* patch extraction: halves the patch-matrix HBM
    # footprint / traffic (the MXU inputs are bf16 anyway; accumulation f32).
    # TODO(synk): fold the k*k taps into the matmul grid (shifted-window
    # index_map) to avoid materializing the patch matrix at high resolutions.
    patches, (N, Ho, Wo) = _im2col(x.astype(jnp.bfloat16), k, stride)
    w_mat = jnp.transpose(w, (2, 3, 1, 0)).reshape(k * k * Cin, Cout)

    hw = Ho * Wo
    # Fused InstanceNorm needs one image's HW rows per M tile (and bf16-clean
    # sublane packing); fall back to the standalone VPU kernel otherwise.
    fuse_in = inorm and (hw % 16 == 0) and (hw <= 2048)
    res_mat = None
    if residual is not None and fuse_in:
        res_mat = residual.reshape(N * hw, Cout)

    y = pallas_matmul(patches, w_mat.astype(jnp.bfloat16),
                      bias=bias, fuse_tanh=fuse_tanh,
                      inorm=fuse_in, relu=relu and fuse_in,
                      residual=res_mat, rows_per_group=hw)
    y = y.reshape(N, Ho, Wo, Cout)

    if inorm and not fuse_in:                    # large-resolution fallback
        if residual is not None:
            y = _in_res(y, residual)
        else:
            y = _in(y, relu)
    return y


def _deconv_block_weight(w_t):
    """Block weight for the 4-phase sub-pixel decomposition of
    ConvTranspose2d(k=3, stride=2, padding=1, output_padding=1), w_t: (Cin,Cout,3,3).

        out[2i,   2j  ] = x[i,j]   @ M(1,1)
        out[2i,   2j+1] = x[i,j]   @ M(1,0) + x[i,j+1]   @ M(1,2)
        out[2i+1, 2j  ] = x[i,j]   @ M(0,1) + x[i+1,j]   @ M(2,1)
        out[2i+1, 2j+1] = x[i,j]   @ M(0,0) + x[i,j+1]   @ M(0,2)
                        + x[i+1,j] @ M(2,0) + x[i+1,j+1] @ M(2,2)
    with M(di,dj)[ci,co] = w_t[ci,co,2-di,2-dj] (flipped, channel-transposed).
    """
    Cin, Cout = w_t.shape[0], w_t.shape[1]

    def M(di, dj):
        return w_t[:, :, 2 - di, 2 - dj]               # (Cin, Cout)

    Z = jnp.zeros((Cin, Cout), w_t.dtype)
    blocks = {                                          # {input shift: {phase: M}}
        (0, 0): {0: M(1, 1), 1: M(1, 0), 2: M(0, 1), 3: M(0, 0)},
        (0, 1): {1: M(1, 2), 3: M(0, 2)},
        (1, 0): {2: M(2, 1), 3: M(2, 0)},
        (1, 1): {3: M(2, 2)},
    }
    rows = []
    for shift in ((0, 0), (0, 1), (1, 0), (1, 1)):
        rows.append(jnp.concatenate(
            [blocks[shift].get(p, Z) for p in range(4)], axis=1))
    return jnp.concatenate(rows, axis=0)                # (4*Cin, 4*Cout)


def conv_transpose2d(x, w_t):
    """PyTorch ConvTranspose2d(3, stride=2, padding=1, output_padding=1,
    bias=False) via 4-phase sub-pixel decomposition (no zero-insertion)."""
    N, H, W, Cin = x.shape
    Cout = w_t.shape[1]
    xp = jnp.pad(x, ((0, 0), (0, 1), (0, 1), (0, 0))).astype(jnp.bfloat16)
    taps = jnp.concatenate(
        [xp[:, :H, :W, :],                 # x[i  , j  ]
         xp[:, :H, 1:W + 1, :],            # x[i  , j+1]
         xp[:, 1:H + 1, :W, :],            # x[i+1, j  ]
         xp[:, 1:H + 1, 1:W + 1, :]],      # x[i+1, j+1]
        axis=-1).reshape(N * H * W, 4 * Cin)
    w_big = _deconv_block_weight(w_t).astype(jnp.bfloat16)
    # TODO(synk): fuse the InstanceNorm into this matmul epilogue with
    # phase-grouped statistics (lane-roll reduce over the 4 phase blocks).
    y = pallas_matmul(taps, w_big)                      # (N*H*W, 4*Cout)
    y = y.reshape(N, H, W, 2, 2, Cout)                  # (..., py, px, C)
    y = jnp.transpose(y, (0, 1, 3, 2, 4, 5))            # (N, H, py, W, px, C)
    return y.reshape(N, 2 * H, 2 * W, Cout)


def _in(x_nhwc, relu):
    N, H, W, C = x_nhwc.shape
    return instance_norm(x_nhwc.reshape(N, H * W, C), relu).reshape(N, H, W, C)


def _in_res(x_nhwc, res_nhwc):
    N, H, W, C = x_nhwc.shape
    y = instance_norm_residual(x_nhwc.reshape(N, H * W, C),
                               res_nhwc.reshape(N, H * W, C))
    return y.reshape(N, H, W, C)


# ------------------------------ Parameters ------------------------------------

def init_params(key):
    """Deterministic synthetic parameters with the exact PyTorch module shapes."""
    def nrm(k, shape):
        return jax.random.normal(k, shape, jnp.float32) * 0.02

    ks = list(jax.random.split(key, 16))
    return {
        "c1": nrm(ks[0], (64, 3, 7, 7)),          # Conv2d(3, 64, 7), bias=False
        "c2": nrm(ks[1], (128, 64, 3, 3)),        # Conv2d(64, 128, 3, s=2)
        "c3": nrm(ks[2], (256, 128, 3, 3)),       # Conv2d(128, 256, 3, s=2)
        "res": [(nrm(ks[3 + 2 * i], (256, 256, 3, 3)),
                 nrm(ks[4 + 2 * i], (256, 256, 3, 3))) for i in range(4)],
        "d1": nrm(ks[11], (256, 128, 3, 3)),      # ConvTranspose2d(256, 128, 3)
        "d2": nrm(ks[12], (128, 64, 3, 3)),       # ConvTranspose2d(128, 64, 3)
        "cf_w": nrm(ks[13], (3, 64, 7, 7)),       # Conv2d(64, 3, 7), bias=True
        "cf_b": nrm(ks[14], (3,)),
    }


# ------------------------------ Forward ----------------------------------------

def generator_forward(params, x_nchw):
    x = jnp.transpose(x_nchw, (0, 2, 3, 1)).astype(jnp.float32)   # NCHW -> NHWC

    # ReflectionPad2d(3) + Conv(3->64, 7) + IN + ReLU   (IN/ReLU fused in matmul)
    h = conv2d(x, params["c1"], stride=1, pad=3, pad_mode="reflect",
               inorm=True, relu=True)
    # Conv(64->128, 3, s=2, p=1) + IN + ReLU
    h = conv2d(h, params["c2"], stride=2, pad=1, inorm=True, relu=True)
    # Conv(128->256, 3, s=2, p=1) + IN + ReLU
    h = conv2d(h, params["c3"], stride=2, pad=1, inorm=True, relu=True)

    # 4 x ResnetBlock(256): h = h + IN(conv2(relu(IN(conv1(h)))))
    for (w1, w2) in params["res"]:
        r = conv2d(h, w1, stride=1, pad=1, pad_mode="reflect",
                   inorm=True, relu=True)
        h = conv2d(r, w2, stride=1, pad=1, pad_mode="reflect",
                   inorm=True, residual=h)         # IN + residual-add fused

    # ConvTranspose(256->128) + IN + ReLU
    h = conv_transpose2d(h, params["d1"])
    h = _in(h, True)
    # ConvTranspose(128->64) + IN + ReLU
    h = conv_transpose2d(h, params["d2"])
    h = _in(h, True)

    # ReflectionPad2d(3) + Conv(64->3, 7, bias) + Tanh  (bias+tanh fused in the
    # matmul epilogue; Cout lane-padded to 128 inside, sliced back to 3)
    h = conv2d(h, params["cf_w"], stride=1, pad=3, pad_mode="reflect",
               bias=params["cf_b"], fuse_tanh=True)

    return jnp.transpose(h, (0, 3, 1, 2))                          # NHWC -> NCHW


# -------------------------------- Main -----------------------------------------

if __name__ == "__main__":
    key = jax.random.PRNGKey(0)
    k_x, k_p = jax.random.split(key)
    x = jax.random.normal(k_x, (2, 3, 16, 16), jnp.float32)        # NCHW, as PyTorch
    params = init_params(k_p)

    fwd = jax.jit(functools.partial(generator_forward, params))
    out = fwd(x)
    jax.block_until_ready(out)

    assert out.shape == (2, 3, 16, 16), out.shape
    assert out.dtype == jnp.float32
    assert bool(jnp.all(jnp.isfinite(out)))
    assert bool(jnp.all(jnp.abs(out) <= 1.0))                      # tanh output range
    print("KERNEL_OK")
</pallas_src>

<mosaic_0001>
module attributes {stable_mosaic.version = 11 : i64} {
  func.func @kernel(%arg0: i32, %arg1: i32, %arg2: i32, %arg3: memref<256x256xbf16, #tpu.memory_space<vmem>>, %arg4: memref<256x128xbf16, #tpu.memory_space<vmem>>, %arg5: memref<256x128xf32, #tpu.memory_space<vmem>>, %arg6: memref<256x128xf32, #tpu.memory_space<vmem>>) attributes {dimension_semantics = [#tpu.dimension_semantics<parallel>, #tpu.dimension_semantics<parallel>, #tpu.dimension_semantics<arbitrary>], iteration_bounds = array<i64: 2, 1, 1>, scalar_prefetch = 0 : i64, scratch_operands = 1 : i64, tpu.core_type = #tpu.core_type<tc>, window_params = [{transform_indices = @transform_0, window_bounds = array<i64: 256, 256>}, {transform_indices = @transform_1, window_bounds = array<i64: 256, 128>}, {transform_indices = @transform_2, window_bounds = array<i64: 256, 128>}]} {
    %c0_i32 = arith.constant 0 : i32
    %0 = arith.cmpi eq, %arg2, %c0_i32 : i32
    %1 = arith.extui %0 : i1 to i32
    %c0_i32_0 = arith.constant 0 : i32
    %2 = arith.cmpi ne, %1, %c0_i32_0 : i32
    scf.if %2 {
      %cst_10 = arith.constant 0.000000e+00 : f32
      %12 = vector.broadcast %cst_10 : f32 to vector<256x128xf32>
      %c0_11 = arith.constant 0 : index
      %c0_12 = arith.constant 0 : index
      %13 = vector.load %arg6[%c0_11, %c0_12] : memref<256x128xf32, #tpu.memory_space<vmem>>, vector<256x128xf32>
      tpu.vector_store %arg6[%c0_11, %c0_12], %12 {strides = array<i32>} : memref<256x128xf32, #tpu.memory_space<vmem>>, vector<256x128xf32>,
    } else {
    }
    %c0 = arith.constant 0 : index
    %c0_1 = arith.constant 0 : index
    %3 = vector.load %arg6[%c0, %c0_1] : memref<256x128xf32, #tpu.memory_space<vmem>>, vector<256x128xf32>
    %c0_2 = arith.constant 0 : index
    %c0_3 = arith.constant 0 : index
    %4 = vector.load %arg3[%c0_2, %c0_3] : memref<256x256xbf16, #tpu.memory_space<vmem>>, vector<256x256xbf16>
    %c0_4 = arith.constant 0 : index
    %c0_5 = arith.constant 0 : index
    %5 = vector.load %arg4[%c0_4, %c0_5] : memref<256x128xbf16, #tpu.memory_space<vmem>>, vector<256x128xbf16>
    %cst = arith.constant dense<0.000000e+00> : vector<256x128xf32>
    %6 = tpu.matmul %4, %5, %cst {dimension_numbers = #tpu.dot_dimension_numbers<[1], [0], [0], [1], [0, 0, 1, 1], [], []>} : vector<256x256xbf16>, vector<256x128xbf16>, vector<256x128xf32> -> vector<256x128xf32>
    %7 = arith.addf %3, %6 : vector<256x128xf32>
    %c0_6 = arith.constant 0 : index
    %c0_7 = arith.constant 0 : index
    %8 = vector.load %arg6[%c0_6, %c0_7] : memref<256x128xf32, #tpu.memory_space<vmem>>, vector<256x128xf32>
    tpu.vector_store %arg6[%c0_6, %c0_7], %7 {strides = array<i32>} : memref<256x128xf32, #tpu.memory_space<vmem>>, vector<256x128xf32>,
    %c0_i32_8 = arith.constant 0 : i32
    %9 = arith.cmpi eq, %arg2, %c0_i32_8 : i32
    %10 = arith.extui %9 : i1 to i32
    %c0_i32_9 = arith.constant 0 : i32
    %11 = arith.cmpi ne, %10, %c0_i32_9 : i32
    scf.if %11 {
      %c0_10 = arith.constant 0 : index
      %c0_11 = arith.constant 0 : index
      %12 = vector.load %arg6[%c0_10, %c0_11] : memref<256x128xf32, #tpu.memory_space<vmem>>, vector<256x128xf32>
      %cst_12 = arith.constant dense<0.000000e+00> : vector<128xf32>
      %13 = vector.multi_reduction <add>, %12, %cst_12 [0] : vector<256x128xf32> to vector<128xf32>
      %14 = vector.shape_cast %13 : vector<128xf32> to vector<1x128xf32>
      %cst_13 = arith.constant 2.560000e+02 : f32
      %15 = vector.broadcast %cst_13 : f32 to vector<1x128xf32>
      %16 = arith.divf %14, %15 : vector<1x128xf32>
      %17 = vector.broadcast %16 : vector<1x128xf32> to vector<256x128xf32>
      %18 = arith.subf %12, %17 : vector<256x128xf32>
      %19 = arith.mulf %18, %18 : vector<256x128xf32>
      %cst_14 = arith.constant dense<0.000000e+00> : vector<128xf32>
      %20 = vector.multi_reduction <add>, %19, %cst_14 [0] : vector<256x128xf32> to vector<128xf32>
      %21 = vector.shape_cast %20 : vector<128xf32> to vector<1x128xf32>
      %cst_15 = arith.constant 2.560000e+02 : f32
      %22 = vector.broadcast %cst_15 : f32 to vector<1x128xf32>
      %23 = arith.divf %21, %22 : vector<1x128xf32>
      %cst_16 = arith.constant 9.99999974E-6 : f32
      %24 = vector.broadcast %cst_16 : f32 to vector<1x128xf32>
      %25 = arith.addf %23, %24 : vector<1x128xf32>
      %26 = math.rsqrt %25 : vector<1x128xf32>
      %27 = vector.broadcast %26 : vector<1x128xf32> to vector<256x128xf32>
      %28 = arith.mulf %18, %27 : vector<256x128xf32>
      %cst_17 = arith.constant 0.000000e+00 : f32
      %29 = vector.broadcast %cst_17 : f32 to vector<256x128xf32>
      %30 = arith.maximumf %28, %29 : vector<256x128xf32>
      %c0_18 = arith.constant 0 : index
      %c0_19 = arith.constant 0 : index
      %31 = vector.load %arg5[%c0_18, %c0_19] : memref<256x128xf32, #tpu.memory_space<vmem>>, vector<256x128xf32>
      tpu.vector_store %arg5[%c0_18, %c0_19], %30 {strides = array<i32>} : memref<256x128xf32, #tpu.memory_space<vmem>>, vector<256x128xf32>,
    } else {
    }
    return
  }
  func.func @transform_0(%arg0: i32, %arg1: i32, %arg2: i32) -> (i32, i32) {
    %c0_i32 = arith.constant 0 : i32
    return %arg0, %arg2 : i32, i32
  }
  func.func @transform_1(%arg0: i32, %arg1: i32, %arg2: i32) -> (i32, i32) {
    %c0_i32 = arith.constant 0 : i32
    return %arg2, %arg1 : i32, i32
  }
  func.func @transform_2(%arg0: i32, %arg1: i32, %arg2: i32) -> (i32, i32) {
    %c0_i32 = arith.constant 0 : i32
    return %arg0, %arg1 : i32, i32
  }
}

module attributes {stable_mosaic.version = 11 : i64} {
  func.func @kernel(%arg0: i32, %arg1: i32, %arg2: i32, %arg3: memref<64x640xbf16, #tpu.memory_space<vmem>>, %arg4: memref<640x128xbf16, #tpu.memory_space<vmem>>, %arg5: memref<64x128xf32, #tpu.memory_space<vmem>>, %arg6: memref<64x128xf32, #tpu.memory_space<vmem>>) attributes {dimension_semantics = [#tpu.dimension_semantics<parallel>, #tpu.dimension_semantics<parallel>, #tpu.dimension_semantics<arbitrary>], iteration_bounds = array<i64: 2, 1, 1>, scalar_prefetch = 0 : i64, scratch_operands = 1 : i64, tpu.core_type = #tpu.core_type<tc>, window_params = [{transform_indices = @transform_0, window_bounds = array<i64: 64, 640>}, {transform_indices = @transform_1, window_bounds = array<i64: 640, 128>}, {transform_indices = @transform_2, window_bounds = array<i64: 64, 128>}]} {
    %c0_i32 = arith.constant 0 : i32
    %0 = arith.cmpi eq, %arg2, %c0_i32 : i32
    %1 = arith.extui %0 : i1 to i32
    %c0_i32_0 = arith.constant 0 : i32
    %2 = arith.cmpi ne, %1, %c0_i32_0 : i32
    scf.if %2 {
      %cst_10 = arith.constant 0.000000e+00 : f32
      %12 = vector.broadcast %cst_10 : f32 to vector<64x128xf32>
      %c0_11 = arith.constant 0 : index
      %c0_12 = arith.constant 0 : index
      %13 = vector.load %arg6[%c0_11, %c0_12] : memref<64x128xf32, #tpu.memory_space<vmem>>, vector<64x128xf32>
      tpu.vector_store %arg6[%c0_11, %c0_12], %12 {strides = array<i32>} : memref<64x128xf32, #tpu.memory_space<vmem>>, vector<64x128xf32>,
    } else {
    }
    %c0 = arith.constant 0 : index
    %c0_1 = arith.constant 0 : index
    %3 = vector.load %arg6[%c0, %c0_1] : memref<64x128xf32, #tpu.memory_space<vmem>>, vector<64x128xf32>
    %c0_2 = arith.constant 0 : index
    %c0_3 = arith.constant 0 : index
    %4 = vector.load %arg3[%c0_2, %c0_3] : memref<64x640xbf16, #tpu.memory_space<vmem>>, vector<64x640xbf16>
    %c0_4 = arith.constant 0 : index
    %c0_5 = arith.constant 0 : index
    %5 = vector.load %arg4[%c0_4, %c0_5] : memref<640x128xbf16, #tpu.memory_space<vmem>>, vector<640x128xbf16>
    %cst = arith.constant dense<0.000000e+00> : vector<64x128xf32>
    %6 = tpu.matmul %4, %5, %cst {dimension_numbers = #tpu.dot_dimension_numbers<[1], [0], [0], [1], [0, 0, 1, 1], [], []>} : vector<64x640xbf16>, vector<640x128xbf16>, vector<64x128xf32> -> vector<64x128xf32>
    %7 = arith.addf %3, %6 : vector<64x128xf32>
    %c0_6 = arith.constant 0 : index
    %c0_7 = arith.constant 0 : index
    %8 = vector.load %arg6[%c0_6, %c0_7] : memref<64x128xf32, #tpu.memory_space<vmem>>, vector<64x128xf32>
    tpu.vector_store %arg6[%c0_6, %c0_7], %7 {strides = array<i32>} : memref<64x128xf32, #tpu.memory_space<vmem>>, vector<64x128xf32>,
    %c0_i32_8 = arith.constant 0 : i32
    %9 = arith.cmpi eq, %arg2, %c0_i32_8 : i32
    %10 = arith.extui %9 : i1 to i32
    %c0_i32_9 = arith.constant 0 : i32
    %11 = arith.cmpi ne, %10, %c0_i32_9 : i32
    scf.if %11 {
      %c0_10 = arith.constant 0 : index
      %c0_11 = arith.constant 0 : index
      %12 = vector.load %arg6[%c0_10, %c0_11] : memref<64x128xf32, #tpu.memory_space<vmem>>, vector<64x128xf32>
      %cst_12 = arith.constant dense<0.000000e+00> : vector<128xf32>
      %13 = vector.multi_reduction <add>, %12, %cst_12 [0] : vector<64x128xf32> to vector<128xf32>
      %14 = vector.shape_cast %13 : vector<128xf32> to vector<1x128xf32>
      %cst_13 = arith.constant 6.400000e+01 : f32
      %15 = vector.broadcast %cst_13 : f32 to vector<1x128xf32>
      %16 = arith.divf %14, %15 : vector<1x128xf32>
      %17 = vector.broadcast %16 : vector<1x128xf32> to vector<64x128xf32>
      %18 = arith.subf %12, %17 : vector<64x128xf32>
      %19 = arith.mulf %18, %18 : vector<64x128xf32>
      %cst_14 = arith.constant dense<0.000000e+00> : vector<128xf32>
      %20 = vector.multi_reduction <add>, %19, %cst_14 [0] : vector<64x128xf32> to vector<128xf32>
      %21 = vector.shape_cast %20 : vector<128xf32> to vector<1x128xf32>
      %cst_15 = arith.constant 6.400000e+01 : f32
      %22 = vector.broadcast %cst_15 : f32 to vector<1x128xf32>
      %23 = arith.divf %21, %22 : vector<1x128xf32>
      %cst_16 = arith.constant 9.99999974E-6 : f32
      %24 = vector.broadcast %cst_16 : f32 to vector<1x128xf32>
      %25 = arith.addf %23, %24 : vector<1x128xf32>
      %26 = math.rsqrt %25 : vector<1x128xf32>
      %27 = vector.broadcast %26 : vector<1x128xf32> to vector<64x128xf32>
      %28 = arith.mulf %18, %27 : vector<64x128xf32>
      %cst_17 = arith.constant 0.000000e+00 : f32
      %29 = vector.broadcast %cst_17 : f32 to vector<64x128xf32>
      %30 = arith.maximumf %28, %29 : vector<64x128xf32>
      %c0_18 = arith.constant 0 : index
      %c0_19 = arith.constant 0 : index
      %31 = vector.load %arg5[%c0_18, %c0_19] : memref<64x128xf32, #tpu.memory_space<vmem>>, vector<64x128xf32>
      tpu.vector_store %arg5[%c0_18, %c0_19], %30 {strides = array<i32>} : memref<64x128xf32, #tpu.memory_space<vmem>>, vector<64x128xf32>,
    } else {
    }
    return
  }
  func.func @transform_0(%arg0: i32, %arg1: i32, %arg2: i32) -> (i32, i32) {
    %c0_i32 = arith.constant 0 : i32
    return %arg0, %arg2 : i32, i32
  }
  func.func @transform_1(%arg0: i32, %arg1: i32, %arg2: i32) -> (i32, i32) {
    %c0_i32 = arith.constant 0 : i32
    return %arg2, %arg1 : i32, i32
  }
  func.func @transform_2(%arg0: i32, %arg1: i32, %arg2: i32) -> (i32, i32) {
    %c0_i32 = arith.constant 0 : i32
    return %arg0, %arg1 : i32, i32
  }
}

module attributes {stable_mosaic.version = 11 : i64} {
  func.func @kernel(%arg0: i32, %arg1: i32, %arg2: i32, %arg3: memref<16x384xbf16, #tpu.memory_space<vmem>>, %arg4: memref<384x256xbf16, #tpu.memory_space<vmem>>, %arg5: memref<16x256xf32, #tpu.memory_space<vmem>>, %arg6: memref<16x256xf32, #tpu.memory_space<vmem>>) attributes {dimension_semantics = [#tpu.dimension_semantics<parallel>, #tpu.dimension_semantics<parallel>, #tpu.dimension_semantics<arbitrary>], iteration_bounds = array<i64: 2, 1, 3>, scalar_prefetch = 0 : i64, scratch_operands = 1 : i64, tpu.core_type = #tpu.core_type<tc>, window_params = [{transform_indices = @transform_0, window_bounds = array<i64: 16, 384>}, {transform_indices = @transform_1, window_bounds = array<i64: 384, 256>}, {transform_indices = @transform_2, window_bounds = array<i64: 16, 256>}]} {
    %c0_i32 = arith.constant 0 : i32
    %0 = arith.cmpi eq, %arg2, %c0_i32 : i32
    %1 = arith.extui %0 : i1 to i32
    %c0_i32_0 = arith.constant 0 : i32
    %2 = arith.cmpi ne, %1, %c0_i32_0 : i32
    scf.if %2 {
      %cst_9 = arith.constant 0.000000e+00 : f32
      %12 = vector.broadcast %cst_9 : f32 to vector<16x256xf32>
      %c0_10 = arith.constant 0 : index
      %c0_11 = arith.constant 0 : index
      %13 = vector.load %arg6[%c0_10, %c0_11] : memref<16x256xf32, #tpu.memory_space<vmem>>, vector<16x256xf32>
      tpu.vector_store %arg6[%c0_10, %c0_11], %12 {strides = array<i32>} : memref<16x256xf32, #tpu.memory_space<vmem>>, vector<16x256xf32>,
    } else {
    }
    %c0 = arith.constant 0 : index
    %c0_1 = arith.constant 0 : index
    %3 = vector.load %arg6[%c0, %c0_1] : memref<16x256xf32, #tpu.memory_space<vmem>>, vector<16x256xf32>
    %c0_2 = arith.constant 0 : index
    %c0_3 = arith.constant 0 : index
    %4 = vector.load %arg3[%c0_2, %c0_3] : memref<16x384xbf16, #tpu.memory_space<vmem>>, vector<16x384xbf16>
    %c0_4 = arith.constant 0 : index
    %c0_5 = arith.constant 0 : index
    %5 = vector.load %arg4[%c0_4, %c0_5] : memref<384x256xbf16, #tpu.memory_space<vmem>>, vector<384x256xbf16>
    %cst = arith.constant dense<0.000000e+00> : vector<16x256xf32>
    %6 = tpu.matmul %4, %5, %cst {dimension_numbers = #tpu.dot_dimension_numbers<[1], [0], [0], [1], [0, 0, 1, 1], [], []>} : vector<16x384xbf16>, vector<384x256xbf16>, vector<16x256xf32> -> vector<16x256xf32>
    %7 = arith.addf %3, %6 : vector<16x256xf32>
    %c0_6 = arith.constant 0 : index
    %c0_7 = arith.constant 0 : index
    %8 = vector.load %arg6[%c0_6, %c0_7] : memref<16x256xf32, #tpu.memory_space<vmem>>, vector<16x256xf32>
    tpu.vector_store %arg6[%c0_6, %c0_7], %7 {strides = array<i32>} : memref<16x256xf32, #tpu.memory_space<vmem>>, vector<16x256xf32>,
    %c2_i32 = arith.constant 2 : i32
    %9 = arith.cmpi eq, %arg2, %c2_i32 : i32
    %10 = arith.extui %9 : i1 to i32
    %c0_i32_8 = arith.constant 0 : i32
    %11 = arith.cmpi ne, %10, %c0_i32_8 : i32
    scf.if %11 {
      %c0_9 = arith.constant 0 : index
      %c0_10 = arith.constant 0 : index
      %12 = vector.load %arg6[%c0_9, %c0_10] : memref<16x256xf32, #tpu.memory_space<vmem>>, vector<16x256xf32>
      %cst_11 = arith.constant dense<0.000000e+00> : vector<256xf32>
      %13 = vector.multi_reduction <add>, %12, %cst_11 [0] : vector<16x256xf32> to vector<256xf32>
      %14 = vector.shape_cast %13 : vector<256xf32> to vector<1x256xf32>
      %cst_12 = arith.constant 1.600000e+01 : f32
      %15 = vector.broadcast %cst_12 : f32 to vector<1x256xf32>
      %16 = arith.divf %14, %15 : vector<1x256xf32>
      %17 = vector.broadcast %16 : vector<1x256xf32> to vector<16x256xf32>
      %18 = arith.subf %12, %17 : vector<16x256xf32>
      %19 = arith.mulf %18, %18 : vector<16x256xf32>
      %cst_13 = arith.constant dense<0.000000e+00> : vector<256xf32>
      %20 = vector.multi_reduction <add>, %19, %cst_13 [0] : vector<16x256xf32> to vector<256xf32>
      %21 = vector.shape_cast %20 : vector<256xf32> to vector<1x256xf32>
      %cst_14 = arith.constant 1.600000e+01 : f32
      %22 = vector.broadcast %cst_14 : f32 to vector<1x256xf32>
      %23 = arith.divf %21, %22 : vector<1x256xf32>
      %cst_15 = arith.constant 9.99999974E-6 : f32
      %24 = vector.broadcast %cst_15 : f32 to vector<1x256xf32>
      %25 = arith.addf %23, %24 : vector<1x256xf32>
      %26 = math.rsqrt %25 : vector<1x256xf32>
      %27 = vector.broadcast %26 : vector<1x256xf32> to vector<16x256xf32>
      %28 = arith.mulf %18, %27 : vector<16x256xf32>
      %cst_16 = arith.constant 0.000000e+00 : f32
      %29 = vector.broadcast %cst_16 : f32 to vector<16x256xf32>
      %30 = arith.maximumf %28, %29 : vector<16x256xf32>
      %c0_17 = arith.constant 0 : index
      %c0_18 = arith.constant 0 : index
      %31 = vector.load %arg5[%c0_17, %c0_18] : memref<16x256xf32, #tpu.memory_space<vmem>>, vector<16x256xf32>
      tpu.vector_store %arg5[%c0_17, %c0_18], %30 {strides = array<i32>} : memref<16x256xf32, #tpu.memory_space<vmem>>, vector<16x256xf32>,
    } else {
    }
    return
  }
  func.func @transform_0(%arg0: i32, %arg1: i32, %arg2: i32) -> (i32, i32) {
    %c0_i32 = arith.constant 0 : i32
    return %arg0, %arg2 : i32, i32
  }
  func.func @transform_1(%arg0: i32, %arg1: i32, %arg2: i32) -> (i32, i32) {
    %c0_i32 = arith.constant 0 : i32
    return %arg2, %arg1 : i32, i32
  }
  func.func @transform_2(%arg0: i32, %arg1: i32, %arg2: i32) -> (i32, i32) {
    %c0_i32 = arith.constant 0 : i32
    return %arg0, %arg1 : i32, i32
  }
}

module attributes {stable_mosaic.version = 11 : i64} {
  func.func @kernel(%arg0: i32, %arg1: i32, %arg2: i32, %arg3: memref<16x768xbf16, #tpu.memory_space<vmem>>, %arg4: memref<768x256xbf16, #tpu.memory_space<vmem>>, %arg5: memref<16x256xf32, #tpu.memory_space<vmem>>, %arg6: memref<16x256xf32, #tpu.memory_space<vmem>>) attributes {dimension_semantics = [#tpu.dimension_semantics<parallel>, #tpu.dimension_semantics<parallel>, #tpu.dimension_semantics<arbitrary>], iteration_bounds = array<i64: 2, 1, 3>, scalar_prefetch = 0 : i64, scratch_operands = 1 : i64, tpu.core_type = #tpu.core_type<tc>, window_params = [{transform_indices = @transform_0, window_bounds = array<i64: 16, 768>}, {transform_indices = @transform_1, window_bounds = array<i64: 768, 256>}, {transform_indices = @transform_2, window_bounds = array<i64: 16, 256>}]} {
    %c0_i32 = arith.constant 0 : i32
    %0 = arith.cmpi eq, %arg2, %c0_i32 : i32
    %1 = arith.extui %0 : i1 to i32
    %c0_i32_0 = arith.constant 0 : i32
    %2 = arith.cmpi ne, %1, %c0_i32_0 : i32
    scf.if %2 {
      %cst_9 = arith.constant 0.000000e+00 : f32
      %12 = vector.broadcast %cst_9 : f32 to vector<16x256xf32>
      %c0_10 = arith.constant 0 : index
      %c0_11 = arith.constant 0 : index
      %13 = vector.load %arg6[%c0_10, %c0_11] : memref<16x256xf32, #tpu.memory_space<vmem>>, vector<16x256xf32>
      tpu.vector_store %arg6[%c0_10, %c0_11], %12 {strides = array<i32>} : memref<16x256xf32, #tpu.memory_space<vmem>>, vector<16x256xf32>,
    } else {
    }
    %c0 = arith.constant 0 : index
    %c0_1 = arith.constant 0 : index
    %3 = vector.load %arg6[%c0, %c0_1] : memref<16x256xf32, #tpu.memory_space<vmem>>, vector<16x256xf32>
    %c0_2 = arith.constant 0 : index
    %c0_3 = arith.constant 0 : index
    %4 = vector.load %arg3[%c0_2, %c0_3] : memref<16x768xbf16, #tpu.memory_space<vmem>>, vector<16x768xbf16>
    %c0_4 = arith.constant 0 : index
    %c0_5 = arith.constant 0 : index
    %5 = vector.load %arg4[%c0_4, %c0_5] : memref<768x256xbf16, #tpu.memory_space<vmem>>, vector<768x256xbf16>
    %cst = arith.constant dense<0.000000e+00> : vector<16x256xf32>
    %6 = tpu.matmul %4, %5, %cst {dimension_numbers = #tpu.dot_dimension_numbers<[1], [0], [0], [1], [0, 0, 1, 1], [], []>} : vector<16x768xbf16>, vector<768x256xbf16>, vector<16x256xf32> -> vector<16x256xf32>
    %7 = arith.addf %3, %6 : vector<16x256xf32>
    %c0_6 = arith.constant 0 : index
    %c0_7 = arith.constant 0 : index
    %8 = vector.load %arg6[%c0_6, %c0_7] : memref<16x256xf32, #tpu.memory_space<vmem>>, vector<16x256xf32>
    tpu.vector_store %arg6[%c0_6, %c0_7], %7 {strides = array<i32>} : memref<16x256xf32, #tpu.memory_space<vmem>>, vector<16x256xf32>,
    %c2_i32 = arith.constant 2 : i32
    %9 = arith.cmpi eq, %arg2, %c2_i32 : i32
    %10 = arith.extui %9 : i1 to i32
    %c0_i32_8 = arith.constant 0 : i32
    %11 = arith.cmpi ne, %10, %c0_i32_8 : i32
    scf.if %11 {
      %c0_9 = arith.constant 0 : index
      %c0_10 = arith.constant 0 : index
      %12 = vector.load %arg6[%c0_9, %c0_10] : memref<16x256xf32, #tpu.memory_space<vmem>>, vector<16x256xf32>
      %cst_11 = arith.constant dense<0.000000e+00> : vector<256xf32>
      %13 = vector.multi_reduction <add>, %12, %cst_11 [0] : vector<16x256xf32> to vector<256xf32>
      %14 = vector.shape_cast %13 : vector<256xf32> to vector<1x256xf32>
      %cst_12 = arith.constant 1.600000e+01 : f32
      %15 = vector.broadcast %cst_12 : f32 to vector<1x256xf32>
      %16 = arith.divf %14, %15 : vector<1x256xf32>
      %17 = vector.broadcast %16 : vector<1x256xf32> to vector<16x256xf32>
      %18 = arith.subf %12, %17 : vector<16x256xf32>
      %19 = arith.mulf %18, %18 : vector<16x256xf32>
      %cst_13 = arith.constant dense<0.000000e+00> : vector<256xf32>
      %20 = vector.multi_reduction <add>, %19, %cst_13 [0] : vector<16x256xf32> to vector<256xf32>
      %21 = vector.shape_cast %20 : vector<256xf32> to vector<1x256xf32>
      %cst_14 = arith.constant 1.600000e+01 : f32
      %22 = vector.broadcast %cst_14 : f32 to vector<1x256xf32>
      %23 = arith.divf %21, %22 : vector<1x256xf32>
      %cst_15 = arith.constant 9.99999974E-6 : f32
      %24 = vector.broadcast %cst_15 : f32 to vector<1x256xf32>
      %25 = arith.addf %23, %24 : vector<1x256xf32>
      %26 = math.rsqrt %25 : vector<1x256xf32>
      %27 = vector.broadcast %26 : vector<1x256xf32> to vector<16x256xf32>
      %28 = arith.mulf %18, %27 : vector<16x256xf32>
      %cst_16 = arith.constant 0.000000e+00 : f32
      %29 = vector.broadcast %cst_16 : f32 to vector<16x256xf32>
      %30 = arith.maximumf %28, %29 : vector<16x256xf32>
      %c0_17 = arith.constant 0 : index
      %c0_18 = arith.constant 0 : index
      %31 = vector.load %arg5[%c0_17, %c0_18] : memref<16x256xf32, #tpu.memory_space<vmem>>, vector<16x256xf32>
      tpu.vector_store %arg5[%c0_17, %c0_18], %30 {strides = array<i32>} : memref<16x256xf32, #tpu.memory_space<vmem>>, vector<16x256xf32>,
    } else {
    }
    return
  }
  func.func @transform_0(%arg0: i32, %arg1: i32, %arg2: i32) -> (i32, i32) {
    %c0_i32 = arith.constant 0 : i32
    return %arg0, %arg2 : i32, i32
  }
  func.func @transform_1(%arg0: i32, %arg1: i32, %arg2: i32) -> (i32, i32) {
    %c0_i32 = arith.constant 0 : i32
    return %arg2, %arg1 : i32, i32
  }
  func.func @transform_2(%arg0: i32, %arg1: i32, %arg2: i32) -> (i32, i32) {
    %c0_i32 = arith.constant 0 : i32
    return %arg0, %arg1 : i32, i32
  }
}

module attributes {stable_mosaic.version = 11 : i64} {
  func.func @kernel(%arg0: i32, %arg1: i32, %arg2: i32, %arg3: memref<16x768xbf16, #tpu.memory_space<vmem>>, %arg4: memref<768x256xbf16, #tpu.memory_space<vmem>>, %arg5: memref<16x256xf32, #tpu.memory_space<vmem>>, %arg6: memref<16x256xf32, #tpu.memory_space<vmem>>, %arg7: memref<16x256xf32, #tpu.memory_space<vmem>>) attributes {dimension_semantics = [#tpu.dimension_semantics<parallel>, #tpu.dimension_semantics<parallel>, #tpu.dimension_semantics<arbitrary>], iteration_bounds = array<i64: 2, 1, 3>, scalar_prefetch = 0 : i64, scratch_operands = 1 : i64, tpu.core_type = #tpu.core_type<tc>, window_params = [{transform_indices = @transform_0, window_bounds = array<i64: 16, 768>}, {transform_indices = @transform_1, window_bounds = array<i64: 768, 256>}, {transform_indices = @transform_2, window_bounds = array<i64: 16, 256>}, {transform_indices = @transform_3, window_bounds = array<i64: 16, 256>}]} {
    %c0_i32 = arith.constant 0 : i32
    %0 = arith.cmpi eq, %arg2, %c0_i32 : i32
    %1 = arith.extui %0 : i1 to i32
    %c0_i32_0 = arith.constant 0 : i32
    %2 = arith.cmpi ne, %1, %c0_i32_0 : i32
    scf.if %2 {
      %cst_9 = arith.constant 0.000000e+00 : f32
      %12 = vector.broadcast %cst_9 : f32 to vector<16x256xf32>
      %c0_10 = arith.constant 0 : index
      %c0_11 = arith.constant 0 : index
      %13 = vector.load %arg7[%c0_10, %c0_11] : memref<16x256xf32, #tpu.memory_space<vmem>>, vector<16x256xf32>
      tpu.vector_store %arg7[%c0_10, %c0_11], %12 {strides = array<i32>} : memref<16x256xf32, #tpu.memory_space<vmem>>, vector<16x256xf32>,
    } else {
    }
    %c0 = arith.constant 0 : index
    %c0_1 = arith.constant 0 : index
    %3 = vector.load %arg7[%c0, %c0_1] : memref<16x256xf32, #tpu.memory_space<vmem>>, vector<16x256xf32>
    %c0_2 = arith.constant 0 : index
    %c0_3 = arith.constant 0 : index
    %4 = vector.load %arg3[%c0_2, %c0_3] : memref<16x768xbf16, #tpu.memory_space<vmem>>, vector<16x768xbf16>
    %c0_4 = arith.constant 0 : index
    %c0_5 = arith.constant 0 : index
    %5 = vector.load %arg4[%c0_4, %c0_5] : memref<768x256xbf16, #tpu.memory_space<vmem>>, vector<768x256xbf16>
    %cst = arith.constant dense<0.000000e+00> : vector<16x256xf32>
    %6 = tpu.matmul %4, %5, %cst {dimension_numbers = #tpu.dot_dimension_numbers<[1], [0], [0], [1], [0, 0, 1, 1], [], []>} : vector<16x768xbf16>, vector<768x256xbf16>, vector<16x256xf32> -> vector<16x256xf32>
    %7 = arith.addf %3, %6 : vector<16x256xf32>
    %c0_6 = arith.constant 0 : index
    %c0_7 = arith.constant 0 : index
    %8 = vector.load %arg7[%c0_6, %c0_7] : memref<16x256xf32, #tpu.memory_space<vmem>>, vector<16x256xf32>
    tpu.vector_store %arg7[%c0_6, %c0_7], %7 {strides = array<i32>} : memref<16x256xf32, #tpu.memory_space<vmem>>, vector<16x256xf32>,
    %c2_i32 = arith.constant 2 : i32
    %9 = arith.cmpi eq, %arg2, %c2_i32 : i32
    %10 = arith.extui %9 : i1 to i32
    %c0_i32_8 = arith.constant 0 : i32
    %11 = arith.cmpi ne, %10, %c0_i32_8 : i32
    scf.if %11 {
      %c0_9 = arith.constant 0 : index
      %c0_10 = arith.constant 0 : index
      %12 = vector.load %arg7[%c0_9, %c0_10] : memref<16x256xf32, #tpu.memory_space<vmem>>, vector<16x256xf32>
      %cst_11 = arith.constant dense<0.000000e+00> : vector<256xf32>
      %13 = vector.multi_reduction <add>, %12, %cst_11 [0] : vector<16x256xf32> to vector<256xf32>
      %14 = vector.shape_cast %13 : vector<256xf32> to vector<1x256xf32>
      %cst_12 = arith.constant 1.600000e+01 : f32
      %15 = vector.broadcast %cst_12 : f32 to vector<1x256xf32>
      %16 = arith.divf %14, %15 : vector<1x256xf32>
      %17 = vector.broadcast %16 : vector<1x256xf32> to vector<16x256xf32>
      %18 = arith.subf %12, %17 : vector<16x256xf32>
      %19 = arith.mulf %18, %18 : vector<16x256xf32>
      %cst_13 = arith.constant dense<0.000000e+00> : vector<256xf32>
      %20 = vector.multi_reduction <add>, %19, %cst_13 [0] : vector<16x256xf32> to vector<256xf32>
      %21 = vector.shape_cast %20 : vector<256xf32> to vector<1x256xf32>
      %cst_14 = arith.constant 1.600000e+01 : f32
      %22 = vector.broadcast %cst_14 : f32 to vector<1x256xf32>
      %23 = arith.divf %21, %22 : vector<1x256xf32>
      %cst_15 = arith.constant 9.99999974E-6 : f32
      %24 = vector.broadcast %cst_15 : f32 to vector<1x256xf32>
      %25 = arith.addf %23, %24 : vector<1x256xf32>
      %26 = math.rsqrt %25 : vector<1x256xf32>
      %27 = vector.broadcast %26 : vector<1x256xf32> to vector<16x256xf32>
      %28 = arith.mulf %18, %27 : vector<16x256xf32>
      %c0_16 = arith.constant 0 : index
      %c0_17 = arith.constant 0 : index
      %29 = vector.load %arg5[%c0_16, %c0_17] : memref<16x256xf32, #tpu.memory_space<vmem>>, vector<16x256xf32>
      %30 = arith.addf %28, %29 : vector<16x256xf32>
      %c0_18 = arith.constant 0 : index
      %c0_19 = arith.constant 0 : index
      %31 = vector.load %arg6[%c0_18, %c0_19] : memref<16x256xf32, #tpu.memory_space<vmem>>, vector<16x256xf32>
      tpu.vector_store %arg6[%c0_18, %c0_19], %30 {strides = array<i32>} : memref<16x256xf32, #tpu.memory_space<vmem>>, vector<16x256xf32>,
    } else {
    }
    return
  }
  func.func @transform_0(%arg0: i32, %arg1: i32, %arg2: i32) -> (i32, i32) {
    %c0_i32 = arith.constant 0 : i32
    return %arg0, %arg2 : i32, i32
  }
  func.func @transform_1(%arg0: i32, %arg1: i32, %arg2: i32) -> (i32, i32) {
    %c0_i32 = arith.constant 0 : i32
    return %arg2, %arg1 : i32, i32
  }
  func.func @transform_2(%arg0: i32, %arg1: i32, %arg2: i32) -> (i32, i32) {
    %c0_i32 = arith.constant 0 : i32
    return %arg0, %arg1 : i32, i32
  }
  func.func @transform_3(%arg0: i32, %arg1: i32, %arg2: i32) -> (i32, i32) {
    %c0_i32 = arith.constant 0 : i32
    return %arg0, %arg1 : i32, i32
  }
}

module attributes {stable_mosaic.version = 11 : i64} {
  func.func @kernel(%arg0: i32, %arg1: i32, %arg2: i32, %arg3: memref<32x1024xbf16, #tpu.memory_space<vmem>>, %arg4: memref<1024x256xbf16, #tpu.memory_space<vmem>>, %arg5: memref<32x256xf32, #tpu.memory_space<vmem>>, %arg6: memref<32x256xf32, #tpu.memory_space<vmem>>) attributes {dimension_semantics = [#tpu.dimension_semantics<parallel>, #tpu.dimension_semantics<parallel>, #tpu.dimension_semantics<arbitrary>], iteration_bounds = array<i64: 1, 2, 1>, scalar_prefetch = 0 : i64, scratch_operands = 1 : i64, tpu.core_type = #tpu.core_type<tc>, window_params = [{transform_indices = @transform_0, window_bounds = array<i64: 32, 1024>}, {transform_indices = @transform_1, window_bounds = array<i64: 1024, 256>}, {transform_indices = @transform_2, window_bounds = array<i64: 32, 256>}]} {
    %c0_i32 = arith.constant 0 : i32
    %0 = arith.cmpi eq, %arg2, %c0_i32 : i32
    %1 = arith.extui %0 : i1 to i32
    %c0_i32_0 = arith.constant 0 : i32
    %2 = arith.cmpi ne, %1, %c0_i32_0 : i32
    scf.if %2 {
      %cst_10 = arith.constant 0.000000e+00 : f32
      %12 = vector.broadcast %cst_10 : f32 to vector<32x256xf32>
      %c0_11 = arith.constant 0 : index
      %c0_12 = arith.constant 0 : index
      %13 = vector.load %arg6[%c0_11, %c0_12] : memref<32x256xf32, #tpu.memory_space<vmem>>, vector<32x256xf32>
      tpu.vector_store %arg6[%c0_11, %c0_12], %12 {strides = array<i32>} : memref<32x256xf32, #tpu.memory_space<vmem>>, vector<32x256xf32>,
    } else {
    }
    %c0 = arith.constant 0 : index
    %c0_1 = arith.constant 0 : index
    %3 = vector.load %arg6[%c0, %c0_1] : memref<32x256xf32, #tpu.memory_space<vmem>>, vector<32x256xf32>
    %c0_2 = arith.constant 0 : index
    %c0_3 = arith.constant 0 : index
    %4 = vector.load %arg3[%c0_2, %c0_3] : memref<32x1024xbf16, #tpu.memory_space<vmem>>, vector<32x1024xbf16>
    %c0_4 = arith.constant 0 : index
    %c0_5 = arith.constant 0 : index
    %5 = vector.load %arg4[%c0_4, %c0_5] : memref<1024x256xbf16, #tpu.memory_space<vmem>>, vector<1024x256xbf16>
    %cst = arith.constant dense<0.000000e+00> : vector<32x256xf32>
    %6 = tpu.matmul %4, %5, %cst {dimension_numbers = #tpu.dot_dimension_numbers<[1], [0], [0], [1], [0, 0, 1, 1], [], []>} : vector<32x1024xbf16>, vector<1024x256xbf16>, vector<32x256xf32> -> vector<32x256xf32>
    %7 = arith.addf %3, %6 : vector<32x256xf32>
    %c0_6 = arith.constant 0 : index
    %c0_7 = arith.constant 0 : index
    %8 = vector.load %arg6[%c0_6, %c0_7] : memref<32x256xf32, #tpu.memory_space<vmem>>, vector<32x256xf32>
    tpu.vector_store %arg6[%c0_6, %c0_7], %7 {strides = array<i32>} : memref<32x256xf32, #tpu.memory_space<vmem>>, vector<32x256xf32>,
    %c0_i32_8 = arith.constant 0 : i32
    %9 = arith.cmpi eq, %arg2, %c0_i32_8 : i32
    %10 = arith.extui %9 : i1 to i32
    %c0_i32_9 = arith.constant 0 : i32
    %11 = arith.cmpi ne, %10, %c0_i32_9 : i32
    scf.if %11 {
      %c0_10 = arith.constant 0 : index
      %c0_11 = arith.constant 0 : index
      %12 = vector.load %arg6[%c0_10, %c0_11] : memref<32x256xf32, #tpu.memory_space<vmem>>, vector<32x256xf32>
      %c0_12 = arith.constant 0 : index
      %c0_13 = arith.constant 0 : index
      %13 = vector.load %arg5[%c0_12, %c0_13] : memref<32x256xf32, #tpu.memory_space<vmem>>, vector<32x256xf32>
      tpu.vector_store %arg5[%c0_12, %c0_13], %12 {strides = array<i32>} : memref<32x256xf32, #tpu.memory_space<vmem>>, vector<32x256xf32>,
    } else {
    }
    return
  }
  func.func @transform_0(%arg0: i32, %arg1: i32, %arg2: i32) -> (i32, i32) {
    %c0_i32 = arith.constant 0 : i32
    return %arg0, %arg2 : i32, i32
  }
  func.func @transform_1(%arg0: i32, %arg1: i32, %arg2: i32) -> (i32, i32) {
    %c0_i32 = arith.constant 0 : i32
    return %arg2, %arg1 : i32, i32
  }
  func.func @transform_2(%arg0: i32, %arg1: i32, %arg2: i32) -> (i32, i32) {
    %c0_i32 = arith.constant 0 : i32
    return %arg0, %arg1 : i32, i32
  }
}

module attributes {stable_mosaic.version = 11 : i64} {
  func.func @kern(%arg0: i32, %arg1: memref<1x64x128xf32, #tpu.memory_space<vmem>>, %arg2: memref<1x64x128xf32, #tpu.memory_space<vmem>>) attributes {dimension_semantics = [#tpu.dimension_semantics<parallel>], iteration_bounds = array<i64: 2>, scalar_prefetch = 0 : i64, scratch_operands = 0 : i64, tpu.core_type = #tpu.core_type<tc>, window_params = [{transform_indices = @transform_0, window_bounds = array<i64: 1, 64, 128>}, {transform_indices = @transform_1, window_bounds = array<i64: 1, 64, 128>}]} {
    %c0 = arith.constant 0 : index
    %c0_0 = arith.constant 0 : index
    %c0_1 = arith.constant 0 : index
    %0 = vector.load %arg1[%c0, %c0_0, %c0_1] : memref<1x64x128xf32, #tpu.memory_space<vmem>>, vector<1x64x128xf32>
    %cst = arith.constant dense<0.000000e+00> : vector<1x128xf32>
    %1 = vector.multi_reduction <add>, %0, %cst [1] : vector<1x64x128xf32> to vector<1x128xf32>
    %2 = vector.shape_cast %1 : vector<1x128xf32> to vector<1x1x128xf32>
    %cst_2 = arith.constant 6.400000e+01 : f32
    %3 = vector.broadcast %cst_2 : f32 to vector<1x1x128xf32>
    %4 = arith.divf %2, %3 : vector<1x1x128xf32>
    %5 = vector.broadcast %4 : vector<1x1x128xf32> to vector<1x64x128xf32>
    %6 = arith.subf %0, %5 : vector<1x64x128xf32>
    %7 = arith.mulf %6, %6 : vector<1x64x128xf32>
    %cst_3 = arith.constant dense<0.000000e+00> : vector<1x128xf32>
    %8 = vector.multi_reduction <add>, %7, %cst_3 [1] : vector<1x64x128xf32> to vector<1x128xf32>
    %9 = vector.shape_cast %8 : vector<1x128xf32> to vector<1x1x128xf32>
    %cst_4 = arith.constant 6.400000e+01 : f32
    %10 = vector.broadcast %cst_4 : f32 to vector<1x1x128xf32>
    %11 = arith.divf %9, %10 : vector<1x1x128xf32>
    %cst_5 = arith.constant 9.99999974E-6 : f32
    %12 = vector.broadcast %cst_5 : f32 to vector<1x1x128xf32>
    %13 = arith.addf %11, %12 : vector<1x1x128xf32>
    %14 = math.rsqrt %13 : vector<1x1x128xf32>
    %15 = vector.broadcast %14 : vector<1x1x128xf32> to vector<1x64x128xf32>
    %16 = arith.mulf %6, %15 : vector<1x64x128xf32>
    %cst_6 = arith.constant 0.000000e+00 : f32
    %17 = vector.broadcast %cst_6 : f32 to vector<1x64x128xf32>
    %18 = arith.maximumf %16, %17 : vector<1x64x128xf32>
    %c0_7 = arith.constant 0 : index
    %c0_8 = arith.constant 0 : index
    %c0_9 = arith.constant 0 : index
    %19 = vector.load %arg2[%c0_7, %c0_8, %c0_9] : memref<1x64x128xf32, #tpu.memory_space<vmem>>, vector<1x64x128xf32>
    tpu.vector_store %arg2[%c0_7, %c0_8, %c0_9], %18 {strides = array<i32>} : memref<1x64x128xf32, #tpu.memory_space<vmem>>, vector<1x64x128xf32>,
    return
  }
  func.func @transform_0(%arg0: i32) -> (i32, i32, i32) {
    %c0_i32 = arith.constant 0 : i32
    %c0_i32_0 = arith.constant 0 : i32
    %c0_i32_1 = arith.constant 0 : i32
    return %arg0, %c0_i32, %c0_i32_0 : i32, i32, i32
  }
  func.func @transform_1(%arg0: i32) -> (i32, i32, i32) {
    %c0_i32 = arith.constant 0 : i32
    %c0_i32_0 = arith.constant 0 : i32
    %c0_i32_1 = arith.constant 0 : i32
    return %arg0, %c0_i32, %c0_i32_0 : i32, i32, i32
  }
}

module attributes {stable_mosaic.version = 11 : i64} {
  func.func @kernel(%arg0: i32, %arg1: i32, %arg2: i32, %arg3: memref<128x512xbf16, #tpu.memory_space<vmem>>, %arg4: memref<512x256xbf16, #tpu.memory_space<vmem>>, %arg5: memref<128x256xf32, #tpu.memory_space<vmem>>, %arg6: memref<128x256xf32, #tpu.memory_space<vmem>>) attributes {dimension_semantics = [#tpu.dimension_semantics<parallel>, #tpu.dimension_semantics<parallel>, #tpu.dimension_semantics<arbitrary>], iteration_bounds = array<i64: 1, 1, 1>, scalar_prefetch = 0 : i64, scratch_operands = 1 : i64, tpu.core_type = #tpu.core_type<tc>, window_params = [{transform_indices = @transform_0, window_bounds = array<i64: 128, 512>}, {transform_indices = @transform_1, window_bounds = array<i64: 512, 256>}, {transform_indices = @transform_2, window_bounds = array<i64: 128, 256>}]} {
    %c0_i32 = arith.constant 0 : i32
    %0 = arith.cmpi eq, %arg2, %c0_i32 : i32
    %1 = arith.extui %0 : i1 to i32
    %c0_i32_0 = arith.constant 0 : i32
    %2 = arith.cmpi ne, %1, %c0_i32_0 : i32
    scf.if %2 {
      %cst_10 = arith.constant 0.000000e+00 : f32
      %12 = vector.broadcast %cst_10 : f32 to vector<128x256xf32>
      %c0_11 = arith.constant 0 : index
      %c0_12 = arith.constant 0 : index
      %13 = vector.load %arg6[%c0_11, %c0_12] : memref<128x256xf32, #tpu.memory_space<vmem>>, vector<128x256xf32>
      tpu.vector_store %arg6[%c0_11, %c0_12], %12 {strides = array<i32>} : memref<128x256xf32, #tpu.memory_space<vmem>>, vector<128x256xf32>,
    } else {
    }
    %c0 = arith.constant 0 : index
    %c0_1 = arith.constant 0 : index
    %3 = vector.load %arg6[%c0, %c0_1] : memref<128x256xf32, #tpu.memory_space<vmem>>, vector<128x256xf32>
    %c0_2 = arith.constant 0 : index
    %c0_3 = arith.constant 0 : index
    %4 = vector.load %arg3[%c0_2, %c0_3] : memref<128x512xbf16, #tpu.memory_space<vmem>>, vector<128x512xbf16>
    %c0_4 = arith.constant 0 : index
    %c0_5 = arith.constant 0 : index
    %5 = vector.load %arg4[%c0_4, %c0_5] : memref<512x256xbf16, #tpu.memory_space<vmem>>, vector<512x256xbf16>
    %cst = arith.constant dense<0.000000e+00> : vector<128x256xf32>
    %6 = tpu.matmul %4, %5, %cst {dimension_numbers = #tpu.dot_dimension_numbers<[1], [0], [0], [1], [0, 0, 1, 1], [], []>} : vector<128x512xbf16>, vector<512x256xbf16>, vector<128x256xf32> -> vector<128x256xf32>
    %7 = arith.addf %3, %6 : vector<128x256xf32>
    %c0_6 = arith.constant 0 : index
    %c0_7 = arith.constant 0 : index
    %8 = vector.load %arg6[%c0_6, %c0_7] : memref<128x256xf32, #tpu.memory_space<vmem>>, vector<128x256xf32>
    tpu.vector_store %arg6[%c0_6, %c0_7], %7 {strides = array<i32>} : memref<128x256xf32, #tpu.memory_space<vmem>>, vector<128x256xf32>,
    %c0_i32_8 = arith.constant 0 : i32
    %9 = arith.cmpi eq, %arg2, %c0_i32_8 : i32
    %10 = arith.extui %9 : i1 to i32
    %c0_i32_9 = arith.constant 0 : i32
    %11 = arith.cmpi ne, %10, %c0_i32_9 : i32
    scf.if %11 {
      %c0_10 = arith.constant 0 : index
      %c0_11 = arith.constant 0 : index
      %12 = vector.load %arg6[%c0_10, %c0_11] : memref<128x256xf32, #tpu.memory_space<vmem>>, vector<128x256xf32>
      %c0_12 = arith.constant 0 : index
      %c0_13 = arith.constant 0 : index
      %13 = vector.load %arg5[%c0_12, %c0_13] : memref<128x256xf32, #tpu.memory_space<vmem>>, vector<128x256xf32>
      tpu.vector_store %arg5[%c0_12, %c0_13], %12 {strides = array<i32>} : memref<128x256xf32, #tpu.memory_space<vmem>>, vector<128x256xf32>,
    } else {
    }
    return
  }
  func.func @transform_0(%arg0: i32, %arg1: i32, %arg2: i32) -> (i32, i32) {
    %c0_i32 = arith.constant 0 : i32
    return %arg0, %arg2 : i32, i32
  }
  func.func @transform_1(%arg0: i32, %arg1: i32, %arg2: i32) -> (i32, i32) {
    %c0_i32 = arith.constant 0 : i32
    return %arg2, %arg1 : i32, i32
  }
  func.func @transform_2(%arg0: i32, %arg1: i32, %arg2: i32) -> (i32, i32) {
    %c0_i32 = arith.constant 0 : i32
    return %arg0, %arg1 : i32, i32
  }
}

module attributes {stable_mosaic.version = 11 : i64} {
  func.func @kern(%arg0: i32, %arg1: memref<1x256x64xf32, #tpu.memory_space<vmem>>, %arg2: memref<1x256x64xf32, #tpu.memory_space<vmem>>) attributes {dimension_semantics = [#tpu.dimension_semantics<parallel>], iteration_bounds = array<i64: 2>, scalar_prefetch = 0 : i64, scratch_operands = 0 : i64, tpu.core_type = #tpu.core_type<tc>, window_params = [{transform_indices = @transform_0, window_bounds = array<i64: 1, 256, 64>}, {transform_indices = @transform_1, window_bounds = array<i64: 1, 256, 64>}]} {
    %c0 = arith.constant 0 : index
    %c0_0 = arith.constant 0 : index
    %c0_1 = arith.constant 0 : index
    %0 = vector.load %arg1[%c0, %c0_0, %c0_1] : memref<1x256x64xf32, #tpu.memory_space<vmem>>, vector<1x256x64xf32>
    %cst = arith.constant dense<0.000000e+00> : vector<1x64xf32>
    %1 = vector.multi_reduction <add>, %0, %cst [1] : vector<1x256x64xf32> to vector<1x64xf32>
    %2 = vector.shape_cast %1 : vector<1x64xf32> to vector<1x1x64xf32>
    %cst_2 = arith.constant 2.560000e+02 : f32
    %3 = vector.broadcast %cst_2 : f32 to vector<1x1x64xf32>
    %4 = arith.divf %2, %3 : vector<1x1x64xf32>
    %5 = vector.broadcast %4 : vector<1x1x64xf32> to vector<1x256x64xf32>
    %6 = arith.subf %0, %5 : vector<1x256x64xf32>
    %7 = arith.mulf %6, %6 : vector<1x256x64xf32>
    %cst_3 = arith.constant dense<0.000000e+00> : vector<1x64xf32>
    %8 = vector.multi_reduction <add>, %7, %cst_3 [1] : vector<1x256x64xf32> to vector<1x64xf32>
    %9 = vector.shape_cast %8 : vector<1x64xf32> to vector<1x1x64xf32>
    %cst_4 = arith.constant 2.560000e+02 : f32
    %10 = vector.broadcast %cst_4 : f32 to vector<1x1x64xf32>
    %11 = arith.divf %9, %10 : vector<1x1x64xf32>
    %cst_5 = arith.constant 9.99999974E-6 : f32
    %12 = vector.broadcast %cst_5 : f32 to vector<1x1x64xf32>
    %13 = arith.addf %11, %12 : vector<1x1x64xf32>
    %14 = math.rsqrt %13 : vector<1x1x64xf32>
    %15 = vector.broadcast %14 : vector<1x1x64xf32> to vector<1x256x64xf32>
    %16 = arith.mulf %6, %15 : vector<1x256x64xf32>
    %cst_6 = arith.constant 0.000000e+00 : f32
    %17 = vector.broadcast %cst_6 : f32 to vector<1x256x64xf32>
    %18 = arith.maximumf %16, %17 : vector<1x256x64xf32>
    %c0_7 = arith.constant 0 : index
    %c0_8 = arith.constant 0 : index
    %c0_9 = arith.constant 0 : index
    %19 = vector.load %arg2[%c0_7, %c0_8, %c0_9] : memref<1x256x64xf32, #tpu.memory_space<vmem>>, vector<1x256x64xf32>
    tpu.vector_store %arg2[%c0_7, %c0_8, %c0_9], %18 {strides = array<i32>} : memref<1x256x64xf32, #tpu.memory_space<vmem>>, vector<1x256x64xf32>,
    return
  }
  func.func @transform_0(%arg0: i32) -> (i32, i32, i32) {
    %c0_i32 = arith.constant 0 : i32
    %c0_i32_0 = arith.constant 0 : i32
    %c0_i32_1 = arith.constant 0 : i32
    return %arg0, %c0_i32, %c0_i32_0 : i32, i32, i32
  }
  func.func @transform_1(%arg0: i32) -> (i32, i32, i32) {
    %c0_i32 = arith.constant 0 : i32
    %c0_i32_0 = arith.constant 0 : i32
    %c0_i32_1 = arith.constant 0 : i32
    return %arg0, %c0_i32, %c0_i32_0 : i32, i32, i32
  }
}

module attributes {stable_mosaic.version = 11 : i64} {
  func.func @kernel(%arg0: i32, %arg1: i32, %arg2: i32, %arg3: memref<256x640xbf16, #tpu.memory_space<vmem>>, %arg4: memref<640x128xbf16, #tpu.memory_space<vmem>>, %arg5: memref<1x128xf32, #tpu.memory_space<vmem>>, %arg6: memref<256x128xf32, #tpu.memory_space<vmem>>, %arg7: memref<256x128xf32, #tpu.memory_space<vmem>>) attributes {dimension_semantics = [#tpu.dimension_semantics<parallel>, #tpu.dimension_semantics<parallel>, #tpu.dimension_semantics<arbitrary>], iteration_bounds = array<i64: 2, 1, 5>, scalar_prefetch = 0 : i64, scratch_operands = 1 : i64, tpu.core_type = #tpu.core_type<tc>, window_params = [{transform_indices = @transform_0, window_bounds = array<i64: 256, 640>}, {transform_indices = @transform_1, window_bounds = array<i64: 640, 128>}, {transform_indices = @transform_2, window_bounds = array<i64: 1, 128>}, {transform_indices = @transform_3, window_bounds = array<i64: 256, 128>}]} {
    %c0_i32 = arith.constant 0 : i32
    %0 = arith.cmpi eq, %arg2, %c0_i32 : i32
    %1 = arith.extui %0 : i1 to i32
    %c0_i32_0 = arith.constant 0 : i32
    %2 = arith.cmpi ne, %1, %c0_i32_0 : i32
    scf.if %2 {
      %cst_9 = arith.constant 0.000000e+00 : f32
      %12 = vector.broadcast %cst_9 : f32 to vector<256x128xf32>
      %c0_10 = arith.constant 0 : index
      %c0_11 = arith.constant 0 : index
      %13 = vector.load %arg7[%c0_10, %c0_11] : memref<256x128xf32, #tpu.memory_space<vmem>>, vector<256x128xf32>
      tpu.vector_store %arg7[%c0_10, %c0_11], %12 {strides = array<i32>} : memref<256x128xf32, #tpu.memory_space<vmem>>, vector<256x128xf32>,
    } else {
    }
    %c0 = arith.constant 0 : index
    %c0_1 = arith.constant 0 : index
    %3 = vector.load %arg7[%c0, %c0_1] : memref<256x128xf32, #tpu.memory_space<vmem>>, vector<256x128xf32>
    %c0_2 = arith.constant 0 : index
    %c0_3 = arith.constant 0 : index
    %4 = vector.load %arg3[%c0_2, %c0_3] : memref<256x640xbf16, #tpu.memory_space<vmem>>, vector<256x640xbf16>
    %c0_4 = arith.constant 0 : index
    %c0_5 = arith.constant 0 : index
    %5 = vector.load %arg4[%c0_4, %c0_5] : memref<640x128xbf16, #tpu.memory_space<vmem>>, vector<640x128xbf16>
    %cst = arith.constant dense<0.000000e+00> : vector<256x128xf32>
    %6 = tpu.matmul %4, %5, %cst {dimension_numbers = #tpu.dot_dimension_numbers<[1], [0], [0], [1], [0, 0, 1, 1], [], []>} : vector<256x640xbf16>, vector<640x128xbf16>, vector<256x128xf32> -> vector<256x128xf32>
    %7 = arith.addf %3, %6 : vector<256x128xf32>
    %c0_6 = arith.constant 0 : index
    %c0_7 = arith.constant 0 : index
    %8 = vector.load %arg7[%c0_6, %c0_7] : memref<256x128xf32, #tpu.memory_space<vmem>>, vector<256x128xf32>
    tpu.vector_store %arg7[%c0_6, %c0_7], %7 {strides = array<i32>} : memref<256x128xf32, #tpu.memory_space<vmem>>, vector<256x128xf32>,
    %c4_i32 = arith.constant 4 : i32
    %9 = arith.cmpi eq, %arg2, %c4_i32 : i32
    %10 = arith.extui %9 : i1 to i32
    %c0_i32_8 = arith.constant 0 : i32
    %11 = arith.cmpi ne, %10, %c0_i32_8 : i32
    scf.if %11 {
      %c0_9 = arith.constant 0 : index
      %c0_10 = arith.constant 0 : index
      %12 = vector.load %arg7[%c0_9, %c0_10] : memref<256x128xf32, #tpu.memory_space<vmem>>, vector<256x128xf32>
      %c0_11 = arith.constant 0 : index
      %c0_12 = arith.constant 0 : index
      %13 = vector.load %arg5[%c0_11, %c0_12] : memref<1x128xf32, #tpu.memory_space<vmem>>, vector<1x128xf32>
      %14 = vector.broadcast %13 : vector<1x128xf32> to vector<256x128xf32>
      %15 = arith.addf %12, %14 : vector<256x128xf32>
      %16 = math.tanh %15 : vector<256x128xf32>
      %c0_13 = arith.constant 0 : index
      %c0_14 = arith.constant 0 : index
      %17 = vector.load %arg6[%c0_13, %c0_14] : memref<256x128xf32, #tpu.memory_space<vmem>>, vector<256x128xf32>
      tpu.vector_store %arg6[%c0_13, %c0_14], %16 {strides = array<i32>} : memref<256x128xf32, #tpu.memory_space<vmem>>, vector<256x128xf32>,
    } else {
    }
    return
  }
  func.func @transform_0(%arg0: i32, %arg1: i32, %arg2: i32) -> (i32, i32) {
    %c0_i32 = arith.constant 0 : i32
    return %arg0, %arg2 : i32, i32
  }
  func.func @transform_1(%arg0: i32, %arg1: i32, %arg2: i32) -> (i32, i32) {
    %c0_i32 = arith.constant 0 : i32
    return %arg2, %arg1 : i32, i32
  }
  func.func @transform_2(%arg0: i32, %arg1: i32, %arg2: i32) -> (i32, i32) {
    %c0_i32 = arith.constant 0 : i32
    %c0_i32_0 = arith.constant 0 : i32
    return %c0_i32, %arg1 : i32, i32
  }
  func.func @transform_3(%arg0: i32, %arg1: i32, %arg2: i32) -> (i32, i32) {
    %c0_i32 = arith.constant 0 : i32
    return %arg0, %arg1 : i32, i32
  }
}

</mosaic_0001>

<bundles_post_ra>
// kernel: generator_forward.16
= control target key start
LH: loop header
LB: loop body
LE: loop exit
PB: predicated region body
PF: predicated region fallthrough
CT: control target
= control target key end

     0   :  { %s1535_s9 = smov 0   ;;  %s1537_s10 = smov 0   ;;  %s2071_s0 = inlined_call_operand.vmem [shape: bf16[512,256], index: 0, kind: input, shape index: {}]   ;;  %s2072_s1 = inlined_call_operand.vmem [shape: bf16[256,128], index: 1, kind: input, shape index: {}]   ;;  %s2073_s2 = inlined_call_operand.vmem [shape: f32[512,128], index: 2, kind: output, shape index: {}]  }
   0x1   :  { %s1539_s11 = smov 0  }
   0x2 LB: > { %s31_s12 = sadd.s32 1, %s1514_s10  ;;  %p1221_p0 = scmp.ge.s32.totalorder %s1518_s11, 1  ;;  %s1518_s11 = sphi %s1539_s11, %s12_s11   ;;  %s1514_s10 = sphi %s1537_s10, %s2075_s10   ;;  %s1510_s9 = sphi %s1535_s9, %s2074_s9  }
   0x3   : > { %p33_p1 = scmp.ge.s32.totalorder %s31_s12, 2  ;;  %p158_p2 = scmp.lt.s32.totalorder %s1518_s11, 3 }
   0x5   : > { %s2077_s12 = smov (%p33_p1, %s31_s12), 0  ;;  %p159_p3 = pnand %p1221_p0, %p158_p2 }
   0x6   : > { %s1222_s15 = sshll.u32 (!%p159_p3), %s1510_s9, 5 }
   0x7   : > { %162 = sbr.rel (%p159_p3) target bundleno = 472 (0x1d8), region = 28  ;;  %p198_p4 = scmp.lt.s32.totalorder (!%p159_p3), %s1222_s15, 63 }
   0xc   : > { %v1430_v0 = vld [vmem:[%s2072_s1 + $0x78] sm:$0xff]   ;;  %v1432_v2 = vld [vmem:[%s2072_s1 + $0x70] sm:$0xff]   ;;  %v1434_v4 = vld [vmem:[%s2072_s1 + $0x68] sm:$0xff]   ;;  %s2079_s15 = smov (!%p198_p4, %s1222_s15), 63 }
   0xd   : > { %v1431_v1 = vld [vmem:[%s2072_s1 + $0x38] sm:$0xff]   ;;  %1278 = vmatprep.subr.bf16.mxu0 %v1430_v0  ;;  %1390 = vmatprep.subr.bf16.mxu1 %v1430_v0  ;;  %v1433_v3 = vld [vmem:[%s2072_s1 + $0x30] sm:$0xff]   ;;  %v1435_v5 = vld [vmem:[%s2072_s1 + $0x28] sm:$0xff]   ;;  %s1277_s30 = sshll.u32 %s2079_s15, 3 }
   0xe   : > { %1279 = vmatpush3.bf16.msra.mxu0 %v1431_v1  ;;  %1398 = vmatpush3.bf16.msra.mxu1 %v1431_v1  ;;  %v1436_v6 = vld [vmem:[%s2072_s1 + $0x60] sm:$0xff]   ;;  %v1438_v8 = vld [vmem:[%s2072_s1 + $0x58] sm:$0xff]   ;;  %s1588_s7 = scalar_lea.vmem %s2071_s0, %s1277_s30  ;;  %v1440_v10 = vld [vmem:[%s2072_s1 + $0x50] sm:$0xff]   ;;  %s2008_s28 = scalar_lea.vmem %s2073_s2, %s1277_s30 }
   0xf   : > { %1280 = vmatprep.subr.bf16.mxu0 %v1432_v2  ;;  %1391 = vmatprep.subr.bf16.mxu1 %v1432_v2  ;;  %v1437_v7 = vld [vmem:[%s2072_s1 + $0x20] sm:$0xff]   ;;  %v1439_v9 = vld [vmem:[%s2072_s1 + $0x18] sm:$0xff]   ;;  %v1441_v12 = vld [vmem:[%s2072_s1 + $0x10] sm:$0xff]  }
  0x10   : > { %v1448_v11 = vld [vmem:[%s1588_s7 + $0x4] ss:$8 sps:$4 sm:$0xff]   ;;  %v1446_v18 = vld [vmem:[%s1588_s7] ss:$8 sps:$4 sm:$0xff]   ;;  %v1449_v19 = vld [vmem:[%s1588_s7 + $0x14] ss:$8 sps:$4 sm:$0xff]  }
  0x11   : > { %647 = vmatprep.mubr.bf16.mxu0 %v1448_v11  ;;  %v1442_v13 = vld [vmem:[%s2072_s1 + $0x48] sm:$0xff]   ;;  %v1444_v16 = vld [vmem:[%s2072_s1 + $0x40] sm:$0xff]   ;;  %v1464_v21 = vld [vmem:[%s1588_s7 + $0x94] ss:$8 sps:$4 sm:$0xff]  }
  0x12   : > { %1281 = vmatpush3.bf16.msra.mxu0 %v1433_v3  ;;  %1399 = vmatpush3.bf16.msra.mxu1 %v1433_v3  ;;  %v1460_v14 = vld [vmem:[%s1588_s7 + $0x84] ss:$8 sps:$4 sm:$0xff]   ;;  %v1458_v20 = vld [vmem:[%s1588_s7 + $0x80] ss:$8 sps:$4 sm:$0xff]   ;;  %v1451_v22 = vld [vmem:[%s1588_s7 + $0x10] ss:$8 sps:$4 sm:$0xff]  }
  0x13   : > { %1282 = vmatprep.subr.bf16.mxu0 %v1434_v4  ;;  %1392 = vmatprep.subr.bf16.mxu1 %v1434_v4  ;;  %v1443_v15 = vld [vmem:[%s2072_s1 + $0x8] sm:$0xff]   ;;  %v1445_v17 = vld [vmem:[%s2072_s1] sm:$0xff]   ;;  %v1466_v24 = vld [vmem:[%s1588_s7 + $0x90] ss:$8 sps:$4 sm:$0xff]  }
  0x14   : > { %711 = vmatprep.mubr.bf16.mxu1 %v1460_v14  ;;  %v1452_v23 = vld [vmem:[%s1588_s7 + $0x24] ss:$8 sps:$4 sm:$0xff]   ;;  %v1454_v26 = vld [vmem:[%s1588_s7 + $0x20] ss:$8 sps:$4 sm:$0xff]   ;;  %v1455_v27 = vld [vmem:[%s1588_s7 + $0x34] ss:$8 sps:$4 sm:$0xff]  }
  0x15   : > { %v1470_v25 = vld [vmem:[%s1588_s7 + $0xa4] ss:$8 sps:$4 sm:$0xff]   ;;  %v1472_v28 = vld [vmem:[%s1588_s7 + $0xa0] ss:$8 sps:$4 sm:$0xff]   ;;  %v1476_v29 = vld [vmem:[%s1588_s7 + $0xb4] ss:$8 sps:$4 sm:$0xff]  }
  0x16   : > { %1283 = vmatpush3.bf16.msra.mxu0 %v1435_v5  ;;  %1400 = vmatpush3.bf16.msra.mxu1 %v1435_v5  ;;  %v1457_v30 = vld [vmem:[%s1588_s7 + $0x30] ss:$8 sps:$4 sm:$0xff]   ;;  %v1461_v31 = vld [vmem:[%s1588_s7 + $0x44] ss:$8 sps:$4 sm:$0xff]   ;;  %v1463_v34 = vld [vmem:[%s1588_s7 + $0x40] ss:$8 sps:$4 sm:$0xff]  }
  0x17   : > { %1284 = vmatprep.subr.bf16.mxu0 %v1436_v6  ;;  %1393 = vmatprep.subr.bf16.mxu1 %v1436_v6  ;;  %v1478_v32 = vld [vmem:[%s1588_s7 + $0xb0] ss:$8 sps:$4 sm:$0xff]   ;;  %v1482_v33 = vld [vmem:[%s1588_s7 + $0xc4] ss:$8 sps:$4 sm:$0xff]   ;;  %v1467_v35 = vld [vmem:[%s1588_s7 + $0x54] ss:$8 sps:$4 sm:$0xff]  }
  0x18   : > { %v1484_v36 = vld [vmem:[%s1588_s7 + $0xc0] ss:$8 sps:$4 sm:$0xff]   ;;  %v1485_v37 = vld [vmem:[%s1588_s7 + $0xd4] ss:$8 sps:$4 sm:$0xff]   ;;  %v1469_v38 = vld [vmem:[%s1588_s7 + $0x50] ss:$8 sps:$4 sm:$0xff]  }
  0x19   : > { %v1473_v39 = vld [vmem:[%s1588_s7 + $0x64] ss:$8 sps:$4 sm:$0xff]   ;;  %v1487_v40 = vld [vmem:[%s1588_s7 + $0xd0] ss:$8 sps:$4 sm:$0xff]   ;;  %v1475_v42 = vld [vmem:[%s1588_s7 + $0x60] ss:$8 sps:$4 sm:$0xff]  }
  0x1a   : > { %1285 = vmatpush3.bf16.msra.mxu0 %v1437_v7  ;;  %1401 = vmatpush3.bf16.msra.mxu1 %v1437_v7  ;;  %v1488_v41 = vld [vmem:[%s1588_s7 + $0xe4] ss:$8 sps:$4 sm:$0xff]   ;;  %v1479_v43 = vld [vmem:[%s1588_s7 + $0x74] ss:$8 sps:$4 sm:$0xff]   ;;  %v1490_v44 = vld [vmem:[%s1588_s7 + $0xe0] ss:$8 sps:$4 sm:$0xff]  }
  0x1b   : > { %1286 = vmatprep.subr.bf16.mxu0 %v1438_v8  ;;  %1394 = vmatprep.subr.bf16.mxu1 %v1438_v8  ;;  %v1491_v45 = vld [vmem:[%s1588_s7 + $0xf4] ss:$8 sps:$4 sm:$0xff]   ;;  %v1481_v46 = vld [vmem:[%s1588_s7 + $0x70] ss:$8 sps:$4 sm:$0xff]  }
  0x1c   : > { %v1493_v47 = vld [vmem:[%s1588_s7 + $0xf0] ss:$8 sps:$4 sm:$0xff]  }
  0x1e   : > { %1287 = vmatpush3.bf16.msra.mxu0 %v1439_v9  ;;  %1402 = vmatpush3.bf16.msra.mxu1 %v1439_v9 }
  0x1f   : > { %1288 = vmatprep.subr.bf16.mxu0 %v1440_v10  ;;  %1395 = vmatprep.subr.bf16.mxu1 %v1440_v10 }
  0x22   : > { %1289 = vmatpush3.bf16.msra.mxu0 %v1441_v12  ;;  %1403 = vmatpush3.bf16.msra.mxu1 %v1441_v12 }
  0x23   : > { %1290 = vmatprep.subr.bf16.mxu0 %v1442_v13  ;;  %1396 = vmatprep.subr.bf16.mxu1 %v1442_v13 }
  0x26   : > { %1291 = vmatpush3.bf16.msra.mxu0 %v1443_v15  ;;  %1404 = vmatpush3.bf16.msra.mxu1 %v1443_v15 }
  0x27   : > { %1292 = vmatprep.subr.bf16.mxu0 %v1444_v16  ;;  %1397 = vmatprep.subr.bf16.mxu1 %v1444_v16 }
  0x2a   : > { %1293 = vmatpush3.bf16.msra.mxu0 %v1445_v17  ;;  %1405 = vmatpush3.bf16.msra.mxu1 %v1445_v17 }
  0x2d   : > { %648 = vmatmul.mubr.bf16.vlgmr.msra.gmra.mxu0 %v1446_v18  ;;  %712 = vmatmul.mubr.bf16.vlgmr.msra.gmra.mxu1 %v1458_v20 }
  0x2e   : > { %655 = vmatprep.mubr.bf16.mxu0 %v1449_v19  ;;  %719 = vmatprep.mubr.bf16.mxu1 %v1464_v21 }
  0x35   : > { %656 = vmatmul.mubr.bf16.gmra.mxu0 %v1451_v22  ;;  %720 = vmatmul.mubr.bf16.gmra.mxu1 %v1466_v24 }
  0x36   : > { %663 = vmatprep.mubr.bf16.mxu0 %v1452_v23  ;;  %727 = vmatprep.mubr.bf16.mxu1 %v1470_v25 }
  0x3d   : > { %664 = vmatmul.mubr.bf16.gmra.mxu0 %v1454_v26  ;;  %728 = vmatmul.mubr.bf16.gmra.mxu1 %v1472_v28 }
  0x3e   : > { %671 = vmatprep.mubr.bf16.mxu0 %v1455_v27  ;;  %735 = vmatprep.mubr.bf16.mxu1 %v1476_v29 }
  0x45   : > { %672 = vmatmul.mubr.bf16.gmra.mxu0 %v1457_v30  ;;  %736 = vmatmul.mubr.bf16.gmra.mxu1 %v1478_v32 }
  0x46   : > { %679 = vmatprep.mubr.bf16.mxu0 %v1461_v31  ;;  %743 = vmatprep.mubr.bf16.mxu1 %v1482_v33 }
  0x4d   : > { %680 = vmatmul.mubr.bf16.gmra.mxu0 %v1463_v34  ;;  %744 = vmatmul.mubr.bf16.gmra.mxu1 %v1484_v36 }
  0x4e   : > { %687 = vmatprep.mubr.bf16.mxu0 %v1467_v35  ;;  %751 = vmatprep.mubr.bf16.mxu1 %v1485_v37 }
  0x55   : > { %688 = vmatmul.mubr.bf16.gmra.mxu0 %v1469_v38  ;;  %752 = vmatmul.mubr.bf16.gmra.mxu1 %v1487_v40 }
  0x56   : > { %695 = vmatprep.mubr.bf16.mxu0 %v1473_v39  ;;  %759 = vmatprep.mubr.bf16.mxu1 %v1488_v41 }
  0x5d   : > { %696 = vmatmul.mubr.bf16.gmra.mxu0 %v1475_v42  ;;  %760 = vmatmul.mubr.bf16.gmra.mxu1 %v1490_v44 }
  0x5e   : > { %703 = vmatprep.mubr.bf16.mxu0 %v1479_v43  ;;  %767 = vmatprep.mubr.bf16.mxu1 %v1491_v45 }
  0x65   : > { %704 = vmatmul.mubr.bf16.gmra.mxu0 %v1481_v46  ;;  %768 = vmatmul.mubr.bf16.gmra.mxu1 %v1493_v47 }
  0xed   : > { %v1294_v48 = vpop.f32.mrf.mxu0  ;;  %v1643_v49 = vpop.f32.mrf.mxu1 }
  0xef   : > { %v1295_v50 = vpop.f32.mrf.mxu0  ;;  %v1645_v51 = vpop.f32.mrf.mxu1 }
  0xf0   : > { %v1679_v20 = vadd.f32 %v1295_v50, %v1294_v48 }
  0xf1   : > { %v1297_v52 = vpop.f32.mrf.mxu0  ;;  %v1647_v53 = vpop.f32.mrf.mxu1 }
  0xf3   : > { %v1298_v54 = vpop.f32.mrf.mxu0  ;;  %v1649_v55 = vpop.f32.mrf.mxu1 }
  0xf4   : > { %v1675_v17 = vadd.f32 %v1298_v54, %v1297_v52 }
  0xf5   : > { %v1300_v56 = vpop.f32.mrf.mxu0  ;;  %v1651_v57 = vpop.f32.mrf.mxu1 }
  0xf6   : > { %v875_v24 = vadd.f32 %v1675_v17, %v1679_v20 }
  0xf7   : > { %v1301_v58 = vpop.f32.mrf.mxu0  ;;  %v1653_v59 = vpop.f32.mrf.mxu1 }
  0xf8   : > { %v1681_v21 = vadd.f32 %v1301_v58, %v1300_v56 }
  0xf9   : > { %v1303_v60 = vpop.f32.mrf.mxu0  ;;  %v1655_v61 = vpop.f32.mrf.mxu1 }
  0xfa   : > { %v876_v27 = vadd.f32 %v1681_v21, %v875_v24 }
  0xfb   : > { %v1304_v62 = vpop.f32.mrf.mxu0  ;;  %v1657_v63 = vpop.f32.mrf.mxu1 }
  0xfc   : > { %v1687_v25 = vadd.f32 %v1304_v62, %v1303_v60 }
  0xfd   : > { %v1306_v0 = vpop.f32.mrf.mxu0  ;;  %v1659_v1 = vpop.f32.mrf.mxu1 }
  0xfe   : > { %v877_v31 = vadd.f32 %v1687_v25, %v876_v27 }
  0xff   : > { %v1307_v2 = vpop.f32.mrf.mxu0  ;;  %v1661_v3 = vpop.f32.mrf.mxu1 }
 0x100   : > { %v1690_v28 = vadd.f32 %v1307_v2, %v1306_v0 }
 0x101   : > { %v1309_v4 = vpop.f32.mrf.mxu0  ;;  %v1663_v5 = vpop.f32.mrf.mxu1 }
 0x102   : > { %v878_v34 = vadd.f32 %v1690_v28, %v877_v31  ;;  %v1730_v31 = vadd.f32 %v1645_v51, %v1643_v49 }
 0x103   : > { %v1310_v6 = vpop.f32.mrf.mxu0  ;;  %v1665_v7 = vpop.f32.mrf.mxu1 }
 0x104   : > { %v1695_v32 = vadd.f32 %v1310_v6, %v1309_v4 }
 0x105   : > { %v1312_v8 = vpop.f32.mrf.mxu0  ;;  %v1667_v9 = vpop.f32.mrf.mxu1 }
 0x106   : > { %v879_v38 = vadd.f32 %v1695_v32, %v878_v34  ;;  %v1735_v34 = vadd.f32 %v1649_v55, %v1647_v53  ;;  %v1750_v53 = vadd.f32 %v1661_v3, %v1659_v1 }
 0x107   : > { %v1313_v10 = vpop.f32.mrf.mxu0  ;;  %v1669_v11 = vpop.f32.mrf.mxu1 }
 0x108   : > { %v1698_v35 = vadd.f32 %v1313_v10, %v1312_v8 }
 0x109   : > { %v1315_v12 = vpop.f32.mrf.mxu0  ;;  %v1671_v13 = vpop.f32.mrf.mxu1 }
 0x10a   : > { %v880_v41 = vadd.f32 %v1698_v35, %v879_v38 }
 0x10b   : > { %v1316_v14 = vpop.f32.mrf.mxu0  ;;  %v1673_v15 = vpop.f32.mrf.mxu1 }
 0x10c   : > { %v1701_v39 = vadd.f32 %v1316_v14, %v1315_v12 }
 0x10d   : > { %v1318_v16 = vpop.f32.mrf.mxu0  ;;  %v1677_v18 = vpop.f32.mrf.mxu1 }
 0x10e   : > { %v881_v45 = vadd.f32 %v1701_v39, %v880_v41 }
 0x10f   : > { %v1319_v19 = vpop.f32.mrf.mxu0  ;;  %v1683_v23 = vpop.f32.mrf.mxu1 }
 0x110   : > { %v1704_v42 = vadd.f32 %v1319_v19, %v1318_v16 }
 0x111   : > { %v1321_v22 = vpop.f32.mrf.mxu0  ;;  %v1692_v30 = vpop.f32.mrf.mxu1 }
 0x112   : > { %v882_v48 = vadd.f32 %v1704_v42, %v881_v45  ;;  %v1755_v45 = vadd.f32 %v1665_v7, %v1663_v5  ;;  %v1770_v5 = vadd.f32 %v1683_v23, %v1677_v18 }
 0x113   : > { %v1322_v26 = vpop.f32.mrf.mxu0  ;;  %v1370_v37 = vpop.f32.mrf.mxu1 }
 0x114   : > { %v1707_v46 = vadd.f32 %v1322_v26, %v1321_v22 }
 0x115   : > { %v1324_v29 = vpop.f32.mrf.mxu0  ;;  %v1372_v44 = vpop.f32.mrf.mxu1 }
 0x116   : > { %v883_v56 = vadd.f32 %v1707_v46, %v882_v48  ;;  %v1774_v48 = vadd.f32 %v1370_v37, %v1692_v30 }
 0x117   : > { %v1325_v33 = vpop.f32.mrf.mxu0  ;;  %v1373_v54 = vpop.f32.mrf.mxu1 }
 0x118   : > { %v1710_v50 = vadd.f32 %v1325_v33, %v1324_v29 }
 0x119   : > { %v1327_v36 = vpop.f32.mrf.mxu0  ;;  %v1375_v4 = vpop.f32.mrf.mxu1 }
 0x11a   : > { %v884_v62 = vadd.f32 %v1710_v50, %v883_v56  ;;  %v1778_v56 = vadd.f32 %v1373_v54, %v1372_v44 }
 0x11b   : > { %v1328_v40 = vpop.f32.mrf.mxu0  ;;  %v1376_v19 = vpop.f32.mrf.mxu1 }
 0x11c   : > { %v1713_v58 = vadd.f32 %v1328_v40, %v1327_v36  ;;  %v1740_v40 = vadd.f32 %v1653_v59, %v1651_v57 }
 0x11d   : > { %v1330_v43 = vpop.f32.mrf.mxu0  ;;  %v1378_v29 = vpop.f32.mrf.mxu1 }
 0x11e   : > { %v885_v6 = vadd.f32 %v1713_v58, %v884_v62 }
 0x11f   : > { %v1331_v47 = vpop.f32.mrf.mxu0  ;;  %v1379_v38 = vpop.f32.mrf.mxu1 }
 0x120   : > { %v1716_v0 = vadd.f32 %v1331_v47, %v1330_v43  ;;  %v1745_v43 = vadd.f32 %v1657_v63, %v1655_v61  ;;  %v1760_v61 = vadd.f32 %v1669_v11, %v1667_v9  ;;  %v1765_v47 = vadd.f32 %v1673_v15, %v1671_v13 }
 0x121   : > { %v1333_v52 = vpop.f32.mrf.mxu0  ;;  %v1381_v51 = vpop.f32.mrf.mxu1  ;;  %v1781_v15 = vadd.f32 %v1376_v19, %v1375_v4  ;;  %v1784_v23 = vadd.f32 %v1379_v38, %v1378_v29 }
 0x122   : > { %v886_v12 = vadd.f32 %v1716_v0, %v885_v6 }
 0x123   : > { %v1334_v60 = vpop.f32.mrf.mxu0  ;;  %v1382_v59 = vpop.f32.mrf.mxu1 }
 0x124   : > { %v1719_v8 = vadd.f32 %v1334_v60, %v1333_v52  ;;  %v1787_v30 = vadd.f32 %v1382_v59, %v1381_v51 }
 0x125   : > { %v1336_v2 = vpop.f32.mrf.mxu0  ;;  %v1384_v3 = vpop.f32.mrf.mxu1 }
 0x126   : > { %v887_v22 = vadd.f32 %v1719_v8, %v886_v12 }
 0x127   : > { %v1337_v10 = vpop.f32.mrf.mxu0  ;;  %v1385_v11 = vpop.f32.mrf.mxu1 }
 0x128   : > { %v1722_v14 = vadd.f32 %v1337_v10, %v1336_v2  ;;  %v1790_v6 = vadd.f32 %v1385_v11, %v1384_v3 }
 0x129   : > { %v1339_v16 = vpop.f32.mrf.mxu0  ;;  %v1387_v60 = vpop.f32.mrf.mxu1 }
 0x12a   : > { %v888_v26 = vadd.f32 %v1722_v14, %v887_v22 }
 0x12b   : > { %v1340_v24 = vpop.f32.mrf.mxu0  ;;  %v1388_v37 = vpop.f32.mrf.mxu1 }
 0x12c   : > { %v1726_v27 = vadd.f32 %v1340_v24, %v1339_v16  ;;  %v1793_v54 = vadd.f32 %v1388_v37, %v1387_v60 }
 0x12e   : > { %v889_v33 = vadd.f32 %v1726_v27, %v888_v26 }
 0x130   : > { %v890_v36 = vadd.f32 %v1730_v31, %v889_v33 }
 0x132   : > { %v891_v41 = vadd.f32 %v1735_v34, %v890_v36 }
 0x134   : > { %v892_v49 = vadd.f32 %v1740_v40, %v891_v41 }
 0x136   : > { %v893_v55 = vadd.f32 %v1745_v43, %v892_v49 }
 0x138   : > { %v894_v57 = vadd.f32 %v1750_v53, %v893_v55 }
 0x13a   : > { %v895_v63 = vadd.f32 %v1755_v45, %v894_v57 }
 0x13c   : > { %v896_v1 = vadd.f32 %v1760_v61, %v895_v63 }
 0x13e   : > { %v897_v7 = vadd.f32 %v1765_v47, %v896_v1 }
 0x140   : > { %v898_v9 = vadd.f32 %v1770_v5, %v897_v7 }
 0x142   : > { %v899_v52 = vadd.f32 %v1774_v48, %v898_v9 }
 0x144   : > { %v900_v13 = vadd.f32 %v1778_v56, %v899_v52 }
 0x146   : > { %v901_v18 = vadd.f32 %v1781_v15, %v900_v13 }
 0x148   : > { %v902_v62 = vadd.f32 %v1784_v23, %v901_v18 }
 0x14a   : > { %v903_v2 = vadd.f32 %v1787_v30, %v902_v62 }
 0x14c   : > { %v904_v44 = vadd.f32 %v1790_v6, %v903_v2 }
 0x14e   : > { %v905_v4 = vadd.f32 %v1793_v54, %v904_v44 }
 0x150   : > { %v906_v10 = vrot.slane %v905_v4, 4 }
 0x152   : > { %v907_v12 = vadd.f32 %v906_v10, %v905_v4 }
 0x154   : > { %v908_v16 = vrot.slane %v907_v12, 2 }
 0x156   : > { %v909_v19 = vadd.f32 %v908_v16, %v907_v12 }
 0x158   : > { %v910_v22 = vrot.slane %v909_v19, 1 }
 0x15a   : > { %v911_v24 = vadd.f32 %v910_v22, %v909_v19 }
 0x15c   : > { %v1796_v26 = vmul.f32 0.00390625, %v911_v24 }
 0x15e   : > { %v1800_v29 = vsub.f32 %v1679_v20, %v1796_v26  ;;  %v1804_v33 = vsub.f32 %v1675_v17, %v1796_v26  ;;  %v1808_v36 = vsub.f32 %v1681_v21, %v1796_v26  ;;  %v1816_v49 = vsub.f32 %v1687_v25, %v1796_v26 }
 0x15f   : > { %v1820_v20 = vsub.f32 %v1690_v28, %v1796_v26  ;;  %v1826_v21 = vsub.f32 %v1695_v32, %v1796_v26  ;;  %v1832_v25 = vsub.f32 %v1698_v35, %v1796_v26  ;;  %v1838_v63 = vsub.f32 %v1701_v39, %v1796_v26 }
 0x160   : > { %v946_v38 = vmul.f32 %v1800_v29, %v1800_v29  ;;  %v947_v41 = vmul.f32 %v1804_v33, %v1804_v33  ;;  %v948_v17 = vmul.f32 %v1808_v36, %v1808_v36  ;;  %v949_v55 = vmul.f32 %v1816_v49, %v1816_v49 }
 0x161   : > { %v950_v28 = vmul.f32 %v1820_v20, %v1820_v20  ;;  %v951_v32 = vmul.f32 %v1826_v21, %v1826_v21  ;;  %v1844_v3 = vsub.f32 %v1704_v42, %v1796_v26  ;;  %v952_v35 = vmul.f32 %v1832_v25, %v1832_v25 }
 0x162   : > { %v978_v51 = vadd.f32 %v947_v41, %v946_v38  ;;  %v1850_v9 = vsub.f32 %v1707_v46, %v1796_v26  ;;  %v953_v39 = vmul.f32 %v1838_v63, %v1838_v63  ;;  %v1856_v52 = vsub.f32 %v1710_v50, %v1796_v26 }
 0x163   : > { %v954_v42 = vmul.f32 %v1844_v3, %v1844_v3  ;;  %v1862_v60 = vsub.f32 %v1713_v58, %v1796_v26  ;;  %v1868_v62 = vsub.f32 %v1716_v0, %v1796_v26  ;;  %v1874_v2 = vsub.f32 %v1719_v8, %v1796_v26 }
 0x164   : > { %v979_v57 = vadd.f32 %v978_v51, %v948_v17  ;;  %v955_v46 = vmul.f32 %v1850_v9, %v1850_v9  ;;  %v956_v50 = vmul.f32 %v1856_v52, %v1856_v52  ;;  %v1880_v4 = vsub.f32 %v1722_v14, %v1796_v26 }
 0x165   : > { %v957_v58 = vmul.f32 %v1862_v60, %v1862_v60  ;;  %v958_v0 = vmul.f32 %v1868_v62, %v1868_v62  ;;  %v1886_v12 = vsub.f32 %v1726_v27, %v1796_v26  ;;  %v959_v8 = vmul.f32 %v1874_v2, %v1874_v2 }
 0x166   : > { %v980_v59 = vadd.f32 %v979_v57, %v949_v55  ;;  %v1892_v19 = vsub.f32 %v1730_v31, %v1796_v26  ;;  %v960_v14 = vmul.f32 %v1880_v4, %v1880_v4  ;;  %v1898_v24 = vsub.f32 %v1735_v34, %v1796_v26 }
 0x167   : > { %v961_v27 = vmul.f32 %v1886_v12, %v1886_v12  ;;  %v1904_v41 = vsub.f32 %v1740_v40, %v1796_v26  ;;  %v1910_v51 = vsub.f32 %v1745_v43, %v1796_v26  ;;  %v1916_v57 = vsub.f32 %v1750_v53, %v1796_v26 }
 0x168   : > { %v981_v1 = vadd.f32 %v980_v59, %v950_v28  ;;  %v962_v31 = vmul.f32 %v1892_v19, %v1892_v19  ;;  %v963_v34 = vmul.f32 %v1898_v24, %v1898_v24  ;;  %v1922_v59 = vsub.f32 %v1755_v45, %v1796_v26 }
 0x169   : > { %v964_v40 = vmul.f32 %v1904_v41, %v1904_v41  ;;  %v965_v43 = vmul.f32 %v1910_v51, %v1910_v51  ;;  %v966_v53 = vmul.f32 %v1916_v57, %v1916_v57 }
 0x16a   : > { %v982_v7 = vadd.f32 %v981_v1, %v951_v32  ;;  %v1928_v1 = vsub.f32 %v1760_v61, %v1796_v26  ;;  %v967_v45 = vmul.f32 %v1922_v59, %v1922_v59 }
 0x16c   : > { %v983_v11 = vadd.f32 %v982_v7, %v952_v35  ;;  %v1934_v7 = vsub.f32 %v1765_v47, %v1796_v26  ;;  %v968_v61 = vmul.f32 %v1928_v1, %v1928_v1 }
 0x16e   : > { %v984_v13 = vadd.f32 %v983_v11, %v953_v39  ;;  %v1940_v11 = vsub.f32 %v1770_v5, %v1796_v26  ;;  %v941_v5 = vsub.f32 %v1781_v15, %v1796_v26  ;;  %v945_v15 = vsub.f32 %v1793_v54, %v1796_v26 }
 0x170   : > { %v985_v18 = vadd.f32 %v984_v13, %v954_v42  ;;  %v939_v13 = vsub.f32 %v1774_v48, %v1796_v26 }
 0x172   : > { %v986_v37 = vadd.f32 %v985_v18, %v955_v46  ;;  %v969_v46 = vmul.f32 %v1934_v7, %v1934_v7  ;;  %v940_v18 = vsub.f32 %v1778_v56, %v1796_v26  ;;  %v944_v56 = vsub.f32 %v1790_v6, %v1796_v26 }
 0x174   : > { %v987_v44 = vadd.f32 %v986_v37, %v956_v50  ;;  %v970_v50 = vmul.f32 %v1940_v11, %v1940_v11  ;;  %v972_v48 = vmul.f32 %v940_v18, %v940_v18 }
 0x176   : > { %v988_v10 = vadd.f32 %v987_v44, %v957_v58  ;;  %v971_v58 = vmul.f32 %v939_v13, %v939_v13 }
 0x178   : > { %v989_v16 = vadd.f32 %v988_v10, %v958_v0  ;;  %v942_v0 = vsub.f32 %v1784_v23, %v1796_v26  ;;  %v977_v23 = vmul.f32 %v945_v15, %v945_v15 }
 0x17a   : > { %v990_v22 = vadd.f32 %v989_v16, %v959_v8  ;;  %v943_v8 = vsub.f32 %v1787_v30, %v1796_v26  ;;  %v973_v16 = vmul.f32 %v941_v5, %v941_v5 }
 0x17c   : > { %v991_v38 = vadd.f32 %v990_v22, %v960_v14  ;;  %v974_v22 = vmul.f32 %v942_v0, %v942_v0 }
 0x17e   : > { %v992_v17 = vadd.f32 %v991_v38, %v961_v27  ;;  %v975_v38 = vmul.f32 %v943_v8, %v943_v8 }
 0x180   : > { %v993_v55 = vadd.f32 %v992_v17, %v962_v31  ;;  %v976_v17 = vmul.f32 %v944_v56, %v944_v56 }
 0x182   : > { %v994_v28 = vadd.f32 %v993_v55, %v963_v34 }
 0x184   : > { %v995_v32 = vadd.f32 %v994_v28, %v964_v40 }
 0x186   : > { %v996_v35 = vadd.f32 %v995_v32, %v965_v43 }
 0x188   : > { %v997_v39 = vadd.f32 %v996_v35, %v966_v53 }
 0x18a   : > { %v998_v42 = vadd.f32 %v997_v39, %v967_v45 }
 0x18c   : > { %v999_v47 = vadd.f32 %v998_v42, %v968_v61 }
 0x18e   : > { %v1000_v37 = vadd.f32 %v999_v47, %v969_v46 }
 0x190   : > { %v1001_v44 = vadd.f32 %v1000_v37, %v970_v50 }
 0x192   : > { %v1002_v10 = vadd.f32 %v1001_v44, %v971_v58 }
 0x194   : > { %v1003_v14 = vadd.f32 %v1002_v10, %v972_v48 }
 0x196   : > { %v1004_v27 = vadd.f32 %v1003_v14, %v973_v16 }
 0x198   : > { %v1005_v31 = vadd.f32 %v1004_v27, %v974_v22 }
 0x19a   : > { %v1006_v34 = vadd.f32 %v1005_v31, %v975_v38 }
 0x19c   : > { %v1007_v55 = vadd.f32 %v1006_v34, %v976_v17 }
 0x19e   : > { %v1008_v40 = vadd.f32 %v1007_v55, %v977_v23 }
 0x1a0   : > { %v1009_v28 = vrot.slane %v1008_v40, 4 }
 0x1a2   : > { %v1010_v43 = vadd.f32 %v1009_v28, %v1008_v40 }
 0x1a4   : > { %v1011_v30 = vrot.slane %v1010_v43, 2 }
 0x1a6   : > { %v1012_v32 = vadd.f32 %v1011_v30, %v1010_v43 }
 0x1a8   : > { %v1013_v53 = vrot.slane %v1012_v32, 1 }
 0x1aa   : > { %v1014_v35 = vadd.f32 %v1013_v53, %v1012_v32 }
 0x1ac   : > { %v1015_v45 = vmul.f32 0.00390625, %v1014_v35 }
 0x1ae   : > { %v1016_v6 = vadd.f32 1e-05, %v1015_v45 }
 0x1b0   : > { %1494 = vrsqrt.f32 %v1016_v6 }
 0x1bd   : > { %v1495_v39 = vpop.eup %1494 }
 0x1be   : > { %v1018_v61 = vmul.f32 %v1495_v39, %v1800_v29  ;;  %v1019_v54 = vmul.f32 %v1495_v39, %v1804_v33  ;;  %v1020_v26 = vmul.f32 %v1495_v39, %v1808_v36  ;;  %v1021_v42 = vmul.f32 %v1495_v39, %v1816_v49 }
 0x1bf   : > { %v1022_v46 = vmul.f32 %v1495_v39, %v1820_v20  ;;  %v1023_v47 = vmul.f32 %v1495_v39, %v1826_v21  ;;  %v1024_v50 = vmul.f32 %v1495_v39, %v1832_v25  ;;  %v1025_v37 = vmul.f32 %v1495_v39, %v1838_v63 }
 0x1c0   : > { %v1026_v58 = vmul.f32 %v1495_v39, %v1844_v3  ;;  %v1027_v44 = vmul.f32 %v1495_v39, %v1850_v9  ;;  %v1028_v29 = vmul.f32 %v1495_v39, %v1856_v52  ;;  %v1029_v33 = vmul.f32 %v1495_v39, %v1862_v60 }
 0x1c1   : > { %v1030_v36 = vmul.f32 %v1495_v39, %v1868_v62  ;;  %v1031_v49 = vmul.f32 %v1495_v39, %v1874_v2  ;;  %v1032_v20 = vmul.f32 %v1495_v39, %v1880_v4  ;;  %v1033_v21 = vmul.f32 %v1495_v39, %v1886_v12 }
 0x1c2   : > { %v1034_v25 = vmul.f32 %v1495_v39, %v1892_v19  ;;  %v1035_v63 = vmul.f32 %v1495_v39, %v1898_v24  ;;  %v1036_v3 = vmul.f32 %v1495_v39, %v1904_v41  ;;  %v1037_v9 = vmul.f32 %v1495_v39, %v1910_v51 }
 0x1c3   : > { %v1983_v52 = vmul.f32 %v1495_v39, %v1916_v57  ;;  %v1986_v60 = vmul.f32 %v1495_v39, %v1922_v59  ;;  %v1989_v62 = vmul.f32 %v1495_v39, %v1928_v1  ;;  %v1992_v2 = vmul.f32 %v1495_v39, %v1934_v7 }
 0x1c4   : > { %v1995_v4 = vmul.f32 %v1495_v39, %v1940_v11  ;;  %v1997_v12 = vmul.f32 %v1495_v39, %v939_v13  ;;  %v1999_v19 = vmul.f32 %v1495_v39, %v940_v18  ;;  %v2001_v24 = vmul.f32 %v1495_v39, %v941_v5 }
 0x1c5   : > { %v2010_v41 = vmul.f32 %v1495_v39, %v942_v0  ;;  %v2012_v51 = vmul.f32 %v1495_v39, %v943_v8  ;;  %v2014_v57 = vmul.f32 %v1495_v39, %v944_v56  ;;  %v2016_v59 = vmul.f32 %v1495_v39, %v945_v15 }
 0x1c6   : > { %v1050_v1 = vmax.f32 %v1018_v61, 0.0  ;;  %v1051_v7 = vmax.f32 %v1019_v54, 0.0  ;;  %v1052_v11 = vmax.f32 %v1020_v26, 0.0  ;;  %v1053_v13 = vmax.f32 %v1021_v42, 0.0 }
 0x1c7   : > { %v1054_v18 = vmax.f32 %v1022_v46, 0.0  ;;  %v1055_v5 = vmax.f32 %v1023_v47, 0.0  ;;  %v1056_v0 = vmax.f32 %v1024_v50, 0.0  ;;  %v1057_v48 = vmax.f32 %v1025_v37, 0.0 }
 0x1c8   : > { %v1058_v10 = vmax.f32 %v1026_v58, 0.0  ;;  %v1059_v8 = vmax.f32 %v1027_v44, 0.0  ;;  %v1060_v16 = vmax.f32 %v1028_v29, 0.0  ;;  %v1061_v14 = vmax.f32 %v1029_v33, 0.0  ;;  %1082 = vst [vmem:[%s2008_s28] sm:$0xff] %v1050_v1  ;;  %1083 = vst [vmem:[%s2008_s28 + $0x8] sm:$0xff] %v1051_v7 }
 0x1c9   : > { %1084 = vst [vmem:[%s2008_s28 + $0x10] sm:$0xff] %v1052_v11  ;;  %1085 = vst [vmem:[%s2008_s28 + $0x18] sm:$0xff] %v1053_v13  ;;  %v1062_v56 = vmax.f32 %v1030_v36, 0.0  ;;  %v1063_v22 = vmax.f32 %v1031_v49, 0.0  ;;  %v1064_v27 = vmax.f32 %v1032_v20, 0.0  ;;  %v1065_v15 = vmax.f32 %v1033_v21, 0.0 }
 0x1ca   : > { %1086 = vst [vmem:[%s2008_s28 + $0x20] sm:$0xff] %v1054_v18  ;;  %1087 = vst [vmem:[%s2008_s28 + $0x28] sm:$0xff] %v1055_v5  ;;  %v1066_v38 = vmax.f32 %v1034_v25, 0.0  ;;  %v1067_v31 = vmax.f32 %v1035_v63, 0.0  ;;  %v1068_v17 = vmax.f32 %v1036_v3, 0.0  ;;  %v1069_v34 = vmax.f32 %v1037_v9, 0.0 }
 0x1cb   : > { %1088 = vst [vmem:[%s2008_s28 + $0x30] sm:$0xff] %v1056_v0  ;;  %1089 = vst [vmem:[%s2008_s28 + $0x38] sm:$0xff] %v1057_v48  ;;  %v1070_v23 = vmax.f32 %v1983_v52, 0.0  ;;  %v1071_v55 = vmax.f32 %v1986_v60, 0.0  ;;  %v1072_v40 = vmax.f32 %v1989_v62, 0.0  ;;  %v1073_v28 = vmax.f32 %v1992_v2, 0.0 }
 0x1cc   : > { %1090 = vst [vmem:[%s2008_s28 + $0x40] sm:$0xff] %v1058_v10  ;;  %1091 = vst [vmem:[%s2008_s28 + $0x48] sm:$0xff] %v1059_v8  ;;  %v1074_v43 = vmax.f32 %v1995_v4, 0.0  ;;  %v1075_v30 = vmax.f32 %v1997_v12, 0.0  ;;  %v1076_v32 = vmax.f32 %v1999_v19, 0.0  ;;  %v1077_v53 = vmax.f32 %v2001_v24, 0.0 }
 0x1cd   : > { %1092 = vst [vmem:[%s2008_s28 + $0x50] sm:$0xff] %v1060_v16  ;;  %1093 = vst [vmem:[%s2008_s28 + $0x58] sm:$0xff] %v1061_v14  ;;  %v1078_v35 = vmax.f32 %v2010_v41, 0.0  ;;  %v1079_v45 = vmax.f32 %v2012_v51, 0.0  ;;  %v1080_v6 = vmax.f32 %v2014_v57, 0.0  ;;  %v1081_v39 = vmax.f32 %v2016_v59, 0.0 }
 0x1ce   : > { %1094 = vst [vmem:[%s2008_s28 + $0x60] sm:$0xff] %v1062_v56  ;;  %1095 = vst [vmem:[%s2008_s28 + $0x68] sm:$0xff] %v1063_v22 }
 0x1cf   : > { %1096 = vst [vmem:[%s2008_s28 + $0x70] sm:$0xff] %v1064_v27  ;;  %1097 = vst [vmem:[%s2008_s28 + $0x78] sm:$0xff] %v1065_v15 }
 0x1d0   : > { %1098 = vst [vmem:[%s2008_s28 + $0x80] sm:$0xff] %v1066_v38  ;;  %1099 = vst [vmem:[%s2008_s28 + $0x88] sm:$0xff] %v1067_v31 }
 0x1d1   : > { %1100 = vst [vmem:[%s2008_s28 + $0x90] sm:$0xff] %v1068_v17  ;;  %1101 = vst [vmem:[%s2008_s28 + $0x98] sm:$0xff] %v1069_v34 }
 0x1d2   : > { %1102 = vst [vmem:[%s2008_s28 + $0xa0] sm:$0xff] %v1070_v23  ;;  %1103 = vst [vmem:[%s2008_s28 + $0xa8] sm:$0xff] %v1071_v55 }
 0x1d3   : > { %1104 = vst [vmem:[%s2008_s28 + $0xb0] sm:$0xff] %v1072_v40  ;;  %1105 = vst [vmem:[%s2008_s28 + $0xb8] sm:$0xff] %v1073_v28 }
 0x1d4   : > { %1106 = vst [vmem:[%s2008_s28 + $0xc0] sm:$0xff] %v1074_v43  ;;  %1107 = vst [vmem:[%s2008_s28 + $0xc8] sm:$0xff] %v1075_v30 }
 0x1d5   : > { %1108 = vst [vmem:[%s2008_s28 + $0xd0] sm:$0xff] %v1076_v32  ;;  %1109 = vst [vmem:[%s2008_s28 + $0xd8] sm:$0xff] %v1077_v53 }
 0x1d6   : > { %1110 = vst [vmem:[%s2008_s28 + $0xe0] sm:$0xff] %v1078_v35  ;;  %1111 = vst [vmem:[%s2008_s28 + $0xe8] sm:$0xff] %v1079_v45 }
 0x1d7   : > { %1112 = vst [vmem:[%s2008_s28 + $0xf0] sm:$0xff] %v1080_v6  ;;  %1113 = vst [vmem:[%s2008_s28 + $0xf8] sm:$0xff] %v1081_v39 }
 0x1d8 PF: > { %s12_s11 = sadd.s32 1, %s1518_s11   ;;  %s2074_s9 = smov %s1514_s10 }
 0x1d9   : > { %p9_p5 = scmp.ge.s32.totalorder %s12_s11, 4   ;;  %s2075_s10 = smov %s2077_s12 }
 0x1db   :  { %11 = sbr.rel (!%p9_p5) target bundleno = 2 (0x2), region = 69 }

// kernel: generator_forward.17
= control target key start
LH: loop header
LB: loop body
LE: loop exit
PB: predicated region body
PF: predicated region fallthrough
CT: control target
= control target key end

     0   :  { %s1428_s9 = smov 0   ;;  %s1430_s10 = smov 0   ;;  %s1610_s0 = inlined_call_operand.vmem [shape: bf16[128,640], index: 0, kind: input, shape index: {}]   ;;  %s1611_s1 = inlined_call_operand.vmem [shape: bf16[640,128], index: 1, kind: input, shape index: {}]   ;;  %s1612_s2 = inlined_call_operand.vmem [shape: f32[128,128], index: 2, kind: output, shape index: {}]  }
   0x1   :  { %s1432_s11 = smov 0  }
   0x2 LB: > { %s31_s12 = sadd.s32 1, %s1407_s10  ;;  %p1095_p0 = scmp.ge.s32.totalorder %s1411_s11, 1  ;;  %s1411_s11 = sphi %s1432_s11, %s12_s11   ;;  %s1407_s10 = sphi %s1430_s10, %s1614_s10   ;;  %s1403_s9 = sphi %s1428_s9, %s1613_s9  }
   0x3   : > { %p33_p1 = scmp.ge.s32.totalorder %s31_s12, 2  ;;  %p158_p2 = scmp.lt.s32.totalorder %s1411_s11, 3 }
   0x5   : > { %s1616_s12 = smov (%p33_p1, %s31_s12), 0  ;;  %p159_p3 = pnand %p1095_p0, %p158_p2 }
   0x6   : > { %s1096_s19 = sshll.u32 (!%p159_p3), %s1403_s9, 3 }
   0x7   : > { %162 = sbr.rel (%p159_p3) target bundleno = 364 (0x16c), region = 28  ;;  %p198_p4 = scmp.lt.s32.totalorder (!%p159_p3), %s1096_s19, 15 }
   0xc   : > { %v1319_v0 = vld [vmem:[%s1611_s1 + $0x78] sm:$0xff]   ;;  %v1323_v4 = vld [vmem:[%s1611_s1 + $0x70] sm:$0xff]   ;;  %v1327_v8 = vld [vmem:[%s1611_s1 + $0x68] sm:$0xff]   ;;  %s1618_s19 = smov (!%p198_p4, %s1096_s19), 15 }
   0xd   : > { %v1320_v1 = vld [vmem:[%s1611_s1 + $0xf8] sm:$0xff]   ;;  %1162 = vmatprep.subr.bf16.mxu0 %v1319_v0  ;;  %v1324_v5 = vld [vmem:[%s1611_s1 + $0xf0] sm:$0xff]   ;;  %v1328_v9 = vld [vmem:[%s1611_s1 + $0xe8] sm:$0xff]   ;;  %s1294_s17 = smul.u32 20, %s1618_s19  ;;  %s1099_s26 = sshll.u32 %s1618_s19, 3 }
   0xe   : > { %v1321_v2 = vld [vmem:[%s1611_s1 + $0x38] sm:$0xff]   ;;  %1202 = vmatprep.subr.bf16.mxu1 %v1320_v1  ;;  %v1325_v6 = vld [vmem:[%s1611_s1 + $0x30] sm:$0xff]   ;;  %v1329_v10 = vld [vmem:[%s1611_s1 + $0x28] sm:$0xff]  }
   0xf   : > { %v1322_v3 = vld [vmem:[%s1611_s1 + $0xb8] sm:$0xff]   ;;  %1163 = vmatpush3.bf16.msra.mxu0 %v1321_v2  ;;  %v1326_v7 = vld [vmem:[%s1611_s1 + $0xb0] sm:$0xff]   ;;  %v1330_v11 = vld [vmem:[%s1611_s1 + $0xa8] sm:$0xff]   ;;  %s1545_s28 = scalar_lea.vmem %s1610_s0, %s1294_s17 }
  0x10   : > { %1203 = vmatpush3.bf16.msra.mxu1 %v1322_v3  ;;  %1164 = vmatprep.subr.bf16.mxu0 %v1323_v4  ;;  %v1331_v12 = vld [vmem:[%s1611_s1 + $0x60] sm:$0xff]   ;;  %v1335_v16 = vld [vmem:[%s1611_s1 + $0x58] sm:$0xff]   ;;  %v1339_v20 = vld [vmem:[%s1611_s1 + $0x50] sm:$0xff]  }
  0x11   : > { %1204 = vmatprep.subr.bf16.mxu1 %v1324_v5  ;;  %v1332_v13 = vld [vmem:[%s1611_s1 + $0xe0] sm:$0xff]   ;;  %v1336_v17 = vld [vmem:[%s1611_s1 + $0xd8] sm:$0xff]   ;;  %v1340_v21 = vld [vmem:[%s1611_s1 + $0xd0] sm:$0xff]  }
  0x12   : > { %v1333_v14 = vld [vmem:[%s1611_s1 + $0x20] sm:$0xff]   ;;  %v1337_v18 = vld [vmem:[%s1611_s1 + $0x18] sm:$0xff]   ;;  %v1341_v22 = vld [vmem:[%s1611_s1 + $0x10] sm:$0xff]  }
  0x13   : > { %1165 = vmatpush3.bf16.msra.mxu0 %v1325_v6  ;;  %v1334_v15 = vld [vmem:[%s1611_s1 + $0xa0] sm:$0xff]   ;;  %v1338_v19 = vld [vmem:[%s1611_s1 + $0x98] sm:$0xff]   ;;  %v1342_v23 = vld [vmem:[%s1611_s1 + $0x90] sm:$0xff]  }
  0x14   : > { %1205 = vmatpush3.bf16.msra.mxu1 %v1326_v7  ;;  %1166 = vmatprep.subr.bf16.mxu0 %v1327_v8  ;;  %v1343_v24 = vld [vmem:[%s1611_s1 + $0x48] sm:$0xff]   ;;  %v1347_v28 = vld [vmem:[%s1611_s1 + $0x40] sm:$0xff]   ;;  %v1357_v36 = vld [vmem:[%s1611_s1 + $0x138] sm:$0xff]  }
  0x15   : > { %1206 = vmatprep.subr.bf16.mxu1 %v1328_v9  ;;  %v1344_v25 = vld [vmem:[%s1611_s1 + $0xc8] sm:$0xff]   ;;  %v1348_v29 = vld [vmem:[%s1611_s1 + $0xc0] sm:$0xff]   ;;  %v1358_v37 = vld [vmem:[%s1611_s1 + $0x130] sm:$0xff]  }
  0x16   : > { %v1345_v26 = vld [vmem:[%s1611_s1 + $0x8] sm:$0xff]   ;;  %v1349_v30 = vld [vmem:[%s1611_s1] sm:$0xff]   ;;  %v1369_v45 = vld [vmem:[%s1545_s28 + $0x5c] ss:$20 sps:$4 sm:$0xff]  }
  0x17   : > { %1167 = vmatpush3.bf16.msra.mxu0 %v1329_v10  ;;  %v1346_v27 = vld [vmem:[%s1611_s1 + $0x88] sm:$0xff]   ;;  %v1350_v31 = vld [vmem:[%s1611_s1 + $0x80] sm:$0xff]   ;;  %v1373_v46 = vld [vmem:[%s1611_s1 + $0x118] sm:$0xff]  }
  0x18   : > { %1207 = vmatpush3.bf16.msra.mxu1 %v1330_v11  ;;  %1168 = vmatprep.subr.bf16.mxu0 %v1331_v12  ;;  %v1351_v32 = vld [vmem:[%s1545_s28] ss:$20 sps:$4 sm:$0xff]   ;;  %v1353_v33 = vld [vmem:[%s1545_s28 + $0x4] ss:$20 sps:$4 sm:$0xff]   ;;  %v1354_v34 = vld [vmem:[%s1545_s28 + $0x8] ss:$20 sps:$4 sm:$0xff]  }
  0x19   : > { %1208 = vmatprep.subr.bf16.mxu1 %v1332_v13  ;;  %v1356_v35 = vld [vmem:[%s1545_s28 + $0xc] ss:$20 sps:$4 sm:$0xff]   ;;  %727 = vmatprep.mubr.bf16.mxu0 %v1353_v33  ;;  %v1361_v39 = vld [vmem:[%s1545_s28 + $0x34] ss:$20 sps:$4 sm:$0xff]   ;;  %v1364_v42 = vld [vmem:[%s1545_s28 + $0x30] ss:$20 sps:$4 sm:$0xff]  }
  0x1a   : > { %792 = vmatprep.mubr.bf16.mxu1 %v1356_v35  ;;  %v1359_v38 = vld [vmem:[%s1545_s28 + $0x2c] ss:$20 sps:$4 sm:$0xff]   ;;  %v1363_v40 = vld [vmem:[%s1545_s28 + $0x28] ss:$20 sps:$4 sm:$0xff]   ;;  %v1371_v47 = vld [vmem:[%s1545_s28 + $0x50] ss:$20 sps:$4 sm:$0xff]  }
  0x1b   : > { %1169 = vmatpush3.bf16.msra.mxu0 %v1333_v14  ;;  %v1365_v41 = vld [vmem:[%s1611_s1 + $0x128] sm:$0xff]   ;;  %v1366_v44 = vld [vmem:[%s1611_s1 + $0x120] sm:$0xff]   ;;  %v1375_v49 = vld [vmem:[%s1545_s28 + $0x7c] ss:$20 sps:$4 sm:$0xff]  }
  0x1c   : > { %1209 = vmatpush3.bf16.msra.mxu1 %v1334_v15  ;;  %1170 = vmatprep.subr.bf16.mxu0 %v1335_v16  ;;  %v1367_v43 = vld [vmem:[%s1545_s28 + $0x54] ss:$20 sps:$4 sm:$0xff]   ;;  %v1372_v48 = vld [vmem:[%s1545_s28 + $0x58] ss:$20 sps:$4 sm:$0xff]   ;;  %v1383_v55 = vld [vmem:[%s1545_s28 + $0x10] ss:$20 sps:$4 sm:$0xff]  }
  0x1d   : > { %1210 = vmatprep.subr.bf16.mxu1 %v1336_v17  ;;  %v1377_v50 = vld [vmem:[%s1545_s28 + $0x84] ss:$20 sps:$4 sm:$0xff]   ;;  %v1374_v51 = vld [vmem:[%s1611_s1 + $0x110] sm:$0xff]   ;;  %v1381_v52 = vld [vmem:[%s1611_s1 + $0x108] sm:$0xff]  }
  0x1e   : > { %v1379_v53 = vld [vmem:[%s1545_s28 + $0x78] ss:$20 sps:$4 sm:$0xff]   ;;  %v1380_v54 = vld [vmem:[%s1545_s28 + $0x80] ss:$20 sps:$4 sm:$0xff]   ;;  %v1386_v59 = vld [vmem:[%s1545_s28 + $0x88] ss:$20 sps:$4 sm:$0xff]  }
  0x1f   : > { %1171 = vmatpush3.bf16.msra.mxu0 %v1337_v18  ;;  %v1384_v56 = vld [vmem:[%s1545_s28 + $0x60] ss:$20 sps:$4 sm:$0xff]   ;;  %v1385_v58 = vld [vmem:[%s1545_s28 + $0x38] ss:$20 sps:$4 sm:$0xff]   ;;  %s224_s28 = scalar_lea.vmem %s1612_s2, %s1099_s26 }
  0x20   : > { %1211 = vmatpush3.bf16.msra.mxu1 %v1338_v19  ;;  %1172 = vmatprep.subr.bf16.mxu0 %v1339_v20  ;;  %v1382_v57 = vld [vmem:[%s1611_s1 + $0x100] sm:$0xff]  }
  0x21   : > { %1212 = vmatprep.subr.bf16.mxu1 %v1340_v21 }
  0x23   : > { %1173 = vmatpush3.bf16.msra.mxu0 %v1341_v22 }
  0x24   : > { %1213 = vmatpush3.bf16.msra.mxu1 %v1342_v23  ;;  %1174 = vmatprep.subr.bf16.mxu0 %v1343_v24 }
  0x25   : > { %1214 = vmatprep.subr.bf16.mxu1 %v1344_v25 }
  0x27   : > { %1175 = vmatpush3.bf16.msra.mxu0 %v1345_v26 }
  0x28   : > { %1215 = vmatpush3.bf16.msra.mxu1 %v1346_v27  ;;  %1176 = vmatprep.subr.bf16.mxu0 %v1347_v28 }
  0x29   : > { %1216 = vmatprep.subr.bf16.mxu1 %v1348_v29 }
  0x2b   : > { %1177 = vmatpush3.bf16.msra.mxu0 %v1349_v30 }
  0x2c   : > { %1217 = vmatpush3.bf16.msra.mxu1 %v1350_v31  ;;  %1254 = vmatprep.subr.bf16.mxu0 %v1357_v36 }
  0x2d   : > { %1278 = vmatprep.subr.bf16.mxu1 %v1357_v36 }
  0x2e   : > { %728 = vmatmul.mubr.bf16.vlgmr.msra.gmra.mxu0 %v1351_v32 }
  0x2f   : > { %793 = vmatmul.mubr.bf16.vlgmr.msra.gmra.mxu1 %v1354_v34  ;;  %1255 = vmatpush3.bf16.msra.mxu0 %v1357_v36 }
  0x30   : > { %1286 = vmatpush3.bf16.msra.mxu1 %v1357_v36  ;;  %1256 = vmatprep.subr.bf16.mxu0 %v1358_v37 }
  0x31   : > { %1279 = vmatprep.subr.bf16.mxu1 %v1358_v37  ;;  %735 = vmatprep.mubr.bf16.mxu0 %v1359_v38 }
  0x32   : > { %800 = vmatprep.mubr.bf16.mxu1 %v1361_v39 }
  0x33   : > { %1257 = vmatpush3.bf16.msra.mxu0 %v1358_v37 }
  0x34   : > { %1287 = vmatpush3.bf16.msra.mxu1 %v1358_v37  ;;  %1258 = vmatprep.subr.bf16.mxu0 %v1365_v41 }
  0x35   : > { %1280 = vmatprep.subr.bf16.mxu1 %v1365_v41 }
  0x36   : > { %736 = vmatmul.mubr.bf16.gmra.mxu0 %v1363_v40 }
  0x37   : > { %801 = vmatmul.mubr.bf16.gmra.mxu1 %v1364_v42  ;;  %743 = vmatprep.mubr.bf16.mxu0 %v1367_v43 }
  0x38   : > { %1259 = vmatpush3.bf16.msra.mxu0 %v1365_v41  ;;  %808 = vmatprep.mubr.bf16.mxu1 %v1369_v45 }
  0x39   : > { %1288 = vmatpush3.bf16.msra.mxu1 %v1365_v41  ;;  %1260 = vmatprep.subr.bf16.mxu0 %v1366_v44 }
  0x3a   : > { %1281 = vmatprep.subr.bf16.mxu1 %v1366_v44 }
  0x3c   : > { %1261 = vmatpush3.bf16.msra.mxu0 %v1366_v44 }
  0x3d   : > { %1289 = vmatpush3.bf16.msra.mxu1 %v1366_v44  ;;  %1262 = vmatprep.subr.bf16.mxu0 %v1373_v46 }
  0x3e   : > { %744 = vmatmul.mubr.bf16.gmra.mxu0 %v1371_v47  ;;  %1282 = vmatprep.subr.bf16.mxu1 %v1373_v46 }
  0x3f   : > { %809 = vmatmul.mubr.bf16.gmra.mxu1 %v1372_v48  ;;  %751 = vmatprep.mubr.bf16.mxu0 %v1375_v49 }
  0x40   : > { %1263 = vmatpush3.bf16.msra.mxu0 %v1373_v46  ;;  %816 = vmatprep.mubr.bf16.mxu1 %v1377_v50 }
  0x41   : > { %1290 = vmatpush3.bf16.msra.mxu1 %v1373_v46  ;;  %1264 = vmatprep.subr.bf16.mxu0 %v1374_v51 }
  0x42   : > { %1283 = vmatprep.subr.bf16.mxu1 %v1374_v51 }
  0x44   : > { %1265 = vmatpush3.bf16.msra.mxu0 %v1374_v51 }
  0x45   : > { %1291 = vmatpush3.bf16.msra.mxu1 %v1374_v51  ;;  %1266 = vmatprep.subr.bf16.mxu0 %v1381_v52 }
  0x46   : > { %752 = vmatmul.mubr.bf16.gmra.mxu0 %v1379_v53  ;;  %1284 = vmatprep.subr.bf16.mxu1 %v1381_v52 }
  0x47   : > { %817 = vmatmul.mubr.bf16.gmra.mxu1 %v1380_v54  ;;  %1270 = vmatprep.mubr.bf16.mxu0 %v1383_v55 }
  0x48   : > { %1267 = vmatpush3.bf16.msra.mxu0 %v1381_v52  ;;  %1274 = vmatprep.mubr.bf16.mxu1 %v1384_v56 }
  0x49   : > { %1292 = vmatpush3.bf16.msra.mxu1 %v1381_v52  ;;  %1268 = vmatprep.subr.bf16.mxu0 %v1382_v57 }
  0x4a   : > { %1285 = vmatprep.subr.bf16.mxu1 %v1382_v57 }
  0x4c   : > { %1269 = vmatpush3.bf16.msra.mxu0 %v1382_v57 }
  0x4d   : > { %1293 = vmatpush3.bf16.msra.mxu1 %v1382_v57 }
  0x4f   : > { %1271 = vmatmul.mubr.bf16.vlgmr.msra.gmra.mxu0 %v1385_v58 }
  0x50   : > { %1275 = vmatmul.mubr.bf16.vlgmr.msra.gmra.mxu1 %v1386_v59 }
  0xee   : > { %v1178_v60 = vpop.f32.mrf.mxu0 }
  0xef   : > { %v1218_v61 = vpop.f32.mrf.mxu1 }
  0xf0   : > { %v1179_v62 = vpop.f32.mrf.mxu0 }
  0xf1   : > { %v1219_v63 = vpop.f32.mrf.mxu1  ;;  %v1180_v29 = vadd.f32 %v1179_v62, %v1178_v60 }
  0xf2   : > { %v1181_v0 = vpop.f32.mrf.mxu0  ;;  %v1220_v30 = vadd.f32 %v1219_v63, %v1218_v61 }
  0xf3   : > { %v1221_v1 = vpop.f32.mrf.mxu1 }
  0xf4   : > { %v1182_v2 = vpop.f32.mrf.mxu0  ;;  %v795_v41 = vadd.f32 %v1220_v30, %v1180_v29 }
  0xf5   : > { %v1222_v3 = vpop.f32.mrf.mxu1  ;;  %v1183_v31 = vadd.f32 %v1182_v2, %v1181_v0 }
  0xf6   : > { %v1184_v4 = vpop.f32.mrf.mxu0  ;;  %v1223_v32 = vadd.f32 %v1222_v3, %v1221_v1 }
  0xf7   : > { %v1224_v5 = vpop.f32.mrf.mxu1 }
  0xf8   : > { %v1185_v6 = vpop.f32.mrf.mxu0  ;;  %v798_v42 = vadd.f32 %v1223_v32, %v1183_v31 }
  0xf9   : > { %v1225_v7 = vpop.f32.mrf.mxu1  ;;  %v1186_v35 = vadd.f32 %v1185_v6, %v1184_v4 }
  0xfa   : > { %v1187_v8 = vpop.f32.mrf.mxu0  ;;  %v1226_v36 = vadd.f32 %v1225_v7, %v1224_v5 }
  0xfb   : > { %v1227_v9 = vpop.f32.mrf.mxu1 }
  0xfc   : > { %v1188_v10 = vpop.f32.mrf.mxu0  ;;  %v803_v46 = vadd.f32 %v1226_v36, %v1186_v35 }
  0xfd   : > { %v1228_v11 = vpop.f32.mrf.mxu1  ;;  %v1189_v39 = vadd.f32 %v1188_v10, %v1187_v8 }
  0xfe   : > { %v1190_v12 = vpop.f32.mrf.mxu0  ;;  %v1229_v40 = vadd.f32 %v1228_v11, %v1227_v9 }
  0xff   : > { %v1230_v13 = vpop.f32.mrf.mxu1 }
 0x100   : > { %v1191_v14 = vpop.f32.mrf.mxu0  ;;  %v806_v53 = vadd.f32 %v1229_v40, %v1189_v39 }
 0x101   : > { %v1231_v15 = vpop.f32.mrf.mxu1  ;;  %v1192_v43 = vadd.f32 %v1191_v14, %v1190_v12 }
 0x102   : > { %v1193_v16 = vpop.f32.mrf.mxu0  ;;  %v1232_v44 = vadd.f32 %v1231_v15, %v1230_v13 }
 0x103   : > { %v1233_v17 = vpop.f32.mrf.mxu1 }
 0x104   : > { %v1194_v18 = vpop.f32.mrf.mxu0  ;;  %v811_v55 = vadd.f32 %v1232_v44, %v1192_v43 }
 0x105   : > { %v1234_v19 = vpop.f32.mrf.mxu1  ;;  %v1195_v49 = vadd.f32 %v1194_v18, %v1193_v16 }
 0x106   : > { %v1196_v20 = vpop.f32.mrf.mxu0  ;;  %v1235_v50 = vadd.f32 %v1234_v19, %v1233_v17 }
 0x107   : > { %v1236_v21 = vpop.f32.mrf.mxu1 }
 0x108   : > { %v1197_v22 = vpop.f32.mrf.mxu0  ;;  %v814_v60 = vadd.f32 %v1235_v50, %v1195_v49 }
 0x109   : > { %v1237_v23 = vpop.f32.mrf.mxu1  ;;  %v1198_v56 = vadd.f32 %v1197_v22, %v1196_v20 }
 0x10a   : > { %v1199_v24 = vpop.f32.mrf.mxu0  ;;  %v1238_v57 = vadd.f32 %v1237_v23, %v1236_v21 }
 0x10b   : > { %v1239_v25 = vpop.f32.mrf.mxu1 }
 0x10c   : > { %v1200_v26 = vpop.f32.mrf.mxu0  ;;  %v819_v2 = vadd.f32 %v1238_v57, %v1198_v56 }
 0x10d   : > { %v1240_v27 = vpop.f32.mrf.mxu1  ;;  %v1201_v62 = vadd.f32 %v1200_v26, %v1199_v24 }
 0x10e   : > { %v1241_v63 = vadd.f32 %v1240_v27, %v1239_v25 }
 0x10f   : > { %v1272_v28 = vpop.f32.mrf.mxu0 }
 0x110   : > { %v1276_v33 = vpop.f32.mrf.mxu1  ;;  %v868_v52 = vadd.f32 %v1272_v28, %v803_v46  ;;  %v822_v6 = vadd.f32 %v1241_v63, %v1201_v62 }
 0x111   : > { %v859_v34 = vpop.f32.mrf.mxu0  ;;  %v884_v5 = vadd.f32 %v1276_v33, %v819_v2 }
 0x112   : > { %v875_v37 = vpop.f32.mrf.mxu1  ;;  %v860_v47 = vadd.f32 %v859_v34, %v795_v41 }
 0x113   : > { %v1273_v38 = vpop.f32.mrf.mxu0  ;;  %v876_v0 = vadd.f32 %v875_v37, %v811_v55 }
 0x114   : > { %v1277_v51 = vpop.f32.mrf.mxu1  ;;  %v871_v58 = vadd.f32 %v1273_v38, %v806_v53 }
 0x115   : > { %v862_v45 = vpop.f32.mrf.mxu0  ;;  %v887_v8 = vadd.f32 %v1277_v51, %v822_v6 }
 0x116   : > { %v863_v48 = vadd.f32 %v862_v45, %v798_v42  ;;  %v878_v61 = vpop.f32.mrf.mxu1 }
 0x117   : > { %v879_v3 = vadd.f32 %v878_v61, %v814_v60 }
 0x118   : > { %v917_v54 = vadd.f32 %v863_v48, %v860_v47 }
 0x11a   : > { %v918_v59 = vadd.f32 %v917_v54, %v868_v52 }
 0x11c   : > { %v919_v1 = vadd.f32 %v918_v59, %v871_v58 }
 0x11e   : > { %v920_v4 = vadd.f32 %v919_v1, %v876_v0 }
 0x120   : > { %v921_v7 = vadd.f32 %v920_v4, %v879_v3 }
 0x122   : > { %v922_v9 = vadd.f32 %v921_v7, %v884_v5 }
 0x124   : > { %v923_v10 = vadd.f32 %v922_v9, %v887_v8 }
 0x126   : > { %v924_v11 = vrot.slane %v923_v10, 4 }
 0x128   : > { %v925_v12 = vadd.f32 %v924_v11, %v923_v10 }
 0x12a   : > { %v926_v13 = vrot.slane %v925_v12, 2 }
 0x12c   : > { %v927_v14 = vadd.f32 %v926_v13, %v925_v12 }
 0x12e   : > { %v928_v15 = vrot.slane %v927_v14, 1 }
 0x130   : > { %v929_v16 = vadd.f32 %v928_v15, %v927_v14 }
 0x132   : > { %v931_v17 = vmul.f32 0.015625, %v929_v16 }
 0x134   : > { %v932_v18 = vsub.f32 %v860_v47, %v931_v17  ;;  %v933_v19 = vsub.f32 %v863_v48, %v931_v17  ;;  %v934_v20 = vsub.f32 %v868_v52, %v931_v17  ;;  %v935_v21 = vsub.f32 %v871_v58, %v931_v17 }
 0x135   : > { %v936_v24 = vsub.f32 %v876_v0, %v931_v17  ;;  %v937_v27 = vsub.f32 %v879_v3, %v931_v17  ;;  %v938_v30 = vsub.f32 %v884_v5, %v931_v17  ;;  %v939_v33 = vsub.f32 %v887_v8, %v931_v17 }
 0x136   : > { %v940_v22 = vmul.f32 %v932_v18, %v932_v18  ;;  %v941_v23 = vmul.f32 %v933_v19, %v933_v19  ;;  %v942_v25 = vmul.f32 %v934_v20, %v934_v20  ;;  %v943_v28 = vmul.f32 %v935_v21, %v935_v21 }
 0x137   : > { %v944_v31 = vmul.f32 %v936_v24, %v936_v24  ;;  %v945_v34 = vmul.f32 %v937_v27, %v937_v27  ;;  %v946_v36 = vmul.f32 %v938_v30, %v938_v30  ;;  %v947_v38 = vmul.f32 %v939_v33, %v939_v33 }
 0x138   : > { %v948_v26 = vadd.f32 %v941_v23, %v940_v22 }
 0x13a   : > { %v949_v29 = vadd.f32 %v948_v26, %v942_v25 }
 0x13c   : > { %v950_v32 = vadd.f32 %v949_v29, %v943_v28 }
 0x13e   : > { %v951_v35 = vadd.f32 %v950_v32, %v944_v31 }
 0x140   : > { %v952_v37 = vadd.f32 %v951_v35, %v945_v34 }
 0x142   : > { %v953_v39 = vadd.f32 %v952_v37, %v946_v36 }
 0x144   : > { %v954_v40 = vadd.f32 %v953_v39, %v947_v38 }
 0x146   : > { %v955_v41 = vrot.slane %v954_v40, 4 }
 0x148   : > { %v956_v42 = vadd.f32 %v955_v41, %v954_v40 }
 0x14a   : > { %v957_v43 = vrot.slane %v956_v42, 2 }
 0x14c   : > { %v958_v44 = vadd.f32 %v957_v43, %v956_v42 }
 0x14e   : > { %v959_v45 = vrot.slane %v958_v44, 1 }
 0x150   : > { %v960_v46 = vadd.f32 %v959_v45, %v958_v44 }
 0x152   : > { %v961_v47 = vmul.f32 0.015625, %v960_v46 }
 0x154   : > { %v962_v48 = vadd.f32 1e-05, %v961_v47 }
 0x156   : > { %1387 = vrsqrt.f32 %v962_v48 }
 0x163   : > { %v1388_v49 = vpop.eup %1387 }
 0x164   : > { %v964_v50 = vmul.f32 %v1388_v49, %v932_v18  ;;  %v965_v51 = vmul.f32 %v1388_v49, %v933_v19  ;;  %v966_v52 = vmul.f32 %v1388_v49, %v934_v20  ;;  %v967_v53 = vmul.f32 %v1388_v49, %v935_v21 }
 0x165   : > { %v968_v54 = vmul.f32 %v1388_v49, %v936_v24  ;;  %v969_v55 = vmul.f32 %v1388_v49, %v937_v27  ;;  %v970_v56 = vmul.f32 %v1388_v49, %v938_v30  ;;  %v971_v57 = vmul.f32 %v1388_v49, %v939_v33 }
 0x166   : > { %v972_v58 = vmax.f32 %v964_v50, 0.0  ;;  %v973_v59 = vmax.f32 %v965_v51, 0.0  ;;  %v974_v60 = vmax.f32 %v966_v52, 0.0  ;;  %v975_v61 = vmax.f32 %v967_v53, 0.0 }
 0x167   : > { %v976_v62 = vmax.f32 %v968_v54, 0.0  ;;  %v977_v63 = vmax.f32 %v969_v55, 0.0  ;;  %v978_v0 = vmax.f32 %v970_v56, 0.0  ;;  %v979_v1 = vmax.f32 %v971_v57, 0.0 }
 0x168   : > { %980 = vst [vmem:[%s224_s28] sm:$0xff] %v972_v58  ;;  %981 = vst [vmem:[%s224_s28 + $0x8] sm:$0xff] %v973_v59 }
 0x169   : > { %982 = vst [vmem:[%s224_s28 + $0x10] sm:$0xff] %v974_v60  ;;  %983 = vst [vmem:[%s224_s28 + $0x18] sm:$0xff] %v975_v61 }
 0x16a   : > { %984 = vst [vmem:[%s224_s28 + $0x20] sm:$0xff] %v976_v62  ;;  %985 = vst [vmem:[%s224_s28 + $0x28] sm:$0xff] %v977_v63 }
 0x16b   : > { %986 = vst [vmem:[%s224_s28 + $0x30] sm:$0xff] %v978_v0  ;;  %987 = vst [vmem:[%s224_s28 + $0x38] sm:$0xff] %v979_v1 }
 0x16c PF: > { %s12_s11 = sadd.s32 1, %s1411_s11   ;;  %s1613_s9 = smov %s1407_s10 }
 0x16d   : > { %p9_p5 = scmp.ge.s32.totalorder %s12_s11, 4   ;;  %s1614_s10 = smov %s1616_s12 }
 0x16f   :  { %11 = sbr.rel (!%p9_p5) target bundleno = 2 (0x2), region = 69 }

// kernel: generator_forward.18
= control target key start
LH: loop header
LB: loop body
LE: loop exit
PB: predicated region body
PF: predicated region fallthrough
CT: control target
= control target key end

     0   :  { %s1150_s9 = smov 0   ;;  %s1152_s10 = smov 0   ;;  %s1305_s0 = inlined_call_operand.vmem [shape: bf16[32,1152], index: 0, kind: input, shape index: {}]   ;;  %s1306_s1 = inlined_call_operand.vmem [shape: bf16[1152,256], index: 1, kind: input, shape index: {}]   ;;  %s1307_s2 = inlined_call_operand.vmem [shape: f32[32,256], index: 2, kind: output, shape index: {}]  }
   0x1   :  { %s1154_s11 = smov 0   ;;  %s1156_s12 = smov 0  }
   0x2   :  { %s1158_s13 = smov 0   ;;  %s1160_s14 = smov 0  }
   0x3   :  { %s1162_s15 = smov 0  }
   0x4 LB: > { %s24_s16 = sadd.s32 1, %s1123_s13  ;;  %s31_s17 = sadd.s32 1, %s1127_s14  ;;  %s1131_s15 = sphi %s1162_s15, %s12_s15   ;;  %s1127_s14 = sphi %s1160_s14, %s1313_s14   ;;  %s1123_s13 = sphi %s1158_s13, %s1312_s13   ;;  %s1119_s12 = sphi %s1156_s12, %s1311_s12   ;;  %s1115_s11 = sphi %s1154_s11, %s1310_s11   ;;  %s1111_s10 = sphi %s1152_s10, %s1309_s10   ;;  %s1107_s9 = sphi %s1150_s9, %s1308_s9  }
   0x5   : > { %p25_p0 = scmp.ge.s32.totalorder %s24_s16, 3  ;;  %p47_p1 = scmp.ne.s32.totalorder %s1111_s10, %s1107_s9 }
   0x6   : > { %p48_p2 = scmp.eq.s32.totalorder %s1131_s15, 0  ;;  %s40_s21 = sadd.s32 1, %s1111_s10 }
   0x7   : > { %s1315_s16 = smov (%p25_p0, %s24_s16), 0  ;;  %s1317_s17 = smov (!%p25_p0, %s31_s17), %s1127_s14 }
   0x8   : > { %p49_p3 = por %p48_p2, %p47_p1  ;;  %p33_p4 = scmp.ge.s32.totalorder %s1317_s17, 2 }
   0x9   : > { %s36_s18 = ssub.s32 %s1123_s13, %s1315_s16  ;;  %p865_p6 = scmp.ge.s32.totalorder %s1131_s15, 6 }
   0xa   : > { %s1319_s17 = smov (%p33_p4, %s1317_s17), 0 }
   0xb   : > { %s35_s19 = ssub.s32 %s1127_s14, %s1319_s17  ;;  %129 = sbr.rel (%p865_p6) target bundleno = 27 (0x1b), region = 16 }
   0xc   : > { %s37_s20 = sor.u32 %s36_s18, %s35_s19 }
   0xd   : > { %p38_p5 = scmp.eq.s32.totalorder %s37_s20, 0 }
   0xf   : > { %s1201_s22 = scalar_select %p38_p5, %s1111_s10, %s40_s21  }
  0x10   : > { %132 = sbr.rel (!%p49_p3) target bundleno = 27 (0x1b), region = 20  ;;  %s134_s23 = sand.u32 (%p49_p3), 1, %s1111_s10  }
  0x11   : > { %s138_s24 = smul.u32 (%p49_p3), 3, %s1123_s13 }
  0x12   : > { %s936_s25 = smul.u32 (%p49_p3), 24, %s134_s23 }
  0x13   : > { %s937_s26 = smul.u32 (%p49_p3), 18, %s1127_s14 }
  0x14   : > { %s136_s4 = scalar_lea.vmem (%p49_p3), [#allocation3], %s936_s25 }
  0x15   : > { %s140_s27 = sadd.s32 %s937_s26, %s138_s24 }
  0x16   : > { %s868_s28 = sshll.u32 %s140_s27, 2 }
  0x17   : > { %s142_s3 = scalar_lea.vmem %s1305_s0, %s868_s28 }
  0x18   : > { %v157_v0 = vld [vmem:[%s142_s3] sm:$0xff]  ;;  %v869_v2 = vld [vmem:[%s142_s3 + $0x8] sm:$0xf]  ;;  %v871_v3 = vld [vmem:[%s142_s3 + $0x2c] sm:$0xf] }
  0x19   : > { %v159_v1 = vld [vmem:[%s142_s3 + $0x24] sm:$0xff]  ;;  %158 = vst [vmem:[%s136_s4] sm:$0xff] %v157_v0  ;;  %870 = vst [vmem:[%s136_s4 + $0x8] sm:$0xf] %v869_v2 }
  0x1a   : > { %160 = vst [vmem:[%s136_s4 + $0xc] sm:$0xff] %v159_v1  ;;  %872 = vst [vmem:[%s136_s4 + $0x14] sm:$0xf] %v871_v3 }
  0x1b PF: > { %p873_p7 = scmp.ge.s32.totalorder %s1131_s15, 1  ;;  %p192_p8 = scmp.lt.s32.totalorder %s1131_s15, 7 }
  0x1d   : > { %p193_p9 = pnand %p873_p7, %p192_p8 }
  0x1e   : > { %s199_s5 = sand.u32 (!%p193_p9), 1, %s1107_s9   ;;  %s237_s6 = smul.u32 (!%p193_p9), 48, %s1115_s11 }
  0x1f   : > { %196 = sbr.rel (%p193_p9) target bundleno = 380 (0x17c), region = 50  ;;  %s876_s8 = sshll.u32 (!%p193_p9), %s1119_s12, 1 }
  0x20   : > { %s938_s7 = smul.u32 (!%p193_p9), 24, %s199_s5  ;;  %p239_p10 = scmp.lt.s32.totalorder (!%p193_p9), %s237_s6, 143 }
  0x21   : > { %p251_p11 = scmp.lt.s32.totalorder (!%p193_p9), %s876_s8, 3  ;;  %p879_p12 = scmp.ne.s32.totalorder (!%p193_p9), %s1115_s11, 0 }
  0x22   : > { %s1225_s9 = scalar_lea.vmem (!%p193_p9), [#allocation3], %s938_s7 }
  0x24   : > { %s1321_s6 = smov (!%p239_p10, %s237_s6), 143  ;;  %s1323_s8 = smov (!%p251_p11, %s876_s8), 3 }
  0x25   : > { %s934_s18 = sshll.u32 %s1321_s6, 3  ;;  %s935_s23 = sshll.u32 %s1323_s8, 4 }
  0x26   : > { %s1218_s21 = scalar_lea.vmem %s1306_s1, %s934_s18  ;;  %s1223_s26 = scalar_lea.vmem %s1307_s2, %s935_s23 }
  0x27   : > { %265 = sbr.rel (%p879_p12) target bundleno = 47 (0x2f), region = 58 }
  0x2c   : > { %v1133_v4 = vmov 0.0  }
  0x2d   : > { %266 = vst [vmem:[#allocation2 + $0x10] sm:$0xff] %v1133_v4  ;;  %267 = vst [vmem:[#allocation2] sm:$0xff] %v1133_v4 }
  0x2e   : > { %268 = vst [vmem:[#allocation2 + $0x18] sm:$0xff] %v1133_v4  ;;  %269 = vst [vmem:[#allocation2 + $0x8] sm:$0xff] %v1133_v4 }
  0x2f PF: > { %v997_v5 = vld [vmem:[%s1218_s21 + $0x74] ss:$8 sps:$4 sm:$0xff]   ;;  %v999_v6 = vld [vmem:[%s1218_s21 + $0x70] ss:$8 sps:$4 sm:$0xff]   ;;  %v1134_v7 = vmov 0   ;;  %p931_p13 = scmp.ne.s32.totalorder %s1115_s11, 2 }
  0x30   : > { %657 = vmatprep.mubr.bf16.mxu1 %v1134_v7  ;;  %582 = vmatprep.subr.bf16.mxu0 %v997_v5  ;;  %v1000_v8 = vld [vmem:[%s1218_s21 + $0x64] ss:$8 sps:$4 sm:$0xff]   ;;  %v1002_v9 = vld [vmem:[%s1218_s21 + $0x60] ss:$8 sps:$4 sm:$0xff]   ;;  %v1003_v10 = vld [vmem:[%s1218_s21 + $0x54] ss:$8 sps:$4 sm:$0xff]  }
  0x31   : > { %583 = vmatpush1.bf16.msra.mxu0 %v999_v6  ;;  %v1005_v11 = vld [vmem:[%s1218_s21 + $0x50] ss:$8 sps:$4 sm:$0xff]   ;;  %v1006_v12 = vld [vmem:[%s1218_s21 + $0x44] ss:$8 sps:$4 sm:$0xff]   ;;  %v1018_v13 = vld [vmem:[%s1218_s21 + $0x174] ss:$8 sps:$4 sm:$0xff]  }
  0x32   : > { %584 = vmatprep.subr.bf16.mxu0 %v1000_v8  ;;  %v1020_v14 = vld [vmem:[%s1218_s21 + $0x170] ss:$8 sps:$4 sm:$0xff]   ;;  %v1008_v15 = vld [vmem:[%s1218_s21 + $0x40] ss:$8 sps:$4 sm:$0xff]   ;;  %v1009_v16 = vld [vmem:[%s1218_s21 + $0x34] ss:$8 sps:$4 sm:$0xff]   ;;  %625 = vmatprep.subr.bf16.mxu1 %v1018_v13 }
  0x33   : > { %v1024_v17 = vld [vmem:[%s1218_s21 + $0x164] ss:$8 sps:$4 sm:$0xff]   ;;  %626 = vmatpush1.bf16.msra.mxu1 %v1020_v14  ;;  %v1026_v18 = vld [vmem:[%s1218_s21 + $0x160] ss:$8 sps:$4 sm:$0xff]   ;;  %v1011_v19 = vld [vmem:[%s1218_s21 + $0x30] ss:$8 sps:$4 sm:$0xff]  }
  0x34   : > { %627 = vmatprep.subr.bf16.mxu1 %v1024_v17  ;;  %v1030_v20 = vld [vmem:[%s1218_s21 + $0x154] ss:$8 sps:$4 sm:$0xff]   ;;  %v1012_v21 = vld [vmem:[%s1218_s21 + $0x24] ss:$8 sps:$4 sm:$0xff]   ;;  %v1032_v22 = vld [vmem:[%s1218_s21 + $0x150] ss:$8 sps:$4 sm:$0xff]  }
  0x35   : > { %585 = vmatpush1.bf16.msra.mxu0 %v1002_v9  ;;  %v1036_v23 = vld [vmem:[%s1218_s21 + $0x144] ss:$8 sps:$4 sm:$0xff]   ;;  %v1014_v24 = vld [vmem:[%s1218_s21 + $0x20] ss:$8 sps:$4 sm:$0xff]   ;;  %v1015_v25 = vld [vmem:[%s1218_s21 + $0x14] ss:$8 sps:$4 sm:$0xff]  }
  0x36   : > { %586 = vmatprep.subr.bf16.mxu0 %v1003_v10  ;;  %v1038_v26 = vld [vmem:[%s1218_s21 + $0x140] ss:$8 sps:$4 sm:$0xff]   ;;  %v1042_v27 = vld [vmem:[%s1218_s21 + $0x134] ss:$8 sps:$4 sm:$0xff]   ;;  %v1017_v28 = vld [vmem:[%s1218_s21 + $0x10] ss:$8 sps:$4 sm:$0xff]  }
  0x37   : > { %628 = vmatpush1.bf16.msra.mxu1 %v1026_v18  ;;  %v1021_v29 = vld [vmem:[%s1218_s21 + $0x4] ss:$8 sps:$4 sm:$0xff]   ;;  %v1044_v30 = vld [vmem:[%s1218_s21 + $0x130] ss:$8 sps:$4 sm:$0xff]   ;;  %v1023_v32 = vld [vmem:[%s1218_s21] ss:$8 sps:$4 sm:$0xff]  }
  0x38   : > { %629 = vmatprep.subr.bf16.mxu1 %v1030_v20  ;;  %v1048_v31 = vld [vmem:[%s1218_s21 + $0x124] ss:$8 sps:$4 sm:$0xff]   ;;  %v1027_v33 = vld [vmem:[%s1218_s21 + $0xf4] ss:$8 sps:$4 sm:$0xff]   ;;  %v1050_v34 = vld [vmem:[%s1218_s21 + $0x120] ss:$8 sps:$4 sm:$0xff]  }
  0x39   : > { %587 = vmatpush1.bf16.msra.mxu0 %v1005_v11  ;;  %v1054_v35 = vld [vmem:[%s1218_s21 + $0x114] ss:$8 sps:$4 sm:$0xff]   ;;  %v1029_v36 = vld [vmem:[%s1218_s21 + $0xf0] ss:$8 sps:$4 sm:$0xff]   ;;  %v1033_v37 = vld [vmem:[%s1218_s21 + $0xe4] ss:$8 sps:$4 sm:$0xff]  }
  0x3a   : > { %588 = vmatprep.subr.bf16.mxu0 %v1006_v12  ;;  %v1056_v38 = vld [vmem:[%s1218_s21 + $0x110] ss:$8 sps:$4 sm:$0xff]   ;;  %v1060_v39 = vld [vmem:[%s1218_s21 + $0x104] ss:$8 sps:$4 sm:$0xff]   ;;  %v1035_v41 = vld [vmem:[%s1218_s21 + $0xe0] ss:$8 sps:$4 sm:$0xff]  }
  0x3b   : > { %630 = vmatpush1.bf16.msra.mxu1 %v1032_v22  ;;  %v1072_v40 = vld [vmem:[%s1225_s9 + $0x4] ss:$12 sps:$4 sm:$0xff]   ;;  %v1066_v46 = vld [vmem:[%s1225_s9 + $0x8] ss:$12 sps:$4 sm:$0xff]   ;;  %v1070_v56 = vld [vmem:[%s1225_s9] ss:$12 sps:$4 sm:$0xff]  }
  0x3c   : > { %631 = vmatprep.subr.bf16.mxu1 %v1036_v23  ;;  %v1039_v42 = vld [vmem:[%s1218_s21 + $0xd4] ss:$8 sps:$4 sm:$0xff]   ;;  %614 = vmatprep.mubr.bf16.mxu0 %v1072_v40  ;;  %v1062_v43 = vld [vmem:[%s1218_s21 + $0x100] ss:$8 sps:$4 sm:$0xff]   ;;  %v1041_v44 = vld [vmem:[%s1218_s21 + $0xd0] ss:$8 sps:$4 sm:$0xff]  }
  0x3d   : > { %589 = vmatpush1.bf16.msra.mxu0 %v1008_v15  ;;  %v1045_v45 = vld [vmem:[%s1218_s21 + $0xc4] ss:$8 sps:$4 sm:$0xff]   ;;  %v1047_v47 = vld [vmem:[%s1218_s21 + $0xc0] ss:$8 sps:$4 sm:$0xff]   ;;  %v1051_v48 = vld [vmem:[%s1218_s21 + $0xb4] ss:$8 sps:$4 sm:$0xff]  }
  0x3e   : > { %590 = vmatprep.subr.bf16.mxu0 %v1009_v16  ;;  %v1053_v49 = vld [vmem:[%s1218_s21 + $0xb0] ss:$8 sps:$4 sm:$0xff]   ;;  %v1057_v50 = vld [vmem:[%s1218_s21 + $0xa4] ss:$8 sps:$4 sm:$0xff]   ;;  %v1059_v51 = vld [vmem:[%s1218_s21 + $0xa0] ss:$8 sps:$4 sm:$0xff]  }
  0x3f   : > { %632 = vmatpush1.bf16.msra.mxu1 %v1038_v26  ;;  %v1063_v52 = vld [vmem:[%s1218_s21 + $0x94] ss:$8 sps:$4 sm:$0xff]   ;;  %v1065_v53 = vld [vmem:[%s1218_s21 + $0x90] ss:$8 sps:$4 sm:$0xff]   ;;  %v1067_v54 = vld [vmem:[%s1218_s21 + $0x84] ss:$8 sps:$4 sm:$0xff]  }
  0x40   : > { %633 = vmatprep.subr.bf16.mxu1 %v1042_v27  ;;  %v1069_v55 = vld [vmem:[%s1218_s21 + $0x80] ss:$8 sps:$4 sm:$0xff]   ;;  %v270_v59 = vld [vmem:[#allocation2 + $0x10] sm:$0xff]  ;;  %v272_v3 = vld [vmem:[#allocation2 + $0x18] sm:$0xff] }
  0x41   : > { %591 = vmatpush1.bf16.msra.mxu0 %v1011_v19  ;;  %v271_v63 = vld [vmem:[#allocation2] sm:$0xff]  ;;  %v273_v8 = vld [vmem:[#allocation2 + $0x8] sm:$0xff] }
  0x42   : > { %592 = vmatprep.subr.bf16.mxu0 %v1012_v21 }
  0x43   : > { %634 = vmatpush1.bf16.msra.mxu1 %v1044_v30 }
  0x44   : > { %635 = vmatprep.subr.bf16.mxu1 %v1048_v31 }
  0x45   : > { %593 = vmatpush1.bf16.msra.mxu0 %v1014_v24 }
  0x46   : > { %594 = vmatprep.subr.bf16.mxu0 %v1015_v25 }
  0x47   : > { %636 = vmatpush1.bf16.msra.mxu1 %v1050_v34 }
  0x48   : > { %637 = vmatprep.subr.bf16.mxu1 %v1054_v35 }
  0x49   : > { %595 = vmatpush1.bf16.msra.mxu0 %v1017_v28 }
  0x4a   : > { %596 = vmatprep.subr.bf16.mxu0 %v1021_v29 }
  0x4b   : > { %638 = vmatpush1.bf16.msra.mxu1 %v1056_v38 }
  0x4c   : > { %639 = vmatprep.subr.bf16.mxu1 %v1060_v39 }
  0x4d   : > { %597 = vmatpush1.bf16.msra.mxu0 %v1023_v32 }
  0x4e   : > { %598 = vmatprep.subr.bf16.mxu0 %v1027_v33 }
  0x4f   : > { %640 = vmatpush1.bf16.msra.mxu1 %v1062_v43 }
  0x51   : > { %599 = vmatpush2.bf16.msra.mxu0 %v1029_v36 }
  0x52   : > { %600 = vmatprep.subr.bf16.mxu0 %v1033_v37  ;;  %658 = vmatmul.mubr.bf16.vlgmr.msra.gmra.mxu1 %v1066_v46 }
  0x55   : > { %601 = vmatpush2.bf16.msra.mxu0 %v1035_v41 }
  0x56   : > { %602 = vmatprep.subr.bf16.mxu0 %v1039_v42 }
  0x59   : > { %603 = vmatpush2.bf16.msra.mxu0 %v1041_v44 }
  0x5a   : > { %604 = vmatprep.subr.bf16.mxu0 %v1045_v45 }
  0x5d   : > { %605 = vmatpush2.bf16.msra.mxu0 %v1047_v47 }
  0x5e   : > { %606 = vmatprep.subr.bf16.mxu0 %v1051_v48 }
  0x61   : > { %607 = vmatpush2.bf16.msra.mxu0 %v1053_v49 }
  0x62   : > { %608 = vmatprep.subr.bf16.mxu0 %v1057_v50 }
  0x65   : > { %609 = vmatpush2.bf16.msra.mxu0 %v1059_v51 }
  0x66   : > { %610 = vmatprep.subr.bf16.mxu0 %v1063_v52 }
  0x69   : > { %611 = vmatpush2.bf16.msra.mxu0 %v1065_v53 }
  0x6a   : > { %612 = vmatprep.subr.bf16.mxu0 %v1067_v54 }
  0x6d   : > { %613 = vmatpush2.bf16.msra.mxu0 %v1069_v55 }
  0x70   : > { %615 = vmatmul.mubr.bf16.vlgmr.msra.gmra.mxu0 %v1070_v56 }
 0x112   : > { %v659_v57 = vpop.f32.mrf.mxu1 }
 0x114   : > { %v661_v58 = vpop.f32.mrf.mxu1 }
 0x116   : > { %v663_v62 = vpop.f32.mrf.mxu1 }
 0x118   : > { %v665_v7 = vpop.f32.mrf.mxu1 }
 0x130   : > { %v616_v60 = vpop.f32.mrf.mxu0 }
 0x131   : > { %v660_v61 = vadd.f32 %v659_v57, %v616_v60 }
 0x132   : > { %v618_v0 = vpop.f32.mrf.mxu0 }
 0x133   : > { %v668_v1 = vadd.f32 %v660_v61, %v270_v59  ;;  %v662_v2 = vadd.f32 %v661_v58, %v618_v0 }
 0x134   : > { %v620_v4 = vpop.f32.mrf.mxu0 }
 0x135   : > { %672 = vst [vmem:[#allocation2 + $0x10] sm:$0xff] %v668_v1  ;;  %v669_v5 = vadd.f32 %v662_v2, %v271_v63  ;;  %v664_v6 = vadd.f32 %v663_v62, %v620_v4 }
 0x136   : > { %v622_v9 = vpop.f32.mrf.mxu0 }
 0x137   : > { %673 = vst [vmem:[#allocation2] sm:$0xff] %v669_v5  ;;  %v670_v10 = vadd.f32 %v664_v6, %v272_v3  ;;  %v666_v11 = vadd.f32 %v665_v7, %v622_v9  ;;  %679 = sbr.rel (%p931_p13) target bundleno = 380 (0x17c), region = 62 }
 0x139   : > { %674 = vst [vmem:[#allocation2 + $0x18] sm:$0xff] %v670_v10  ;;  %v671_v12 = vadd.f32 %v666_v11, %v273_v8 }
 0x13b   : > { %675 = vst [vmem:[#allocation2 + $0x8] sm:$0xff] %v671_v12 }
 0x13c   : > { %v680_v13 = vld [vmem:[#allocation2 + $0x10] sm:$0xff] }
 0x13e   : > { %v681_v15 = vld [vmem:[#allocation2] sm:$0xff] }
 0x140   : > { %v682_v14 = vld [vmem:[#allocation2 + $0x18] sm:$0xff] }
 0x141   : > { %v684_v16 = vadd.f32 %v682_v14, %v680_v13 }
 0x142   : > { %v683_v17 = vld [vmem:[#allocation2 + $0x8] sm:$0xff] }
 0x143   : > { %v691_v18 = vadd.f32 %v683_v17, %v681_v15  ;;  %v685_v19 = vrot.slane %v684_v16, 4 }
 0x145   : > { %v692_v20 = vrot.slane %v691_v18, 4  ;;  %v686_v21 = vadd.f32 %v685_v19, %v684_v16 }
 0x147   : > { %v693_v22 = vadd.f32 %v692_v20, %v691_v18  ;;  %v687_v23 = vrot.slane %v686_v21, 2 }
 0x149   : > { %v694_v24 = vrot.slane %v693_v22, 2  ;;  %v688_v25 = vadd.f32 %v687_v23, %v686_v21 }
 0x14b   : > { %v695_v26 = vadd.f32 %v694_v24, %v693_v22  ;;  %v689_v27 = vrot.slane %v688_v25, 1 }
 0x14d   : > { %v696_v28 = vrot.slane %v695_v26, 1  ;;  %v690_v29 = vadd.f32 %v689_v27, %v688_v25 }
 0x14f   : > { %v697_v30 = vadd.f32 %v696_v28, %v695_v26  ;;  %v699_v31 = vmul.f32 0.0625, %v690_v29 }
 0x151   : > { %v700_v32 = vmul.f32 0.0625, %v697_v30  ;;  %v701_v33 = vsub.f32 %v680_v13, %v699_v31  ;;  %v703_v34 = vsub.f32 %v682_v14, %v699_v31 }
 0x153   : > { %v702_v35 = vsub.f32 %v681_v15, %v700_v32  ;;  %v704_v36 = vsub.f32 %v683_v17, %v700_v32  ;;  %v705_v37 = vmul.f32 %v701_v33, %v701_v33  ;;  %v707_v38 = vmul.f32 %v703_v34, %v703_v34 }
 0x155   : > { %v706_v39 = vmul.f32 %v702_v35, %v702_v35  ;;  %v708_v40 = vmul.f32 %v704_v36, %v704_v36  ;;  %v709_v41 = vadd.f32 %v707_v38, %v705_v37 }
 0x157   : > { %v716_v42 = vadd.f32 %v708_v40, %v706_v39  ;;  %v710_v43 = vrot.slane %v709_v41, 4 }
 0x159   : > { %v717_v44 = vrot.slane %v716_v42, 4  ;;  %v711_v45 = vadd.f32 %v710_v43, %v709_v41 }
 0x15b   : > { %v718_v46 = vadd.f32 %v717_v44, %v716_v42  ;;  %v712_v47 = vrot.slane %v711_v45, 2 }
 0x15d   : > { %v719_v48 = vrot.slane %v718_v46, 2  ;;  %v713_v49 = vadd.f32 %v712_v47, %v711_v45 }
 0x15f   : > { %v720_v50 = vadd.f32 %v719_v48, %v718_v46  ;;  %v714_v51 = vrot.slane %v713_v49, 1 }
 0x161   : > { %v721_v52 = vrot.slane %v720_v50, 1  ;;  %v715_v53 = vadd.f32 %v714_v51, %v713_v49 }
 0x163   : > { %v722_v54 = vadd.f32 %v721_v52, %v720_v50  ;;  %v723_v55 = vmul.f32 0.0625, %v715_v53 }
 0x165   : > { %v724_v56 = vmul.f32 0.0625, %v722_v54  ;;  %v725_v57 = vadd.f32 1e-05, %v723_v55 }
 0x167   : > { %v726_v58 = vadd.f32 1e-05, %v724_v56  ;;  %1073 = vrsqrt.f32 %v725_v57 }
 0x169   : > { %1075 = vrsqrt.f32 %v726_v58 }
 0x174   : > { %v1074_v59 = vpop.eup %1073 }
 0x175   : > { %v729_v61 = vmul.f32 %v1074_v59, %v701_v33  ;;  %v731_v62 = vmul.f32 %v1074_v59, %v703_v34 }
 0x176   : > { %v1076_v60 = vpop.eup %1075 }
 0x177   : > { %v730_v63 = vmul.f32 %v1076_v60, %v702_v35  ;;  %v732_v0 = vmul.f32 %v1076_v60, %v704_v36  ;;  %v733_v1 = vmax.f32 %v729_v61, 0.0  ;;  %v735_v2 = vmax.f32 %v731_v62, 0.0 }
 0x179   : > { %v734_v3 = vmax.f32 %v730_v63, 0.0  ;;  %v736_v4 = vmax.f32 %v732_v0, 0.0  ;;  %737 = vst [vmem:[%s1223_s26] sm:$0xff] %v733_v1  ;;  %739 = vst [vmem:[%s1223_s26 + $0x10] sm:$0xff] %v735_v2 }
 0x17b   : > { %738 = vst [vmem:[%s1223_s26 + $0x8] sm:$0xff] %v734_v3  ;;  %740 = vst [vmem:[%s1223_s26 + $0x18] sm:$0xff] %v736_v4 }
 0x17c PF: > { %s12_s15 = sadd.s32 1, %s1131_s15   ;;  %s1308_s9 = smov %s1111_s10 }
 0x17d   : > { %p9_p0 = scmp.ge.s32.totalorder %s12_s15, 8   ;;  %s1309_s10 = smov %s1201_s22 }
 0x17e   : > { %s1310_s11 = smov %s1123_s13  ;;  %s1311_s12 = smov %s1127_s14 }
 0x17f   : > { %s1312_s13 = smov %s1315_s16  ;;  %s1313_s14 = smov %s1319_s17 }
 0x180   :  { %11 = sbr.rel (!%p9_p0) target bundleno = 4 (0x4), region = 106 }

// kernel: generator_forward.19
= control target key start
LH: loop header
LB: loop body
LE: loop exit
PB: predicated region body
PF: predicated region fallthrough
CT: control target
= control target key end

     0   :  { %s1608_s9 = smov 0   ;;  %s1610_s10 = smov 0   ;;  %s1814_s0 = inlined_call_operand.vmem [shape: bf16[32,2304], index: 0, kind: input, shape index: {}]   ;;  %s1815_s1 = inlined_call_operand.vmem [shape: bf16[2304,256], index: 1, kind: input, shape index: {}]   ;;  %s1816_s2 = inlined_call_operand.vmem [shape: f32[32,256], index: 2, kind: output, shape index: {}]  }
   0x1   :  { %s1612_s11 = smov 0   ;;  %s1614_s12 = smov 0  }
   0x2   :  { %s1616_s13 = smov 0   ;;  %s1618_s14 = smov 0  }
   0x3   :  { %s1620_s15 = smov 0  }
   0x4 LB: > { %s24_s16 = sadd.s32 1, %s1582_s13  ;;  %s31_s17 = sadd.s32 1, %s1586_s14  ;;  %s1590_s15 = sphi %s1620_s15, %s12_s15   ;;  %s1586_s14 = sphi %s1618_s14, %s1822_s14   ;;  %s1582_s13 = sphi %s1616_s13, %s1821_s13   ;;  %s1578_s12 = sphi %s1614_s12, %s1820_s12   ;;  %s1574_s11 = sphi %s1612_s11, %s1819_s11   ;;  %s1570_s10 = sphi %s1610_s10, %s1818_s10   ;;  %s1566_s9 = sphi %s1608_s9, %s1817_s9  }
   0x5   : > { %p25_p0 = scmp.ge.s32.totalorder %s24_s16, 3  ;;  %p47_p1 = scmp.ne.s32.totalorder %s1570_s10, %s1566_s9 }
   0x6   : > { %p48_p2 = scmp.eq.s32.totalorder %s1590_s15, 0  ;;  %s40_s21 = sadd.s32 1, %s1570_s10 }
   0x7   : > { %s1824_s16 = smov (%p25_p0, %s24_s16), 0  ;;  %s1826_s17 = smov (!%p25_p0, %s31_s17), %s1586_s14 }
   0x8   : > { %p49_p3 = por %p48_p2, %p47_p1  ;;  %p33_p4 = scmp.ge.s32.totalorder %s1826_s17, 2 }
   0x9   : > { %s36_s18 = ssub.s32 %s1582_s13, %s1824_s16  ;;  %p1201_p6 = scmp.ge.s32.totalorder %s1590_s15, 6 }
   0xa   : > { %s1828_s17 = smov (%p33_p4, %s1826_s17), 0 }
   0xb   : > { %s35_s19 = ssub.s32 %s1586_s14, %s1828_s17  ;;  %129 = sbr.rel (%p1201_p6) target bundleno = 28 (0x1c), region = 16 }
   0xc   : > { %s37_s20 = sor.u32 %s36_s18, %s35_s19 }
   0xd   : > { %p38_p5 = scmp.eq.s32.totalorder %s37_s20, 0 }
   0xf   : > { %s1659_s22 = scalar_select %p38_p5, %s1570_s10, %s40_s21  }
  0x10   : > { %132 = sbr.rel (!%p49_p3) target bundleno = 28 (0x1c), region = 20  ;;  %s134_s23 = sand.u32 (%p49_p3), 1, %s1570_s10  }
  0x11   : > { %s138_s24 = smul.u32 (%p49_p3), 6, %s1582_s13 }
  0x12   : > { %s1319_s25 = smul.u32 (%p49_p3), 48, %s134_s23 }
  0x13   : > { %s1320_s26 = smul.u32 (%p49_p3), 36, %s1586_s14 }
  0x14   : > { %s136_s4 = scalar_lea.vmem (%p49_p3), [#allocation3], %s1319_s25 }
  0x15   : > { %s140_s27 = sadd.s32 %s1320_s26, %s138_s24 }
  0x16   : > { %s1204_s28 = sshll.u32 %s140_s27, 2 }
  0x17   : > { %s142_s3 = scalar_lea.vmem %s1814_s0, %s1204_s28 }
  0x18   : > { %v155_v0 = vld [vmem:[%s142_s3] sm:$0xff]  ;;  %v157_v1 = vld [vmem:[%s142_s3 + $0x8] sm:$0xff]  ;;  %v159_v2 = vld [vmem:[%s142_s3 + $0x10] sm:$0xff] }
  0x19   : > { %156 = vst [vmem:[%s136_s4] sm:$0xff] %v155_v0  ;;  %158 = vst [vmem:[%s136_s4 + $0x8] sm:$0xff] %v157_v1  ;;  %v161_v3 = vld [vmem:[%s142_s3 + $0x48] sm:$0xff]  ;;  %v163_v4 = vld [vmem:[%s142_s3 + $0x50] sm:$0xff] }
  0x1a   : > { %160 = vst [vmem:[%s136_s4 + $0x10] sm:$0xff] %v159_v2  ;;  %v165_v5 = vld [vmem:[%s142_s3 + $0x58] sm:$0xff]  ;;  %162 = vst [vmem:[%s136_s4 + $0x18] sm:$0xff] %v161_v3 }
  0x1b   : > { %164 = vst [vmem:[%s136_s4 + $0x20] sm:$0xff] %v163_v4  ;;  %166 = vst [vmem:[%s136_s4 + $0x28] sm:$0xff] %v165_v5 }
  0x1c PF: > { %p1205_p7 = scmp.ge.s32.totalorder %s1590_s15, 1  ;;  %p186_p8 = scmp.lt.s32.totalorder %s1590_s15, 7 }
  0x1e   : > { %p187_p9 = pnand %p1205_p7, %p186_p8 }
  0x1f   : > { %s193_s5 = sand.u32 (!%p187_p9), 1, %s1566_s9   ;;  %s231_s6 = smul.u32 (!%p187_p9), 96, %s1574_s11 }
  0x20   : > { %190 = sbr.rel (%p187_p9) target bundleno = 445 (0x1bd), region = 47  ;;  %s1208_s8 = sshll.u32 (!%p187_p9), %s1578_s12, 1 }
  0x21   : > { %s1321_s7 = smul.u32 (!%p187_p9), 48, %s193_s5  ;;  %p233_p10 = scmp.lt.s32.totalorder (!%p187_p9), %s231_s6, 287 }
  0x22   : > { %p245_p11 = scmp.lt.s32.totalorder (!%p187_p9), %s1208_s8, 3  ;;  %p1211_p12 = scmp.ne.s32.totalorder (!%p187_p9), %s1574_s11, 0 }
  0x23   : > { %s1683_s9 = scalar_lea.vmem (!%p187_p9), [#allocation3], %s1321_s7 }
  0x25   : > { %s1830_s6 = smov (!%p233_p10, %s231_s6), 287  ;;  %s1832_s8 = smov (!%p245_p11, %s1208_s8), 3 }
  0x26   : > { %s1317_s18 = sshll.u32 %s1830_s6, 3  ;;  %s1318_s23 = sshll.u32 %s1832_s8, 4 }
  0x27   : > { %s1676_s21 = scalar_lea.vmem %s1815_s1, %s1317_s18  ;;  %s1681_s26 = scalar_lea.vmem %s1816_s2, %s1318_s23 }
  0x28   : > { %258 = sbr.rel (%p1211_p12) target bundleno = 48 (0x30), region = 55 }
  0x2d   : > { %v1592_v6 = vmov 0.0  }
  0x2e   : > { %259 = vst [vmem:[#allocation2 + $0x10] sm:$0xff] %v1592_v6  ;;  %260 = vst [vmem:[#allocation2] sm:$0xff] %v1592_v6 }
  0x2f   : > { %261 = vst [vmem:[#allocation2 + $0x18] sm:$0xff] %v1592_v6  ;;  %262 = vst [vmem:[#allocation2 + $0x8] sm:$0xff] %v1592_v6 }
  0x30 PF: > { %v1379_v7 = vld [vmem:[%s1676_s21 + $0x74] ss:$8 sps:$4 sm:$0xff]   ;;  %v1383_v9 = vld [vmem:[%s1676_s21 + $0x70] ss:$8 sps:$4 sm:$0xff]   ;;  %v1385_v11 = vld [vmem:[%s1676_s21 + $0x64] ss:$8 sps:$4 sm:$0xff]  }
  0x31   : > { %v1381_v8 = vld [vmem:[%s1676_s21 + $0x174] ss:$8 sps:$4 sm:$0xff]   ;;  %879 = vmatprep.subr.bf16.mxu0 %v1379_v7  ;;  %v1384_v10 = vld [vmem:[%s1676_s21 + $0x170] ss:$8 sps:$4 sm:$0xff]   ;;  %v1387_v12 = vld [vmem:[%s1676_s21 + $0x164] ss:$8 sps:$4 sm:$0xff]  }
  0x32   : > { %922 = vmatprep.subr.bf16.mxu1 %v1381_v8  ;;  %880 = vmatpush1.bf16.msra.mxu0 %v1383_v9  ;;  %v1389_v13 = vld [vmem:[%s1676_s21 + $0x60] ss:$8 sps:$4 sm:$0xff]   ;;  %v1391_v15 = vld [vmem:[%s1676_s21 + $0x54] ss:$8 sps:$4 sm:$0xff]   ;;  %v1395_v17 = vld [vmem:[%s1676_s21 + $0x50] ss:$8 sps:$4 sm:$0xff]  }
  0x33   : > { %923 = vmatpush1.bf16.msra.mxu1 %v1384_v10  ;;  %881 = vmatprep.subr.bf16.mxu0 %v1385_v11  ;;  %v1390_v14 = vld [vmem:[%s1676_s21 + $0x160] ss:$8 sps:$4 sm:$0xff]   ;;  %v1393_v16 = vld [vmem:[%s1676_s21 + $0x154] ss:$8 sps:$4 sm:$0xff]   ;;  %v1396_v18 = vld [vmem:[%s1676_s21 + $0x150] ss:$8 sps:$4 sm:$0xff]  }
  0x34   : > { %924 = vmatprep.subr.bf16.mxu1 %v1387_v12  ;;  %v1397_v19 = vld [vmem:[%s1676_s21 + $0x44] ss:$8 sps:$4 sm:$0xff]   ;;  %v1401_v21 = vld [vmem:[%s1676_s21 + $0x40] ss:$8 sps:$4 sm:$0xff]   ;;  %v1403_v23 = vld [vmem:[%s1676_s21 + $0x34] ss:$8 sps:$4 sm:$0xff]  }
  0x35   : > { %v1399_v20 = vld [vmem:[%s1676_s21 + $0x144] ss:$8 sps:$4 sm:$0xff]   ;;  %v1402_v22 = vld [vmem:[%s1676_s21 + $0x140] ss:$8 sps:$4 sm:$0xff]   ;;  %v1405_v24 = vld [vmem:[%s1676_s21 + $0x134] ss:$8 sps:$4 sm:$0xff]  }
  0x36   : > { %882 = vmatpush1.bf16.msra.mxu0 %v1389_v13  ;;  %v1407_v25 = vld [vmem:[%s1676_s21 + $0x30] ss:$8 sps:$4 sm:$0xff]   ;;  %v1409_v27 = vld [vmem:[%s1676_s21 + $0x24] ss:$8 sps:$4 sm:$0xff]   ;;  %v1413_v29 = vld [vmem:[%s1676_s21 + $0x20] ss:$8 sps:$4 sm:$0xff]  }
  0x37   : > { %925 = vmatpush1.bf16.msra.mxu1 %v1390_v14  ;;  %883 = vmatprep.subr.bf16.mxu0 %v1391_v15  ;;  %v1408_v26 = vld [vmem:[%s1676_s21 + $0x130] ss:$8 sps:$4 sm:$0xff]   ;;  %v1411_v28 = vld [vmem:[%s1676_s21 + $0x124] ss:$8 sps:$4 sm:$0xff]   ;;  %v1414_v30 = vld [vmem:[%s1676_s21 + $0x120] ss:$8 sps:$4 sm:$0xff]  }
  0x38   : > { %926 = vmatprep.subr.bf16.mxu1 %v1393_v16  ;;  %v1415_v31 = vld [vmem:[%s1676_s21 + $0x14] ss:$8 sps:$4 sm:$0xff]   ;;  %v1419_v33 = vld [vmem:[%s1676_s21 + $0x10] ss:$8 sps:$4 sm:$0xff]   ;;  %v1421_v35 = vld [vmem:[%s1676_s21 + $0x4] ss:$8 sps:$4 sm:$0xff]  }
  0x39   : > { %v1417_v32 = vld [vmem:[%s1676_s21 + $0x114] ss:$8 sps:$4 sm:$0xff]   ;;  %v1420_v34 = vld [vmem:[%s1676_s21 + $0x110] ss:$8 sps:$4 sm:$0xff]   ;;  %v1423_v36 = vld [vmem:[%s1676_s21 + $0x104] ss:$8 sps:$4 sm:$0xff]  }
  0x3a   : > { %884 = vmatpush1.bf16.msra.mxu0 %v1395_v17  ;;  %v1425_v37 = vld [vmem:[%s1676_s21] ss:$8 sps:$4 sm:$0xff]   ;;  %v1427_v39 = vld [vmem:[%s1676_s21 + $0xf4] ss:$8 sps:$4 sm:$0xff]   ;;  %v1431_v41 = vld [vmem:[%s1676_s21 + $0xf0] ss:$8 sps:$4 sm:$0xff]  }
  0x3b   : > { %927 = vmatpush1.bf16.msra.mxu1 %v1396_v18  ;;  %885 = vmatprep.subr.bf16.mxu0 %v1397_v19  ;;  %v1426_v38 = vld [vmem:[%s1676_s21 + $0x100] ss:$8 sps:$4 sm:$0xff]   ;;  %v1429_v40 = vld [vmem:[%s1676_s21 + $0x1f4] ss:$8 sps:$4 sm:$0xff]   ;;  %v1432_v42 = vld [vmem:[%s1676_s21 + $0x1f0] ss:$8 sps:$4 sm:$0xff]  }
  0x3c   : > { %928 = vmatprep.subr.bf16.mxu1 %v1399_v20  ;;  %v1433_v43 = vld [vmem:[%s1676_s21 + $0xe4] ss:$8 sps:$4 sm:$0xff]   ;;  %v1437_v45 = vld [vmem:[%s1676_s21 + $0xe0] ss:$8 sps:$4 sm:$0xff]   ;;  %v1439_v47 = vld [vmem:[%s1676_s21 + $0xd4] ss:$8 sps:$4 sm:$0xff]  }
  0x3d   : > { %v1435_v44 = vld [vmem:[%s1676_s21 + $0x1e4] ss:$8 sps:$4 sm:$0xff]   ;;  %v1438_v46 = vld [vmem:[%s1676_s21 + $0x1e0] ss:$8 sps:$4 sm:$0xff]   ;;  %v1441_v48 = vld [vmem:[%s1676_s21 + $0x1d4] ss:$8 sps:$4 sm:$0xff]  }
  0x3e   : > { %886 = vmatpush1.bf16.msra.mxu0 %v1401_v21  ;;  %v1443_v49 = vld [vmem:[%s1676_s21 + $0xd0] ss:$8 sps:$4 sm:$0xff]   ;;  %v1445_v51 = vld [vmem:[%s1676_s21 + $0xc4] ss:$8 sps:$4 sm:$0xff]   ;;  %v1449_v53 = vld [vmem:[%s1676_s21 + $0xc0] ss:$8 sps:$4 sm:$0xff]  }
  0x3f   : > { %929 = vmatpush1.bf16.msra.mxu1 %v1402_v22  ;;  %887 = vmatprep.subr.bf16.mxu0 %v1403_v23  ;;  %v1444_v50 = vld [vmem:[%s1676_s21 + $0x1d0] ss:$8 sps:$4 sm:$0xff]   ;;  %v1447_v52 = vld [vmem:[%s1676_s21 + $0x1c4] ss:$8 sps:$4 sm:$0xff]   ;;  %v1450_v54 = vld [vmem:[%s1676_s21 + $0x1c0] ss:$8 sps:$4 sm:$0xff]  }
  0x40   : > { %930 = vmatprep.subr.bf16.mxu1 %v1405_v24  ;;  %v1451_v55 = vld [vmem:[%s1676_s21 + $0xb4] ss:$8 sps:$4 sm:$0xff]   ;;  %v1455_v59 = vld [vmem:[%s1676_s21 + $0xb0] ss:$8 sps:$4 sm:$0xff]   ;;  %v1457_v61 = vld [vmem:[%s1676_s21 + $0xa4] ss:$8 sps:$4 sm:$0xff]  }
  0x41   : > { %v1477_v56 = vld [vmem:[%s1683_s9 + $0x4] ss:$24 sps:$4 sm:$0xff]   ;;  %v1456_v60 = vld [vmem:[%s1676_s21 + $0x1b0] ss:$8 sps:$4 sm:$0xff]   ;;  %v1461_v63 = vld [vmem:[%s1676_s21 + $0xa0] ss:$8 sps:$4 sm:$0xff]  }
  0x42   : > { %888 = vmatpush1.bf16.msra.mxu0 %v1407_v25  ;;  %v1453_v57 = vld [vmem:[%s1676_s21 + $0x1b4] ss:$8 sps:$4 sm:$0xff]   ;;  %911 = vmatprep.mubr.bf16.mxu0 %v1477_v56  ;;  %v1459_v62 = vld [vmem:[%s1676_s21 + $0x1a4] ss:$8 sps:$4 sm:$0xff]   ;;  %v1462_v0 = vld [vmem:[%s1676_s21 + $0x1a0] ss:$8 sps:$4 sm:$0xff]  }
  0x43   : > { %931 = vmatpush1.bf16.msra.mxu1 %v1408_v26  ;;  %889 = vmatprep.subr.bf16.mxu0 %v1409_v27  ;;  %v1480_v58 = vld [vmem:[%s1683_s9 + $0xc] ss:$24 sps:$4 sm:$0xff]   ;;  %v1467_v3 = vld [vmem:[%s1676_s21 + $0x90] ss:$8 sps:$4 sm:$0xff]   ;;  %v1473_v7 = vld [vmem:[%s1676_s21 + $0x80] ss:$8 sps:$4 sm:$0xff]  }
  0x44   : > { %932 = vmatprep.subr.bf16.mxu1 %v1411_v28  ;;  %954 = vmatprep.mubr.bf16.mxu1 %v1480_v58  ;;  %v1463_v1 = vld [vmem:[%s1676_s21 + $0x94] ss:$8 sps:$4 sm:$0xff]   ;;  %v1468_v4 = vld [vmem:[%s1676_s21 + $0x190] ss:$8 sps:$4 sm:$0xff]   ;;  %v1469_v5 = vld [vmem:[%s1676_s21 + $0x84] ss:$8 sps:$4 sm:$0xff]  }
  0x45   : > { %v1465_v2 = vld [vmem:[%s1676_s21 + $0x194] ss:$8 sps:$4 sm:$0xff]   ;;  %v1471_v6 = vld [vmem:[%s1676_s21 + $0x184] ss:$8 sps:$4 sm:$0xff]   ;;  %v1474_v8 = vld [vmem:[%s1676_s21 + $0x180] ss:$8 sps:$4 sm:$0xff]  }
  0x46   : > { %890 = vmatpush1.bf16.msra.mxu0 %v1413_v29  ;;  %v1483_v9 = vld [vmem:[%s1676_s21 + $0x274] ss:$8 sps:$4 sm:$0xff]   ;;  %v1475_v10 = vld [vmem:[%s1683_s9] ss:$24 sps:$4 sm:$0xff]   ;;  %v1486_v13 = vld [vmem:[%s1676_s21 + $0x264] ss:$8 sps:$4 sm:$0xff]  }
  0x47   : > { %933 = vmatpush1.bf16.msra.mxu1 %v1414_v30  ;;  %891 = vmatprep.subr.bf16.mxu0 %v1415_v31  ;;  %v1478_v11 = vld [vmem:[%s1683_s9 + $0x8] ss:$24 sps:$4 sm:$0xff]   ;;  %v1531_v14 = vld [vmem:[%s1683_s9 + $0x14] ss:$24 sps:$4 sm:$0xff]   ;;  %p1314_p13 = scmp.ne.s32.totalorder %s1574_s11, 2 }
  0x48   : > { %934 = vmatprep.subr.bf16.mxu1 %v1417_v32  ;;  %v1481_v12 = vld [vmem:[%s1676_s21 + $0x270] ss:$8 sps:$4 sm:$0xff]   ;;  %v1484_v15 = vld [vmem:[%s1676_s21 + $0x260] ss:$8 sps:$4 sm:$0xff]   ;;  %v1489_v16 = vld [vmem:[%s1676_s21 + $0x254] ss:$8 sps:$4 sm:$0xff]  }
  0x49   : > { %v1487_v17 = vld [vmem:[%s1676_s21 + $0x250] ss:$8 sps:$4 sm:$0xff]   ;;  %v1492_v18 = vld [vmem:[%s1676_s21 + $0x244] ss:$8 sps:$4 sm:$0xff]   ;;  %v1490_v19 = vld [vmem:[%s1676_s21 + $0x240] ss:$8 sps:$4 sm:$0xff]  }
  0x4a   : > { %892 = vmatpush1.bf16.msra.mxu0 %v1419_v33  ;;  %v1495_v20 = vld [vmem:[%s1676_s21 + $0x234] ss:$8 sps:$4 sm:$0xff]   ;;  %v1493_v21 = vld [vmem:[%s1676_s21 + $0x230] ss:$8 sps:$4 sm:$0xff]   ;;  %v1498_v22 = vld [vmem:[%s1676_s21 + $0x224] ss:$8 sps:$4 sm:$0xff]  }
  0x4b   : > { %935 = vmatpush1.bf16.msra.mxu1 %v1420_v34  ;;  %893 = vmatprep.subr.bf16.mxu0 %v1421_v35  ;;  %v1496_v23 = vld [vmem:[%s1676_s21 + $0x220] ss:$8 sps:$4 sm:$0xff]   ;;  %v1501_v24 = vld [vmem:[%s1676_s21 + $0x214] ss:$8 sps:$4 sm:$0xff]   ;;  %v1499_v25 = vld [vmem:[%s1676_s21 + $0x210] ss:$8 sps:$4 sm:$0xff]  }
  0x4c   : > { %936 = vmatprep.subr.bf16.mxu1 %v1423_v36  ;;  %v1504_v26 = vld [vmem:[%s1676_s21 + $0x204] ss:$8 sps:$4 sm:$0xff]   ;;  %v1502_v27 = vld [vmem:[%s1676_s21 + $0x200] ss:$8 sps:$4 sm:$0xff]   ;;  %v1507_v28 = vld [vmem:[%s1676_s21 + $0x2f4] ss:$8 sps:$4 sm:$0xff]  }
  0x4d   : > { %v1505_v29 = vld [vmem:[%s1676_s21 + $0x2f0] ss:$8 sps:$4 sm:$0xff]   ;;  %v1510_v30 = vld [vmem:[%s1676_s21 + $0x2e4] ss:$8 sps:$4 sm:$0xff]   ;;  %v1508_v31 = vld [vmem:[%s1676_s21 + $0x2e0] ss:$8 sps:$4 sm:$0xff]  }
  0x4e   : > { %894 = vmatpush1.bf16.msra.mxu0 %v1425_v37  ;;  %v1513_v32 = vld [vmem:[%s1676_s21 + $0x2d4] ss:$8 sps:$4 sm:$0xff]   ;;  %v1511_v33 = vld [vmem:[%s1676_s21 + $0x2d0] ss:$8 sps:$4 sm:$0xff]   ;;  %v1516_v34 = vld [vmem:[%s1676_s21 + $0x2c4] ss:$8 sps:$4 sm:$0xff]  }
  0x4f   : > { %937 = vmatpush1.bf16.msra.mxu1 %v1426_v38  ;;  %895 = vmatprep.subr.bf16.mxu0 %v1427_v39  ;;  %v1514_v35 = vld [vmem:[%s1676_s21 + $0x2c0] ss:$8 sps:$4 sm:$0xff]   ;;  %v1519_v36 = vld [vmem:[%s1676_s21 + $0x2b4] ss:$8 sps:$4 sm:$0xff]   ;;  %v1517_v37 = vld [vmem:[%s1676_s21 + $0x2b0] ss:$8 sps:$4 sm:$0xff]  }
  0x50   : > { %938 = vmatprep.subr.bf16.mxu1 %v1429_v40  ;;  %v1522_v38 = vld [vmem:[%s1676_s21 + $0x2a4] ss:$8 sps:$4 sm:$0xff]   ;;  %v1520_v39 = vld [vmem:[%s1676_s21 + $0x2a0] ss:$8 sps:$4 sm:$0xff]   ;;  %v1525_v40 = vld [vmem:[%s1676_s21 + $0x294] ss:$8 sps:$4 sm:$0xff]  }
  0x51   : > { %v264_v58 = vld [vmem:[#allocation2] sm:$0xff] }
  0x52   : > { %896 = vmatpush2.bf16.msra.mxu0 %v1431_v41  ;;  %v1523_v41 = vld [vmem:[%s1676_s21 + $0x290] ss:$8 sps:$4 sm:$0xff]  }
  0x53   : > { %939 = vmatpush2.bf16.msra.mxu1 %v1432_v42  ;;  %897 = vmatprep.subr.bf16.mxu0 %v1433_v43  ;;  %v1528_v42 = vld [vmem:[%s1676_s21 + $0x284] ss:$8 sps:$4 sm:$0xff]   ;;  %v1526_v43 = vld [vmem:[%s1676_s21 + $0x280] ss:$8 sps:$4 sm:$0xff]  }
  0x54   : > { %940 = vmatprep.subr.bf16.mxu1 %v1435_v44  ;;  %v1529_v44 = vld [vmem:[%s1683_s9 + $0x10] ss:$24 sps:$4 sm:$0xff]  }
  0x56   : > { %898 = vmatpush2.bf16.msra.mxu0 %v1437_v45 }
  0x57   : > { %941 = vmatpush2.bf16.msra.mxu1 %v1438_v46  ;;  %899 = vmatprep.subr.bf16.mxu0 %v1439_v47 }
  0x58   : > { %942 = vmatprep.subr.bf16.mxu1 %v1441_v48 }
  0x5a   : > { %900 = vmatpush2.bf16.msra.mxu0 %v1443_v49 }
  0x5b   : > { %943 = vmatpush2.bf16.msra.mxu1 %v1444_v50  ;;  %901 = vmatprep.subr.bf16.mxu0 %v1445_v51 }
  0x5c   : > { %944 = vmatprep.subr.bf16.mxu1 %v1447_v52 }
  0x5e   : > { %902 = vmatpush2.bf16.msra.mxu0 %v1449_v53  ;;  %v263_v53 = vld [vmem:[#allocation2 + $0x10] sm:$0xff] }
  0x5f   : > { %945 = vmatpush2.bf16.msra.mxu1 %v1450_v54  ;;  %903 = vmatprep.subr.bf16.mxu0 %v1451_v55 }
  0x60   : > { %946 = vmatprep.subr.bf16.mxu1 %v1453_v57 }
  0x62   : > { %904 = vmatpush2.bf16.msra.mxu0 %v1455_v59 }
  0x63   : > { %947 = vmatpush2.bf16.msra.mxu1 %v1456_v60  ;;  %905 = vmatprep.subr.bf16.mxu0 %v1457_v61 }
  0x64   : > { %948 = vmatprep.subr.bf16.mxu1 %v1459_v62 }
  0x66   : > { %906 = vmatpush2.bf16.msra.mxu0 %v1461_v63  ;;  %v265_v63 = vld [vmem:[#allocation2 + $0x18] sm:$0xff] }
  0x67   : > { %949 = vmatpush2.bf16.msra.mxu1 %v1462_v0  ;;  %907 = vmatprep.subr.bf16.mxu0 %v1463_v1 }
  0x68   : > { %950 = vmatprep.subr.bf16.mxu1 %v1465_v2 }
  0x6a   : > { %908 = vmatpush2.bf16.msra.mxu0 %v1467_v3 }
  0x6b   : > { %951 = vmatpush2.bf16.msra.mxu1 %v1468_v4  ;;  %909 = vmatprep.subr.bf16.mxu0 %v1469_v5  ;;  %v266_v4 = vld [vmem:[#allocation2 + $0x8] sm:$0xff] }
  0x6c   : > { %952 = vmatprep.subr.bf16.mxu1 %v1471_v6 }
  0x6e   : > { %910 = vmatpush2.bf16.msra.mxu0 %v1473_v7 }
  0x6f   : > { %953 = vmatpush2.bf16.msra.mxu1 %v1474_v8  ;;  %965 = vmatprep.subr.bf16.mxu0 %v1483_v9 }
  0x71   : > { %912 = vmatmul.mubr.bf16.vlgmr.msra.gmra.mxu0 %v1475_v10 }
  0x72   : > { %955 = vmatmul.mubr.bf16.vlgmr.msra.gmra.mxu1 %v1478_v11  ;;  %966 = vmatpush1.bf16.msra.mxu0 %v1481_v12 }
  0x73   : > { %967 = vmatprep.subr.bf16.mxu0 %v1486_v13  ;;  %997 = vmatprep.mubr.bf16.mxu0 %v1531_v14 }
  0x76   : > { %968 = vmatpush1.bf16.msra.mxu0 %v1484_v15 }
  0x77   : > { %969 = vmatprep.subr.bf16.mxu0 %v1489_v16 }
  0x7a   : > { %970 = vmatpush1.bf16.msra.mxu0 %v1487_v17 }
  0x7b   : > { %971 = vmatprep.subr.bf16.mxu0 %v1492_v18 }
  0x7e   : > { %972 = vmatpush1.bf16.msra.mxu0 %v1490_v19 }
  0x7f   : > { %973 = vmatprep.subr.bf16.mxu0 %v1495_v20 }
  0x82   : > { %974 = vmatpush1.bf16.msra.mxu0 %v1493_v21 }
  0x83   : > { %975 = vmatprep.subr.bf16.mxu0 %v1498_v22 }
  0x86   : > { %976 = vmatpush1.bf16.msra.mxu0 %v1496_v23 }
  0x87   : > { %977 = vmatprep.subr.bf16.mxu0 %v1501_v24 }
  0x8a   : > { %978 = vmatpush1.bf16.msra.mxu0 %v1499_v25 }
  0x8b   : > { %979 = vmatprep.subr.bf16.mxu0 %v1504_v26 }
  0x8e   : > { %980 = vmatpush1.bf16.msra.mxu0 %v1502_v27 }
  0x8f   : > { %981 = vmatprep.subr.bf16.mxu0 %v1507_v28 }
  0x92   : > { %982 = vmatpush2.bf16.msra.mxu0 %v1505_v29 }
  0x93   : > { %983 = vmatprep.subr.bf16.mxu0 %v1510_v30 }
  0x96   : > { %984 = vmatpush2.bf16.msra.mxu0 %v1508_v31 }
  0x97   : > { %985 = vmatprep.subr.bf16.mxu0 %v1513_v32 }
  0x9a   : > { %986 = vmatpush2.bf16.msra.mxu0 %v1511_v33 }
  0x9b   : > { %987 = vmatprep.subr.bf16.mxu0 %v1516_v34 }
  0x9e   : > { %988 = vmatpush2.bf16.msra.mxu0 %v1514_v35 }
  0x9f   : > { %989 = vmatprep.subr.bf16.mxu0 %v1519_v36 }
  0xa2   : > { %990 = vmatpush2.bf16.msra.mxu0 %v1517_v37 }
  0xa3   : > { %991 = vmatprep.subr.bf16.mxu0 %v1522_v38 }
  0xa6   : > { %992 = vmatpush2.bf16.msra.mxu0 %v1520_v39 }
  0xa7   : > { %993 = vmatprep.subr.bf16.mxu0 %v1525_v40 }
  0xaa   : > { %994 = vmatpush2.bf16.msra.mxu0 %v1523_v41 }
  0xab   : > { %995 = vmatprep.subr.bf16.mxu0 %v1528_v42 }
  0xae   : > { %996 = vmatpush2.bf16.msra.mxu0 %v1526_v43 }
  0xb1   : > { %998 = vmatmul.mubr.bf16.vlgmr.msra.gmra.mxu0 %v1529_v44 }
 0x131   : > { %v913_v45 = vpop.f32.mrf.mxu0 }
 0x132   : > { %v956_v46 = vpop.f32.mrf.mxu1 }
 0x133   : > { %v915_v47 = vpop.f32.mrf.mxu0  ;;  %v957_v52 = vadd.f32 %v956_v46, %v913_v45 }
 0x134   : > { %v958_v48 = vpop.f32.mrf.mxu1 }
 0x135   : > { %v917_v49 = vpop.f32.mrf.mxu0  ;;  %v959_v55 = vadd.f32 %v958_v48, %v915_v47 }
 0x136   : > { %v960_v50 = vpop.f32.mrf.mxu1 }
 0x137   : > { %v919_v51 = vpop.f32.mrf.mxu0  ;;  %v961_v60 = vadd.f32 %v960_v50, %v917_v49 }
 0x138   : > { %v962_v57 = vpop.f32.mrf.mxu1 }
 0x139   : > { %v963_v1 = vadd.f32 %v962_v57, %v919_v51 }
 0x171   : > { %v999_v54 = vpop.f32.mrf.mxu0 }
 0x172   : > { %v1000_v56 = vadd.f32 %v999_v54, %v957_v52 }
 0x173   : > { %v1001_v59 = vpop.f32.mrf.mxu0 }
 0x174   : > { %v1008_v61 = vadd.f32 %v1000_v56, %v263_v53  ;;  %v1002_v62 = vadd.f32 %v1001_v59, %v959_v55 }
 0x175   : > { %v1003_v0 = vpop.f32.mrf.mxu0 }
 0x176   : > { %1012 = vst [vmem:[#allocation2 + $0x10] sm:$0xff] %v1008_v61  ;;  %v1009_v2 = vadd.f32 %v1002_v62, %v264_v58  ;;  %v1004_v3 = vadd.f32 %v1003_v0, %v961_v60 }
 0x177   : > { %v1005_v5 = vpop.f32.mrf.mxu0 }
 0x178   : > { %1013 = vst [vmem:[#allocation2] sm:$0xff] %v1009_v2  ;;  %v1010_v6 = vadd.f32 %v1004_v3, %v265_v63  ;;  %v1006_v7 = vadd.f32 %v1005_v5, %v963_v1  ;;  %1019 = sbr.rel (%p1314_p13) target bundleno = 445 (0x1bd), region = 59 }
 0x17a   : > { %1014 = vst [vmem:[#allocation2 + $0x18] sm:$0xff] %v1010_v6  ;;  %v1011_v8 = vadd.f32 %v1006_v7, %v266_v4 }
 0x17c   : > { %1015 = vst [vmem:[#allocation2 + $0x8] sm:$0xff] %v1011_v8 }
 0x17d   : > { %v1020_v9 = vld [vmem:[#allocation2 + $0x10] sm:$0xff] }
 0x17f   : > { %v1021_v11 = vld [vmem:[#allocation2] sm:$0xff] }
 0x181   : > { %v1022_v10 = vld [vmem:[#allocation2 + $0x18] sm:$0xff] }
 0x182   : > { %v1024_v12 = vadd.f32 %v1022_v10, %v1020_v9 }
 0x183   : > { %v1023_v13 = vld [vmem:[#allocation2 + $0x8] sm:$0xff] }
 0x184   : > { %v1031_v14 = vadd.f32 %v1023_v13, %v1021_v11  ;;  %v1025_v15 = vrot.slane %v1024_v12, 4 }
 0x186   : > { %v1032_v16 = vrot.slane %v1031_v14, 4  ;;  %v1026_v17 = vadd.f32 %v1025_v15, %v1024_v12 }
 0x188   : > { %v1033_v18 = vadd.f32 %v1032_v16, %v1031_v14  ;;  %v1027_v19 = vrot.slane %v1026_v17, 2 }
 0x18a   : > { %v1034_v20 = vrot.slane %v1033_v18, 2  ;;  %v1028_v21 = vadd.f32 %v1027_v19, %v1026_v17 }
 0x18c   : > { %v1035_v22 = vadd.f32 %v1034_v20, %v1033_v18  ;;  %v1029_v23 = vrot.slane %v1028_v21, 1 }
 0x18e   : > { %v1036_v24 = vrot.slane %v1035_v22, 1  ;;  %v1030_v25 = vadd.f32 %v1029_v23, %v1028_v21 }
 0x190   : > { %v1037_v26 = vadd.f32 %v1036_v24, %v1035_v22  ;;  %v1039_v27 = vmul.f32 0.0625, %v1030_v25 }
 0x192   : > { %v1040_v28 = vmul.f32 0.0625, %v1037_v26  ;;  %v1041_v29 = vsub.f32 %v1020_v9, %v1039_v27  ;;  %v1043_v30 = vsub.f32 %v1022_v10, %v1039_v27 }
 0x194   : > { %v1042_v31 = vsub.f32 %v1021_v11, %v1040_v28  ;;  %v1044_v32 = vsub.f32 %v1023_v13, %v1040_v28  ;;  %v1045_v33 = vmul.f32 %v1041_v29, %v1041_v29  ;;  %v1047_v34 = vmul.f32 %v1043_v30, %v1043_v30 }
 0x196   : > { %v1046_v35 = vmul.f32 %v1042_v31, %v1042_v31  ;;  %v1048_v36 = vmul.f32 %v1044_v32, %v1044_v32  ;;  %v1049_v37 = vadd.f32 %v1047_v34, %v1045_v33 }
 0x198   : > { %v1056_v38 = vadd.f32 %v1048_v36, %v1046_v35  ;;  %v1050_v39 = vrot.slane %v1049_v37, 4 }
 0x19a   : > { %v1057_v40 = vrot.slane %v1056_v38, 4  ;;  %v1051_v41 = vadd.f32 %v1050_v39, %v1049_v37 }
 0x19c   : > { %v1058_v42 = vadd.f32 %v1057_v40, %v1056_v38  ;;  %v1052_v43 = vrot.slane %v1051_v41, 2 }
 0x19e   : > { %v1059_v44 = vrot.slane %v1058_v42, 2  ;;  %v1053_v45 = vadd.f32 %v1052_v43, %v1051_v41 }
 0x1a0   : > { %v1060_v46 = vadd.f32 %v1059_v44, %v1058_v42  ;;  %v1054_v47 = vrot.slane %v1053_v45, 1 }
 0x1a2   : > { %v1061_v48 = vrot.slane %v1060_v46, 1  ;;  %v1055_v49 = vadd.f32 %v1054_v47, %v1053_v45 }
 0x1a4   : > { %v1062_v50 = vadd.f32 %v1061_v48, %v1060_v46  ;;  %v1063_v51 = vmul.f32 0.0625, %v1055_v49 }
 0x1a6   : > { %v1064_v52 = vmul.f32 0.0625, %v1062_v50  ;;  %v1065_v53 = vadd.f32 1e-05, %v1063_v51 }
 0x1a8   : > { %v1066_v54 = vadd.f32 1e-05, %v1064_v52  ;;  %1532 = vrsqrt.f32 %v1065_v53 }
 0x1aa   : > { %1534 = vrsqrt.f32 %v1066_v54 }
 0x1b5   : > { %v1533_v55 = vpop.eup %1532 }
 0x1b6   : > { %v1069_v57 = vmul.f32 %v1533_v55, %v1041_v29  ;;  %v1071_v58 = vmul.f32 %v1533_v55, %v1043_v30 }
 0x1b7   : > { %v1535_v56 = vpop.eup %1534 }
 0x1b8   : > { %v1070_v59 = vmul.f32 %v1535_v56, %v1042_v31  ;;  %v1072_v60 = vmul.f32 %v1535_v56, %v1044_v32  ;;  %v1073_v61 = vmax.f32 %v1069_v57, 0.0  ;;  %v1075_v62 = vmax.f32 %v1071_v58, 0.0 }
 0x1ba   : > { %v1074_v63 = vmax.f32 %v1070_v59, 0.0  ;;  %v1076_v0 = vmax.f32 %v1072_v60, 0.0  ;;  %1077 = vst [vmem:[%s1681_s26] sm:$0xff] %v1073_v61  ;;  %1079 = vst [vmem:[%s1681_s26 + $0x10] sm:$0xff] %v1075_v62 }
 0x1bc   : > { %1078 = vst [vmem:[%s1681_s26 + $0x8] sm:$0xff] %v1074_v63  ;;  %1080 = vst [vmem:[%s1681_s26 + $0x18] sm:$0xff] %v1076_v0 }
 0x1bd PF: > { %s12_s15 = sadd.s32 1, %s1590_s15   ;;  %s1817_s9 = smov %s1570_s10 }
 0x1be   : > { %p9_p0 = scmp.ge.s32.totalorder %s12_s15, 8   ;;  %s1818_s10 = smov %s1659_s22 }
 0x1bf   : > { %s1819_s11 = smov %s1582_s13  ;;  %s1820_s12 = smov %s1586_s14 }
 0x1c0   : > { %s1821_s13 = smov %s1824_s16  ;;  %s1822_s14 = smov %s1828_s17 }
 0x1c1   :  { %11 = sbr.rel (!%p9_p0) target bundleno = 4 (0x4), region = 97 }

// kernel: generator_forward.20
= control target key start
LH: loop header
LB: loop body
LE: loop exit
PB: predicated region body
PF: predicated region fallthrough
CT: control target
= control target key end

     0   :  { %s1707_s12 = smov 0   ;;  %s1709_s13 = smov 0   ;;  %s1922_s0 = inlined_call_operand.vmem [shape: bf16[32,2304], index: 0, kind: input, shape index: {}]   ;;  %s1923_s1 = inlined_call_operand.vmem [shape: bf16[2304,256], index: 1, kind: input, shape index: {}]   ;;  %s1924_s2 = inlined_call_operand.vmem [shape: f32[32,256], index: 2, kind: input, shape index: {}]   ;;  %s1925_s3 = inlined_call_operand.vmem [shape: f32[32,256], index: 3, kind: output, shape index: {}]  }
   0x1   :  { %s1711_s14 = smov 0   ;;  %s1713_s15 = smov 0  }
   0x2   :  { %s1715_s16 = smov 0   ;;  %s1717_s17 = smov 0  }
   0x3   :  { %s1719_s18 = smov 0  }
   0x4 LB: > { %s25_s19 = sadd.s32 1, %s1676_s16  ;;  %s32_s20 = sadd.s32 1, %s1680_s17  ;;  %s1684_s18 = sphi %s1719_s18, %s13_s18   ;;  %s1680_s17 = sphi %s1717_s17, %s1931_s17   ;;  %s1676_s16 = sphi %s1715_s16, %s1930_s16   ;;  %s1672_s15 = sphi %s1713_s15, %s1929_s15   ;;  %s1668_s14 = sphi %s1711_s14, %s1928_s14   ;;  %s1664_s13 = sphi %s1709_s13, %s1927_s13   ;;  %s1660_s12 = sphi %s1707_s12, %s1926_s12  }
   0x5   : > { %p26_p0 = scmp.ge.s32.totalorder %s25_s19, 3  ;;  %p48_p1 = scmp.ne.s32.totalorder %s1664_s13, %s1660_s12 }
   0x6   : > { %p49_p2 = scmp.eq.s32.totalorder %s1684_s18, 0  ;;  %s41_s24 = sadd.s32 1, %s1664_s13 }
   0x7   : > { %s1933_s19 = smov (%p26_p0, %s25_s19), 0  ;;  %s1935_s20 = smov (!%p26_p0, %s32_s20), %s1680_s17 }
   0x8   : > { %p50_p3 = por %p49_p2, %p48_p1  ;;  %p34_p4 = scmp.ge.s32.totalorder %s1935_s20, 2 }
   0x9   : > { %s37_s21 = ssub.s32 %s1676_s16, %s1933_s19  ;;  %p1291_p6 = scmp.ge.s32.totalorder %s1684_s18, 6 }
   0xa   : > { %s1937_s20 = smov (%p34_p4, %s1935_s20), 0 }
   0xb   : > { %s36_s22 = ssub.s32 %s1680_s17, %s1937_s20  ;;  %158 = sbr.rel (%p1291_p6) target bundleno = 28 (0x1c), region = 16 }
   0xc   : > { %s38_s23 = sor.u32 %s37_s21, %s36_s22 }
   0xd   : > { %p39_p5 = scmp.eq.s32.totalorder %s38_s23, 0 }
   0xf   : > { %s1758_s25 = scalar_select %p39_p5, %s1664_s13, %s41_s24  }
  0x10   : > { %161 = sbr.rel (!%p50_p3) target bundleno = 28 (0x1c), region = 20  ;;  %s163_s26 = sand.u32 (%p50_p3), 1, %s1664_s13  }
  0x11   : > { %s167_s27 = smul.u32 (%p50_p3), 6, %s1676_s16 }
  0x12   : > { %s1413_s28 = smul.u32 (%p50_p3), 48, %s163_s26 }
  0x13   : > { %s1414_s29 = smul.u32 (%p50_p3), 36, %s1680_s17 }
  0x14   : > { %s165_s8 = scalar_lea.vmem (%p50_p3), [#allocation3], %s1413_s28 }
  0x15   : > { %s169_s30 = sadd.s32 %s1414_s29, %s167_s27 }
  0x16   : > { %s1294_s4 = sshll.u32 %s169_s30, 2 }
  0x17   : > { %s171_s7 = scalar_lea.vmem %s1922_s0, %s1294_s4 }
  0x18   : > { %v184_v0 = vld [vmem:[%s171_s7] sm:$0xff]  ;;  %v186_v1 = vld [vmem:[%s171_s7 + $0x8] sm:$0xff]  ;;  %v188_v2 = vld [vmem:[%s171_s7 + $0x10] sm:$0xff] }
  0x19   : > { %185 = vst [vmem:[%s165_s8] sm:$0xff] %v184_v0  ;;  %187 = vst [vmem:[%s165_s8 + $0x8] sm:$0xff] %v186_v1  ;;  %v190_v3 = vld [vmem:[%s171_s7 + $0x48] sm:$0xff]  ;;  %v192_v4 = vld [vmem:[%s171_s7 + $0x50] sm:$0xff] }
  0x1a   : > { %189 = vst [vmem:[%s165_s8 + $0x10] sm:$0xff] %v188_v2  ;;  %v194_v5 = vld [vmem:[%s171_s7 + $0x58] sm:$0xff]  ;;  %191 = vst [vmem:[%s165_s8 + $0x18] sm:$0xff] %v190_v3 }
  0x1b   : > { %193 = vst [vmem:[%s165_s8 + $0x20] sm:$0xff] %v192_v4  ;;  %195 = vst [vmem:[%s165_s8 + $0x28] sm:$0xff] %v194_v5 }
  0x1c PF: > { %p1295_p7 = scmp.ge.s32.totalorder %s1684_s18, 1  ;;  %p230_p8 = scmp.lt.s32.totalorder %s1684_s18, 7 }
  0x1e   : > { %p231_p9 = pnand %p1295_p7, %p230_p8 }
  0x1f   : > { %s237_s9 = sand.u32 (!%p231_p9), 1, %s1660_s12   ;;  %s287_s10 = smul.u32 (!%p231_p9), 96, %s1668_s14 }
  0x20   : > { %234 = sbr.rel (%p231_p9) target bundleno = 445 (0x1bd), region = 51  ;;  %s1298_s21 = sshll.u32 (!%p231_p9), %s1672_s15, 1 }
  0x21   : > { %s1415_s11 = smul.u32 (!%p231_p9), 48, %s237_s9  ;;  %p289_p10 = scmp.lt.s32.totalorder (!%p231_p9), %s287_s10, 287 }
  0x22   : > { %p301_p11 = scmp.lt.s32.totalorder (!%p231_p9), %s1298_s21, 3  ;;  %p1304_p12 = scmp.ne.s32.totalorder (!%p231_p9), %s1668_s14, 0 }
  0x23   : > { %s1787_s5 = scalar_lea.vmem (!%p231_p9), [#allocation3], %s1415_s11 }
  0x25   : > { %s1939_s10 = smov (!%p289_p10, %s287_s10), 287  ;;  %s1941_s21 = smov (!%p301_p11, %s1298_s21), 3 }
  0x26   : > { %s1410_s22 = sshll.u32 %s1939_s10, 3  ;;  %s1411_s27 = sshll.u32 %s1941_s21, 4 }
  0x27   : > { %s1775_s26 = scalar_lea.vmem %s1923_s1, %s1410_s22  ;;  %s1780_s30 = scalar_lea.vmem %s1924_s2, %s1411_s27 }
  0x28   : > { %s1785_s15 = scalar_lea.vmem %s1925_s3, %s1411_s27  ;;  %326 = sbr.rel (%p1304_p12) target bundleno = 48 (0x30), region = 59 }
  0x2d   : > { %v1686_v6 = vmov 0.0  }
  0x2e   : > { %327 = vst [vmem:[#allocation2 + $0x10] sm:$0xff] %v1686_v6  ;;  %328 = vst [vmem:[#allocation2] sm:$0xff] %v1686_v6 }
  0x2f   : > { %329 = vst [vmem:[#allocation2 + $0x18] sm:$0xff] %v1686_v6  ;;  %330 = vst [vmem:[#allocation2 + $0x8] sm:$0xff] %v1686_v6 }
  0x30 PF: > { %v1473_v7 = vld [vmem:[%s1775_s26 + $0x74] ss:$8 sps:$4 sm:$0xff]   ;;  %v1477_v9 = vld [vmem:[%s1775_s26 + $0x70] ss:$8 sps:$4 sm:$0xff]   ;;  %v1479_v11 = vld [vmem:[%s1775_s26 + $0x64] ss:$8 sps:$4 sm:$0xff]  }
  0x31   : > { %v1475_v8 = vld [vmem:[%s1775_s26 + $0x174] ss:$8 sps:$4 sm:$0xff]   ;;  %947 = vmatprep.subr.bf16.mxu0 %v1473_v7  ;;  %v1478_v10 = vld [vmem:[%s1775_s26 + $0x170] ss:$8 sps:$4 sm:$0xff]   ;;  %v1481_v12 = vld [vmem:[%s1775_s26 + $0x164] ss:$8 sps:$4 sm:$0xff]  }
  0x32   : > { %990 = vmatprep.subr.bf16.mxu1 %v1475_v8  ;;  %948 = vmatpush1.bf16.msra.mxu0 %v1477_v9  ;;  %v1483_v13 = vld [vmem:[%s1775_s26 + $0x60] ss:$8 sps:$4 sm:$0xff]   ;;  %v1485_v15 = vld [vmem:[%s1775_s26 + $0x54] ss:$8 sps:$4 sm:$0xff]   ;;  %v1489_v17 = vld [vmem:[%s1775_s26 + $0x50] ss:$8 sps:$4 sm:$0xff]  }
  0x33   : > { %991 = vmatpush1.bf16.msra.mxu1 %v1478_v10  ;;  %949 = vmatprep.subr.bf16.mxu0 %v1479_v11  ;;  %v1484_v14 = vld [vmem:[%s1775_s26 + $0x160] ss:$8 sps:$4 sm:$0xff]   ;;  %v1487_v16 = vld [vmem:[%s1775_s26 + $0x154] ss:$8 sps:$4 sm:$0xff]   ;;  %v1490_v18 = vld [vmem:[%s1775_s26 + $0x150] ss:$8 sps:$4 sm:$0xff]  }
  0x34   : > { %992 = vmatprep.subr.bf16.mxu1 %v1481_v12  ;;  %v1491_v19 = vld [vmem:[%s1775_s26 + $0x44] ss:$8 sps:$4 sm:$0xff]   ;;  %v1495_v21 = vld [vmem:[%s1775_s26 + $0x40] ss:$8 sps:$4 sm:$0xff]   ;;  %v1497_v23 = vld [vmem:[%s1775_s26 + $0x34] ss:$8 sps:$4 sm:$0xff]  }
  0x35   : > { %v1493_v20 = vld [vmem:[%s1775_s26 + $0x144] ss:$8 sps:$4 sm:$0xff]   ;;  %v1496_v22 = vld [vmem:[%s1775_s26 + $0x140] ss:$8 sps:$4 sm:$0xff]   ;;  %v1499_v24 = vld [vmem:[%s1775_s26 + $0x134] ss:$8 sps:$4 sm:$0xff]  }
  0x36   : > { %950 = vmatpush1.bf16.msra.mxu0 %v1483_v13  ;;  %v1501_v25 = vld [vmem:[%s1775_s26 + $0x30] ss:$8 sps:$4 sm:$0xff]   ;;  %v1503_v27 = vld [vmem:[%s1775_s26 + $0x24] ss:$8 sps:$4 sm:$0xff]   ;;  %v1507_v29 = vld [vmem:[%s1775_s26 + $0x20] ss:$8 sps:$4 sm:$0xff]  }
  0x37   : > { %993 = vmatpush1.bf16.msra.mxu1 %v1484_v14  ;;  %951 = vmatprep.subr.bf16.mxu0 %v1485_v15  ;;  %v1502_v26 = vld [vmem:[%s1775_s26 + $0x130] ss:$8 sps:$4 sm:$0xff]   ;;  %v1505_v28 = vld [vmem:[%s1775_s26 + $0x124] ss:$8 sps:$4 sm:$0xff]   ;;  %v1508_v30 = vld [vmem:[%s1775_s26 + $0x120] ss:$8 sps:$4 sm:$0xff]  }
  0x38   : > { %994 = vmatprep.subr.bf16.mxu1 %v1487_v16  ;;  %v1509_v31 = vld [vmem:[%s1775_s26 + $0x14] ss:$8 sps:$4 sm:$0xff]   ;;  %v1513_v33 = vld [vmem:[%s1775_s26 + $0x10] ss:$8 sps:$4 sm:$0xff]   ;;  %v1515_v35 = vld [vmem:[%s1775_s26 + $0x4] ss:$8 sps:$4 sm:$0xff]  }
  0x39   : > { %v1511_v32 = vld [vmem:[%s1775_s26 + $0x114] ss:$8 sps:$4 sm:$0xff]   ;;  %v1514_v34 = vld [vmem:[%s1775_s26 + $0x110] ss:$8 sps:$4 sm:$0xff]   ;;  %v1517_v36 = vld [vmem:[%s1775_s26 + $0x104] ss:$8 sps:$4 sm:$0xff]  }
  0x3a   : > { %952 = vmatpush1.bf16.msra.mxu0 %v1489_v17  ;;  %v1519_v37 = vld [vmem:[%s1775_s26] ss:$8 sps:$4 sm:$0xff]   ;;  %v1521_v39 = vld [vmem:[%s1775_s26 + $0xf4] ss:$8 sps:$4 sm:$0xff]   ;;  %v1525_v41 = vld [vmem:[%s1775_s26 + $0xf0] ss:$8 sps:$4 sm:$0xff]  }
  0x3b   : > { %995 = vmatpush1.bf16.msra.mxu1 %v1490_v18  ;;  %953 = vmatprep.subr.bf16.mxu0 %v1491_v19  ;;  %v1520_v38 = vld [vmem:[%s1775_s26 + $0x100] ss:$8 sps:$4 sm:$0xff]   ;;  %v1523_v40 = vld [vmem:[%s1775_s26 + $0x1f4] ss:$8 sps:$4 sm:$0xff]   ;;  %v1526_v42 = vld [vmem:[%s1775_s26 + $0x1f0] ss:$8 sps:$4 sm:$0xff]  }
  0x3c   : > { %996 = vmatprep.subr.bf16.mxu1 %v1493_v20  ;;  %v1527_v43 = vld [vmem:[%s1775_s26 + $0xe4] ss:$8 sps:$4 sm:$0xff]   ;;  %v1531_v45 = vld [vmem:[%s1775_s26 + $0xe0] ss:$8 sps:$4 sm:$0xff]   ;;  %v1533_v47 = vld [vmem:[%s1775_s26 + $0xd4] ss:$8 sps:$4 sm:$0xff]  }
  0x3d   : > { %v1529_v44 = vld [vmem:[%s1775_s26 + $0x1e4] ss:$8 sps:$4 sm:$0xff]   ;;  %v1532_v46 = vld [vmem:[%s1775_s26 + $0x1e0] ss:$8 sps:$4 sm:$0xff]   ;;  %v1535_v48 = vld [vmem:[%s1775_s26 + $0x1d4] ss:$8 sps:$4 sm:$0xff]  }
  0x3e   : > { %954 = vmatpush1.bf16.msra.mxu0 %v1495_v21  ;;  %v1537_v49 = vld [vmem:[%s1775_s26 + $0xd0] ss:$8 sps:$4 sm:$0xff]   ;;  %v1539_v51 = vld [vmem:[%s1775_s26 + $0xc4] ss:$8 sps:$4 sm:$0xff]   ;;  %v1543_v53 = vld [vmem:[%s1775_s26 + $0xc0] ss:$8 sps:$4 sm:$0xff]  }
  0x3f   : > { %997 = vmatpush1.bf16.msra.mxu1 %v1496_v22  ;;  %955 = vmatprep.subr.bf16.mxu0 %v1497_v23  ;;  %v1538_v50 = vld [vmem:[%s1775_s26 + $0x1d0] ss:$8 sps:$4 sm:$0xff]   ;;  %v1541_v52 = vld [vmem:[%s1775_s26 + $0x1c4] ss:$8 sps:$4 sm:$0xff]   ;;  %v1544_v54 = vld [vmem:[%s1775_s26 + $0x1c0] ss:$8 sps:$4 sm:$0xff]  }
  0x40   : > { %998 = vmatprep.subr.bf16.mxu1 %v1499_v24  ;;  %v1545_v55 = vld [vmem:[%s1775_s26 + $0xb4] ss:$8 sps:$4 sm:$0xff]   ;;  %v1549_v59 = vld [vmem:[%s1775_s26 + $0xb0] ss:$8 sps:$4 sm:$0xff]   ;;  %v1551_v61 = vld [vmem:[%s1775_s26 + $0xa4] ss:$8 sps:$4 sm:$0xff]  }
  0x41   : > { %v1571_v56 = vld [vmem:[%s1787_s5 + $0x4] ss:$24 sps:$4 sm:$0xff]   ;;  %v1550_v60 = vld [vmem:[%s1775_s26 + $0x1b0] ss:$8 sps:$4 sm:$0xff]   ;;  %v1555_v63 = vld [vmem:[%s1775_s26 + $0xa0] ss:$8 sps:$4 sm:$0xff]  }
  0x42   : > { %956 = vmatpush1.bf16.msra.mxu0 %v1501_v25  ;;  %v1547_v57 = vld [vmem:[%s1775_s26 + $0x1b4] ss:$8 sps:$4 sm:$0xff]   ;;  %979 = vmatprep.mubr.bf16.mxu0 %v1571_v56  ;;  %v1553_v62 = vld [vmem:[%s1775_s26 + $0x1a4] ss:$8 sps:$4 sm:$0xff]   ;;  %v1556_v0 = vld [vmem:[%s1775_s26 + $0x1a0] ss:$8 sps:$4 sm:$0xff]  }
  0x43   : > { %999 = vmatpush1.bf16.msra.mxu1 %v1502_v26  ;;  %957 = vmatprep.subr.bf16.mxu0 %v1503_v27  ;;  %v1574_v58 = vld [vmem:[%s1787_s5 + $0xc] ss:$24 sps:$4 sm:$0xff]   ;;  %v1561_v3 = vld [vmem:[%s1775_s26 + $0x90] ss:$8 sps:$4 sm:$0xff]   ;;  %v1567_v7 = vld [vmem:[%s1775_s26 + $0x80] ss:$8 sps:$4 sm:$0xff]  }
  0x44   : > { %1000 = vmatprep.subr.bf16.mxu1 %v1505_v28  ;;  %1022 = vmatprep.mubr.bf16.mxu1 %v1574_v58  ;;  %v1557_v1 = vld [vmem:[%s1775_s26 + $0x94] ss:$8 sps:$4 sm:$0xff]   ;;  %v1562_v4 = vld [vmem:[%s1775_s26 + $0x190] ss:$8 sps:$4 sm:$0xff]   ;;  %v1563_v5 = vld [vmem:[%s1775_s26 + $0x84] ss:$8 sps:$4 sm:$0xff]  }
  0x45   : > { %v1559_v2 = vld [vmem:[%s1775_s26 + $0x194] ss:$8 sps:$4 sm:$0xff]   ;;  %v1565_v6 = vld [vmem:[%s1775_s26 + $0x184] ss:$8 sps:$4 sm:$0xff]   ;;  %v1568_v8 = vld [vmem:[%s1775_s26 + $0x180] ss:$8 sps:$4 sm:$0xff]  }
  0x46   : > { %958 = vmatpush1.bf16.msra.mxu0 %v1507_v29  ;;  %v1577_v9 = vld [vmem:[%s1775_s26 + $0x274] ss:$8 sps:$4 sm:$0xff]   ;;  %v1569_v10 = vld [vmem:[%s1787_s5] ss:$24 sps:$4 sm:$0xff]   ;;  %v1580_v13 = vld [vmem:[%s1775_s26 + $0x264] ss:$8 sps:$4 sm:$0xff]  }
  0x47   : > { %1001 = vmatpush1.bf16.msra.mxu1 %v1508_v30  ;;  %959 = vmatprep.subr.bf16.mxu0 %v1509_v31  ;;  %v1572_v11 = vld [vmem:[%s1787_s5 + $0x8] ss:$24 sps:$4 sm:$0xff]   ;;  %v1625_v14 = vld [vmem:[%s1787_s5 + $0x14] ss:$24 sps:$4 sm:$0xff]   ;;  %p1407_p13 = scmp.ne.s32.totalorder %s1668_s14, 2 }
  0x48   : > { %1002 = vmatprep.subr.bf16.mxu1 %v1511_v32  ;;  %v1575_v12 = vld [vmem:[%s1775_s26 + $0x270] ss:$8 sps:$4 sm:$0xff]   ;;  %v1578_v15 = vld [vmem:[%s1775_s26 + $0x260] ss:$8 sps:$4 sm:$0xff]   ;;  %v1583_v16 = vld [vmem:[%s1775_s26 + $0x254] ss:$8 sps:$4 sm:$0xff]  }
  0x49   : > { %v1581_v17 = vld [vmem:[%s1775_s26 + $0x250] ss:$8 sps:$4 sm:$0xff]   ;;  %v1586_v18 = vld [vmem:[%s1775_s26 + $0x244] ss:$8 sps:$4 sm:$0xff]   ;;  %v1584_v19 = vld [vmem:[%s1775_s26 + $0x240] ss:$8 sps:$4 sm:$0xff]  }
  0x4a   : > { %960 = vmatpush1.bf16.msra.mxu0 %v1513_v33  ;;  %v1589_v20 = vld [vmem:[%s1775_s26 + $0x234] ss:$8 sps:$4 sm:$0xff]   ;;  %v1587_v21 = vld [vmem:[%s1775_s26 + $0x230] ss:$8 sps:$4 sm:$0xff]   ;;  %v1592_v22 = vld [vmem:[%s1775_s26 + $0x224] ss:$8 sps:$4 sm:$0xff]  }
  0x4b   : > { %1003 = vmatpush1.bf16.msra.mxu1 %v1514_v34  ;;  %961 = vmatprep.subr.bf16.mxu0 %v1515_v35  ;;  %v1590_v23 = vld [vmem:[%s1775_s26 + $0x220] ss:$8 sps:$4 sm:$0xff]   ;;  %v1595_v24 = vld [vmem:[%s1775_s26 + $0x214] ss:$8 sps:$4 sm:$0xff]   ;;  %v1593_v25 = vld [vmem:[%s1775_s26 + $0x210] ss:$8 sps:$4 sm:$0xff]  }
  0x4c   : > { %1004 = vmatprep.subr.bf16.mxu1 %v1517_v36  ;;  %v1598_v26 = vld [vmem:[%s1775_s26 + $0x204] ss:$8 sps:$4 sm:$0xff]   ;;  %v1596_v27 = vld [vmem:[%s1775_s26 + $0x200] ss:$8 sps:$4 sm:$0xff]   ;;  %v1601_v28 = vld [vmem:[%s1775_s26 + $0x2f4] ss:$8 sps:$4 sm:$0xff]  }
  0x4d   : > { %v1599_v29 = vld [vmem:[%s1775_s26 + $0x2f0] ss:$8 sps:$4 sm:$0xff]   ;;  %v1604_v30 = vld [vmem:[%s1775_s26 + $0x2e4] ss:$8 sps:$4 sm:$0xff]   ;;  %v1602_v31 = vld [vmem:[%s1775_s26 + $0x2e0] ss:$8 sps:$4 sm:$0xff]  }
  0x4e   : > { %962 = vmatpush1.bf16.msra.mxu0 %v1519_v37  ;;  %v1607_v32 = vld [vmem:[%s1775_s26 + $0x2d4] ss:$8 sps:$4 sm:$0xff]   ;;  %v1605_v33 = vld [vmem:[%s1775_s26 + $0x2d0] ss:$8 sps:$4 sm:$0xff]   ;;  %v1610_v34 = vld [vmem:[%s1775_s26 + $0x2c4] ss:$8 sps:$4 sm:$0xff]  }
  0x4f   : > { %1005 = vmatpush1.bf16.msra.mxu1 %v1520_v38  ;;  %963 = vmatprep.subr.bf16.mxu0 %v1521_v39  ;;  %v1608_v35 = vld [vmem:[%s1775_s26 + $0x2c0] ss:$8 sps:$4 sm:$0xff]   ;;  %v1613_v36 = vld [vmem:[%s1775_s26 + $0x2b4] ss:$8 sps:$4 sm:$0xff]   ;;  %v1611_v37 = vld [vmem:[%s1775_s26 + $0x2b0] ss:$8 sps:$4 sm:$0xff]  }
  0x50   : > { %1006 = vmatprep.subr.bf16.mxu1 %v1523_v40  ;;  %v1616_v38 = vld [vmem:[%s1775_s26 + $0x2a4] ss:$8 sps:$4 sm:$0xff]   ;;  %v1614_v39 = vld [vmem:[%s1775_s26 + $0x2a0] ss:$8 sps:$4 sm:$0xff]   ;;  %v1619_v40 = vld [vmem:[%s1775_s26 + $0x294] ss:$8 sps:$4 sm:$0xff]  }
  0x51   : > { %v332_v58 = vld [vmem:[#allocation2] sm:$0xff] }
  0x52   : > { %964 = vmatpush2.bf16.msra.mxu0 %v1525_v41  ;;  %v1617_v41 = vld [vmem:[%s1775_s26 + $0x290] ss:$8 sps:$4 sm:$0xff]  }
  0x53   : > { %1007 = vmatpush2.bf16.msra.mxu1 %v1526_v42  ;;  %965 = vmatprep.subr.bf16.mxu0 %v1527_v43  ;;  %v1622_v42 = vld [vmem:[%s1775_s26 + $0x284] ss:$8 sps:$4 sm:$0xff]   ;;  %v1620_v43 = vld [vmem:[%s1775_s26 + $0x280] ss:$8 sps:$4 sm:$0xff]  }
  0x54   : > { %1008 = vmatprep.subr.bf16.mxu1 %v1529_v44  ;;  %v1623_v44 = vld [vmem:[%s1787_s5 + $0x10] ss:$24 sps:$4 sm:$0xff]  }
  0x56   : > { %966 = vmatpush2.bf16.msra.mxu0 %v1531_v45 }
  0x57   : > { %1009 = vmatpush2.bf16.msra.mxu1 %v1532_v46  ;;  %967 = vmatprep.subr.bf16.mxu0 %v1533_v47 }
  0x58   : > { %1010 = vmatprep.subr.bf16.mxu1 %v1535_v48 }
  0x5a   : > { %968 = vmatpush2.bf16.msra.mxu0 %v1537_v49 }
  0x5b   : > { %1011 = vmatpush2.bf16.msra.mxu1 %v1538_v50  ;;  %969 = vmatprep.subr.bf16.mxu0 %v1539_v51 }
  0x5c   : > { %1012 = vmatprep.subr.bf16.mxu1 %v1541_v52 }
  0x5e   : > { %970 = vmatpush2.bf16.msra.mxu0 %v1543_v53  ;;  %v331_v53 = vld [vmem:[#allocation2 + $0x10] sm:$0xff] }
  0x5f   : > { %1013 = vmatpush2.bf16.msra.mxu1 %v1544_v54  ;;  %971 = vmatprep.subr.bf16.mxu0 %v1545_v55 }
  0x60   : > { %1014 = vmatprep.subr.bf16.mxu1 %v1547_v57 }
  0x62   : > { %972 = vmatpush2.bf16.msra.mxu0 %v1549_v59 }
  0x63   : > { %1015 = vmatpush2.bf16.msra.mxu1 %v1550_v60  ;;  %973 = vmatprep.subr.bf16.mxu0 %v1551_v61 }
  0x64   : > { %1016 = vmatprep.subr.bf16.mxu1 %v1553_v62 }
  0x66   : > { %974 = vmatpush2.bf16.msra.mxu0 %v1555_v63  ;;  %v333_v63 = vld [vmem:[#allocation2 + $0x18] sm:$0xff] }
  0x67   : > { %1017 = vmatpush2.bf16.msra.mxu1 %v1556_v0  ;;  %975 = vmatprep.subr.bf16.mxu0 %v1557_v1 }
  0x68   : > { %1018 = vmatprep.subr.bf16.mxu1 %v1559_v2 }
  0x6a   : > { %976 = vmatpush2.bf16.msra.mxu0 %v1561_v3 }
  0x6b   : > { %1019 = vmatpush2.bf16.msra.mxu1 %v1562_v4  ;;  %977 = vmatprep.subr.bf16.mxu0 %v1563_v5  ;;  %v334_v4 = vld [vmem:[#allocation2 + $0x8] sm:$0xff] }
  0x6c   : > { %1020 = vmatprep.subr.bf16.mxu1 %v1565_v6 }
  0x6e   : > { %978 = vmatpush2.bf16.msra.mxu0 %v1567_v7 }
  0x6f   : > { %1021 = vmatpush2.bf16.msra.mxu1 %v1568_v8  ;;  %1033 = vmatprep.subr.bf16.mxu0 %v1577_v9 }
  0x71   : > { %980 = vmatmul.mubr.bf16.vlgmr.msra.gmra.mxu0 %v1569_v10 }
  0x72   : > { %1023 = vmatmul.mubr.bf16.vlgmr.msra.gmra.mxu1 %v1572_v11  ;;  %1034 = vmatpush1.bf16.msra.mxu0 %v1575_v12 }
  0x73   : > { %1035 = vmatprep.subr.bf16.mxu0 %v1580_v13  ;;  %1065 = vmatprep.mubr.bf16.mxu0 %v1625_v14 }
  0x76   : > { %1036 = vmatpush1.bf16.msra.mxu0 %v1578_v15 }
  0x77   : > { %1037 = vmatprep.subr.bf16.mxu0 %v1583_v16 }
  0x7a   : > { %1038 = vmatpush1.bf16.msra.mxu0 %v1581_v17 }
  0x7b   : > { %1039 = vmatprep.subr.bf16.mxu0 %v1586_v18 }
  0x7e   : > { %1040 = vmatpush1.bf16.msra.mxu0 %v1584_v19 }
  0x7f   : > { %1041 = vmatprep.subr.bf16.mxu0 %v1589_v20 }
  0x82   : > { %1042 = vmatpush1.bf16.msra.mxu0 %v1587_v21 }
  0x83   : > { %1043 = vmatprep.subr.bf16.mxu0 %v1592_v22 }
  0x86   : > { %1044 = vmatpush1.bf16.msra.mxu0 %v1590_v23 }
  0x87   : > { %1045 = vmatprep.subr.bf16.mxu0 %v1595_v24 }
  0x8a   : > { %1046 = vmatpush1.bf16.msra.mxu0 %v1593_v25 }
  0x8b   : > { %1047 = vmatprep.subr.bf16.mxu0 %v1598_v26 }
  0x8e   : > { %1048 = vmatpush1.bf16.msra.mxu0 %v1596_v27 }
  0x8f   : > { %1049 = vmatprep.subr.bf16.mxu0 %v1601_v28 }
  0x92   : > { %1050 = vmatpush2.bf16.msra.mxu0 %v1599_v29 }
  0x93   : > { %1051 = vmatprep.subr.bf16.mxu0 %v1604_v30 }
  0x96   : > { %1052 = vmatpush2.bf16.msra.mxu0 %v1602_v31 }
  0x97   : > { %1053 = vmatprep.subr.bf16.mxu0 %v1607_v32 }
  0x9a   : > { %1054 = vmatpush2.bf16.msra.mxu0 %v1605_v33 }
  0x9b   : > { %1055 = vmatprep.subr.bf16.mxu0 %v1610_v34 }
  0x9e   : > { %1056 = vmatpush2.bf16.msra.mxu0 %v1608_v35 }
  0x9f   : > { %1057 = vmatprep.subr.bf16.mxu0 %v1613_v36 }
  0xa2   : > { %1058 = vmatpush2.bf16.msra.mxu0 %v1611_v37 }
  0xa3   : > { %1059 = vmatprep.subr.bf16.mxu0 %v1616_v38 }
  0xa6   : > { %1060 = vmatpush2.bf16.msra.mxu0 %v1614_v39 }
  0xa7   : > { %1061 = vmatprep.subr.bf16.mxu0 %v1619_v40 }
  0xaa   : > { %1062 = vmatpush2.bf16.msra.mxu0 %v1617_v41 }
  0xab   : > { %1063 = vmatprep.subr.bf16.mxu0 %v1622_v42 }
  0xae   : > { %1064 = vmatpush2.bf16.msra.mxu0 %v1620_v43 }
  0xb1   : > { %1066 = vmatmul.mubr.bf16.vlgmr.msra.gmra.mxu0 %v1623_v44 }
 0x131   : > { %v981_v45 = vpop.f32.mrf.mxu0 }
 0x132   : > { %v1024_v46 = vpop.f32.mrf.mxu1 }
 0x133   : > { %v983_v47 = vpop.f32.mrf.mxu0  ;;  %v1025_v52 = vadd.f32 %v1024_v46, %v981_v45 }
 0x134   : > { %v1026_v48 = vpop.f32.mrf.mxu1 }
 0x135   : > { %v985_v49 = vpop.f32.mrf.mxu0  ;;  %v1027_v55 = vadd.f32 %v1026_v48, %v983_v47 }
 0x136   : > { %v1028_v50 = vpop.f32.mrf.mxu1 }
 0x137   : > { %v987_v51 = vpop.f32.mrf.mxu0  ;;  %v1029_v60 = vadd.f32 %v1028_v50, %v985_v49 }
 0x138   : > { %v1030_v57 = vpop.f32.mrf.mxu1 }
 0x139   : > { %v1031_v1 = vadd.f32 %v1030_v57, %v987_v51 }
 0x171   : > { %v1067_v54 = vpop.f32.mrf.mxu0 }
 0x172   : > { %v1068_v56 = vadd.f32 %v1067_v54, %v1025_v52 }
 0x173   : > { %v1069_v59 = vpop.f32.mrf.mxu0 }
 0x174   : > { %v1076_v61 = vadd.f32 %v1068_v56, %v331_v53  ;;  %v1070_v62 = vadd.f32 %v1069_v59, %v1027_v55 }
 0x175   : > { %v1071_v0 = vpop.f32.mrf.mxu0 }
 0x176   : > { %1080 = vst [vmem:[#allocation2 + $0x10] sm:$0xff] %v1076_v61  ;;  %v1077_v2 = vadd.f32 %v1070_v62, %v332_v58  ;;  %v1072_v3 = vadd.f32 %v1071_v0, %v1029_v60 }
 0x177   : > { %v1073_v5 = vpop.f32.mrf.mxu0 }
 0x178   : > { %1081 = vst [vmem:[#allocation2] sm:$0xff] %v1077_v2  ;;  %v1078_v6 = vadd.f32 %v1072_v3, %v333_v63  ;;  %v1074_v7 = vadd.f32 %v1073_v5, %v1031_v1  ;;  %1087 = sbr.rel (%p1407_p13) target bundleno = 445 (0x1bd), region = 63 }
 0x17a   : > { %1082 = vst [vmem:[#allocation2 + $0x18] sm:$0xff] %v1078_v6  ;;  %v1079_v8 = vadd.f32 %v1074_v7, %v334_v4 }
 0x17c   : > { %1083 = vst [vmem:[#allocation2 + $0x8] sm:$0xff] %v1079_v8 }
 0x17d   : > { %v1088_v9 = vld [vmem:[#allocation2 + $0x10] sm:$0xff]  ;;  %v1141_v56 = vld [vmem:[%s1780_s30] sm:$0xff]  ;;  %v1142_v60 = vld [vmem:[%s1780_s30 + $0x8] sm:$0xff] }
 0x17e   : > { %v1143_v57 = vld [vmem:[%s1780_s30 + $0x10] sm:$0xff]  ;;  %v1144_v62 = vld [vmem:[%s1780_s30 + $0x18] sm:$0xff] }
 0x17f   : > { %v1089_v12 = vld [vmem:[#allocation2] sm:$0xff] }
 0x181   : > { %v1090_v10 = vld [vmem:[#allocation2 + $0x18] sm:$0xff] }
 0x182   : > { %v1092_v11 = vadd.f32 %v1090_v10, %v1088_v9 }
 0x183   : > { %v1091_v13 = vld [vmem:[#allocation2 + $0x8] sm:$0xff] }
 0x184   : > { %v1099_v14 = vadd.f32 %v1091_v13, %v1089_v12  ;;  %v1093_v15 = vrot.slane %v1092_v11, 4 }
 0x186   : > { %v1100_v16 = vrot.slane %v1099_v14, 4  ;;  %v1094_v17 = vadd.f32 %v1093_v15, %v1092_v11 }
 0x188   : > { %v1101_v18 = vadd.f32 %v1100_v16, %v1099_v14  ;;  %v1095_v19 = vrot.slane %v1094_v17, 2 }
 0x18a   : > { %v1102_v20 = vrot.slane %v1101_v18, 2  ;;  %v1096_v21 = vadd.f32 %v1095_v19, %v1094_v17 }
 0x18c   : > { %v1103_v22 = vadd.f32 %v1102_v20, %v1101_v18  ;;  %v1097_v23 = vrot.slane %v1096_v21, 1 }
 0x18e   : > { %v1104_v24 = vrot.slane %v1103_v22, 1  ;;  %v1098_v25 = vadd.f32 %v1097_v23, %v1096_v21 }
 0x190   : > { %v1105_v26 = vadd.f32 %v1104_v24, %v1103_v22  ;;  %v1107_v27 = vmul.f32 0.0625, %v1098_v25 }
 0x192   : > { %v1108_v28 = vmul.f32 0.0625, %v1105_v26  ;;  %v1109_v29 = vsub.f32 %v1088_v9, %v1107_v27  ;;  %v1111_v30 = vsub.f32 %v1090_v10, %v1107_v27 }
 0x194   : > { %v1110_v31 = vsub.f32 %v1089_v12, %v1108_v28  ;;  %v1112_v32 = vsub.f32 %v1091_v13, %v1108_v28  ;;  %v1113_v33 = vmul.f32 %v1109_v29, %v1109_v29  ;;  %v1115_v34 = vmul.f32 %v1111_v30, %v1111_v30 }
 0x196   : > { %v1114_v35 = vmul.f32 %v1110_v31, %v1110_v31  ;;  %v1116_v36 = vmul.f32 %v1112_v32, %v1112_v32  ;;  %v1117_v37 = vadd.f32 %v1115_v34, %v1113_v33 }
 0x198   : > { %v1124_v38 = vadd.f32 %v1116_v36, %v1114_v35  ;;  %v1118_v39 = vrot.slane %v1117_v37, 4 }
 0x19a   : > { %v1125_v40 = vrot.slane %v1124_v38, 4  ;;  %v1119_v41 = vadd.f32 %v1118_v39, %v1117_v37 }
 0x19c   : > { %v1126_v42 = vadd.f32 %v1125_v40, %v1124_v38  ;;  %v1120_v43 = vrot.slane %v1119_v41, 2 }
 0x19e   : > { %v1127_v44 = vrot.slane %v1126_v42, 2  ;;  %v1121_v45 = vadd.f32 %v1120_v43, %v1119_v41 }
 0x1a0   : > { %v1128_v46 = vadd.f32 %v1127_v44, %v1126_v42  ;;  %v1122_v47 = vrot.slane %v1121_v45, 1 }
 0x1a2   : > { %v1129_v48 = vrot.slane %v1128_v46, 1  ;;  %v1123_v49 = vadd.f32 %v1122_v47, %v1121_v45 }
 0x1a4   : > { %v1130_v50 = vadd.f32 %v1129_v48, %v1128_v46  ;;  %v1131_v51 = vmul.f32 0.0625, %v1123_v49 }
 0x1a6   : > { %v1132_v52 = vmul.f32 0.0625, %v1130_v50  ;;  %v1133_v53 = vadd.f32 1e-05, %v1131_v51 }
 0x1a8   : > { %v1134_v54 = vadd.f32 1e-05, %v1132_v52  ;;  %1626 = vrsqrt.f32 %v1133_v53 }
 0x1aa   : > { %1628 = vrsqrt.f32 %v1134_v54 }
 0x1b5   : > { %v1627_v55 = vpop.eup %1626 }
 0x1b6   : > { %v1137_v59 = vmul.f32 %v1627_v55, %v1109_v29  ;;  %v1139_v61 = vmul.f32 %v1627_v55, %v1111_v30 }
 0x1b7   : > { %v1629_v58 = vpop.eup %1628 }
 0x1b8   : > { %v1138_v63 = vmul.f32 %v1629_v58, %v1110_v31  ;;  %v1140_v0 = vmul.f32 %v1629_v58, %v1112_v32  ;;  %v1145_v1 = vadd.f32 %v1141_v56, %v1137_v59  ;;  %v1147_v2 = vadd.f32 %v1143_v57, %v1139_v61 }
 0x1ba   : > { %v1146_v3 = vadd.f32 %v1142_v60, %v1138_v63  ;;  %v1148_v4 = vadd.f32 %v1144_v62, %v1140_v0  ;;  %1149 = vst [vmem:[%s1785_s15] sm:$0xff] %v1145_v1  ;;  %1151 = vst [vmem:[%s1785_s15 + $0x10] sm:$0xff] %v1147_v2 }
 0x1bc   : > { %1150 = vst [vmem:[%s1785_s15 + $0x8] sm:$0xff] %v1146_v3  ;;  %1152 = vst [vmem:[%s1785_s15 + $0x18] sm:$0xff] %v1148_v4 }
 0x1bd PF: > { %s13_s18 = sadd.s32 1, %s1684_s18   ;;  %s1926_s12 = smov %s1664_s13 }
 0x1be   : > { %p10_p0 = scmp.ge.s32.totalorder %s13_s18, 8   ;;  %s1927_s13 = smov %s1758_s25 }
 0x1bf   : > { %s1928_s14 = smov %s1676_s16  ;;  %s1929_s15 = smov %s1680_s17 }
 0x1c0   : > { %s1930_s16 = smov %s1933_s19  ;;  %s1931_s17 = smov %s1937_s20 }
 0x1c1   :  { %12 = sbr.rel (!%p10_p0) target bundleno = 4 (0x4), region = 104 }

// kernel: generator_forward.27
= control target key start
LH: loop header
LB: loop body
LE: loop exit
PB: predicated region body
PF: predicated region fallthrough
CT: control target
= control target key end

     0   :  { %s2472_s9 = smov 0   ;;  %s2474_s10 = smov 0   ;;  %s3042_s0 = inlined_call_operand.vmem [shape: bf16[32,1024], index: 0, kind: input, shape index: {}]   ;;  %s3043_s1 = inlined_call_operand.vmem [shape: bf16[1024,512], index: 1, kind: input, shape index: {}]   ;;  %s3044_s2 = inlined_call_operand.vmem [shape: f32[32,512], index: 2, kind: output, shape index: {}]  }
   0x1   :  { %s2476_s11 = smov 0   ;;  %s2478_s12 = smov 0  }
   0x2   :  { %s2480_s13 = smov 0  }
   0x3 LB: > { %s27_s14 = sadd.s32 1, %s2451_s12  ;;  %s2023_s15 = sadd.s32 4294967295, %s2455_s13   ;;  %s2455_s13 = sphi %s2480_s13, %s12_s13   ;;  %s2451_s12 = sphi %s2478_s12, %s3049_s12   ;;  %s2447_s11 = sphi %s2476_s11, %s3048_s11   ;;  %s2443_s10 = sphi %s2474_s10, %s3047_s10   ;;  %s2439_s9 = sphi %s2472_s9, %s3046_s9  }
   0x4   : > { %p29_p0 = scmp.ge.s32.totalorder %s27_s14, 2  ;;  %p75_p1 = scmp.ne.s32.totalorder %s2443_s10, %s2439_s9 }
   0x5   : > { %p76_p2 = scmp.eq.s32.totalorder %s2455_s13, 0  ;;  %p107_p4 = scmp.eq.s32.totalorder %s2023_s15, 1 }
   0x6   : > { %s3051_s14 = smov (%p29_p0, %s27_s14), 0  ;;  %s68_s17 = sadd.s32 1, %s2443_s10 }
   0x7   : > { %p77_p3 = por %p76_p2, %p75_p1  ;;  %s64_s16 = ssub.s32 %s2451_s12, %s3051_s14 }
   0x8   : > { %p66_p5 = scmp.eq.s32.totalorder %s64_s16, 0  ;;  %p2507_p6 = por %p107_p4, %p75_p1 }
   0x9   : > { %p2027_p7 = scmp.ge.s32.totalorder %s2455_s13, 2 }
   0xa   : > { %s2512_s19 = scalar_select %p66_p5, %s2443_s10, %s68_s17  }
   0xb   : > { %144 = sbr.rel (%p2027_p7) target bundleno = 84 (0x54), region = 20 }
  0x10   : > { %147 = sbr.rel (!%p77_p3) target bundleno = 84 (0x54), region = 24  ;;  %s149_s20 = sand.u32 (%p77_p3), 1, %s2443_s10  }
  0x11   : > { %s2183_s21 = sshll.u32 (%p77_p3), %s2451_s12, 3  ;;  %s2028_s22 = sshll.u32 (%p77_p3), %s149_s20, 10 }
  0x12   : > { %s2520_s25 = scalar_lea.vmem (%p77_p3), %s3043_s1, %s2183_s21  ;;  %s2525_s26 = scalar_lea.vmem (%p77_p3), [#allocation3], %s2028_s22 }
  0x13   : > { %v440_v0 = vld [vmem:[%s2520_s25] sm:$0xff] (%p77_p3)  ;;  %v442_v1 = vld [vmem:[%s2520_s25 + $0x10] sm:$0xff] (%p77_p3) }
  0x14   : > { %v444_v2 = vld [vmem:[%s2520_s25 + $0x20] sm:$0xff] (%p77_p3)  ;;  %441 = vst [vmem:[%s2525_s26] sm:$0xff] (%p77_p3), %v440_v0  ;;  %443 = vst [vmem:[%s2525_s26 + $0x8] sm:$0xff] (%p77_p3), %v442_v1  ;;  %v446_v3 = vld [vmem:[%s2520_s25 + $0x30] sm:$0xff] (%p77_p3) }
  0x15   : > { %445 = vst [vmem:[%s2525_s26 + $0x10] sm:$0xff] %v444_v2  ;;  %v448_v4 = vld [vmem:[%s2520_s25 + $0x40] sm:$0xff]  ;;  %v450_v5 = vld [vmem:[%s2520_s25 + $0x50] sm:$0xff]  ;;  %447 = vst [vmem:[%s2525_s26 + $0x18] sm:$0xff] %v446_v3 }
  0x16   : > { %449 = vst [vmem:[%s2525_s26 + $0x20] sm:$0xff] %v448_v4  ;;  %451 = vst [vmem:[%s2525_s26 + $0x28] sm:$0xff] %v450_v5  ;;  %v452_v6 = vld [vmem:[%s2520_s25 + $0x60] sm:$0xff]  ;;  %v454_v7 = vld [vmem:[%s2520_s25 + $0x70] sm:$0xff] }
  0x17   : > { %v456_v8 = vld [vmem:[%s2520_s25 + $0x80] sm:$0xff]  ;;  %453 = vst [vmem:[%s2525_s26 + $0x30] sm:$0xff] %v452_v6  ;;  %455 = vst [vmem:[%s2525_s26 + $0x38] sm:$0xff] %v454_v7  ;;  %v458_v9 = vld [vmem:[%s2520_s25 + $0x90] sm:$0xff] }
  0x18   : > { %457 = vst [vmem:[%s2525_s26 + $0x40] sm:$0xff] %v456_v8  ;;  %v460_v10 = vld [vmem:[%s2520_s25 + $0xa0] sm:$0xff]  ;;  %v462_v11 = vld [vmem:[%s2520_s25 + $0xb0] sm:$0xff]  ;;  %459 = vst [vmem:[%s2525_s26 + $0x48] sm:$0xff] %v458_v9 }
  0x19   : > { %461 = vst [vmem:[%s2525_s26 + $0x50] sm:$0xff] %v460_v10  ;;  %463 = vst [vmem:[%s2525_s26 + $0x58] sm:$0xff] %v462_v11  ;;  %v464_v12 = vld [vmem:[%s2520_s25 + $0xc0] sm:$0xff]  ;;  %v466_v13 = vld [vmem:[%s2520_s25 + $0xd0] sm:$0xff] }
  0x1a   : > { %v468_v14 = vld [vmem:[%s2520_s25 + $0xe0] sm:$0xff]  ;;  %465 = vst [vmem:[%s2525_s26 + $0x60] sm:$0xff] %v464_v12  ;;  %467 = vst [vmem:[%s2525_s26 + $0x68] sm:$0xff] %v466_v13  ;;  %v470_v15 = vld [vmem:[%s2520_s25 + $0xf0] sm:$0xff] }
  0x1b   : > { %469 = vst [vmem:[%s2525_s26 + $0x70] sm:$0xff] %v468_v14  ;;  %v472_v16 = vld [vmem:[%s2520_s25 + $0x100] sm:$0xff]  ;;  %v474_v17 = vld [vmem:[%s2520_s25 + $0x110] sm:$0xff]  ;;  %471 = vst [vmem:[%s2525_s26 + $0x78] sm:$0xff] %v470_v15 }
  0x1c   : > { %473 = vst [vmem:[%s2525_s26 + $0x80] sm:$0xff] %v472_v16  ;;  %475 = vst [vmem:[%s2525_s26 + $0x88] sm:$0xff] %v474_v17  ;;  %v476_v18 = vld [vmem:[%s2520_s25 + $0x120] sm:$0xff]  ;;  %v478_v19 = vld [vmem:[%s2520_s25 + $0x130] sm:$0xff] }
  0x1d   : > { %v480_v20 = vld [vmem:[%s2520_s25 + $0x140] sm:$0xff]  ;;  %477 = vst [vmem:[%s2525_s26 + $0x90] sm:$0xff] %v476_v18  ;;  %479 = vst [vmem:[%s2525_s26 + $0x98] sm:$0xff] %v478_v19  ;;  %v482_v21 = vld [vmem:[%s2520_s25 + $0x150] sm:$0xff] }
  0x1e   : > { %481 = vst [vmem:[%s2525_s26 + $0xa0] sm:$0xff] %v480_v20  ;;  %v484_v22 = vld [vmem:[%s2520_s25 + $0x160] sm:$0xff]  ;;  %v486_v23 = vld [vmem:[%s2520_s25 + $0x170] sm:$0xff]  ;;  %483 = vst [vmem:[%s2525_s26 + $0xa8] sm:$0xff] %v482_v21 }
  0x1f   : > { %485 = vst [vmem:[%s2525_s26 + $0xb0] sm:$0xff] %v484_v22  ;;  %487 = vst [vmem:[%s2525_s26 + $0xb8] sm:$0xff] %v486_v23  ;;  %v488_v24 = vld [vmem:[%s2520_s25 + $0x180] sm:$0xff]  ;;  %v490_v25 = vld [vmem:[%s2520_s25 + $0x190] sm:$0xff] }
  0x20   : > { %v492_v26 = vld [vmem:[%s2520_s25 + $0x1a0] sm:$0xff]  ;;  %489 = vst [vmem:[%s2525_s26 + $0xc0] sm:$0xff] %v488_v24  ;;  %491 = vst [vmem:[%s2525_s26 + $0xc8] sm:$0xff] %v490_v25  ;;  %v494_v27 = vld [vmem:[%s2520_s25 + $0x1b0] sm:$0xff] }
  0x21   : > { %493 = vst [vmem:[%s2525_s26 + $0xd0] sm:$0xff] %v492_v26  ;;  %v496_v28 = vld [vmem:[%s2520_s25 + $0x1c0] sm:$0xff]  ;;  %v498_v29 = vld [vmem:[%s2520_s25 + $0x1d0] sm:$0xff]  ;;  %495 = vst [vmem:[%s2525_s26 + $0xd8] sm:$0xff] %v494_v27 }
  0x22   : > { %497 = vst [vmem:[%s2525_s26 + $0xe0] sm:$0xff] %v496_v28  ;;  %499 = vst [vmem:[%s2525_s26 + $0xe8] sm:$0xff] %v498_v29  ;;  %v500_v30 = vld [vmem:[%s2520_s25 + $0x1e0] sm:$0xff]  ;;  %v502_v31 = vld [vmem:[%s2520_s25 + $0x1f0] sm:$0xff] }
  0x23   : > { %v504_v32 = vld [vmem:[%s2520_s25 + $0x200] sm:$0xff]  ;;  %501 = vst [vmem:[%s2525_s26 + $0xf0] sm:$0xff] %v500_v30  ;;  %503 = vst [vmem:[%s2525_s26 + $0xf8] sm:$0xff] %v502_v31  ;;  %v506_v33 = vld [vmem:[%s2520_s25 + $0x210] sm:$0xff] }
  0x24   : > { %505 = vst [vmem:[%s2525_s26 + $0x100] sm:$0xff] %v504_v32  ;;  %v508_v34 = vld [vmem:[%s2520_s25 + $0x220] sm:$0xff]  ;;  %v510_v35 = vld [vmem:[%s2520_s25 + $0x230] sm:$0xff]  ;;  %507 = vst [vmem:[%s2525_s26 + $0x108] sm:$0xff] %v506_v33 }
  0x25   : > { %509 = vst [vmem:[%s2525_s26 + $0x110] sm:$0xff] %v508_v34  ;;  %511 = vst [vmem:[%s2525_s26 + $0x118] sm:$0xff] %v510_v35  ;;  %v512_v36 = vld [vmem:[%s2520_s25 + $0x240] sm:$0xff]  ;;  %v514_v37 = vld [vmem:[%s2520_s25 + $0x250] sm:$0xff] }
  0x26   : > { %v516_v38 = vld [vmem:[%s2520_s25 + $0x260] sm:$0xff]  ;;  %513 = vst [vmem:[%s2525_s26 + $0x120] sm:$0xff] %v512_v36  ;;  %515 = vst [vmem:[%s2525_s26 + $0x128] sm:$0xff] %v514_v37  ;;  %v518_v39 = vld [vmem:[%s2520_s25 + $0x270] sm:$0xff] }
  0x27   : > { %517 = vst [vmem:[%s2525_s26 + $0x130] sm:$0xff] %v516_v38  ;;  %v520_v40 = vld [vmem:[%s2520_s25 + $0x280] sm:$0xff]  ;;  %v522_v41 = vld [vmem:[%s2520_s25 + $0x290] sm:$0xff]  ;;  %519 = vst [vmem:[%s2525_s26 + $0x138] sm:$0xff] %v518_v39 }
  0x28   : > { %521 = vst [vmem:[%s2525_s26 + $0x140] sm:$0xff] %v520_v40  ;;  %523 = vst [vmem:[%s2525_s26 + $0x148] sm:$0xff] %v522_v41  ;;  %v524_v42 = vld [vmem:[%s2520_s25 + $0x2a0] sm:$0xff]  ;;  %v526_v43 = vld [vmem:[%s2520_s25 + $0x2b0] sm:$0xff] }
  0x29   : > { %v528_v44 = vld [vmem:[%s2520_s25 + $0x2c0] sm:$0xff]  ;;  %525 = vst [vmem:[%s2525_s26 + $0x150] sm:$0xff] %v524_v42  ;;  %527 = vst [vmem:[%s2525_s26 + $0x158] sm:$0xff] %v526_v43  ;;  %v530_v45 = vld [vmem:[%s2520_s25 + $0x2d0] sm:$0xff] }
  0x2a   : > { %529 = vst [vmem:[%s2525_s26 + $0x160] sm:$0xff] %v528_v44  ;;  %v532_v46 = vld [vmem:[%s2520_s25 + $0x2e0] sm:$0xff]  ;;  %v534_v47 = vld [vmem:[%s2520_s25 + $0x2f0] sm:$0xff]  ;;  %531 = vst [vmem:[%s2525_s26 + $0x168] sm:$0xff] %v530_v45 }
  0x2b   : > { %533 = vst [vmem:[%s2525_s26 + $0x170] sm:$0xff] %v532_v46  ;;  %535 = vst [vmem:[%s2525_s26 + $0x178] sm:$0xff] %v534_v47  ;;  %v536_v48 = vld [vmem:[%s2520_s25 + $0x300] sm:$0xff]  ;;  %v538_v49 = vld [vmem:[%s2520_s25 + $0x310] sm:$0xff] }
  0x2c   : > { %v540_v50 = vld [vmem:[%s2520_s25 + $0x320] sm:$0xff]  ;;  %537 = vst [vmem:[%s2525_s26 + $0x180] sm:$0xff] %v536_v48  ;;  %539 = vst [vmem:[%s2525_s26 + $0x188] sm:$0xff] %v538_v49  ;;  %v542_v51 = vld [vmem:[%s2520_s25 + $0x330] sm:$0xff] }
  0x2d   : > { %541 = vst [vmem:[%s2525_s26 + $0x190] sm:$0xff] %v540_v50  ;;  %v544_v52 = vld [vmem:[%s2520_s25 + $0x340] sm:$0xff]  ;;  %v546_v53 = vld [vmem:[%s2520_s25 + $0x350] sm:$0xff]  ;;  %543 = vst [vmem:[%s2525_s26 + $0x198] sm:$0xff] %v542_v51 }
  0x2e   : > { %545 = vst [vmem:[%s2525_s26 + $0x1a0] sm:$0xff] %v544_v52  ;;  %547 = vst [vmem:[%s2525_s26 + $0x1a8] sm:$0xff] %v546_v53  ;;  %v548_v54 = vld [vmem:[%s2520_s25 + $0x360] sm:$0xff]  ;;  %v550_v55 = vld [vmem:[%s2520_s25 + $0x370] sm:$0xff] }
  0x2f   : > { %v552_v56 = vld [vmem:[%s2520_s25 + $0x380] sm:$0xff]  ;;  %549 = vst [vmem:[%s2525_s26 + $0x1b0] sm:$0xff] %v548_v54  ;;  %551 = vst [vmem:[%s2525_s26 + $0x1b8] sm:$0xff] %v550_v55  ;;  %v554_v57 = vld [vmem:[%s2520_s25 + $0x390] sm:$0xff] }
  0x30   : > { %553 = vst [vmem:[%s2525_s26 + $0x1c0] sm:$0xff] %v552_v56  ;;  %v556_v58 = vld [vmem:[%s2520_s25 + $0x3a0] sm:$0xff]  ;;  %v558_v59 = vld [vmem:[%s2520_s25 + $0x3b0] sm:$0xff]  ;;  %555 = vst [vmem:[%s2525_s26 + $0x1c8] sm:$0xff] %v554_v57 }
  0x31   : > { %557 = vst [vmem:[%s2525_s26 + $0x1d0] sm:$0xff] %v556_v58  ;;  %559 = vst [vmem:[%s2525_s26 + $0x1d8] sm:$0xff] %v558_v59  ;;  %v560_v60 = vld [vmem:[%s2520_s25 + $0x3c0] sm:$0xff]  ;;  %v562_v61 = vld [vmem:[%s2520_s25 + $0x3d0] sm:$0xff] }
  0x32   : > { %v564_v62 = vld [vmem:[%s2520_s25 + $0x3e0] sm:$0xff]  ;;  %561 = vst [vmem:[%s2525_s26 + $0x1e0] sm:$0xff] %v560_v60  ;;  %563 = vst [vmem:[%s2525_s26 + $0x1e8] sm:$0xff] %v562_v61  ;;  %v566_v63 = vld [vmem:[%s2520_s25 + $0x3f0] sm:$0xff] }
  0x33   : > { %565 = vst [vmem:[%s2525_s26 + $0x1f0] sm:$0xff] %v564_v62  ;;  %v568_v0 = vld [vmem:[%s2520_s25 + $0x400] sm:$0xff]  ;;  %v570_v1 = vld [vmem:[%s2520_s25 + $0x410] sm:$0xff]  ;;  %567 = vst [vmem:[%s2525_s26 + $0x1f8] sm:$0xff] %v566_v63 }
  0x34   : > { %569 = vst [vmem:[%s2525_s26 + $0x200] sm:$0xff] %v568_v0  ;;  %571 = vst [vmem:[%s2525_s26 + $0x208] sm:$0xff] %v570_v1  ;;  %v572_v2 = vld [vmem:[%s2520_s25 + $0x420] sm:$0xff]  ;;  %v574_v3 = vld [vmem:[%s2520_s25 + $0x430] sm:$0xff] }
  0x35   : > { %v576_v4 = vld [vmem:[%s2520_s25 + $0x440] sm:$0xff]  ;;  %573 = vst [vmem:[%s2525_s26 + $0x210] sm:$0xff] %v572_v2  ;;  %575 = vst [vmem:[%s2525_s26 + $0x218] sm:$0xff] %v574_v3  ;;  %v578_v5 = vld [vmem:[%s2520_s25 + $0x450] sm:$0xff] }
  0x36   : > { %577 = vst [vmem:[%s2525_s26 + $0x220] sm:$0xff] %v576_v4  ;;  %v580_v6 = vld [vmem:[%s2520_s25 + $0x460] sm:$0xff]  ;;  %v582_v7 = vld [vmem:[%s2520_s25 + $0x470] sm:$0xff]  ;;  %579 = vst [vmem:[%s2525_s26 + $0x228] sm:$0xff] %v578_v5 }
  0x37   : > { %581 = vst [vmem:[%s2525_s26 + $0x230] sm:$0xff] %v580_v6  ;;  %583 = vst [vmem:[%s2525_s26 + $0x238] sm:$0xff] %v582_v7  ;;  %v584_v8 = vld [vmem:[%s2520_s25 + $0x480] sm:$0xff]  ;;  %v586_v9 = vld [vmem:[%s2520_s25 + $0x490] sm:$0xff] }
  0x38   : > { %v588_v10 = vld [vmem:[%s2520_s25 + $0x4a0] sm:$0xff]  ;;  %585 = vst [vmem:[%s2525_s26 + $0x240] sm:$0xff] %v584_v8  ;;  %587 = vst [vmem:[%s2525_s26 + $0x248] sm:$0xff] %v586_v9  ;;  %v590_v11 = vld [vmem:[%s2520_s25 + $0x4b0] sm:$0xff] }
  0x39   : > { %589 = vst [vmem:[%s2525_s26 + $0x250] sm:$0xff] %v588_v10  ;;  %v592_v12 = vld [vmem:[%s2520_s25 + $0x4c0] sm:$0xff]  ;;  %v594_v13 = vld [vmem:[%s2520_s25 + $0x4d0] sm:$0xff]  ;;  %591 = vst [vmem:[%s2525_s26 + $0x258] sm:$0xff] %v590_v11 }
  0x3a   : > { %593 = vst [vmem:[%s2525_s26 + $0x260] sm:$0xff] %v592_v12  ;;  %595 = vst [vmem:[%s2525_s26 + $0x268] sm:$0xff] %v594_v13  ;;  %v596_v14 = vld [vmem:[%s2520_s25 + $0x4e0] sm:$0xff]  ;;  %v598_v15 = vld [vmem:[%s2520_s25 + $0x4f0] sm:$0xff] }
  0x3b   : > { %v600_v16 = vld [vmem:[%s2520_s25 + $0x500] sm:$0xff]  ;;  %597 = vst [vmem:[%s2525_s26 + $0x270] sm:$0xff] %v596_v14  ;;  %599 = vst [vmem:[%s2525_s26 + $0x278] sm:$0xff] %v598_v15  ;;  %v602_v17 = vld [vmem:[%s2520_s25 + $0x510] sm:$0xff] }
  0x3c   : > { %601 = vst [vmem:[%s2525_s26 + $0x280] sm:$0xff] %v600_v16  ;;  %v604_v18 = vld [vmem:[%s2520_s25 + $0x520] sm:$0xff]  ;;  %v606_v19 = vld [vmem:[%s2520_s25 + $0x530] sm:$0xff]  ;;  %603 = vst [vmem:[%s2525_s26 + $0x288] sm:$0xff] %v602_v17 }
  0x3d   : > { %605 = vst [vmem:[%s2525_s26 + $0x290] sm:$0xff] %v604_v18  ;;  %607 = vst [vmem:[%s2525_s26 + $0x298] sm:$0xff] %v606_v19  ;;  %v608_v20 = vld [vmem:[%s2520_s25 + $0x540] sm:$0xff]  ;;  %v610_v21 = vld [vmem:[%s2520_s25 + $0x550] sm:$0xff] }
  0x3e   : > { %v612_v22 = vld [vmem:[%s2520_s25 + $0x560] sm:$0xff]  ;;  %609 = vst [vmem:[%s2525_s26 + $0x2a0] sm:$0xff] %v608_v20  ;;  %611 = vst [vmem:[%s2525_s26 + $0x2a8] sm:$0xff] %v610_v21  ;;  %v614_v23 = vld [vmem:[%s2520_s25 + $0x570] sm:$0xff] }
  0x3f   : > { %613 = vst [vmem:[%s2525_s26 + $0x2b0] sm:$0xff] %v612_v22  ;;  %v616_v24 = vld [vmem:[%s2520_s25 + $0x580] sm:$0xff]  ;;  %v618_v25 = vld [vmem:[%s2520_s25 + $0x590] sm:$0xff]  ;;  %615 = vst [vmem:[%s2525_s26 + $0x2b8] sm:$0xff] %v614_v23 }
  0x40   : > { %617 = vst [vmem:[%s2525_s26 + $0x2c0] sm:$0xff] %v616_v24  ;;  %619 = vst [vmem:[%s2525_s26 + $0x2c8] sm:$0xff] %v618_v25  ;;  %v620_v26 = vld [vmem:[%s2520_s25 + $0x5a0] sm:$0xff]  ;;  %v622_v27 = vld [vmem:[%s2520_s25 + $0x5b0] sm:$0xff] }
  0x41   : > { %v624_v28 = vld [vmem:[%s2520_s25 + $0x5c0] sm:$0xff]  ;;  %621 = vst [vmem:[%s2525_s26 + $0x2d0] sm:$0xff] %v620_v26  ;;  %623 = vst [vmem:[%s2525_s26 + $0x2d8] sm:$0xff] %v622_v27  ;;  %v626_v29 = vld [vmem:[%s2520_s25 + $0x5d0] sm:$0xff] }
  0x42   : > { %625 = vst [vmem:[%s2525_s26 + $0x2e0] sm:$0xff] %v624_v28  ;;  %v628_v30 = vld [vmem:[%s2520_s25 + $0x5e0] sm:$0xff]  ;;  %v630_v31 = vld [vmem:[%s2520_s25 + $0x5f0] sm:$0xff]  ;;  %627 = vst [vmem:[%s2525_s26 + $0x2e8] sm:$0xff] %v626_v29 }
  0x43   : > { %629 = vst [vmem:[%s2525_s26 + $0x2f0] sm:$0xff] %v628_v30  ;;  %631 = vst [vmem:[%s2525_s26 + $0x2f8] sm:$0xff] %v630_v31  ;;  %v632_v32 = vld [vmem:[%s2520_s25 + $0x600] sm:$0xff]  ;;  %v634_v33 = vld [vmem:[%s2520_s25 + $0x610] sm:$0xff] }
  0x44   : > { %v636_v34 = vld [vmem:[%s2520_s25 + $0x620] sm:$0xff]  ;;  %633 = vst [vmem:[%s2525_s26 + $0x300] sm:$0xff] %v632_v32  ;;  %635 = vst [vmem:[%s2525_s26 + $0x308] sm:$0xff] %v634_v33  ;;  %v638_v35 = vld [vmem:[%s2520_s25 + $0x630] sm:$0xff] }
  0x45   : > { %637 = vst [vmem:[%s2525_s26 + $0x310] sm:$0xff] %v636_v34  ;;  %v640_v36 = vld [vmem:[%s2520_s25 + $0x640] sm:$0xff]  ;;  %v642_v37 = vld [vmem:[%s2520_s25 + $0x650] sm:$0xff]  ;;  %639 = vst [vmem:[%s2525_s26 + $0x318] sm:$0xff] %v638_v35 }
  0x46   : > { %641 = vst [vmem:[%s2525_s26 + $0x320] sm:$0xff] %v640_v36  ;;  %643 = vst [vmem:[%s2525_s26 + $0x328] sm:$0xff] %v642_v37  ;;  %v644_v38 = vld [vmem:[%s2520_s25 + $0x660] sm:$0xff]  ;;  %v646_v39 = vld [vmem:[%s2520_s25 + $0x670] sm:$0xff] }
  0x47   : > { %v648_v40 = vld [vmem:[%s2520_s25 + $0x680] sm:$0xff]  ;;  %645 = vst [vmem:[%s2525_s26 + $0x330] sm:$0xff] %v644_v38  ;;  %647 = vst [vmem:[%s2525_s26 + $0x338] sm:$0xff] %v646_v39  ;;  %v650_v41 = vld [vmem:[%s2520_s25 + $0x690] sm:$0xff] }
  0x48   : > { %649 = vst [vmem:[%s2525_s26 + $0x340] sm:$0xff] %v648_v40  ;;  %v652_v42 = vld [vmem:[%s2520_s25 + $0x6a0] sm:$0xff]  ;;  %v654_v43 = vld [vmem:[%s2520_s25 + $0x6b0] sm:$0xff]  ;;  %651 = vst [vmem:[%s2525_s26 + $0x348] sm:$0xff] %v650_v41 }
  0x49   : > { %653 = vst [vmem:[%s2525_s26 + $0x350] sm:$0xff] %v652_v42  ;;  %655 = vst [vmem:[%s2525_s26 + $0x358] sm:$0xff] %v654_v43  ;;  %v656_v44 = vld [vmem:[%s2520_s25 + $0x6c0] sm:$0xff]  ;;  %v658_v45 = vld [vmem:[%s2520_s25 + $0x6d0] sm:$0xff] }
  0x4a   : > { %v660_v46 = vld [vmem:[%s2520_s25 + $0x6e0] sm:$0xff]  ;;  %657 = vst [vmem:[%s2525_s26 + $0x360] sm:$0xff] %v656_v44  ;;  %659 = vst [vmem:[%s2525_s26 + $0x368] sm:$0xff] %v658_v45  ;;  %v662_v47 = vld [vmem:[%s2520_s25 + $0x6f0] sm:$0xff] }
  0x4b   : > { %661 = vst [vmem:[%s2525_s26 + $0x370] sm:$0xff] %v660_v46  ;;  %v664_v48 = vld [vmem:[%s2520_s25 + $0x700] sm:$0xff]  ;;  %v666_v49 = vld [vmem:[%s2520_s25 + $0x710] sm:$0xff]  ;;  %663 = vst [vmem:[%s2525_s26 + $0x378] sm:$0xff] %v662_v47 }
  0x4c   : > { %665 = vst [vmem:[%s2525_s26 + $0x380] sm:$0xff] %v664_v48  ;;  %667 = vst [vmem:[%s2525_s26 + $0x388] sm:$0xff] %v666_v49  ;;  %v668_v50 = vld [vmem:[%s2520_s25 + $0x720] sm:$0xff]  ;;  %v670_v51 = vld [vmem:[%s2520_s25 + $0x730] sm:$0xff] }
  0x4d   : > { %v672_v52 = vld [vmem:[%s2520_s25 + $0x740] sm:$0xff]  ;;  %669 = vst [vmem:[%s2525_s26 + $0x390] sm:$0xff] %v668_v50  ;;  %671 = vst [vmem:[%s2525_s26 + $0x398] sm:$0xff] %v670_v51  ;;  %v674_v53 = vld [vmem:[%s2520_s25 + $0x750] sm:$0xff] }
  0x4e   : > { %673 = vst [vmem:[%s2525_s26 + $0x3a0] sm:$0xff] %v672_v52  ;;  %v676_v54 = vld [vmem:[%s2520_s25 + $0x760] sm:$0xff]  ;;  %v678_v55 = vld [vmem:[%s2520_s25 + $0x770] sm:$0xff]  ;;  %675 = vst [vmem:[%s2525_s26 + $0x3a8] sm:$0xff] %v674_v53 }
  0x4f   : > { %677 = vst [vmem:[%s2525_s26 + $0x3b0] sm:$0xff] %v676_v54  ;;  %679 = vst [vmem:[%s2525_s26 + $0x3b8] sm:$0xff] %v678_v55  ;;  %v680_v56 = vld [vmem:[%s2520_s25 + $0x780] sm:$0xff]  ;;  %v682_v57 = vld [vmem:[%s2520_s25 + $0x790] sm:$0xff] }
  0x50   : > { %v684_v58 = vld [vmem:[%s2520_s25 + $0x7a0] sm:$0xff]  ;;  %681 = vst [vmem:[%s2525_s26 + $0x3c0] sm:$0xff] %v680_v56  ;;  %683 = vst [vmem:[%s2525_s26 + $0x3c8] sm:$0xff] %v682_v57  ;;  %v686_v59 = vld [vmem:[%s2520_s25 + $0x7b0] sm:$0xff] }
  0x51   : > { %685 = vst [vmem:[%s2525_s26 + $0x3d0] sm:$0xff] %v684_v58  ;;  %v688_v60 = vld [vmem:[%s2520_s25 + $0x7c0] sm:$0xff]  ;;  %v690_v61 = vld [vmem:[%s2520_s25 + $0x7d0] sm:$0xff]  ;;  %687 = vst [vmem:[%s2525_s26 + $0x3d8] sm:$0xff] %v686_v59 }
  0x52   : > { %689 = vst [vmem:[%s2525_s26 + $0x3e0] sm:$0xff] %v688_v60  ;;  %691 = vst [vmem:[%s2525_s26 + $0x3e8] sm:$0xff] %v690_v61  ;;  %v692_v62 = vld [vmem:[%s2520_s25 + $0x7e0] sm:$0xff]  ;;  %v694_v63 = vld [vmem:[%s2520_s25 + $0x7f0] sm:$0xff] }
  0x53   : > { %693 = vst [vmem:[%s2525_s26 + $0x3f0] sm:$0xff] %v692_v62  ;;  %695 = vst [vmem:[%s2525_s26 + $0x3f8] sm:$0xff] %v694_v63 }
  0x54 PF: > { %p2031_p8 = scmp.ge.s32.totalorder %s2455_s13, 1  ;;  %p700_p9 = scmp.lt.s32.totalorder %s2455_s13, 3 }
  0x56   : > { %p701_p10 = pnand %p2031_p8, %p700_p9 }
  0x57   : > { %s707_s27 = sand.u32 (!%p701_p10), 1, %s2439_s9  }
  0x58   : > { %704 = sbr.rel (%p701_p10) target bundleno = 443 (0x1bb), region = 62  ;;  %s2032_s6 = sshll.u32 (!%p701_p10), %s707_s27, 10 }
  0x59   : > { %s2813_s15 = scalar_lea.vmem (!%p701_p10), [#allocation3], %s2032_s6 }
  0x5d   : > { %v2786_v0 = vld [vmem:[%s3042_s0] sm:$0xff]  ;;  %v2796_v2 = vld [vmem:[%s3042_s0 + $0x8] sm:$0xff]  ;;  %v2225_v8 = vld [vmem:[%s2813_s15 + $0x74] ss:$8 sps:$4 sm:$0xff]   ;;  %s2184_s9 = sshll.u32 (%p2507_p6), %s2447_s11, 4 }
  0x5e   : > { %v2791_v1 = vld [vmem:[%s3042_s0 + $0x20] sm:$0xff]  ;;  %v2807_v5 = vld [vmem:[%s3042_s0 + $0x28] sm:$0xff]  ;;  %v2227_v9 = vld [vmem:[%s2813_s15 + $0x174] ss:$8 sps:$4 sm:$0xff]   ;;  %1637 = vmatprep.subr.bf16.mxu0 %v2225_v8  ;;  %s1896_s26 = scalar_lea.vmem (%p2507_p6), %s3044_s2, %s2184_s9 }
  0x5f   : > { %v2034_v3 = vcombine.low %v2786_v0, %v2791_v1  ;;  %v2035_v4 = vcombine.high %v2786_v0, %v2791_v1  ;;  %v2036_v6 = vcombine.low %v2796_v2, %v2807_v5  ;;  %v2037_v7 = vcombine.high %v2796_v2, %v2807_v5  ;;  %v2229_v10 = vld [vmem:[%s2813_s15 + $0x70] ss:$8 sps:$4 sm:$0xff]   ;;  %1690 = vmatprep.subr.bf16.mxu1 %v2227_v9  ;;  %v2231_v12 = vld [vmem:[%s2813_s15 + $0x64] ss:$8 sps:$4 sm:$0xff]   ;;  %v2235_v14 = vld [vmem:[%s2813_s15 + $0x60] ss:$8 sps:$4 sm:$0xff]  }
  0x60   : > { %v2230_v11 = vld [vmem:[%s2813_s15 + $0x170] ss:$8 sps:$4 sm:$0xff]   ;;  %1638 = vmatpush1.bf16.msra.mxu0 %v2229_v10  ;;  %v2233_v13 = vld [vmem:[%s2813_s15 + $0x164] ss:$8 sps:$4 sm:$0xff]   ;;  %v2236_v15 = vld [vmem:[%s2813_s15 + $0x160] ss:$8 sps:$4 sm:$0xff]  }
  0x61   : > { %1669 = vmatprep.mubr.bf16.mxu0 %v2035_v4  ;;  %1722 = vmatprep.mubr.bf16.mxu1 %v2037_v7  ;;  %v2237_v16 = vld [vmem:[%s2813_s15 + $0x54] ss:$8 sps:$4 sm:$0xff]   ;;  %v2241_v18 = vld [vmem:[%s2813_s15 + $0x50] ss:$8 sps:$4 sm:$0xff]   ;;  %v2243_v20 = vld [vmem:[%s2813_s15 + $0x44] ss:$8 sps:$4 sm:$0xff]  }
  0x62   : > { %1691 = vmatpush1.bf16.msra.mxu1 %v2230_v11  ;;  %1639 = vmatprep.subr.bf16.mxu0 %v2231_v12  ;;  %v2239_v17 = vld [vmem:[%s2813_s15 + $0x154] ss:$8 sps:$4 sm:$0xff]   ;;  %v2242_v19 = vld [vmem:[%s2813_s15 + $0x150] ss:$8 sps:$4 sm:$0xff]   ;;  %v2245_v21 = vld [vmem:[%s2813_s15 + $0x144] ss:$8 sps:$4 sm:$0xff]  }
  0x63   : > { %1692 = vmatprep.subr.bf16.mxu1 %v2233_v13  ;;  %v2247_v22 = vld [vmem:[%s2813_s15 + $0x40] ss:$8 sps:$4 sm:$0xff]   ;;  %v2249_v24 = vld [vmem:[%s2813_s15 + $0x34] ss:$8 sps:$4 sm:$0xff]   ;;  %v2253_v26 = vld [vmem:[%s2813_s15 + $0x30] ss:$8 sps:$4 sm:$0xff]  }
  0x64   : > { %1640 = vmatpush1.bf16.msra.mxu0 %v2235_v14  ;;  %v2248_v23 = vld [vmem:[%s2813_s15 + $0x140] ss:$8 sps:$4 sm:$0xff]   ;;  %v2251_v25 = vld [vmem:[%s2813_s15 + $0x134] ss:$8 sps:$4 sm:$0xff]   ;;  %v2254_v27 = vld [vmem:[%s2813_s15 + $0x130] ss:$8 sps:$4 sm:$0xff]  }
  0x65   : > { %1641 = vmatprep.subr.bf16.mxu0 %v2237_v16  ;;  %v2255_v28 = vld [vmem:[%s2813_s15 + $0x24] ss:$8 sps:$4 sm:$0xff]   ;;  %v2259_v30 = vld [vmem:[%s2813_s15 + $0x20] ss:$8 sps:$4 sm:$0xff]   ;;  %v2261_v32 = vld [vmem:[%s2813_s15 + $0x14] ss:$8 sps:$4 sm:$0xff]  }
  0x66   : > { %1693 = vmatpush1.bf16.msra.mxu1 %v2236_v15  ;;  %v2257_v29 = vld [vmem:[%s2813_s15 + $0x124] ss:$8 sps:$4 sm:$0xff]   ;;  %v2260_v31 = vld [vmem:[%s2813_s15 + $0x120] ss:$8 sps:$4 sm:$0xff]   ;;  %v2263_v33 = vld [vmem:[%s2813_s15 + $0x114] ss:$8 sps:$4 sm:$0xff]  }
  0x67   : > { %1694 = vmatprep.subr.bf16.mxu1 %v2239_v17  ;;  %v2265_v34 = vld [vmem:[%s2813_s15 + $0x10] ss:$8 sps:$4 sm:$0xff]   ;;  %v2267_v36 = vld [vmem:[%s2813_s15 + $0x4] ss:$8 sps:$4 sm:$0xff]   ;;  %v2271_v38 = vld [vmem:[%s2813_s15] ss:$8 sps:$4 sm:$0xff]  }
  0x68   : > { %1642 = vmatpush1.bf16.msra.mxu0 %v2241_v18  ;;  %v2266_v35 = vld [vmem:[%s2813_s15 + $0x110] ss:$8 sps:$4 sm:$0xff]   ;;  %v2269_v37 = vld [vmem:[%s2813_s15 + $0x104] ss:$8 sps:$4 sm:$0xff]   ;;  %v2272_v39 = vld [vmem:[%s2813_s15 + $0x100] ss:$8 sps:$4 sm:$0xff]  }
  0x69   : > { %1643 = vmatprep.subr.bf16.mxu0 %v2243_v20  ;;  %v2273_v40 = vld [vmem:[%s2813_s15 + $0xf4] ss:$8 sps:$4 sm:$0xff]   ;;  %v2277_v42 = vld [vmem:[%s2813_s15 + $0xf0] ss:$8 sps:$4 sm:$0xff]   ;;  %v2279_v44 = vld [vmem:[%s2813_s15 + $0xe4] ss:$8 sps:$4 sm:$0xff]  }
  0x6a   : > { %1695 = vmatpush1.bf16.msra.mxu1 %v2242_v19  ;;  %v2275_v41 = vld [vmem:[%s2813_s15 + $0x1f4] ss:$8 sps:$4 sm:$0xff]   ;;  %v2278_v43 = vld [vmem:[%s2813_s15 + $0x1f0] ss:$8 sps:$4 sm:$0xff]   ;;  %v2281_v45 = vld [vmem:[%s2813_s15 + $0x1e4] ss:$8 sps:$4 sm:$0xff]  }
  0x6b   : > { %1696 = vmatprep.subr.bf16.mxu1 %v2245_v21  ;;  %v2283_v46 = vld [vmem:[%s2813_s15 + $0xe0] ss:$8 sps:$4 sm:$0xff]   ;;  %v2285_v48 = vld [vmem:[%s2813_s15 + $0xd4] ss:$8 sps:$4 sm:$0xff]   ;;  %v2289_v50 = vld [vmem:[%s2813_s15 + $0xd0] ss:$8 sps:$4 sm:$0xff]  }
  0x6c   : > { %1644 = vmatpush1.bf16.msra.mxu0 %v2247_v22  ;;  %v2284_v47 = vld [vmem:[%s2813_s15 + $0x1e0] ss:$8 sps:$4 sm:$0xff]   ;;  %v2287_v49 = vld [vmem:[%s2813_s15 + $0x1d4] ss:$8 sps:$4 sm:$0xff]   ;;  %v2290_v51 = vld [vmem:[%s2813_s15 + $0x1d0] ss:$8 sps:$4 sm:$0xff]  }
  0x6d   : > { %1645 = vmatprep.subr.bf16.mxu0 %v2249_v24  ;;  %v2291_v52 = vld [vmem:[%s2813_s15 + $0xc4] ss:$8 sps:$4 sm:$0xff]   ;;  %v2295_v54 = vld [vmem:[%s2813_s15 + $0xc0] ss:$8 sps:$4 sm:$0xff]   ;;  %v2297_v56 = vld [vmem:[%s2813_s15 + $0xb4] ss:$8 sps:$4 sm:$0xff]  }
  0x6e   : > { %1697 = vmatpush1.bf16.msra.mxu1 %v2248_v23  ;;  %v2293_v53 = vld [vmem:[%s2813_s15 + $0x1c4] ss:$8 sps:$4 sm:$0xff]   ;;  %v2296_v55 = vld [vmem:[%s2813_s15 + $0x1c0] ss:$8 sps:$4 sm:$0xff]   ;;  %v2299_v57 = vld [vmem:[%s2813_s15 + $0x1b4] ss:$8 sps:$4 sm:$0xff]  }
  0x6f   : > { %1698 = vmatprep.subr.bf16.mxu1 %v2251_v25  ;;  %v2301_v58 = vld [vmem:[%s2813_s15 + $0xb0] ss:$8 sps:$4 sm:$0xff]   ;;  %v2303_v60 = vld [vmem:[%s2813_s15 + $0xa4] ss:$8 sps:$4 sm:$0xff]   ;;  %v2307_v62 = vld [vmem:[%s2813_s15 + $0xa0] ss:$8 sps:$4 sm:$0xff]  }
  0x70   : > { %1646 = vmatpush1.bf16.msra.mxu0 %v2253_v26  ;;  %v2302_v59 = vld [vmem:[%s2813_s15 + $0x1b0] ss:$8 sps:$4 sm:$0xff]   ;;  %v2305_v61 = vld [vmem:[%s2813_s15 + $0x1a4] ss:$8 sps:$4 sm:$0xff]   ;;  %v2308_v63 = vld [vmem:[%s2813_s15 + $0x1a0] ss:$8 sps:$4 sm:$0xff]  }
  0x71   : > { %1647 = vmatprep.subr.bf16.mxu0 %v2255_v28  ;;  %v2309_v4 = vld [vmem:[%s2813_s15 + $0x94] ss:$8 sps:$4 sm:$0xff]   ;;  %v2313_v8 = vld [vmem:[%s2813_s15 + $0x90] ss:$8 sps:$4 sm:$0xff]   ;;  %v2315_v10 = vld [vmem:[%s2813_s15 + $0x84] ss:$8 sps:$4 sm:$0xff]  }
  0x72   : > { %1699 = vmatpush1.bf16.msra.mxu1 %v2254_v27  ;;  %v2311_v7 = vld [vmem:[%s2813_s15 + $0x194] ss:$8 sps:$4 sm:$0xff]   ;;  %v2314_v9 = vld [vmem:[%s2813_s15 + $0x190] ss:$8 sps:$4 sm:$0xff]   ;;  %v2317_v11 = vld [vmem:[%s2813_s15 + $0x184] ss:$8 sps:$4 sm:$0xff]  }
  0x73   : > { %1700 = vmatprep.subr.bf16.mxu1 %v2257_v29  ;;  %v2319_v12 = vld [vmem:[%s2813_s15 + $0x80] ss:$8 sps:$4 sm:$0xff]   ;;  %v2323_v14 = vld [vmem:[%s2813_s15 + $0x274] ss:$8 sps:$4 sm:$0xff]   ;;  %v2321_v20 = vld [vmem:[%s2813_s15 + $0x270] ss:$8 sps:$4 sm:$0xff]  }
  0x74   : > { %1648 = vmatpush1.bf16.msra.mxu0 %v2259_v30  ;;  %v2320_v13 = vld [vmem:[%s2813_s15 + $0x180] ss:$8 sps:$4 sm:$0xff]   ;;  %v2326_v15 = vld [vmem:[%s2813_s15 + $0x374] ss:$8 sps:$4 sm:$0xff]   ;;  %v2324_v21 = vld [vmem:[%s2813_s15 + $0x370] ss:$8 sps:$4 sm:$0xff]  }
  0x75   : > { %1649 = vmatprep.subr.bf16.mxu0 %v2261_v32  ;;  %v781_v16 = vld [vmem:[%s3042_s0 + $0x40] sm:$0xff]  ;;  %v782_v18 = vld [vmem:[%s3042_s0 + $0x48] sm:$0xff]  ;;  %v2335_v28 = vld [vmem:[%s2813_s15 + $0x254] ss:$8 sps:$4 sm:$0xff]  }
  0x76   : > { %1701 = vmatpush1.bf16.msra.mxu1 %v2260_v31  ;;  %v785_v17 = vld [vmem:[%s3042_s0 + $0x60] sm:$0xff]  ;;  %v786_v19 = vld [vmem:[%s3042_s0 + $0x68] sm:$0xff]  ;;  %v2338_v29 = vld [vmem:[%s2813_s15 + $0x354] ss:$8 sps:$4 sm:$0xff]  }
  0x77   : > { %1702 = vmatprep.subr.bf16.mxu1 %v2263_v33  ;;  %v2329_v22 = vld [vmem:[%s2813_s15 + $0x264] ss:$8 sps:$4 sm:$0xff]   ;;  %v2043_v24 = vcombine.high %v781_v16, %v785_v17  ;;  %v2045_v25 = vcombine.high %v782_v18, %v786_v19  ;;  %v2327_v26 = vld [vmem:[%s2813_s15 + $0x260] ss:$8 sps:$4 sm:$0xff]   ;;  %v2333_v0 = vld [vmem:[%s2813_s15 + $0x250] ss:$8 sps:$4 sm:$0xff]   ;;  %v2044_v2 = vcombine.low %v782_v18, %v786_v19 }
  0x78   : > { %1650 = vmatpush1.bf16.msra.mxu0 %v2265_v34  ;;  %v2332_v23 = vld [vmem:[%s2813_s15 + $0x364] ss:$8 sps:$4 sm:$0xff]   ;;  %v2330_v27 = vld [vmem:[%s2813_s15 + $0x360] ss:$8 sps:$4 sm:$0xff]   ;;  %v2336_v1 = vld [vmem:[%s2813_s15 + $0x350] ss:$8 sps:$4 sm:$0xff]  }
  0x79   : > { %1651 = vmatprep.subr.bf16.mxu0 %v2267_v36  ;;  %v2341_v5 = vld [vmem:[%s2813_s15 + $0x244] ss:$8 sps:$4 sm:$0xff]   ;;  %v2339_v30 = vld [vmem:[%s2813_s15 + $0x240] ss:$8 sps:$4 sm:$0xff]   ;;  %v2347_v32 = vld [vmem:[%s2813_s15 + $0x234] ss:$8 sps:$4 sm:$0xff]  }
  0x7a   : > { %1703 = vmatpush1.bf16.msra.mxu1 %v2266_v35  ;;  %v2342_v31 = vld [vmem:[%s2813_s15 + $0x340] ss:$8 sps:$4 sm:$0xff]   ;;  %v2350_v33 = vld [vmem:[%s2813_s15 + $0x334] ss:$8 sps:$4 sm:$0xff]   ;;  %v2345_v34 = vld [vmem:[%s2813_s15 + $0x230] ss:$8 sps:$4 sm:$0xff]  }
  0x7b   : > { %1704 = vmatprep.subr.bf16.mxu1 %v2269_v37  ;;  %v2348_v35 = vld [vmem:[%s2813_s15 + $0x330] ss:$8 sps:$4 sm:$0xff]   ;;  %v2353_v36 = vld [vmem:[%s2813_s15 + $0x224] ss:$8 sps:$4 sm:$0xff]   ;;  %v2399_v18 = vld [vmem:[%s2813_s15 + $0x2a0] ss:$8 sps:$4 sm:$0xff]  }
  0x7c   : > { %1652 = vmatpush1.bf16.msra.mxu0 %v2271_v38  ;;  %v2356_v37 = vld [vmem:[%s2813_s15 + $0x324] ss:$8 sps:$4 sm:$0xff]   ;;  %v2922_v38 = vld [vmem:[%s3042_s0 + $0x10] sm:$0xff]  ;;  %v2402_v19 = vld [vmem:[%s2813_s15 + $0x3a0] ss:$8 sps:$4 sm:$0xff]  }
  0x7d   : > { %1653 = vmatprep.subr.bf16.mxu0 %v2273_v40  ;;  %v2354_v40 = vld [vmem:[%s2813_s15 + $0x320] ss:$8 sps:$4 sm:$0xff]  }
  0x7e   : > { %1705 = vmatpush1.bf16.msra.mxu1 %v2272_v39  ;;  %v2351_v39 = vld [vmem:[%s2813_s15 + $0x220] ss:$8 sps:$4 sm:$0xff]  }
  0x7f   : > { %1706 = vmatprep.subr.bf16.mxu1 %v2275_v41  ;;  %v2359_v41 = vld [vmem:[%s2813_s15 + $0x214] ss:$8 sps:$4 sm:$0xff]  }
  0x80   : > { %1654 = vmatpush2.bf16.msra.mxu0 %v2277_v42  ;;  %v2362_v42 = vld [vmem:[%s2813_s15 + $0x314] ss:$8 sps:$4 sm:$0xff]  }
  0x81   : > { %1655 = vmatprep.subr.bf16.mxu0 %v2279_v44  ;;  %v2936_v44 = vld [vmem:[%s3042_s0 + $0x18] sm:$0xff] }
  0x82   : > { %1707 = vmatpush2.bf16.msra.mxu1 %v2278_v43  ;;  %v2931_v43 = vld [vmem:[%s3042_s0 + $0x30] sm:$0xff] }
  0x83   : > { %1708 = vmatprep.subr.bf16.mxu1 %v2281_v45  ;;  %v2039_v45 = vcombine.high %v2922_v38, %v2931_v43 }
  0x84   : > { %1656 = vmatpush2.bf16.msra.mxu0 %v2283_v46  ;;  %v2943_v46 = vld [vmem:[%s3042_s0 + $0x38] sm:$0xff] }
  0x85   : > { %1657 = vmatprep.subr.bf16.mxu0 %v2285_v48  ;;  %v2357_v48 = vld [vmem:[%s2813_s15 + $0x210] ss:$8 sps:$4 sm:$0xff]  }
  0x86   : > { %1709 = vmatpush2.bf16.msra.mxu1 %v2284_v47  ;;  %v2041_v47 = vcombine.high %v2936_v44, %v2943_v46 }
  0x87   : > { %1710 = vmatprep.subr.bf16.mxu1 %v2287_v49  ;;  %v2360_v49 = vld [vmem:[%s2813_s15 + $0x310] ss:$8 sps:$4 sm:$0xff]  }
  0x88   : > { %1658 = vmatpush2.bf16.msra.mxu0 %v2289_v50  ;;  %v2365_v50 = vld [vmem:[%s2813_s15 + $0x204] ss:$8 sps:$4 sm:$0xff]  }
  0x89   : > { %1659 = vmatprep.subr.bf16.mxu0 %v2291_v52  ;;  %v2363_v52 = vld [vmem:[%s2813_s15 + $0x200] ss:$8 sps:$4 sm:$0xff]  }
  0x8a   : > { %1711 = vmatpush2.bf16.msra.mxu1 %v2290_v51  ;;  %v2368_v51 = vld [vmem:[%s2813_s15 + $0x304] ss:$8 sps:$4 sm:$0xff]  }
  0x8b   : > { %1712 = vmatprep.subr.bf16.mxu1 %v2293_v53  ;;  %v2366_v53 = vld [vmem:[%s2813_s15 + $0x300] ss:$8 sps:$4 sm:$0xff]  }
  0x8c   : > { %1660 = vmatpush2.bf16.msra.mxu0 %v2295_v54  ;;  %v2371_v54 = vld [vmem:[%s2813_s15 + $0x2f4] ss:$8 sps:$4 sm:$0xff]  }
  0x8d   : > { %1661 = vmatprep.subr.bf16.mxu0 %v2297_v56  ;;  %v2369_v56 = vld [vmem:[%s2813_s15 + $0x2f0] ss:$8 sps:$4 sm:$0xff]  }
  0x8e   : > { %1713 = vmatpush2.bf16.msra.mxu1 %v2296_v55  ;;  %v2374_v55 = vld [vmem:[%s2813_s15 + $0x3f4] ss:$8 sps:$4 sm:$0xff]  }
  0x8f   : > { %1714 = vmatprep.subr.bf16.mxu1 %v2299_v57  ;;  %v2372_v57 = vld [vmem:[%s2813_s15 + $0x3f0] ss:$8 sps:$4 sm:$0xff]  }
  0x90   : > { %1662 = vmatpush2.bf16.msra.mxu0 %v2301_v58  ;;  %v2377_v58 = vld [vmem:[%s2813_s15 + $0x2e4] ss:$8 sps:$4 sm:$0xff]  }
  0x91   : > { %1663 = vmatprep.subr.bf16.mxu0 %v2303_v60  ;;  %v2375_v60 = vld [vmem:[%s2813_s15 + $0x2e0] ss:$8 sps:$4 sm:$0xff]  }
  0x92   : > { %1715 = vmatpush2.bf16.msra.mxu1 %v2302_v59  ;;  %v2380_v59 = vld [vmem:[%s2813_s15 + $0x3e4] ss:$8 sps:$4 sm:$0xff]  }
  0x93   : > { %1716 = vmatprep.subr.bf16.mxu1 %v2305_v61  ;;  %v2378_v61 = vld [vmem:[%s2813_s15 + $0x3e0] ss:$8 sps:$4 sm:$0xff]  }
  0x94   : > { %1664 = vmatpush2.bf16.msra.mxu0 %v2307_v62  ;;  %v2383_v62 = vld [vmem:[%s2813_s15 + $0x2d4] ss:$8 sps:$4 sm:$0xff]  }
  0x95   : > { %1665 = vmatprep.subr.bf16.mxu0 %v2309_v4  ;;  %v2381_v4 = vld [vmem:[%s2813_s15 + $0x2d0] ss:$8 sps:$4 sm:$0xff]  }
  0x96   : > { %1717 = vmatpush2.bf16.msra.mxu1 %v2308_v63  ;;  %v2386_v63 = vld [vmem:[%s2813_s15 + $0x3d4] ss:$8 sps:$4 sm:$0xff]  }
  0x97   : > { %1718 = vmatprep.subr.bf16.mxu1 %v2311_v7  ;;  %v2384_v7 = vld [vmem:[%s2813_s15 + $0x3d0] ss:$8 sps:$4 sm:$0xff]  }
  0x98   : > { %1666 = vmatpush2.bf16.msra.mxu0 %v2313_v8  ;;  %v2389_v8 = vld [vmem:[%s2813_s15 + $0x2c4] ss:$8 sps:$4 sm:$0xff]  }
  0x99   : > { %1667 = vmatprep.subr.bf16.mxu0 %v2315_v10  ;;  %v2387_v10 = vld [vmem:[%s2813_s15 + $0x2c0] ss:$8 sps:$4 sm:$0xff]  }
  0x9a   : > { %1719 = vmatpush2.bf16.msra.mxu1 %v2314_v9  ;;  %v2392_v9 = vld [vmem:[%s2813_s15 + $0x3c4] ss:$8 sps:$4 sm:$0xff]  }
  0x9b   : > { %1720 = vmatprep.subr.bf16.mxu1 %v2317_v11  ;;  %v2390_v11 = vld [vmem:[%s2813_s15 + $0x3c0] ss:$8 sps:$4 sm:$0xff]  }
  0x9c   : > { %1668 = vmatpush2.bf16.msra.mxu0 %v2319_v12  ;;  %v2395_v12 = vld [vmem:[%s2813_s15 + $0x2b4] ss:$8 sps:$4 sm:$0xff]  }
  0x9d   : > { %1743 = vmatprep.subr.bf16.mxu0 %v2323_v14  ;;  %v2393_v14 = vld [vmem:[%s2813_s15 + $0x2b0] ss:$8 sps:$4 sm:$0xff]  }
  0x9e   : > { %1721 = vmatpush2.bf16.msra.mxu1 %v2320_v13  ;;  %v2398_v13 = vld [vmem:[%s2813_s15 + $0x3b4] ss:$8 sps:$4 sm:$0xff]  }
  0x9f   : > { %1796 = vmatprep.subr.bf16.mxu1 %v2326_v15  ;;  %1670 = vmatmul.mubr.bf16.vlgmr.msra.gmra.mxu0 %v2034_v3  ;;  %v2042_v3 = vcombine.low %v781_v16, %v785_v17  ;;  %v2396_v15 = vld [vmem:[%s2813_s15 + $0x3b0] ss:$8 sps:$4 sm:$0xff]   ;;  %v2401_v16 = vld [vmem:[%s2813_s15 + $0x2a4] ss:$8 sps:$4 sm:$0xff]  }
  0xa0   : > { %1744 = vmatpush1.bf16.msra.mxu0 %v2321_v20  ;;  %1679 = vmatprep.mubr.bf16.mxu0 %v2043_v24  ;;  %v2404_v17 = vld [vmem:[%s2813_s15 + $0x3a4] ss:$8 sps:$4 sm:$0xff]   ;;  %v2407_v20 = vld [vmem:[%s2813_s15 + $0x294] ss:$8 sps:$4 sm:$0xff]  }
  0xa1   : > { %1723 = vmatmul.mubr.bf16.vlgmr.msra.gmra.mxu1 %v2036_v6  ;;  %1745 = vmatprep.subr.bf16.mxu0 %v2329_v22  ;;  %v2344_v6 = vld [vmem:[%s2813_s15 + $0x344] ss:$8 sps:$4 sm:$0xff]   ;;  %v2405_v22 = vld [vmem:[%s2813_s15 + $0x290] ss:$8 sps:$4 sm:$0xff]  }
  0xa2   : > { %1797 = vmatpush1.bf16.msra.mxu1 %v2324_v21  ;;  %1732 = vmatprep.mubr.bf16.mxu1 %v2045_v25  ;;  %v2410_v21 = vld [vmem:[%s2813_s15 + $0x394] ss:$8 sps:$4 sm:$0xff]   ;;  %v2413_v24 = vld [vmem:[%s2813_s15 + $0x284] ss:$8 sps:$4 sm:$0xff]  }
  0xa3   : > { %1798 = vmatprep.subr.bf16.mxu1 %v2332_v23  ;;  %v2408_v23 = vld [vmem:[%s2813_s15 + $0x390] ss:$8 sps:$4 sm:$0xff]   ;;  %v2416_v25 = vld [vmem:[%s2813_s15 + $0x384] ss:$8 sps:$4 sm:$0xff]  }
  0xa4   : > { %1746 = vmatpush1.bf16.msra.mxu0 %v2327_v26  ;;  %v2411_v26 = vld [vmem:[%s2813_s15 + $0x280] ss:$8 sps:$4 sm:$0xff]  }
  0xa5   : > { %1747 = vmatprep.subr.bf16.mxu0 %v2335_v28  ;;  %v783_v28 = vld [vmem:[%s3042_s0 + $0x50] sm:$0xff] }
  0xa6   : > { %1799 = vmatpush1.bf16.msra.mxu1 %v2330_v27  ;;  %v2414_v27 = vld [vmem:[%s2813_s15 + $0x380] ss:$8 sps:$4 sm:$0xff]   ;;  %s2033_s15 = sshll.u32 %s707_s27, 6 }
  0xa7   : > { %1800 = vmatprep.subr.bf16.mxu1 %v2338_v29  ;;  %1680 = vmatmul.mubr.bf16.gmra.mxu0 %v2042_v3  ;;  %v787_v29 = vld [vmem:[%s3042_s0 + $0x70] sm:$0xff]  ;;  %v2038_v3 = vcombine.low %v2922_v38, %v2931_v43  ;;  %s3003_s24 = scalar_lea.vmem [#allocation4], %s2033_s15 }
  0xa8   : > { %1748 = vmatpush1.bf16.msra.mxu0 %v2333_v0  ;;  %1775 = vmatprep.mubr.bf16.mxu0 %v2039_v45  ;;  %v784_v0 = vld [vmem:[%s3042_s0 + $0x58] sm:$0xff] }
  0xa9   : > { %1733 = vmatmul.mubr.bf16.gmra.mxu1 %v2044_v2  ;;  %1749 = vmatprep.subr.bf16.mxu0 %v2341_v5  ;;  %v2040_v2 = vcombine.low %v2936_v44, %v2943_v46  ;;  %v2047_v5 = vcombine.high %v783_v28, %v787_v29 }
  0xaa   : > { %1801 = vmatpush1.bf16.msra.mxu1 %v2336_v1  ;;  %1828 = vmatprep.mubr.bf16.mxu1 %v2041_v47  ;;  %v788_v1 = vld [vmem:[%s3042_s0 + $0x78] sm:$0xff] }
  0xab   : > { %1802 = vmatprep.subr.bf16.mxu1 %v2344_v6  ;;  %v2049_v6 = vcombine.high %v784_v0, %v788_v1 }
  0xac   : > { %1750 = vmatpush1.bf16.msra.mxu0 %v2339_v30  ;;  %v2046_v30 = vcombine.low %v783_v28, %v787_v29 }
  0xad   : > { %1751 = vmatprep.subr.bf16.mxu0 %v2347_v32 }
  0xae   : > { %1803 = vmatpush1.bf16.msra.mxu1 %v2342_v31  ;;  %v2048_v31 = vcombine.low %v784_v0, %v788_v1 }
  0xaf   : > { %1804 = vmatprep.subr.bf16.mxu1 %v2350_v33 }
  0xb0   : > { %1752 = vmatpush1.bf16.msra.mxu0 %v2345_v34 }
  0xb1   : > { %1753 = vmatprep.subr.bf16.mxu0 %v2353_v36 }
  0xb2   : > { %1805 = vmatpush1.bf16.msra.mxu1 %v2348_v35 }
  0xb3   : > { %1806 = vmatprep.subr.bf16.mxu1 %v2356_v37 }
  0xb4   : > { %1754 = vmatpush1.bf16.msra.mxu0 %v2351_v39 }
  0xb5   : > { %1755 = vmatprep.subr.bf16.mxu0 %v2359_v41 }
  0xb6   : > { %1807 = vmatpush1.bf16.msra.mxu1 %v2354_v40 }
  0xb7   : > { %1808 = vmatprep.subr.bf16.mxu1 %v2362_v42 }
  0xb8   : > { %1756 = vmatpush1.bf16.msra.mxu0 %v2357_v48 }
  0xb9   : > { %1757 = vmatprep.subr.bf16.mxu0 %v2365_v50 }
  0xba   : > { %1809 = vmatpush1.bf16.msra.mxu1 %v2360_v49 }
  0xbb   : > { %1810 = vmatprep.subr.bf16.mxu1 %v2368_v51 }
  0xbc   : > { %1758 = vmatpush1.bf16.msra.mxu0 %v2363_v52 }
  0xbd   : > { %1759 = vmatprep.subr.bf16.mxu0 %v2371_v54 }
  0xbe   : > { %1811 = vmatpush1.bf16.msra.mxu1 %v2366_v53 }
  0xbf   : > { %1812 = vmatprep.subr.bf16.mxu1 %v2374_v55 }
  0xc0   : > { %1760 = vmatpush2.bf16.msra.mxu0 %v2369_v56 }
  0xc1   : > { %1761 = vmatprep.subr.bf16.mxu0 %v2377_v58 }
  0xc2   : > { %1813 = vmatpush2.bf16.msra.mxu1 %v2372_v57 }
  0xc3   : > { %1814 = vmatprep.subr.bf16.mxu1 %v2380_v59 }
  0xc4   : > { %1762 = vmatpush2.bf16.msra.mxu0 %v2375_v60 }
  0xc5   : > { %1763 = vmatprep.subr.bf16.mxu0 %v2383_v62 }
  0xc6   : > { %1815 = vmatpush2.bf16.msra.mxu1 %v2378_v61 }
  0xc7   : > { %1816 = vmatprep.subr.bf16.mxu1 %v2386_v63 }
  0xc8   : > { %1764 = vmatpush2.bf16.msra.mxu0 %v2381_v4 }
  0xc9   : > { %1765 = vmatprep.subr.bf16.mxu0 %v2389_v8 }
  0xca   : > { %1817 = vmatpush2.bf16.msra.mxu1 %v2384_v7 }
  0xcb   : > { %1818 = vmatprep.subr.bf16.mxu1 %v2392_v9 }
  0xcc   : > { %1766 = vmatpush2.bf16.msra.mxu0 %v2387_v10 }
  0xcd   : > { %1767 = vmatprep.subr.bf16.mxu0 %v2395_v12 }
  0xce   : > { %1819 = vmatpush2.bf16.msra.mxu1 %v2390_v11 }
  0xcf   : > { %1820 = vmatprep.subr.bf16.mxu1 %v2398_v13 }
  0xd0   : > { %1768 = vmatpush2.bf16.msra.mxu0 %v2393_v14 }
  0xd1   : > { %1769 = vmatprep.subr.bf16.mxu0 %v2401_v16 }
  0xd2   : > { %1821 = vmatpush2.bf16.msra.mxu1 %v2396_v15 }
  0xd3   : > { %1822 = vmatprep.subr.bf16.mxu1 %v2404_v17 }
  0xd4   : > { %1770 = vmatpush2.bf16.msra.mxu0 %v2399_v18 }
  0xd5   : > { %1771 = vmatprep.subr.bf16.mxu0 %v2407_v20 }
  0xd6   : > { %1823 = vmatpush2.bf16.msra.mxu1 %v2402_v19 }
  0xd7   : > { %1824 = vmatprep.subr.bf16.mxu1 %v2410_v21 }
  0xd8   : > { %1772 = vmatpush2.bf16.msra.mxu0 %v2405_v22 }
  0xd9   : > { %1773 = vmatprep.subr.bf16.mxu0 %v2413_v24 }
  0xda   : > { %1825 = vmatpush2.bf16.msra.mxu1 %v2408_v23 }
  0xdb   : > { %1826 = vmatprep.subr.bf16.mxu1 %v2416_v25 }
  0xdc   : > { %1774 = vmatpush2.bf16.msra.mxu0 %v2411_v26 }
  0xde   : > { %1827 = vmatpush2.bf16.msra.mxu1 %v2414_v27 }
  0xdf   : > { %1776 = vmatmul.mubr.bf16.vlgmr.msra.gmra.mxu0 %v2038_v3 }
  0xe0   : > { %1785 = vmatprep.mubr.bf16.mxu0 %v2047_v5 }
  0xe1   : > { %1829 = vmatmul.mubr.bf16.vlgmr.msra.gmra.mxu1 %v2040_v2 }
  0xe2   : > { %1838 = vmatprep.mubr.bf16.mxu1 %v2049_v6 }
  0xe7   : > { %1786 = vmatmul.mubr.bf16.gmra.mxu0 %v2046_v30 }
  0xe9   : > { %1839 = vmatmul.mubr.bf16.gmra.mxu1 %v2048_v31 }
 0x15f   : > { %v1671_v32 = vpop.f32.mrf.mxu0 }
 0x161   : > { %v1724_v33 = vpop.f32.mrf.mxu1  ;;  %v1673_v34 = vpop.f32.mrf.mxu0 }
 0x162   : > { %v1725_v48 = vadd.f32 %v1724_v33, %v1671_v32 }
 0x163   : > { %v1726_v35 = vpop.f32.mrf.mxu1  ;;  %v1675_v36 = vpop.f32.mrf.mxu0 }
 0x164   : > { %v1727_v51 = vadd.f32 %v1726_v35, %v1673_v34 }
 0x165   : > { %v1728_v37 = vpop.f32.mrf.mxu1  ;;  %v1677_v38 = vpop.f32.mrf.mxu0 }
 0x166   : > { %v1729_v55 = vadd.f32 %v1728_v37, %v1675_v36 }
 0x167   : > { %v1730_v39 = vpop.f32.mrf.mxu1  ;;  %v1681_v40 = vpop.f32.mrf.mxu0 }
 0x168   : > { %v1731_v60 = vadd.f32 %v1730_v39, %v1677_v38 }
 0x169   : > { %v1734_v41 = vpop.f32.mrf.mxu1  ;;  %v1683_v42 = vpop.f32.mrf.mxu0 }
 0x16a   : > { %v1735_v7 = vadd.f32 %v1734_v41, %v1681_v40 }
 0x16b   : > { %v1736_v43 = vpop.f32.mrf.mxu1  ;;  %v1685_v44 = vpop.f32.mrf.mxu0 }
 0x16c   : > { %v1737_v12 = vadd.f32 %v1736_v43, %v1683_v42 }
 0x16d   : > { %v1738_v45 = vpop.f32.mrf.mxu1  ;;  %v1687_v46 = vpop.f32.mrf.mxu0 }
 0x16e   : > { %v1739_v17 = vadd.f32 %v1738_v45, %v1685_v44 }
 0x16f   : > { %v1740_v47 = vpop.f32.mrf.mxu1 }
 0x170   : > { %v1741_v22 = vadd.f32 %v1740_v47, %v1687_v46 }
 0x19f   : > { %v1777_v49 = vpop.f32.mrf.mxu0 }
 0x1a0   : > { %v1778_v52 = vadd.f32 %v1777_v49, %v1725_v48 }
 0x1a1   : > { %v1830_v50 = vpop.f32.mrf.mxu1  ;;  %v1779_v53 = vpop.f32.mrf.mxu0 }
 0x1a2   : > { %v1831_v56 = vadd.f32 %v1830_v50, %v1778_v52  ;;  %v1780_v57 = vadd.f32 %v1779_v53, %v1727_v51 }
 0x1a3   : > { %v1832_v54 = vpop.f32.mrf.mxu1  ;;  %v1781_v58 = vpop.f32.mrf.mxu0 }
 0x1a4   : > { %1876 = vst [vmem:[%s3003_s24] sm:$0xff] %v1831_v56  ;;  %v1833_v61 = vadd.f32 %v1832_v54, %v1780_v57  ;;  %v1782_v62 = vadd.f32 %v1781_v58, %v1729_v55 }
 0x1a5   : > { %v1834_v59 = vpop.f32.mrf.mxu1  ;;  %v1783_v63 = vpop.f32.mrf.mxu0 }
 0x1a6   : > { %1877 = vst [vmem:[%s3003_s24 + $0x8] sm:$0xff] %v1833_v61  ;;  %v1835_v8 = vadd.f32 %v1834_v59, %v1782_v62  ;;  %v1784_v9 = vadd.f32 %v1783_v63, %v1731_v60 }
 0x1a7   : > { %v1836_v4 = vpop.f32.mrf.mxu1  ;;  %v1787_v10 = vpop.f32.mrf.mxu0 }
 0x1a8   : > { %1878 = vst [vmem:[%s3003_s24 + $0x10] sm:$0xff] %v1835_v8  ;;  %v1837_v13 = vadd.f32 %v1836_v4, %v1784_v9  ;;  %v1788_v14 = vadd.f32 %v1787_v10, %v1735_v7 }
 0x1a9   : > { %v1840_v11 = vpop.f32.mrf.mxu1  ;;  %v1789_v15 = vpop.f32.mrf.mxu0 }
 0x1aa   : > { %1879 = vst [vmem:[%s3003_s24 + $0x18] sm:$0xff] %v1837_v13  ;;  %v1841_v18 = vadd.f32 %v1840_v11, %v1788_v14  ;;  %v1790_v19 = vadd.f32 %v1789_v15, %v1737_v12 }
 0x1ab   : > { %v1842_v16 = vpop.f32.mrf.mxu1  ;;  %v1791_v20 = vpop.f32.mrf.mxu0  ;;  %v1909_v0 = vld [vmem:[%s3003_s24] sm:$0xff] (%p2507_p6) }
 0x1ac   : > { %1880 = vst [vmem:[%s3003_s24 + $0x20] sm:$0xff] %v1841_v18  ;;  %v1843_v23 = vadd.f32 %v1842_v16, %v1790_v19  ;;  %v1792_v24 = vadd.f32 %v1791_v20, %v1739_v17  ;;  %1910 = vst [vmem:[%s1896_s26] sm:$0xff] (%p2507_p6), %v1909_v0 }
 0x1ad   : > { %v1844_v21 = vpop.f32.mrf.mxu1  ;;  %v1793_v25 = vpop.f32.mrf.mxu0  ;;  %v1911_v1 = vld [vmem:[%s3003_s24 + $0x8] sm:$0xff] (%p2507_p6) }
 0x1ae   : > { %1881 = vst [vmem:[%s3003_s24 + $0x28] sm:$0xff] %v1843_v23  ;;  %v1845_v26 = vadd.f32 %v1844_v21, %v1792_v24  ;;  %v1794_v27 = vadd.f32 %v1793_v25, %v1741_v22  ;;  %1890 = sbr.rel (!%p2507_p6) target bundleno = 443 (0x1bb), region = 78  ;;  %1912 = vst [vmem:[%s1896_s26 + $0x8] sm:$0xff] (%p2507_p6), %v1911_v1 }
 0x1af   : > { %v1846_v28 = vpop.f32.mrf.mxu1  ;;  %v1913_v3 = vld [vmem:[%s3003_s24 + $0x10] sm:$0xff] (%p2507_p6) }
 0x1b0   : > { %1882 = vst [vmem:[%s3003_s24 + $0x30] sm:$0xff] %v1845_v26  ;;  %v1847_v29 = vadd.f32 %v1846_v28, %v1794_v27  ;;  %1914 = vst [vmem:[%s1896_s26 + $0x20] sm:$0xff] (%p2507_p6), %v1913_v3 }
 0x1b1   : > { %v1915_v2 = vld [vmem:[%s3003_s24 + $0x18] sm:$0xff] (%p2507_p6) }
 0x1b2   : > { %1883 = vst [vmem:[%s3003_s24 + $0x38] sm:$0xff] %v1847_v29  ;;  %1916 = vst [vmem:[%s1896_s26 + $0x28] sm:$0xff] (%p2507_p6), %v1915_v2 }
 0x1b3   : > { %v1917_v5 = vld [vmem:[%s3003_s24 + $0x20] sm:$0xff] }
 0x1b4   : > { %1918 = vst [vmem:[%s1896_s26 + $0x40] sm:$0xff] %v1917_v5 }
 0x1b5   : > { %v1919_v6 = vld [vmem:[%s3003_s24 + $0x28] sm:$0xff] }
 0x1b6   : > { %1920 = vst [vmem:[%s1896_s26 + $0x48] sm:$0xff] %v1919_v6 }
 0x1b7   : > { %v1921_v30 = vld [vmem:[%s3003_s24 + $0x30] sm:$0xff] }
 0x1b8   : > { %1922 = vst [vmem:[%s1896_s26 + $0x60] sm:$0xff] %v1921_v30 }
 0x1b9   : > { %v1923_v31 = vld [vmem:[%s3003_s24 + $0x38] sm:$0xff] }
 0x1ba   : > { %1924 = vst [vmem:[%s1896_s26 + $0x68] sm:$0xff] %v1923_v31 }
 0x1bb PF: > { %s12_s13 = sadd.s32 1, %s2455_s13   ;;  %s3046_s9 = smov %s2443_s10 }
 0x1bc   : > { %p9_p11 = scmp.ge.s32.totalorder %s12_s13, 4   ;;  %s3047_s10 = smov %s2512_s19 }
 0x1bd   : > { %s3048_s11 = smov %s2451_s12  ;;  %s3049_s12 = smov %s3051_s14 }
 0x1be   :  { %11 = sbr.rel (!%p9_p11) target bundleno = 3 (0x3), region = 135 }

// kernel: generator_forward.28
= control target key start
LH: loop header
LB: loop body
LE: loop exit
PB: predicated region body
PF: predicated region fallthrough
CT: control target
= control target key end

     0   :  { %s292_s6 = smov 0   ;;  %s316_s0 = inlined_call_operand.vmem [shape: f32[2,64,128], index: 0, kind: input, shape index: {}]   ;;  %s317_s1 = inlined_call_operand.vmem [shape: f32[2,64,128], index: 1, kind: output, shape index: {}]  }
   0x1 LB: > { %s251_s7 = sadd.s32 4294967295, %s280_s6   ;;  %p255_p0 = scmp.ge.s32.totalorder %s280_s6, 1  ;;  %s280_s6 = sphi %s292_s6, %s11_s6  }
   0x2   : > { %p87_p1 = scmp.lt.s32.totalorder %s280_s6, 3 }
   0x4   : > { %p88_p2 = pnand %p255_p0, %p87_p1 }
   0x5   : > { %p107_p3 = scmp.lt.s32.totalorder (!%p88_p2), %s251_s7, 1 }
   0x6   : > { %91 = sbr.rel (%p88_p2) target bundleno = 99 (0x63), region = 24 }
   0xb   : > { %s319_s7 = smov (!%p107_p3, %s251_s7), 1 }
   0xc   : > { %s262_s8 = sshll.u32 %s319_s7, 6 }
   0xd   : > { %s111_s11 = scalar_lea.vmem %s316_s0, %s262_s8  ;;  %s116_s14 = scalar_lea.vmem %s317_s1, %s262_s8 }
   0xe   : > { %v117_v0 = vld [vmem:[%s111_s11] sm:$0xff]  ;;  %v118_v1 = vld [vmem:[%s111_s11 + $0x8] sm:$0xff]  ;;  %v119_v2 = vld [vmem:[%s111_s11 + $0x10] sm:$0xff] }
   0xf   : > { %v125_v3 = vadd.f32 %v118_v1, %v117_v0  ;;  %v120_v4 = vld [vmem:[%s111_s11 + $0x18] sm:$0xff]  ;;  %v121_v6 = vld [vmem:[%s111_s11 + $0x20] sm:$0xff]  ;;  %v122_v8 = vld [vmem:[%s111_s11 + $0x28] sm:$0xff] }
  0x10   : > { %v123_v10 = vld [vmem:[%s111_s11 + $0x30] sm:$0xff]  ;;  %v124_v12 = vld [vmem:[%s111_s11 + $0x38] sm:$0xff] }
  0x11   : > { %v126_v5 = vadd.f32 %v125_v3, %v119_v2 }
  0x13   : > { %v127_v7 = vadd.f32 %v126_v5, %v120_v4 }
  0x15   : > { %v128_v9 = vadd.f32 %v127_v7, %v121_v6 }
  0x17   : > { %v129_v11 = vadd.f32 %v128_v9, %v122_v8 }
  0x19   : > { %v130_v13 = vadd.f32 %v129_v11, %v123_v10 }
  0x1b   : > { %v131_v14 = vadd.f32 %v130_v13, %v124_v12 }
  0x1d   : > { %v132_v15 = vrot.slane %v131_v14, 4 }
  0x1f   : > { %v133_v16 = vadd.f32 %v132_v15, %v131_v14 }
  0x21   : > { %v134_v17 = vrot.slane %v133_v16, 2 }
  0x23   : > { %v135_v18 = vadd.f32 %v134_v17, %v133_v16 }
  0x25   : > { %v136_v19 = vrot.slane %v135_v18, 1 }
  0x27   : > { %v137_v20 = vadd.f32 %v136_v19, %v135_v18 }
  0x29   : > { %v139_v21 = vmul.f32 0.015625, %v137_v20 }
  0x2b   : > { %v140_v22 = vsub.f32 %v117_v0, %v139_v21  ;;  %v141_v23 = vsub.f32 %v118_v1, %v139_v21  ;;  %v142_v24 = vsub.f32 %v119_v2, %v139_v21  ;;  %v143_v25 = vsub.f32 %v120_v4, %v139_v21 }
  0x2c   : > { %v144_v26 = vsub.f32 %v121_v6, %v139_v21  ;;  %v145_v30 = vsub.f32 %v122_v8, %v139_v21  ;;  %v146_v33 = vsub.f32 %v123_v10, %v139_v21  ;;  %v147_v36 = vsub.f32 %v124_v12, %v139_v21 }
  0x2d   : > { %v148_v27 = vmul.f32 %v140_v22, %v140_v22  ;;  %v149_v28 = vmul.f32 %v141_v23, %v141_v23  ;;  %v150_v29 = vmul.f32 %v142_v24, %v142_v24  ;;  %v151_v31 = vmul.f32 %v143_v25, %v143_v25 }
  0x2e   : > { %v152_v34 = vmul.f32 %v144_v26, %v144_v26  ;;  %v153_v37 = vmul.f32 %v145_v30, %v145_v30  ;;  %v154_v39 = vmul.f32 %v146_v33, %v146_v33  ;;  %v155_v41 = vmul.f32 %v147_v36, %v147_v36 }
  0x2f   : > { %v156_v32 = vadd.f32 %v149_v28, %v148_v27 }
  0x31   : > { %v157_v35 = vadd.f32 %v156_v32, %v150_v29 }
  0x33   : > { %v158_v38 = vadd.f32 %v157_v35, %v151_v31 }
  0x35   : > { %v159_v40 = vadd.f32 %v158_v38, %v152_v34 }
  0x37   : > { %v160_v42 = vadd.f32 %v159_v40, %v153_v37 }
  0x39   : > { %v161_v43 = vadd.f32 %v160_v42, %v154_v39 }
  0x3b   : > { %v162_v44 = vadd.f32 %v161_v43, %v155_v41 }
  0x3d   : > { %v163_v45 = vrot.slane %v162_v44, 4 }
  0x3f   : > { %v164_v46 = vadd.f32 %v163_v45, %v162_v44 }
  0x41   : > { %v165_v47 = vrot.slane %v164_v46, 2 }
  0x43   : > { %v166_v48 = vadd.f32 %v165_v47, %v164_v46 }
  0x45   : > { %v167_v49 = vrot.slane %v166_v48, 1 }
  0x47   : > { %v168_v50 = vadd.f32 %v167_v49, %v166_v48 }
  0x49   : > { %v169_v51 = vmul.f32 0.015625, %v168_v50 }
  0x4b   : > { %v170_v52 = vadd.f32 1e-05, %v169_v51 }
  0x4d   : > { %272 = vrsqrt.f32 %v170_v52 }
  0x5a   : > { %v273_v53 = vpop.eup %272 }
  0x5b   : > { %v172_v54 = vmul.f32 %v273_v53, %v140_v22  ;;  %v173_v55 = vmul.f32 %v273_v53, %v141_v23  ;;  %v174_v56 = vmul.f32 %v273_v53, %v142_v24  ;;  %v175_v57 = vmul.f32 %v273_v53, %v143_v25 }
  0x5c   : > { %v176_v58 = vmul.f32 %v273_v53, %v144_v26  ;;  %v177_v59 = vmul.f32 %v273_v53, %v145_v30  ;;  %v178_v60 = vmul.f32 %v273_v53, %v146_v33  ;;  %v179_v61 = vmul.f32 %v273_v53, %v147_v36 }
  0x5d   : > { %v180_v62 = vmax.f32 %v172_v54, 0.0  ;;  %v181_v63 = vmax.f32 %v173_v55, 0.0  ;;  %v182_v0 = vmax.f32 %v174_v56, 0.0  ;;  %v183_v1 = vmax.f32 %v175_v57, 0.0 }
  0x5e   : > { %v184_v2 = vmax.f32 %v176_v58, 0.0  ;;  %v185_v3 = vmax.f32 %v177_v59, 0.0  ;;  %v186_v4 = vmax.f32 %v178_v60, 0.0  ;;  %v187_v5 = vmax.f32 %v179_v61, 0.0 }
  0x5f   : > { %188 = vst [vmem:[%s116_s14] sm:$0xff] %v180_v62  ;;  %189 = vst [vmem:[%s116_s14 + $0x8] sm:$0xff] %v181_v63 }
  0x60   : > { %190 = vst [vmem:[%s116_s14 + $0x10] sm:$0xff] %v182_v0  ;;  %191 = vst [vmem:[%s116_s14 + $0x18] sm:$0xff] %v183_v1 }
  0x61   : > { %192 = vst [vmem:[%s116_s14 + $0x20] sm:$0xff] %v184_v2  ;;  %193 = vst [vmem:[%s116_s14 + $0x28] sm:$0xff] %v185_v3 }
  0x62   : > { %194 = vst [vmem:[%s116_s14 + $0x30] sm:$0xff] %v186_v4  ;;  %195 = vst [vmem:[%s116_s14 + $0x38] sm:$0xff] %v187_v5 }
  0x63 PF: > { %s11_s6 = sadd.s32 1, %s280_s6  }
  0x64   : > { %p8_p4 = scmp.ge.s32.totalorder %s11_s6, 4  }
  0x66   :  { %10 = sbr.rel (!%p8_p4) target bundleno = 1 (0x1), region = 54 }

// kernel: generator_forward.29
= control target key start
LH: loop header
LB: loop body
LE: loop exit
PB: predicated region body
PF: predicated region fallthrough
CT: control target
= control target key end

     0   :  { %s1655_s1 = inlined_call_operand.vmem [shape: bf16[512,256], index: 1, kind: input, shape index: {}]   ;;  %s1656_s0 = inlined_call_operand.vmem [shape: bf16[128,512], index: 0, kind: input, shape index: {}]   ;;  %s1657_s2 = inlined_call_operand.vmem [shape: f32[128,256], index: 2, kind: output, shape index: {}]  }
   0x1   :  { %v1112_v0 = vld [vmem:[%s1655_s1 + $0x74] ss:$8 sps:$4 sm:$0xff]   ;;  %v1116_v2 = vld [vmem:[%s1655_s1 + $0x70] ss:$8 sps:$4 sm:$0xff]   ;;  %v1118_v4 = vld [vmem:[%s1655_s1 + $0x64] ss:$8 sps:$4 sm:$0xff]  }
   0x2   :  { %v1114_v1 = vld [vmem:[%s1655_s1 + $0x174] ss:$8 sps:$4 sm:$0xff]   ;;  %655 = vmatprep.subr.bf16.mxu0 %v1112_v0  ;;  %v1117_v3 = vld [vmem:[%s1655_s1 + $0x170] ss:$8 sps:$4 sm:$0xff]   ;;  %v1120_v5 = vld [vmem:[%s1655_s1 + $0x164] ss:$8 sps:$4 sm:$0xff]  }
   0x3   :  { %768 = vmatprep.subr.bf16.mxu1 %v1114_v1  ;;  %656 = vmatpush1.bf16.msra.mxu0 %v1116_v2  ;;  %v1122_v6 = vld [vmem:[%s1655_s1 + $0x60] ss:$8 sps:$4 sm:$0xff]   ;;  %v1124_v8 = vld [vmem:[%s1655_s1 + $0x54] ss:$8 sps:$4 sm:$0xff]   ;;  %v1128_v10 = vld [vmem:[%s1655_s1 + $0x50] ss:$8 sps:$4 sm:$0xff]  }
   0x4   :  { %769 = vmatpush1.bf16.msra.mxu1 %v1117_v3  ;;  %657 = vmatprep.subr.bf16.mxu0 %v1118_v4  ;;  %v1123_v7 = vld [vmem:[%s1655_s1 + $0x160] ss:$8 sps:$4 sm:$0xff]   ;;  %v1126_v9 = vld [vmem:[%s1655_s1 + $0x154] ss:$8 sps:$4 sm:$0xff]   ;;  %v1129_v11 = vld [vmem:[%s1655_s1 + $0x150] ss:$8 sps:$4 sm:$0xff]  }
   0x5   :  { %770 = vmatprep.subr.bf16.mxu1 %v1120_v5  ;;  %v1130_v12 = vld [vmem:[%s1655_s1 + $0x44] ss:$8 sps:$4 sm:$0xff]   ;;  %v1134_v14 = vld [vmem:[%s1655_s1 + $0x40] ss:$8 sps:$4 sm:$0xff]   ;;  %v1136_v16 = vld [vmem:[%s1655_s1 + $0x34] ss:$8 sps:$4 sm:$0xff]  }
   0x6   :  { %v1132_v13 = vld [vmem:[%s1655_s1 + $0x144] ss:$8 sps:$4 sm:$0xff]   ;;  %v1135_v15 = vld [vmem:[%s1655_s1 + $0x140] ss:$8 sps:$4 sm:$0xff]   ;;  %v1138_v17 = vld [vmem:[%s1655_s1 + $0x134] ss:$8 sps:$4 sm:$0xff]  }
   0x7   :  { %658 = vmatpush1.bf16.msra.mxu0 %v1122_v6  ;;  %v1140_v18 = vld [vmem:[%s1655_s1 + $0x30] ss:$8 sps:$4 sm:$0xff]   ;;  %v1142_v20 = vld [vmem:[%s1655_s1 + $0x24] ss:$8 sps:$4 sm:$0xff]   ;;  %v1146_v22 = vld [vmem:[%s1655_s1 + $0x20] ss:$8 sps:$4 sm:$0xff]  }
   0x8   :  { %771 = vmatpush1.bf16.msra.mxu1 %v1123_v7  ;;  %659 = vmatprep.subr.bf16.mxu0 %v1124_v8  ;;  %v1141_v19 = vld [vmem:[%s1655_s1 + $0x130] ss:$8 sps:$4 sm:$0xff]   ;;  %v1144_v21 = vld [vmem:[%s1655_s1 + $0x124] ss:$8 sps:$4 sm:$0xff]   ;;  %v1147_v23 = vld [vmem:[%s1655_s1 + $0x120] ss:$8 sps:$4 sm:$0xff]  }
   0x9   :  { %772 = vmatprep.subr.bf16.mxu1 %v1126_v9  ;;  %v1148_v24 = vld [vmem:[%s1655_s1 + $0x14] ss:$8 sps:$4 sm:$0xff]   ;;  %v1152_v26 = vld [vmem:[%s1655_s1 + $0x10] ss:$8 sps:$4 sm:$0xff]   ;;  %v1154_v28 = vld [vmem:[%s1655_s1 + $0x4] ss:$8 sps:$4 sm:$0xff]  }
   0xa   :  { %v1150_v25 = vld [vmem:[%s1655_s1 + $0x114] ss:$8 sps:$4 sm:$0xff]   ;;  %v1153_v27 = vld [vmem:[%s1655_s1 + $0x110] ss:$8 sps:$4 sm:$0xff]   ;;  %v1156_v29 = vld [vmem:[%s1655_s1 + $0x104] ss:$8 sps:$4 sm:$0xff]  }
   0xb   :  { %660 = vmatpush1.bf16.msra.mxu0 %v1128_v10  ;;  %v1158_v30 = vld [vmem:[%s1655_s1] ss:$8 sps:$4 sm:$0xff]   ;;  %v1160_v32 = vld [vmem:[%s1655_s1 + $0xf4] ss:$8 sps:$4 sm:$0xff]   ;;  %v1164_v34 = vld [vmem:[%s1655_s1 + $0xf0] ss:$8 sps:$4 sm:$0xff]  }
   0xc   :  { %773 = vmatpush1.bf16.msra.mxu1 %v1129_v11  ;;  %661 = vmatprep.subr.bf16.mxu0 %v1130_v12  ;;  %v1159_v31 = vld [vmem:[%s1655_s1 + $0x100] ss:$8 sps:$4 sm:$0xff]   ;;  %v1162_v33 = vld [vmem:[%s1655_s1 + $0x1f4] ss:$8 sps:$4 sm:$0xff]   ;;  %v1165_v35 = vld [vmem:[%s1655_s1 + $0x1f0] ss:$8 sps:$4 sm:$0xff]  }
   0xd   :  { %774 = vmatprep.subr.bf16.mxu1 %v1132_v13  ;;  %v1166_v36 = vld [vmem:[%s1655_s1 + $0xe4] ss:$8 sps:$4 sm:$0xff]   ;;  %v1170_v38 = vld [vmem:[%s1655_s1 + $0xe0] ss:$8 sps:$4 sm:$0xff]   ;;  %v1172_v40 = vld [vmem:[%s1655_s1 + $0xd4] ss:$8 sps:$4 sm:$0xff]  }
   0xe   :  { %v1168_v37 = vld [vmem:[%s1655_s1 + $0x1e4] ss:$8 sps:$4 sm:$0xff]   ;;  %v1171_v39 = vld [vmem:[%s1655_s1 + $0x1e0] ss:$8 sps:$4 sm:$0xff]   ;;  %v1174_v41 = vld [vmem:[%s1655_s1 + $0x1d4] ss:$8 sps:$4 sm:$0xff]  }
   0xf   :  { %662 = vmatpush1.bf16.msra.mxu0 %v1134_v14  ;;  %v1176_v42 = vld [vmem:[%s1655_s1 + $0xd0] ss:$8 sps:$4 sm:$0xff]   ;;  %v1178_v44 = vld [vmem:[%s1655_s1 + $0xc4] ss:$8 sps:$4 sm:$0xff]   ;;  %v1182_v46 = vld [vmem:[%s1655_s1 + $0xc0] ss:$8 sps:$4 sm:$0xff]  }
  0x10   :  { %775 = vmatpush1.bf16.msra.mxu1 %v1135_v15  ;;  %663 = vmatprep.subr.bf16.mxu0 %v1136_v16  ;;  %v1177_v43 = vld [vmem:[%s1655_s1 + $0x1d0] ss:$8 sps:$4 sm:$0xff]   ;;  %v1180_v45 = vld [vmem:[%s1655_s1 + $0x1c4] ss:$8 sps:$4 sm:$0xff]   ;;  %v1183_v47 = vld [vmem:[%s1655_s1 + $0x1c0] ss:$8 sps:$4 sm:$0xff]  }
  0x11   :  { %776 = vmatprep.subr.bf16.mxu1 %v1138_v17  ;;  %v1184_v48 = vld [vmem:[%s1655_s1 + $0xb4] ss:$8 sps:$4 sm:$0xff]   ;;  %v1188_v52 = vld [vmem:[%s1655_s1 + $0xb0] ss:$8 sps:$4 sm:$0xff]   ;;  %v1190_v54 = vld [vmem:[%s1655_s1 + $0xa4] ss:$8 sps:$4 sm:$0xff]  }
  0x12   :  { %v1210_v49 = vld [vmem:[%s1656_s0 + $0x4] ss:$16 sps:$4 sm:$0xff]   ;;  %v1213_v51 = vld [vmem:[%s1656_s0 + $0xc] ss:$16 sps:$4 sm:$0xff]   ;;  %v1189_v53 = vld [vmem:[%s1655_s1 + $0x1b0] ss:$8 sps:$4 sm:$0xff]  }
  0x13   :  { %664 = vmatpush1.bf16.msra.mxu0 %v1140_v18  ;;  %v1186_v50 = vld [vmem:[%s1655_s1 + $0x1b4] ss:$8 sps:$4 sm:$0xff]   ;;  %687 = vmatprep.mubr.bf16.mxu0 %v1210_v49  ;;  %v1192_v55 = vld [vmem:[%s1655_s1 + $0x1a4] ss:$8 sps:$4 sm:$0xff]   ;;  %v1194_v56 = vld [vmem:[%s1655_s1 + $0xa0] ss:$8 sps:$4 sm:$0xff]  }
  0x14   :  { %777 = vmatpush1.bf16.msra.mxu1 %v1141_v19  ;;  %665 = vmatprep.subr.bf16.mxu0 %v1142_v20  ;;  %v1195_v57 = vld [vmem:[%s1655_s1 + $0x1a0] ss:$8 sps:$4 sm:$0xff]   ;;  %v1196_v58 = vld [vmem:[%s1655_s1 + $0x94] ss:$8 sps:$4 sm:$0xff]   ;;  %v1200_v60 = vld [vmem:[%s1655_s1 + $0x90] ss:$8 sps:$4 sm:$0xff]  }
  0x15   :  { %778 = vmatprep.subr.bf16.mxu1 %v1144_v21  ;;  %800 = vmatprep.mubr.bf16.mxu1 %v1213_v51  ;;  %v1198_v59 = vld [vmem:[%s1655_s1 + $0x194] ss:$8 sps:$4 sm:$0xff]   ;;  %v1201_v61 = vld [vmem:[%s1655_s1 + $0x190] ss:$8 sps:$4 sm:$0xff]   ;;  %v1202_v62 = vld [vmem:[%s1655_s1 + $0x84] ss:$8 sps:$4 sm:$0xff]  }
  0x16   :  { %v1204_v63 = vld [vmem:[%s1655_s1 + $0x184] ss:$8 sps:$4 sm:$0xff]   ;;  %v1206_v0 = vld [vmem:[%s1655_s1 + $0x80] ss:$8 sps:$4 sm:$0xff]  }
  0x17   :  { %666 = vmatpush1.bf16.msra.mxu0 %v1146_v22  ;;  %v1207_v1 = vld [vmem:[%s1655_s1 + $0x180] ss:$8 sps:$4 sm:$0xff]   ;;  %v1214_v4 = vld [vmem:[%s1656_s0 + $0x24] ss:$16 sps:$4 sm:$0xff]   ;;  %v1216_v5 = vld [vmem:[%s1656_s0 + $0x2c] ss:$16 sps:$4 sm:$0xff]  }
  0x18   :  { %779 = vmatpush1.bf16.msra.mxu1 %v1147_v23  ;;  %667 = vmatprep.subr.bf16.mxu0 %v1148_v24  ;;  %v1208_v2 = vld [vmem:[%s1656_s0] ss:$16 sps:$4 sm:$0xff]   ;;  %v1211_v3 = vld [vmem:[%s1656_s0 + $0x8] ss:$16 sps:$4 sm:$0xff]   ;;  %v1220_v8 = vld [vmem:[%s1656_s0 + $0x44] ss:$16 sps:$4 sm:$0xff]  }
  0x19   :  { %780 = vmatprep.subr.bf16.mxu1 %v1150_v25  ;;  %v1218_v6 = vld [vmem:[%s1656_s0 + $0x20] ss:$16 sps:$4 sm:$0xff]   ;;  %v1219_v7 = vld [vmem:[%s1656_s0 + $0x28] ss:$16 sps:$4 sm:$0xff]   ;;  %v1222_v9 = vld [vmem:[%s1656_s0 + $0x4c] ss:$16 sps:$4 sm:$0xff]  }
  0x1a   :  { %v1224_v10 = vld [vmem:[%s1656_s0 + $0x40] ss:$16 sps:$4 sm:$0xff]   ;;  %v1225_v11 = vld [vmem:[%s1656_s0 + $0x48] ss:$16 sps:$4 sm:$0xff]   ;;  %v1226_v12 = vld [vmem:[%s1656_s0 + $0x64] ss:$16 sps:$4 sm:$0xff]  }
  0x1b   :  { %668 = vmatpush1.bf16.msra.mxu0 %v1152_v26  ;;  %v1228_v13 = vld [vmem:[%s1656_s0 + $0x6c] ss:$16 sps:$4 sm:$0xff]   ;;  %v1230_v14 = vld [vmem:[%s1656_s0 + $0x60] ss:$16 sps:$4 sm:$0xff]   ;;  %v1231_v15 = vld [vmem:[%s1656_s0 + $0x68] ss:$16 sps:$4 sm:$0xff]  }
  0x1c   :  { %781 = vmatpush1.bf16.msra.mxu1 %v1153_v27  ;;  %669 = vmatprep.subr.bf16.mxu0 %v1154_v28  ;;  %v1232_v16 = vld [vmem:[%s1656_s0 + $0x84] ss:$16 sps:$4 sm:$0xff]   ;;  %v1234_v17 = vld [vmem:[%s1656_s0 + $0x8c] ss:$16 sps:$4 sm:$0xff]   ;;  %v1236_v18 = vld [vmem:[%s1656_s0 + $0x80] ss:$16 sps:$4 sm:$0xff]  }
  0x1d   :  { %782 = vmatprep.subr.bf16.mxu1 %v1156_v29  ;;  %v1237_v19 = vld [vmem:[%s1656_s0 + $0x88] ss:$16 sps:$4 sm:$0xff]   ;;  %v1238_v20 = vld [vmem:[%s1656_s0 + $0xa4] ss:$16 sps:$4 sm:$0xff]   ;;  %v1240_v21 = vld [vmem:[%s1656_s0 + $0xac] ss:$16 sps:$4 sm:$0xff]  }
  0x1e   :  { %v1242_v22 = vld [vmem:[%s1656_s0 + $0xa0] ss:$16 sps:$4 sm:$0xff]   ;;  %v1243_v23 = vld [vmem:[%s1656_s0 + $0xa8] ss:$16 sps:$4 sm:$0xff]   ;;  %v1244_v24 = vld [vmem:[%s1656_s0 + $0xc4] ss:$16 sps:$4 sm:$0xff]  }
  0x1f   :  { %670 = vmatpush1.bf16.msra.mxu0 %v1158_v30  ;;  %v1246_v25 = vld [vmem:[%s1656_s0 + $0xcc] ss:$16 sps:$4 sm:$0xff]   ;;  %v1248_v26 = vld [vmem:[%s1656_s0 + $0xc0] ss:$16 sps:$4 sm:$0xff]   ;;  %v1249_v27 = vld [vmem:[%s1656_s0 + $0xc8] ss:$16 sps:$4 sm:$0xff]  }
  0x20   :  { %783 = vmatpush1.bf16.msra.mxu1 %v1159_v31  ;;  %671 = vmatprep.subr.bf16.mxu0 %v1160_v32  ;;  %v1250_v28 = vld [vmem:[%s1656_s0 + $0xe4] ss:$16 sps:$4 sm:$0xff]   ;;  %v1252_v29 = vld [vmem:[%s1656_s0 + $0xec] ss:$16 sps:$4 sm:$0xff]   ;;  %v1254_v30 = vld [vmem:[%s1656_s0 + $0xe0] ss:$16 sps:$4 sm:$0xff]  }
  0x21   :  { %784 = vmatprep.subr.bf16.mxu1 %v1162_v33  ;;  %v1255_v31 = vld [vmem:[%s1656_s0 + $0xe8] ss:$16 sps:$4 sm:$0xff]  }
  0x23   :  { %672 = vmatpush2.bf16.msra.mxu0 %v1164_v34 }
  0x24   :  { %785 = vmatpush2.bf16.msra.mxu1 %v1165_v35  ;;  %673 = vmatprep.subr.bf16.mxu0 %v1166_v36 }
  0x25   :  { %786 = vmatprep.subr.bf16.mxu1 %v1168_v37 }
  0x27   :  { %674 = vmatpush2.bf16.msra.mxu0 %v1170_v38 }
  0x28   :  { %787 = vmatpush2.bf16.msra.mxu1 %v1171_v39  ;;  %675 = vmatprep.subr.bf16.mxu0 %v1172_v40 }
  0x29   :  { %788 = vmatprep.subr.bf16.mxu1 %v1174_v41 }
  0x2b   :  { %676 = vmatpush2.bf16.msra.mxu0 %v1176_v42 }
  0x2c   :  { %789 = vmatpush2.bf16.msra.mxu1 %v1177_v43  ;;  %677 = vmatprep.subr.bf16.mxu0 %v1178_v44 }
  0x2d   :  { %790 = vmatprep.subr.bf16.mxu1 %v1180_v45 }
  0x2f   :  { %678 = vmatpush2.bf16.msra.mxu0 %v1182_v46 }
  0x30   :  { %791 = vmatpush2.bf16.msra.mxu1 %v1183_v47  ;;  %679 = vmatprep.subr.bf16.mxu0 %v1184_v48 }
  0x31   :  { %792 = vmatprep.subr.bf16.mxu1 %v1186_v50 }
  0x33   :  { %680 = vmatpush2.bf16.msra.mxu0 %v1188_v52 }
  0x34   :  { %793 = vmatpush2.bf16.msra.mxu1 %v1189_v53  ;;  %681 = vmatprep.subr.bf16.mxu0 %v1190_v54 }
  0x35   :  { %794 = vmatprep.subr.bf16.mxu1 %v1192_v55 }
  0x37   :  { %682 = vmatpush2.bf16.msra.mxu0 %v1194_v56 }
  0x38   :  { %795 = vmatpush2.bf16.msra.mxu1 %v1195_v57  ;;  %683 = vmatprep.subr.bf16.mxu0 %v1196_v58 }
  0x39   :  { %796 = vmatprep.subr.bf16.mxu1 %v1198_v59 }
  0x3b   :  { %684 = vmatpush2.bf16.msra.mxu0 %v1200_v60 }
  0x3c   :  { %797 = vmatpush2.bf16.msra.mxu1 %v1201_v61  ;;  %685 = vmatprep.subr.bf16.mxu0 %v1202_v62 }
  0x3d   :  { %798 = vmatprep.subr.bf16.mxu1 %v1204_v63 }
  0x3f   :  { %686 = vmatpush2.bf16.msra.mxu0 %v1206_v0 }
  0x40   :  { %799 = vmatpush2.bf16.msra.mxu1 %v1207_v1 }
  0x42   :  { %688 = vmatmul.mubr.bf16.vlgmr.msra.gmra.mxu0 %v1208_v2 }
  0x43   :  { %801 = vmatmul.mubr.bf16.vlgmr.msra.gmra.mxu1 %v1211_v3  ;;  %697 = vmatprep.mubr.bf16.mxu0 %v1214_v4 }
  0x44   :  { %810 = vmatprep.mubr.bf16.mxu1 %v1216_v5 }
  0x4a   :  { %698 = vmatmul.mubr.bf16.gmra.mxu0 %v1218_v6 }
  0x4b   :  { %811 = vmatmul.mubr.bf16.gmra.mxu1 %v1219_v7  ;;  %707 = vmatprep.mubr.bf16.mxu0 %v1220_v8 }
  0x4c   :  { %820 = vmatprep.mubr.bf16.mxu1 %v1222_v9 }
  0x52   :  { %708 = vmatmul.mubr.bf16.gmra.mxu0 %v1224_v10 }
  0x53   :  { %821 = vmatmul.mubr.bf16.gmra.mxu1 %v1225_v11  ;;  %717 = vmatprep.mubr.bf16.mxu0 %v1226_v12 }
  0x54   :  { %830 = vmatprep.mubr.bf16.mxu1 %v1228_v13 }
  0x5a   :  { %718 = vmatmul.mubr.bf16.gmra.mxu0 %v1230_v14 }
  0x5b   :  { %831 = vmatmul.mubr.bf16.gmra.mxu1 %v1231_v15  ;;  %727 = vmatprep.mubr.bf16.mxu0 %v1232_v16 }
  0x5c   :  { %840 = vmatprep.mubr.bf16.mxu1 %v1234_v17 }
  0x62   :  { %728 = vmatmul.mubr.bf16.gmra.mxu0 %v1236_v18 }
  0x63   :  { %841 = vmatmul.mubr.bf16.gmra.mxu1 %v1237_v19  ;;  %737 = vmatprep.mubr.bf16.mxu0 %v1238_v20 }
  0x64   :  { %850 = vmatprep.mubr.bf16.mxu1 %v1240_v21 }
  0x6a   :  { %738 = vmatmul.mubr.bf16.gmra.mxu0 %v1242_v22 }
  0x6b   :  { %851 = vmatmul.mubr.bf16.gmra.mxu1 %v1243_v23  ;;  %747 = vmatprep.mubr.bf16.mxu0 %v1244_v24 }
  0x6c   :  { %860 = vmatprep.mubr.bf16.mxu1 %v1246_v25 }
  0x72   :  { %748 = vmatmul.mubr.bf16.gmra.mxu0 %v1248_v26 }
  0x73   :  { %861 = vmatmul.mubr.bf16.gmra.mxu1 %v1249_v27  ;;  %757 = vmatprep.mubr.bf16.mxu0 %v1250_v28 }
  0x74   :  { %870 = vmatprep.mubr.bf16.mxu1 %v1252_v29 }
  0x7a   :  { %758 = vmatmul.mubr.bf16.gmra.mxu0 %v1254_v30 }
  0x7b   :  { %871 = vmatmul.mubr.bf16.gmra.mxu1 %v1255_v31 }
 0x102   :  { %v689_v32 = vpop.f32.mrf.mxu0 }
 0x103   :  { %v802_v33 = vpop.f32.mrf.mxu1 }
 0x104   :  { %v803_v34 = vadd.f32 %v802_v33, %v689_v32  ;;  %v691_v35 = vpop.f32.mrf.mxu0 }
 0x105   :  { %v804_v36 = vpop.f32.mrf.mxu1 }
 0x106   :  { %980 = vst [vmem:[%s1657_s2] sm:$0xff] %v803_v34  ;;  %v805_v37 = vadd.f32 %v804_v36, %v691_v35  ;;  %v693_v38 = vpop.f32.mrf.mxu0 }
 0x107   :  { %v806_v39 = vpop.f32.mrf.mxu1 }
 0x108   :  { %981 = vst [vmem:[%s1657_s2 + $0x8] sm:$0xff] %v805_v37  ;;  %v807_v40 = vadd.f32 %v806_v39, %v693_v38  ;;  %v695_v41 = vpop.f32.mrf.mxu0 }
 0x109   :  { %v808_v42 = vpop.f32.mrf.mxu1 }
 0x10a   :  { %982 = vst [vmem:[%s1657_s2 + $0x10] sm:$0xff] %v807_v40  ;;  %v809_v43 = vadd.f32 %v808_v42, %v695_v41  ;;  %v699_v44 = vpop.f32.mrf.mxu0 }
 0x10b   :  { %v812_v45 = vpop.f32.mrf.mxu1 }
 0x10c   :  { %983 = vst [vmem:[%s1657_s2 + $0x18] sm:$0xff] %v809_v43  ;;  %v813_v46 = vadd.f32 %v812_v45, %v699_v44  ;;  %v701_v47 = vpop.f32.mrf.mxu0 }
 0x10d   :  { %v814_v48 = vpop.f32.mrf.mxu1 }
 0x10e   :  { %984 = vst [vmem:[%s1657_s2 + $0x20] sm:$0xff] %v813_v46  ;;  %v815_v49 = vadd.f32 %v814_v48, %v701_v47  ;;  %v703_v50 = vpop.f32.mrf.mxu0 }
 0x10f   :  { %v816_v51 = vpop.f32.mrf.mxu1 }
 0x110   :  { %985 = vst [vmem:[%s1657_s2 + $0x28] sm:$0xff] %v815_v49  ;;  %v817_v52 = vadd.f32 %v816_v51, %v703_v50  ;;  %v705_v53 = vpop.f32.mrf.mxu0 }
 0x111   :  { %v818_v54 = vpop.f32.mrf.mxu1 }
 0x112   :  { %986 = vst [vmem:[%s1657_s2 + $0x30] sm:$0xff] %v817_v52  ;;  %v819_v55 = vadd.f32 %v818_v54, %v705_v53  ;;  %v709_v56 = vpop.f32.mrf.mxu0 }
 0x113   :  { %v822_v57 = vpop.f32.mrf.mxu1 }
 0x114   :  { %987 = vst [vmem:[%s1657_s2 + $0x38] sm:$0xff] %v819_v55  ;;  %v823_v58 = vadd.f32 %v822_v57, %v709_v56  ;;  %v711_v59 = vpop.f32.mrf.mxu0 }
 0x115   :  { %v824_v60 = vpop.f32.mrf.mxu1 }
 0x116   :  { %988 = vst [vmem:[%s1657_s2 + $0x40] sm:$0xff] %v823_v58  ;;  %v825_v61 = vadd.f32 %v824_v60, %v711_v59  ;;  %v713_v62 = vpop.f32.mrf.mxu0 }
 0x117   :  { %v826_v63 = vpop.f32.mrf.mxu1 }
 0x118   :  { %989 = vst [vmem:[%s1657_s2 + $0x48] sm:$0xff] %v825_v61  ;;  %v827_v0 = vadd.f32 %v826_v63, %v713_v62  ;;  %v715_v1 = vpop.f32.mrf.mxu0 }
 0x119   :  { %v828_v2 = vpop.f32.mrf.mxu1 }
 0x11a   :  { %990 = vst [vmem:[%s1657_s2 + $0x50] sm:$0xff] %v827_v0  ;;  %v829_v3 = vadd.f32 %v828_v2, %v715_v1  ;;  %v719_v4 = vpop.f32.mrf.mxu0 }
 0x11b   :  { %v832_v5 = vpop.f32.mrf.mxu1 }
 0x11c   :  { %991 = vst [vmem:[%s1657_s2 + $0x58] sm:$0xff] %v829_v3  ;;  %v833_v6 = vadd.f32 %v832_v5, %v719_v4  ;;  %v721_v7 = vpop.f32.mrf.mxu0 }
 0x11d   :  { %v834_v8 = vpop.f32.mrf.mxu1 }
 0x11e   :  { %992 = vst [vmem:[%s1657_s2 + $0x60] sm:$0xff] %v833_v6  ;;  %v835_v9 = vadd.f32 %v834_v8, %v721_v7  ;;  %v723_v10 = vpop.f32.mrf.mxu0 }
 0x11f   :  { %v836_v11 = vpop.f32.mrf.mxu1 }
 0x120   :  { %993 = vst [vmem:[%s1657_s2 + $0x68] sm:$0xff] %v835_v9  ;;  %v837_v12 = vadd.f32 %v836_v11, %v723_v10  ;;  %v725_v13 = vpop.f32.mrf.mxu0 }
 0x121   :  { %v838_v14 = vpop.f32.mrf.mxu1 }
 0x122   :  { %994 = vst [vmem:[%s1657_s2 + $0x70] sm:$0xff] %v837_v12  ;;  %v839_v15 = vadd.f32 %v838_v14, %v725_v13  ;;  %v729_v16 = vpop.f32.mrf.mxu0 }
 0x123   :  { %v842_v17 = vpop.f32.mrf.mxu1 }
 0x124   :  { %995 = vst [vmem:[%s1657_s2 + $0x78] sm:$0xff] %v839_v15  ;;  %v843_v18 = vadd.f32 %v842_v17, %v729_v16  ;;  %v731_v19 = vpop.f32.mrf.mxu0 }
 0x125   :  { %v844_v20 = vpop.f32.mrf.mxu1 }
 0x126   :  { %996 = vst [vmem:[%s1657_s2 + $0x80] sm:$0xff] %v843_v18  ;;  %v845_v21 = vadd.f32 %v844_v20, %v731_v19  ;;  %v733_v22 = vpop.f32.mrf.mxu0 }
 0x127   :  { %v846_v23 = vpop.f32.mrf.mxu1 }
 0x128   :  { %997 = vst [vmem:[%s1657_s2 + $0x88] sm:$0xff] %v845_v21  ;;  %v847_v24 = vadd.f32 %v846_v23, %v733_v22  ;;  %v735_v25 = vpop.f32.mrf.mxu0 }
 0x129   :  { %v848_v26 = vpop.f32.mrf.mxu1 }
 0x12a   :  { %998 = vst [vmem:[%s1657_s2 + $0x90] sm:$0xff] %v847_v24  ;;  %v849_v27 = vadd.f32 %v848_v26, %v735_v25  ;;  %v739_v28 = vpop.f32.mrf.mxu0 }
 0x12b   :  { %v852_v29 = vpop.f32.mrf.mxu1 }
 0x12c   :  { %999 = vst [vmem:[%s1657_s2 + $0x98] sm:$0xff] %v849_v27  ;;  %v853_v30 = vadd.f32 %v852_v29, %v739_v28  ;;  %v741_v31 = vpop.f32.mrf.mxu0 }
 0x12d   :  { %v854_v32 = vpop.f32.mrf.mxu1 }
 0x12e   :  { %1000 = vst [vmem:[%s1657_s2 + $0xa0] sm:$0xff] %v853_v30  ;;  %v855_v33 = vadd.f32 %v854_v32, %v741_v31  ;;  %v743_v34 = vpop.f32.mrf.mxu0 }
 0x12f   :  { %v856_v35 = vpop.f32.mrf.mxu1 }
 0x130   :  { %1001 = vst [vmem:[%s1657_s2 + $0xa8] sm:$0xff] %v855_v33  ;;  %v857_v36 = vadd.f32 %v856_v35, %v743_v34  ;;  %v745_v37 = vpop.f32.mrf.mxu0 }
 0x131   :  { %v858_v38 = vpop.f32.mrf.mxu1 }
 0x132   :  { %1002 = vst [vmem:[%s1657_s2 + $0xb0] sm:$0xff] %v857_v36  ;;  %v859_v39 = vadd.f32 %v858_v38, %v745_v37  ;;  %v749_v40 = vpop.f32.mrf.mxu0 }
 0x133   :  { %v862_v41 = vpop.f32.mrf.mxu1 }
 0x134   :  { %1003 = vst [vmem:[%s1657_s2 + $0xb8] sm:$0xff] %v859_v39  ;;  %v863_v42 = vadd.f32 %v862_v41, %v749_v40  ;;  %v751_v43 = vpop.f32.mrf.mxu0 }
 0x135   :  { %v864_v44 = vpop.f32.mrf.mxu1 }
 0x136   :  { %1004 = vst [vmem:[%s1657_s2 + $0xc0] sm:$0xff] %v863_v42  ;;  %v865_v45 = vadd.f32 %v864_v44, %v751_v43  ;;  %v753_v46 = vpop.f32.mrf.mxu0 }
 0x137   :  { %v866_v47 = vpop.f32.mrf.mxu1 }
 0x138   :  { %1005 = vst [vmem:[%s1657_s2 + $0xc8] sm:$0xff] %v865_v45  ;;  %v867_v48 = vadd.f32 %v866_v47, %v753_v46  ;;  %v755_v49 = vpop.f32.mrf.mxu0 }
 0x139   :  { %v868_v50 = vpop.f32.mrf.mxu1 }
 0x13a   :  { %1006 = vst [vmem:[%s1657_s2 + $0xd0] sm:$0xff] %v867_v48  ;;  %v869_v51 = vadd.f32 %v868_v50, %v755_v49  ;;  %v759_v52 = vpop.f32.mrf.mxu0 }
 0x13b   :  { %v872_v53 = vpop.f32.mrf.mxu1 }
 0x13c   :  { %1007 = vst [vmem:[%s1657_s2 + $0xd8] sm:$0xff] %v869_v51  ;;  %v873_v54 = vadd.f32 %v872_v53, %v759_v52  ;;  %v761_v55 = vpop.f32.mrf.mxu0 }
 0x13d   :  { %v874_v56 = vpop.f32.mrf.mxu1 }
 0x13e   :  { %1008 = vst [vmem:[%s1657_s2 + $0xe0] sm:$0xff] %v873_v54  ;;  %v875_v57 = vadd.f32 %v874_v56, %v761_v55  ;;  %v763_v58 = vpop.f32.mrf.mxu0 }
 0x13f   :  { %v876_v59 = vpop.f32.mrf.mxu1 }
 0x140   :  { %1009 = vst [vmem:[%s1657_s2 + $0xe8] sm:$0xff] %v875_v57  ;;  %v877_v60 = vadd.f32 %v876_v59, %v763_v58  ;;  %v765_v61 = vpop.f32.mrf.mxu0 }
 0x141   :  { %v878_v62 = vpop.f32.mrf.mxu1 }
 0x142   :  { %1010 = vst [vmem:[%s1657_s2 + $0xf0] sm:$0xff] %v877_v60  ;;  %v879_v63 = vadd.f32 %v878_v62, %v765_v61 }
 0x144   :  { %1011 = vst [vmem:[%s1657_s2 + $0xf8] sm:$0xff] %v879_v63 }

// kernel: generator_forward.30
= control target key start
LH: loop header
LB: loop body
LE: loop exit
PB: predicated region body
PF: predicated region fallthrough
CT: control target
= control target key end

     0   :  { %s549_s6 = smov 0   ;;  %s1093_s0 = inlined_call_operand.vmem [shape: f32[2,256,64], index: 0, kind: input, shape index: {}]   ;;  %s1094_s1 = inlined_call_operand.vmem [shape: f32[2,256,64], index: 1, kind: output, shape index: {}]  }
   0x1 LB: > { %s508_s7 = sadd.s32 4294967295, %s537_s6   ;;  %p512_p0 = scmp.ge.s32.totalorder %s537_s6, 1  ;;  %s537_s6 = sphi %s549_s6, %s11_s6  }
   0x2   : > { %p87_p1 = scmp.lt.s32.totalorder %s537_s6, 3 }
   0x4   : > { %p88_p2 = pnand %p512_p0, %p87_p1 }
   0x5   : > { %p107_p3 = scmp.lt.s32.totalorder (!%p88_p2), %s508_s7, 1 }
   0x6   : > { %91 = sbr.rel (%p88_p2) target bundleno = 210 (0xd2), region = 24 }
   0xb   : > { %s1096_s7 = smov (!%p107_p3, %s508_s7), 1  ;;  %vm149_vm0 = vcmask 523264  }
   0xc   : > { %s519_s8 = sshll.u32 %s1096_s7, 8 }
   0xd   : > { %s565_s11 = scalar_lea.vmem %s1093_s0, %s519_s8  ;;  %s968_s14 = scalar_lea.vmem %s1094_s1, %s519_s8 }
   0xe   : > { %v568_v0 = vld [vmem:[%s565_s11] sm:$0xff]  ;;  %v571_v1 = vld [vmem:[%s565_s11 + $0x8] sm:$0xff]  ;;  %v574_v2 = vld [vmem:[%s565_s11 + $0x10] sm:$0xff] }
   0xf   : > { %v577_v3 = vld [vmem:[%s565_s11 + $0x18] sm:$0xff]  ;;  %v150_v4 = vsel %vm149_vm0, %v568_v0, 0.0  ;;  %v151_v5 = vsel %vm149_vm0, %v571_v1, 0.0  ;;  %v153_v6 = vsel %vm149_vm0, %v574_v2, 0.0  ;;  %v586_v7 = vld [vmem:[%s565_s11 + $0x20] sm:$0xff]  ;;  %v591_v10 = vld [vmem:[%s565_s11 + $0x28] sm:$0xff] }
  0x10   : > { %v152_v8 = vadd.f32 %v151_v5, %v150_v4  ;;  %v155_v9 = vsel %vm149_vm0, %v577_v3, 0.0  ;;  %v157_v12 = vsel %vm149_vm0, %v586_v7, 0.0  ;;  %v596_v13 = vld [vmem:[%s565_s11 + $0x30] sm:$0xff]  ;;  %v159_v15 = vsel %vm149_vm0, %v591_v10, 0.0  ;;  %v601_v16 = vld [vmem:[%s565_s11 + $0x38] sm:$0xff]  ;;  %v606_v19 = vld [vmem:[%s565_s11 + $0x40] sm:$0xff] }
  0x11   : > { %v161_v18 = vsel %vm149_vm0, %v596_v13, 0.0  ;;  %v163_v21 = vsel %vm149_vm0, %v601_v16, 0.0  ;;  %v611_v22 = vld [vmem:[%s565_s11 + $0x48] sm:$0xff]  ;;  %v165_v24 = vsel %vm149_vm0, %v606_v19, 0.0  ;;  %v616_v25 = vld [vmem:[%s565_s11 + $0x50] sm:$0xff]  ;;  %v621_v28 = vld [vmem:[%s565_s11 + $0x58] sm:$0xff] }
  0x12   : > { %v154_v11 = vadd.f32 %v153_v6, %v152_v8  ;;  %v167_v27 = vsel %vm149_vm0, %v611_v22, 0.0  ;;  %v169_v30 = vsel %vm149_vm0, %v616_v25, 0.0  ;;  %v626_v31 = vld [vmem:[%s565_s11 + $0x60] sm:$0xff]  ;;  %v171_v33 = vsel %vm149_vm0, %v621_v28, 0.0  ;;  %v631_v34 = vld [vmem:[%s565_s11 + $0x68] sm:$0xff]  ;;  %v636_v37 = vld [vmem:[%s565_s11 + $0x70] sm:$0xff] }
  0x13   : > { %v173_v36 = vsel %vm149_vm0, %v626_v31, 0.0  ;;  %v175_v39 = vsel %vm149_vm0, %v631_v34, 0.0  ;;  %v641_v40 = vld [vmem:[%s565_s11 + $0x78] sm:$0xff]  ;;  %v177_v42 = vsel %vm149_vm0, %v636_v37, 0.0  ;;  %v646_v43 = vld [vmem:[%s565_s11 + $0x80] sm:$0xff]  ;;  %v651_v46 = vld [vmem:[%s565_s11 + $0x88] sm:$0xff] }
  0x14   : > { %v156_v14 = vadd.f32 %v155_v9, %v154_v11  ;;  %v179_v45 = vsel %vm149_vm0, %v641_v40, 0.0  ;;  %v181_v48 = vsel %vm149_vm0, %v646_v43, 0.0  ;;  %v656_v49 = vld [vmem:[%s565_s11 + $0x90] sm:$0xff]  ;;  %v183_v51 = vsel %vm149_vm0, %v651_v46, 0.0  ;;  %v661_v52 = vld [vmem:[%s565_s11 + $0x98] sm:$0xff]  ;;  %v666_v55 = vld [vmem:[%s565_s11 + $0xa0] sm:$0xff] }
  0x15   : > { %v185_v54 = vsel %vm149_vm0, %v656_v49, 0.0  ;;  %v187_v57 = vsel %vm149_vm0, %v661_v52, 0.0  ;;  %v671_v58 = vld [vmem:[%s565_s11 + $0xa8] sm:$0xff]  ;;  %v189_v60 = vsel %vm149_vm0, %v666_v55, 0.0  ;;  %v676_v61 = vld [vmem:[%s565_s11 + $0xb0] sm:$0xff]  ;;  %v681_v4 = vld [vmem:[%s565_s11 + $0xb8] sm:$0xff] }
  0x16   : > { %v158_v17 = vadd.f32 %v157_v12, %v156_v14  ;;  %v191_v63 = vsel %vm149_vm0, %v671_v58, 0.0  ;;  %v193_v6 = vsel %vm149_vm0, %v676_v61, 0.0  ;;  %v686_v8 = vld [vmem:[%s565_s11 + $0xc0] sm:$0xff]  ;;  %v195_v11 = vsel %vm149_vm0, %v681_v4, 0.0  ;;  %v691_v12 = vld [vmem:[%s565_s11 + $0xc8] sm:$0xff] }
  0x18   : > { %v160_v20 = vadd.f32 %v159_v15, %v158_v17  ;;  %v197_v15 = vsel %vm149_vm0, %v686_v8, 0.0  ;;  %v696_v17 = vld [vmem:[%s565_s11 + $0xd0] sm:$0xff] }
  0x1a   : > { %v162_v23 = vadd.f32 %v161_v18, %v160_v20  ;;  %v199_v20 = vsel %vm149_vm0, %v691_v12, 0.0 }
  0x1c   : > { %v164_v26 = vadd.f32 %v163_v21, %v162_v23  ;;  %v701_v21 = vld [vmem:[%s565_s11 + $0xd8] sm:$0xff] }
  0x1e   : > { %v166_v29 = vadd.f32 %v165_v24, %v164_v26  ;;  %v201_v24 = vsel %vm149_vm0, %v696_v17, 0.0  ;;  %v706_v26 = vld [vmem:[%s565_s11 + $0xe0] sm:$0xff] }
  0x20   : > { %v168_v32 = vadd.f32 %v167_v27, %v166_v29  ;;  %v203_v29 = vsel %vm149_vm0, %v701_v21, 0.0 }
  0x22   : > { %v170_v35 = vadd.f32 %v169_v30, %v168_v32  ;;  %v711_v30 = vld [vmem:[%s565_s11 + $0xe8] sm:$0xff] }
  0x24   : > { %v172_v38 = vadd.f32 %v171_v33, %v170_v35  ;;  %v205_v33 = vsel %vm149_vm0, %v706_v26, 0.0  ;;  %v716_v35 = vld [vmem:[%s565_s11 + $0xf0] sm:$0xff] }
  0x26   : > { %v174_v41 = vadd.f32 %v173_v36, %v172_v38  ;;  %v207_v38 = vsel %vm149_vm0, %v711_v30, 0.0 }
  0x28   : > { %v176_v44 = vadd.f32 %v175_v39, %v174_v41  ;;  %v721_v39 = vld [vmem:[%s565_s11 + $0xf8] sm:$0xff] }
  0x2a   : > { %v178_v47 = vadd.f32 %v177_v42, %v176_v44  ;;  %v209_v42 = vsel %vm149_vm0, %v716_v35, 0.0 }
  0x2c   : > { %v180_v50 = vadd.f32 %v179_v45, %v178_v47  ;;  %v211_v45 = vsel %vm149_vm0, %v721_v39, 0.0 }
  0x2e   : > { %v182_v53 = vadd.f32 %v181_v48, %v180_v50 }
  0x30   : > { %v184_v56 = vadd.f32 %v183_v51, %v182_v53 }
  0x32   : > { %v186_v59 = vadd.f32 %v185_v54, %v184_v56 }
  0x34   : > { %v188_v62 = vadd.f32 %v187_v57, %v186_v59 }
  0x36   : > { %v190_v5 = vadd.f32 %v189_v60, %v188_v62 }
  0x38   : > { %v192_v9 = vadd.f32 %v191_v63, %v190_v5 }
  0x3a   : > { %v194_v14 = vadd.f32 %v193_v6, %v192_v9 }
  0x3c   : > { %v196_v18 = vadd.f32 %v195_v11, %v194_v14 }
  0x3e   : > { %v198_v23 = vadd.f32 %v197_v15, %v196_v18 }
  0x40   : > { %v200_v27 = vadd.f32 %v199_v20, %v198_v23 }
  0x42   : > { %v202_v32 = vadd.f32 %v201_v24, %v200_v27 }
  0x44   : > { %v204_v36 = vadd.f32 %v203_v29, %v202_v32 }
  0x46   : > { %v206_v41 = vadd.f32 %v205_v33, %v204_v36 }
  0x48   : > { %v208_v44 = vadd.f32 %v207_v38, %v206_v41 }
  0x4a   : > { %v210_v47 = vadd.f32 %v209_v42, %v208_v44 }
  0x4c   : > { %v212_v48 = vadd.f32 %v211_v45, %v210_v47 }
  0x4e   : > { %v213_v50 = vrot.slane %v212_v48, 4 }
  0x50   : > { %v214_v51 = vadd.f32 %v213_v50, %v212_v48 }
  0x52   : > { %v215_v53 = vrot.slane %v214_v51, 2 }
  0x54   : > { %v216_v54 = vadd.f32 %v215_v53, %v214_v51 }
  0x56   : > { %v217_v56 = vrot.slane %v216_v54, 1 }
  0x58   : > { %v218_v57 = vadd.f32 %v217_v56, %v216_v54 }
  0x5a   : > { %v727_v59 = vmul.f32 0.00390625, %v218_v57 }
  0x5c   : > { %v731_v60 = vsub.f32 %v568_v0, %v727_v59  ;;  %v735_v62 = vsub.f32 %v571_v1, %v727_v59  ;;  %v739_v63 = vsub.f32 %v574_v2, %v727_v59  ;;  %v743_v5 = vsub.f32 %v577_v3, %v727_v59 }
  0x5d   : > { %v747_v6 = vsub.f32 %v586_v7, %v727_v59  ;;  %v757_v2 = vsub.f32 %v591_v10, %v727_v59  ;;  %v763_v7 = vsub.f32 %v596_v13, %v727_v59  ;;  %v772_v10 = vsub.f32 %v601_v16, %v727_v59 }
  0x5e   : > { %v253_v0 = vmul.f32 %v731_v60, %v731_v60  ;;  %v254_v9 = vmul.f32 %v735_v62, %v735_v62  ;;  %v255_v1 = vmul.f32 %v739_v63, %v739_v63  ;;  %v256_v3 = vmul.f32 %v743_v5, %v743_v5 }
  0x5f   : > { %v257_v11 = vmul.f32 %v747_v6, %v747_v6  ;;  %v258_v23 = vmul.f32 %v757_v2, %v757_v2  ;;  %v779_v27 = vsub.f32 %v606_v19, %v727_v59  ;;  %v259_v29 = vmul.f32 %v763_v7, %v763_v7 }
  0x60   : > { %v285_v14 = vsel %vm149_vm0, %v253_v0, 0.0  ;;  %v286_v15 = vsel %vm149_vm0, %v254_v9, 0.0  ;;  %v288_v18 = vsel %vm149_vm0, %v255_v1, 0.0  ;;  %v290_v13 = vsel %vm149_vm0, %v256_v3, 0.0 }
  0x61   : > { %v287_v20 = vadd.f32 %v286_v15, %v285_v14  ;;  %v292_v32 = vsel %vm149_vm0, %v257_v11, 0.0  ;;  %v786_v16 = vsub.f32 %v611_v22, %v727_v59  ;;  %v260_v36 = vmul.f32 %v772_v10, %v772_v10 }
  0x62   : > { %v294_v38 = vsel %vm149_vm0, %v258_v23, 0.0  ;;  %v793_v19 = vsub.f32 %v616_v25, %v727_v59  ;;  %v261_v42 = vmul.f32 %v779_v27, %v779_v27  ;;  %v296_v44 = vsel %vm149_vm0, %v259_v29, 0.0 }
  0x63   : > { %v289_v24 = vadd.f32 %v288_v18, %v287_v20  ;;  %v800_v22 = vsub.f32 %v621_v28, %v727_v59  ;;  %v262_v47 = vmul.f32 %v786_v16, %v786_v16  ;;  %v298_v48 = vsel %vm149_vm0, %v260_v36, 0.0 }
  0x64   : > { %v807_v25 = vsub.f32 %v626_v31, %v727_v59  ;;  %v263_v51 = vmul.f32 %v793_v19, %v793_v19  ;;  %v300_v53 = vsel %vm149_vm0, %v261_v42, 0.0  ;;  %v814_v28 = vsub.f32 %v631_v34, %v727_v59 }
  0x65   : > { %v291_v33 = vadd.f32 %v290_v13, %v289_v24  ;;  %v264_v56 = vmul.f32 %v800_v22, %v800_v22  ;;  %v302_v57 = vsel %vm149_vm0, %v262_v47, 0.0  ;;  %v821_v31 = vsub.f32 %v636_v37, %v727_v59 }
  0x66   : > { %v265_v9 = vmul.f32 %v807_v25, %v807_v25  ;;  %v304_v1 = vsel %vm149_vm0, %v263_v51, 0.0  ;;  %v828_v34 = vsub.f32 %v641_v40, %v727_v59  ;;  %v266_v11 = vmul.f32 %v814_v28, %v814_v28 }
  0x67   : > { %v293_v41 = vadd.f32 %v292_v32, %v291_v33  ;;  %v306_v14 = vsel %vm149_vm0, %v264_v56, 0.0  ;;  %v835_v37 = vsub.f32 %v646_v43, %v727_v59  ;;  %v267_v18 = vmul.f32 %v821_v31, %v821_v31 }
  0x68   : > { %v308_v20 = vsel %vm149_vm0, %v265_v9, 0.0  ;;  %v842_v40 = vsub.f32 %v651_v46, %v727_v59  ;;  %v268_v13 = vmul.f32 %v828_v34, %v828_v34  ;;  %v310_v24 = vsel %vm149_vm0, %v266_v11, 0.0 }
  0x69   : > { %v295_v45 = vadd.f32 %v294_v38, %v293_v41  ;;  %v849_v43 = vsub.f32 %v656_v49, %v727_v59  ;;  %v269_v32 = vmul.f32 %v835_v37, %v835_v37  ;;  %v312_v33 = vsel %vm149_vm0, %v267_v18, 0.0 }
  0x6a   : > { %v856_v46 = vsub.f32 %v661_v52, %v727_v59  ;;  %v270_v38 = vmul.f32 %v842_v40, %v842_v40  ;;  %v314_v41 = vsel %vm149_vm0, %v268_v13, 0.0  ;;  %v863_v49 = vsub.f32 %v666_v55, %v727_v59 }
  0x6b   : > { %v297_v50 = vadd.f32 %v296_v44, %v295_v45  ;;  %v271_v44 = vmul.f32 %v849_v43, %v849_v43  ;;  %v316_v45 = vsel %vm149_vm0, %v269_v32, 0.0  ;;  %v870_v52 = vsub.f32 %v671_v58, %v727_v59 }
  0x6c   : > { %v877_v55 = vsub.f32 %v676_v61, %v727_v59  ;;  %v884_v58 = vsub.f32 %v681_v4, %v727_v59  ;;  %v891_v61 = vsub.f32 %v686_v8, %v727_v59  ;;  %v898_v4 = vsub.f32 %v691_v12, %v727_v59 }
  0x6d   : > { %v299_v54 = vadd.f32 %v298_v48, %v297_v50  ;;  %v272_v48 = vmul.f32 %v856_v46, %v856_v46  ;;  %v318_v50 = vsel %vm149_vm0, %v270_v38, 0.0  ;;  %v905_v8 = vsub.f32 %v696_v17, %v727_v59 }
  0x6e   : > { %v912_v12 = vsub.f32 %v701_v21, %v727_v59  ;;  %v919_v17 = vsub.f32 %v706_v26, %v727_v59  ;;  %v926_v21 = vsub.f32 %v711_v30, %v727_v59  ;;  %v933_v26 = vsub.f32 %v716_v35, %v727_v59 }
  0x6f   : > { %v301_v0 = vadd.f32 %v300_v53, %v299_v54  ;;  %v273_v53 = vmul.f32 %v863_v49, %v863_v49  ;;  %v320_v54 = vsel %vm149_vm0, %v271_v44, 0.0  ;;  %v940_v30 = vsub.f32 %v721_v39, %v727_v59 }
  0x70   : > { %v283_v35 = vmul.f32 %v933_v26, %v933_v26 }
  0x71   : > { %v303_v3 = vadd.f32 %v302_v57, %v301_v0  ;;  %v274_v57 = vmul.f32 %v870_v52, %v870_v52  ;;  %v322_v0 = vsel %vm149_vm0, %v272_v48, 0.0 }
  0x72   : > { %v344_v39 = vsel %vm149_vm0, %v283_v35, 0.0 }
  0x73   : > { %v305_v15 = vadd.f32 %v304_v1, %v303_v3  ;;  %v275_v1 = vmul.f32 %v877_v55, %v877_v55  ;;  %v324_v3 = vsel %vm149_vm0, %v273_v53, 0.0 }
  0x75   : > { %v307_v23 = vadd.f32 %v306_v14, %v305_v15  ;;  %v276_v14 = vmul.f32 %v884_v58, %v884_v58  ;;  %v326_v15 = vsel %vm149_vm0, %v274_v57, 0.0  ;;  %v284_v57 = vmul.f32 %v940_v30, %v940_v30 }
  0x77   : > { %v309_v29 = vadd.f32 %v308_v20, %v307_v23  ;;  %v277_v20 = vmul.f32 %v891_v61, %v891_v61  ;;  %v328_v23 = vsel %vm149_vm0, %v275_v1, 0.0  ;;  %v346_v1 = vsel %vm149_vm0, %v284_v57, 0.0 }
  0x79   : > { %v311_v36 = vadd.f32 %v310_v24, %v309_v29  ;;  %v278_v24 = vmul.f32 %v898_v4, %v898_v4  ;;  %v330_v29 = vsel %vm149_vm0, %v276_v14, 0.0 }
  0x7b   : > { %v313_v42 = vadd.f32 %v312_v33, %v311_v36  ;;  %v279_v33 = vmul.f32 %v905_v8, %v905_v8  ;;  %v332_v36 = vsel %vm149_vm0, %v277_v20, 0.0 }
  0x7d   : > { %v315_v47 = vadd.f32 %v314_v41, %v313_v42  ;;  %v280_v41 = vmul.f32 %v912_v12, %v912_v12  ;;  %v334_v42 = vsel %vm149_vm0, %v278_v24, 0.0 }
  0x7f   : > { %v317_v51 = vadd.f32 %v316_v45, %v315_v47  ;;  %v281_v45 = vmul.f32 %v919_v17, %v919_v17  ;;  %v336_v47 = vsel %vm149_vm0, %v279_v33, 0.0 }
  0x81   : > { %v319_v56 = vadd.f32 %v318_v50, %v317_v51  ;;  %v282_v50 = vmul.f32 %v926_v21, %v926_v21  ;;  %v338_v51 = vsel %vm149_vm0, %v280_v41, 0.0 }
  0x83   : > { %v321_v9 = vadd.f32 %v320_v54, %v319_v56  ;;  %v340_v54 = vsel %vm149_vm0, %v281_v45, 0.0 }
  0x85   : > { %v323_v11 = vadd.f32 %v322_v0, %v321_v9  ;;  %v342_v0 = vsel %vm149_vm0, %v282_v50, 0.0 }
  0x87   : > { %v325_v18 = vadd.f32 %v324_v3, %v323_v11 }
  0x89   : > { %v327_v13 = vadd.f32 %v326_v15, %v325_v18 }
  0x8b   : > { %v329_v32 = vadd.f32 %v328_v23, %v327_v13 }
  0x8d   : > { %v331_v38 = vadd.f32 %v330_v29, %v329_v32 }
  0x8f   : > { %v333_v44 = vadd.f32 %v332_v36, %v331_v38 }
  0x91   : > { %v335_v48 = vadd.f32 %v334_v42, %v333_v44 }
  0x93   : > { %v337_v53 = vadd.f32 %v336_v47, %v335_v48 }
  0x95   : > { %v339_v56 = vadd.f32 %v338_v51, %v337_v53 }
  0x97   : > { %v341_v9 = vadd.f32 %v340_v54, %v339_v56 }
  0x99   : > { %v343_v59 = vadd.f32 %v342_v0, %v341_v9 }
  0x9b   : > { %v345_v3 = vadd.f32 %v344_v39, %v343_v59 }
  0x9d   : > { %v347_v11 = vadd.f32 %v346_v1, %v345_v3 }
  0x9f   : > { %v348_v14 = vrot.slane %v347_v11, 4 }
  0xa1   : > { %v349_v15 = vadd.f32 %v348_v14, %v347_v11 }
  0xa3   : > { %v350_v18 = vrot.slane %v349_v15, 2 }
  0xa5   : > { %v351_v20 = vadd.f32 %v350_v18, %v349_v15 }
  0xa7   : > { %v352_v23 = vrot.slane %v351_v20, 1 }
  0xa9   : > { %v353_v13 = vadd.f32 %v352_v23, %v351_v20 }
  0xab   : > { %v354_v24 = vmul.f32 0.00390625, %v353_v13 }
  0xad   : > { %v355_v29 = vadd.f32 1e-05, %v354_v24 }
  0xaf   : > { %529 = vrsqrt.f32 %v355_v29 }
  0xbc   : > { %v953_v32 = vpop.eup %529 }
  0xbd   : > { %v357_v33 = vmul.f32 %v953_v32, %v731_v60  ;;  %v358_v36 = vmul.f32 %v953_v32, %v735_v62  ;;  %v359_v38 = vmul.f32 %v953_v32, %v739_v63  ;;  %v360_v41 = vmul.f32 %v953_v32, %v743_v5 }
  0xbe   : > { %v361_v60 = vmul.f32 %v953_v32, %v747_v6  ;;  %v362_v62 = vmul.f32 %v953_v32, %v757_v2  ;;  %v363_v63 = vmul.f32 %v953_v32, %v763_v7  ;;  %v364_v5 = vmul.f32 %v953_v32, %v772_v10 }
  0xbf   : > { %v389_v42 = vmax.f32 %v357_v33, 0.0  ;;  %v390_v44 = vmax.f32 %v358_v36, 0.0  ;;  %v391_v45 = vmax.f32 %v359_v38, 0.0  ;;  %v392_v47 = vmax.f32 %v360_v41, 0.0 }
  0xc0   : > { %v393_v48 = vmax.f32 %v361_v60, 0.0  ;;  %v394_v50 = vmax.f32 %v362_v62, 0.0  ;;  %v395_v6 = vmax.f32 %v363_v63, 0.0  ;;  %v396_v51 = vmax.f32 %v364_v5, 0.0 }
  0xc1   : > { %421 = vst.msk [vmem:[%s968_s14] sm:$0xff] %vm149_vm0, %v389_v42  ;;  %422 = vst.msk [vmem:[%s968_s14 + $0x8] sm:$0xff] %vm149_vm0, %v390_v44  ;;  %v365_v2 = vmul.f32 %v953_v32, %v779_v27  ;;  %v366_v7 = vmul.f32 %v953_v32, %v786_v16  ;;  %v367_v10 = vmul.f32 %v953_v32, %v793_v19 }
  0xc2   : > { %423 = vst.msk [vmem:[%s968_s14 + $0x10] sm:$0xff] %vm149_vm0, %v391_v45  ;;  %424 = vst.msk [vmem:[%s968_s14 + $0x18] sm:$0xff] %vm149_vm0, %v392_v47  ;;  %v368_v53 = vmul.f32 %v953_v32, %v800_v22  ;;  %v369_v27 = vmul.f32 %v953_v32, %v807_v25  ;;  %v370_v16 = vmul.f32 %v953_v32, %v814_v28 }
  0xc3   : > { %425 = vst.msk [vmem:[%s968_s14 + $0x20] sm:$0xff] %vm149_vm0, %v393_v48  ;;  %426 = vst.msk [vmem:[%s968_s14 + $0x28] sm:$0xff] %vm149_vm0, %v394_v50  ;;  %v371_v19 = vmul.f32 %v953_v32, %v821_v31  ;;  %v372_v22 = vmul.f32 %v953_v32, %v828_v34  ;;  %v397_v35 = vmax.f32 %v365_v2, 0.0  ;;  %v398_v54 = vmax.f32 %v366_v7, 0.0 }
  0xc4   : > { %427 = vst.msk [vmem:[%s968_s14 + $0x30] sm:$0xff] %vm149_vm0, %v395_v6  ;;  %428 = vst.msk [vmem:[%s968_s14 + $0x38] sm:$0xff] %vm149_vm0, %v396_v51  ;;  %v399_v56 = vmax.f32 %v367_v10, 0.0  ;;  %v400_v57 = vmax.f32 %v368_v53, 0.0  ;;  %v401_v0 = vmax.f32 %v369_v27, 0.0  ;;  %v402_v9 = vmax.f32 %v370_v16, 0.0 }
  0xc5   : > { %v403_v25 = vmax.f32 %v371_v19, 0.0  ;;  %v404_v39 = vmax.f32 %v372_v22, 0.0  ;;  %429 = vst.msk [vmem:[%s968_s14 + $0x40] sm:$0xff] %vm149_vm0, %v397_v35  ;;  %430 = vst.msk [vmem:[%s968_s14 + $0x48] sm:$0xff] %vm149_vm0, %v398_v54  ;;  %v373_v28 = vmul.f32 %v953_v32, %v835_v37  ;;  %v374_v31 = vmul.f32 %v953_v32, %v842_v40 }
  0xc6   : > { %431 = vst.msk [vmem:[%s968_s14 + $0x50] sm:$0xff] %vm149_vm0, %v399_v56  ;;  %432 = vst.msk [vmem:[%s968_s14 + $0x58] sm:$0xff] %vm149_vm0, %v400_v57  ;;  %v375_v34 = vmul.f32 %v953_v32, %v849_v43  ;;  %v376_v59 = vmul.f32 %v953_v32, %v856_v46  ;;  %v377_v37 = vmul.f32 %v953_v32, %v863_v49 }
  0xc7   : > { %433 = vst.msk [vmem:[%s968_s14 + $0x60] sm:$0xff] %vm149_vm0, %v401_v0  ;;  %434 = vst.msk [vmem:[%s968_s14 + $0x68] sm:$0xff] %vm149_vm0, %v402_v9  ;;  %v378_v40 = vmul.f32 %v953_v32, %v870_v52  ;;  %v379_v43 = vmul.f32 %v953_v32, %v877_v55  ;;  %v380_v46 = vmul.f32 %v953_v32, %v884_v58  ;;  %v405_v1 = vmax.f32 %v373_v28, 0.0 }
  0xc8   : > { %435 = vst.msk [vmem:[%s968_s14 + $0x70] sm:$0xff] %vm149_vm0, %v403_v25  ;;  %436 = vst.msk [vmem:[%s968_s14 + $0x78] sm:$0xff] %vm149_vm0, %v404_v39  ;;  %v406_v3 = vmax.f32 %v374_v31, 0.0  ;;  %v407_v11 = vmax.f32 %v375_v34, 0.0  ;;  %v408_v14 = vmax.f32 %v376_v59, 0.0  ;;  %v409_v15 = vmax.f32 %v377_v37, 0.0 }
  0xc9   : > { %v410_v18 = vmax.f32 %v378_v40, 0.0  ;;  %v411_v49 = vmax.f32 %v379_v43, 0.0  ;;  %v412_v20 = vmax.f32 %v380_v46, 0.0  ;;  %437 = vst.msk [vmem:[%s968_s14 + $0x80] sm:$0xff] %vm149_vm0, %v405_v1  ;;  %v381_v52 = vmul.f32 %v953_v32, %v891_v61 }
  0xca   : > { %438 = vst.msk [vmem:[%s968_s14 + $0x88] sm:$0xff] %vm149_vm0, %v406_v3  ;;  %439 = vst.msk [vmem:[%s968_s14 + $0x90] sm:$0xff] %vm149_vm0, %v407_v11  ;;  %v382_v55 = vmul.f32 %v953_v32, %v898_v4  ;;  %v383_v58 = vmul.f32 %v953_v32, %v905_v8  ;;  %v384_v23 = vmul.f32 %v953_v32, %v912_v12 }
  0xcb   : > { %440 = vst.msk [vmem:[%s968_s14 + $0x98] sm:$0xff] %vm149_vm0, %v408_v14  ;;  %441 = vst.msk [vmem:[%s968_s14 + $0xa0] sm:$0xff] %vm149_vm0, %v409_v15  ;;  %v385_v61 = vmul.f32 %v953_v32, %v919_v17  ;;  %v386_v4 = vmul.f32 %v953_v32, %v926_v21  ;;  %v387_v8 = vmul.f32 %v953_v32, %v933_v26  ;;  %v413_v13 = vmax.f32 %v381_v52, 0.0 }
  0xcc   : > { %442 = vst.msk [vmem:[%s968_s14 + $0xa8] sm:$0xff] %vm149_vm0, %v410_v18  ;;  %443 = vst.msk [vmem:[%s968_s14 + $0xb0] sm:$0xff] %vm149_vm0, %v411_v49  ;;  %v388_v12 = vmul.f32 %v953_v32, %v940_v30  ;;  %v414_v24 = vmax.f32 %v382_v55, 0.0  ;;  %v415_v29 = vmax.f32 %v383_v58, 0.0  ;;  %v416_v33 = vmax.f32 %v384_v23, 0.0 }
  0xcd   : > { %444 = vst.msk [vmem:[%s968_s14 + $0xb8] sm:$0xff] %vm149_vm0, %v412_v20  ;;  %v417_v36 = vmax.f32 %v385_v61, 0.0  ;;  %v418_v38 = vmax.f32 %v386_v4, 0.0  ;;  %v419_v17 = vmax.f32 %v387_v8, 0.0  ;;  %445 = vst.msk [vmem:[%s968_s14 + $0xc0] sm:$0xff] %vm149_vm0, %v413_v13 }
  0xce   : > { %v420_v41 = vmax.f32 %v388_v12, 0.0  ;;  %446 = vst.msk [vmem:[%s968_s14 + $0xc8] sm:$0xff] %vm149_vm0, %v414_v24  ;;  %447 = vst.msk [vmem:[%s968_s14 + $0xd0] sm:$0xff] %vm149_vm0, %v415_v29 }
  0xcf   : > { %448 = vst.msk [vmem:[%s968_s14 + $0xd8] sm:$0xff] %vm149_vm0, %v416_v33  ;;  %449 = vst.msk [vmem:[%s968_s14 + $0xe0] sm:$0xff] %vm149_vm0, %v417_v36 }
  0xd0   : > { %450 = vst.msk [vmem:[%s968_s14 + $0xe8] sm:$0xff] %vm149_vm0, %v418_v38  ;;  %451 = vst.msk [vmem:[%s968_s14 + $0xf0] sm:$0xff] %vm149_vm0, %v419_v17 }
  0xd1   : > { %452 = vst.msk [vmem:[%s968_s14 + $0xf8] sm:$0xff] %vm149_vm0, %v420_v41 }
  0xd2 PF: > { %s11_s6 = sadd.s32 1, %s537_s6  }
  0xd3   : > { %p8_p4 = scmp.ge.s32.totalorder %s11_s6, 4  }
  0xd5   :  { %10 = sbr.rel (!%p8_p4) target bundleno = 1 (0x1), region = 54 }

// kernel: generator_forward.31
= control target key start
LH: loop header
LB: loop body
LE: loop exit
PB: predicated region body
PF: predicated region fallthrough
CT: control target
= control target key end

     0   :  { %s3047_s12 = smov 0   ;;  %s3049_s13 = smov 0   ;;  %s3769_s0 = inlined_call_operand.vmem [shape: bf16[512,3200], index: 0, kind: input, shape index: {}]   ;;  %s3770_s1 = inlined_call_operand.vmem [shape: bf16[3200,128], index: 1, kind: input, shape index: {}]   ;;  %s3771_s2 = inlined_call_operand.vmem [shape: f32[1,128], index: 2, kind: input, shape index: {}]   ;;  %s3772_s3 = inlined_call_operand.vmem [shape: f32[512,128], index: 3, kind: output, shape index: {}]  }
   0x1   :  { %s3051_s14 = smov 0   ;;  %s3053_s15 = smov 0  }
   0x2   :  { %s3055_s16 = smov 0   ;;  %s3057_s17 = smov 0  }
   0x3   :  { %s3059_s18 = smov 0  }
   0x4 LB: > { %s25_s19 = sadd.s32 1, %s3016_s16  ;;  %s32_s20 = sadd.s32 1, %s3020_s17  ;;  %s3024_s18 = sphi %s3059_s18, %s13_s18   ;;  %s3020_s17 = sphi %s3057_s17, %s3824_s17   ;;  %s3016_s16 = sphi %s3055_s16, %s3823_s16   ;;  %s3012_s15 = sphi %s3053_s15, %s3822_s15   ;;  %s3008_s14 = sphi %s3051_s14, %s3821_s14   ;;  %s3004_s13 = sphi %s3049_s13, %s3820_s13   ;;  %s3000_s12 = sphi %s3047_s12, %s3819_s12  }
   0x5   : > { %p26_p0 = scmp.ge.s32.totalorder %s25_s19, 5  ;;  %p48_p1 = scmp.ne.s32.totalorder %s3004_s13, %s3000_s12 }
   0x6   : > { %p49_p2 = scmp.eq.s32.totalorder %s3024_s18, 0  ;;  %s41_s24 = sadd.s32 1, %s3004_s13 }
   0x7   : > { %s3826_s19 = smov (%p26_p0, %s25_s19), 0  ;;  %s3828_s20 = smov (!%p26_p0, %s32_s20), %s3020_s17 }
   0x8   : > { %p50_p3 = por %p49_p2, %p48_p1  ;;  %p34_p4 = scmp.ge.s32.totalorder %s3828_s20, 2 }
   0x9   : > { %s37_s21 = ssub.s32 %s3016_s16, %s3826_s19  ;;  %p2185_p6 = scmp.ge.s32.totalorder %s3024_s18, 10 }
   0xa   : > { %s3830_s20 = smov (%p34_p4, %s3828_s20), 0 }
   0xb   : > { %s36_s22 = ssub.s32 %s3020_s17, %s3830_s20  ;;  %162 = sbr.rel (%p2185_p6) target bundleno = 78 (0x4e), region = 20 }
   0xc   : > { %s38_s23 = sor.u32 %s37_s21, %s36_s22 }
   0xd   : > { %p39_p5 = scmp.eq.s32.totalorder %s38_s23, 0 }
   0xf   : > { %s3098_s25 = scalar_select %p39_p5, %s3004_s13, %s41_s24  }
  0x10   : > { %165 = sbr.rel (!%p50_p3) target bundleno = 78 (0x4e), region = 24  ;;  %s167_s26 = sand.u32 (%p50_p3), 1, %s3004_s13  }
  0x11   : > { %s171_s27 = smul.u32 (%p50_p3), 5, %s3016_s16 }
  0x12   : > { %s2694_s28 = smul.u32 (%p50_p3), 640, %s167_s26 }
  0x13   : > { %s2695_s29 = smul.u32 (%p50_p3), 800, %s3020_s17 }
  0x14   : > { %s3112_s8 = scalar_lea.vmem (%p50_p3), [#allocation3], %s2694_s28 }
  0x15   : > { %s173_s30 = sadd.s32 %s2695_s29, %s171_s27 }
  0x16   : > { %s2188_s4 = sshll.u32 %s173_s30, 2 }
  0x17   : > { %s3107_s7 = scalar_lea.vmem %s3769_s0, %s2188_s4 }
  0x18   : > { %v190_v0 = vld [vmem:[%s3107_s7] sm:$0xff]  ;;  %v192_v1 = vld [vmem:[%s3107_s7 + $0x8] sm:$0xff]  ;;  %v200_v5 = vld [vmem:[%s3107_s7 + $0xd0] sm:$0xff] }
  0x19   : > { %v194_v2 = vld [vmem:[%s3107_s7 + $0x64] sm:$0xff]  ;;  %191 = vst [vmem:[%s3112_s8] sm:$0xff] %v190_v0  ;;  %193 = vst [vmem:[%s3112_s8 + $0x8] sm:$0xff] %v192_v1  ;;  %v196_v3 = vld [vmem:[%s3107_s7 + $0x6c] sm:$0xff] }
  0x1a   : > { %195 = vst [vmem:[%s3112_s8 + $0x14] sm:$0xff] %v194_v2  ;;  %v198_v4 = vld [vmem:[%s3107_s7 + $0xc8] sm:$0xff]  ;;  %197 = vst [vmem:[%s3112_s8 + $0x1c] sm:$0xff] %v196_v3  ;;  %v204_v7 = vld [vmem:[%s3107_s7 + $0x134] sm:$0xff] }
  0x1b   : > { %199 = vst [vmem:[%s3112_s8 + $0x28] sm:$0xff] %v198_v4  ;;  %201 = vst [vmem:[%s3112_s8 + $0x30] sm:$0xff] %v200_v5  ;;  %v202_v6 = vld [vmem:[%s3107_s7 + $0x12c] sm:$0xff]  ;;  %v208_v9 = vld [vmem:[%s3107_s7 + $0x198] sm:$0xff] }
  0x1c   : > { %v206_v8 = vld [vmem:[%s3107_s7 + $0x190] sm:$0xff]  ;;  %203 = vst [vmem:[%s3112_s8 + $0x3c] sm:$0xff] %v202_v6  ;;  %205 = vst [vmem:[%s3112_s8 + $0x44] sm:$0xff] %v204_v7  ;;  %v212_v11 = vld [vmem:[%s3107_s7 + $0x1fc] sm:$0xff] }
  0x1d   : > { %207 = vst [vmem:[%s3112_s8 + $0x50] sm:$0xff] %v206_v8  ;;  %v210_v10 = vld [vmem:[%s3107_s7 + $0x1f4] sm:$0xff]  ;;  %209 = vst [vmem:[%s3112_s8 + $0x58] sm:$0xff] %v208_v9  ;;  %v216_v13 = vld [vmem:[%s3107_s7 + $0x260] sm:$0xff] }
  0x1e   : > { %211 = vst [vmem:[%s3112_s8 + $0x64] sm:$0xff] %v210_v10  ;;  %213 = vst [vmem:[%s3112_s8 + $0x6c] sm:$0xff] %v212_v11  ;;  %v214_v12 = vld [vmem:[%s3107_s7 + $0x258] sm:$0xff]  ;;  %v220_v15 = vld [vmem:[%s3107_s7 + $0x2c4] sm:$0xff] }
  0x1f   : > { %v218_v14 = vld [vmem:[%s3107_s7 + $0x2bc] sm:$0xff]  ;;  %215 = vst [vmem:[%s3112_s8 + $0x78] sm:$0xff] %v214_v12  ;;  %217 = vst [vmem:[%s3112_s8 + $0x80] sm:$0xff] %v216_v13  ;;  %v224_v17 = vld [vmem:[%s3107_s7 + $0x328] sm:$0xff] }
  0x20   : > { %219 = vst [vmem:[%s3112_s8 + $0x8c] sm:$0xff] %v218_v14  ;;  %v222_v16 = vld [vmem:[%s3107_s7 + $0x320] sm:$0xff]  ;;  %221 = vst [vmem:[%s3112_s8 + $0x94] sm:$0xff] %v220_v15  ;;  %v228_v19 = vld [vmem:[%s3107_s7 + $0x38c] sm:$0xff] }
  0x21   : > { %223 = vst [vmem:[%s3112_s8 + $0xa0] sm:$0xff] %v222_v16  ;;  %225 = vst [vmem:[%s3112_s8 + $0xa8] sm:$0xff] %v224_v17  ;;  %v226_v18 = vld [vmem:[%s3107_s7 + $0x384] sm:$0xff]  ;;  %v232_v21 = vld [vmem:[%s3107_s7 + $0x3f0] sm:$0xff] }
  0x22   : > { %v230_v20 = vld [vmem:[%s3107_s7 + $0x3e8] sm:$0xff]  ;;  %227 = vst [vmem:[%s3112_s8 + $0xb4] sm:$0xff] %v226_v18  ;;  %229 = vst [vmem:[%s3112_s8 + $0xbc] sm:$0xff] %v228_v19  ;;  %v236_v23 = vld [vmem:[%s3107_s7 + $0x454] sm:$0xff] }
  0x23   : > { %231 = vst [vmem:[%s3112_s8 + $0xc8] sm:$0xff] %v230_v20  ;;  %v234_v22 = vld [vmem:[%s3107_s7 + $0x44c] sm:$0xff]  ;;  %233 = vst [vmem:[%s3112_s8 + $0xd0] sm:$0xff] %v232_v21  ;;  %v240_v25 = vld [vmem:[%s3107_s7 + $0x4b8] sm:$0xff] }
  0x24   : > { %235 = vst [vmem:[%s3112_s8 + $0xdc] sm:$0xff] %v234_v22  ;;  %237 = vst [vmem:[%s3112_s8 + $0xe4] sm:$0xff] %v236_v23  ;;  %v238_v24 = vld [vmem:[%s3107_s7 + $0x4b0] sm:$0xff]  ;;  %v244_v27 = vld [vmem:[%s3107_s7 + $0x51c] sm:$0xff] }
  0x25   : > { %v242_v26 = vld [vmem:[%s3107_s7 + $0x514] sm:$0xff]  ;;  %239 = vst [vmem:[%s3112_s8 + $0xf0] sm:$0xff] %v238_v24  ;;  %241 = vst [vmem:[%s3112_s8 + $0xf8] sm:$0xff] %v240_v25  ;;  %v248_v29 = vld [vmem:[%s3107_s7 + $0x580] sm:$0xff] }
  0x26   : > { %243 = vst [vmem:[%s3112_s8 + $0x104] sm:$0xff] %v242_v26  ;;  %v246_v28 = vld [vmem:[%s3107_s7 + $0x578] sm:$0xff]  ;;  %245 = vst [vmem:[%s3112_s8 + $0x10c] sm:$0xff] %v244_v27  ;;  %v252_v31 = vld [vmem:[%s3107_s7 + $0x5e4] sm:$0xff] }
  0x27   : > { %247 = vst [vmem:[%s3112_s8 + $0x118] sm:$0xff] %v246_v28  ;;  %249 = vst [vmem:[%s3112_s8 + $0x120] sm:$0xff] %v248_v29  ;;  %v250_v30 = vld [vmem:[%s3107_s7 + $0x5dc] sm:$0xff]  ;;  %v256_v33 = vld [vmem:[%s3107_s7 + $0x648] sm:$0xff] }
  0x28   : > { %v254_v32 = vld [vmem:[%s3107_s7 + $0x640] sm:$0xff]  ;;  %251 = vst [vmem:[%s3112_s8 + $0x12c] sm:$0xff] %v250_v30  ;;  %253 = vst [vmem:[%s3112_s8 + $0x134] sm:$0xff] %v252_v31  ;;  %v260_v35 = vld [vmem:[%s3107_s7 + $0x6ac] sm:$0xff] }
  0x29   : > { %255 = vst [vmem:[%s3112_s8 + $0x140] sm:$0xff] %v254_v32  ;;  %v258_v34 = vld [vmem:[%s3107_s7 + $0x6a4] sm:$0xff]  ;;  %257 = vst [vmem:[%s3112_s8 + $0x148] sm:$0xff] %v256_v33  ;;  %v264_v37 = vld [vmem:[%s3107_s7 + $0x710] sm:$0xff] }
  0x2a   : > { %259 = vst [vmem:[%s3112_s8 + $0x154] sm:$0xff] %v258_v34  ;;  %261 = vst [vmem:[%s3112_s8 + $0x15c] sm:$0xff] %v260_v35  ;;  %v262_v36 = vld [vmem:[%s3107_s7 + $0x708] sm:$0xff]  ;;  %v268_v39 = vld [vmem:[%s3107_s7 + $0x774] sm:$0xff] }
  0x2b   : > { %v266_v38 = vld [vmem:[%s3107_s7 + $0x76c] sm:$0xff]  ;;  %263 = vst [vmem:[%s3112_s8 + $0x168] sm:$0xff] %v262_v36  ;;  %265 = vst [vmem:[%s3112_s8 + $0x170] sm:$0xff] %v264_v37  ;;  %v272_v41 = vld [vmem:[%s3107_s7 + $0x7d8] sm:$0xff] }
  0x2c   : > { %267 = vst [vmem:[%s3112_s8 + $0x17c] sm:$0xff] %v266_v38  ;;  %v270_v40 = vld [vmem:[%s3107_s7 + $0x7d0] sm:$0xff]  ;;  %269 = vst [vmem:[%s3112_s8 + $0x184] sm:$0xff] %v268_v39  ;;  %v276_v43 = vld [vmem:[%s3107_s7 + $0x83c] sm:$0xff] }
  0x2d   : > { %271 = vst [vmem:[%s3112_s8 + $0x190] sm:$0xff] %v270_v40  ;;  %273 = vst [vmem:[%s3112_s8 + $0x198] sm:$0xff] %v272_v41  ;;  %v274_v42 = vld [vmem:[%s3107_s7 + $0x834] sm:$0xff]  ;;  %v280_v45 = vld [vmem:[%s3107_s7 + $0x8a0] sm:$0xff] }
  0x2e   : > { %v278_v44 = vld [vmem:[%s3107_s7 + $0x898] sm:$0xff]  ;;  %275 = vst [vmem:[%s3112_s8 + $0x1a4] sm:$0xff] %v274_v42  ;;  %277 = vst [vmem:[%s3112_s8 + $0x1ac] sm:$0xff] %v276_v43  ;;  %v284_v47 = vld [vmem:[%s3107_s7 + $0x904] sm:$0xff] }
  0x2f   : > { %279 = vst [vmem:[%s3112_s8 + $0x1b8] sm:$0xff] %v278_v44  ;;  %v282_v46 = vld [vmem:[%s3107_s7 + $0x8fc] sm:$0xff]  ;;  %281 = vst [vmem:[%s3112_s8 + $0x1c0] sm:$0xff] %v280_v45  ;;  %v288_v49 = vld [vmem:[%s3107_s7 + $0x968] sm:$0xff] }
  0x30   : > { %283 = vst [vmem:[%s3112_s8 + $0x1cc] sm:$0xff] %v282_v46  ;;  %285 = vst [vmem:[%s3112_s8 + $0x1d4] sm:$0xff] %v284_v47  ;;  %v286_v48 = vld [vmem:[%s3107_s7 + $0x960] sm:$0xff]  ;;  %v292_v51 = vld [vmem:[%s3107_s7 + $0x9cc] sm:$0xff] }
  0x31   : > { %v290_v50 = vld [vmem:[%s3107_s7 + $0x9c4] sm:$0xff]  ;;  %287 = vst [vmem:[%s3112_s8 + $0x1e0] sm:$0xff] %v286_v48  ;;  %289 = vst [vmem:[%s3112_s8 + $0x1e8] sm:$0xff] %v288_v49  ;;  %v296_v53 = vld [vmem:[%s3107_s7 + $0xa30] sm:$0xff] }
  0x32   : > { %291 = vst [vmem:[%s3112_s8 + $0x1f4] sm:$0xff] %v290_v50  ;;  %v294_v52 = vld [vmem:[%s3107_s7 + $0xa28] sm:$0xff]  ;;  %293 = vst [vmem:[%s3112_s8 + $0x1fc] sm:$0xff] %v292_v51  ;;  %v300_v55 = vld [vmem:[%s3107_s7 + $0xa94] sm:$0xff] }
  0x33   : > { %295 = vst [vmem:[%s3112_s8 + $0x208] sm:$0xff] %v294_v52  ;;  %297 = vst [vmem:[%s3112_s8 + $0x210] sm:$0xff] %v296_v53  ;;  %v298_v54 = vld [vmem:[%s3107_s7 + $0xa8c] sm:$0xff]  ;;  %v304_v57 = vld [vmem:[%s3107_s7 + $0xaf8] sm:$0xff] }
  0x34   : > { %v302_v56 = vld [vmem:[%s3107_s7 + $0xaf0] sm:$0xff]  ;;  %299 = vst [vmem:[%s3112_s8 + $0x21c] sm:$0xff] %v298_v54  ;;  %301 = vst [vmem:[%s3112_s8 + $0x224] sm:$0xff] %v300_v55  ;;  %v308_v59 = vld [vmem:[%s3107_s7 + $0xb5c] sm:$0xff] }
  0x35   : > { %303 = vst [vmem:[%s3112_s8 + $0x230] sm:$0xff] %v302_v56  ;;  %v306_v58 = vld [vmem:[%s3107_s7 + $0xb54] sm:$0xff]  ;;  %305 = vst [vmem:[%s3112_s8 + $0x238] sm:$0xff] %v304_v57  ;;  %v312_v61 = vld [vmem:[%s3107_s7 + $0xbc0] sm:$0xff] }
  0x36   : > { %307 = vst [vmem:[%s3112_s8 + $0x244] sm:$0xff] %v306_v58  ;;  %309 = vst [vmem:[%s3112_s8 + $0x24c] sm:$0xff] %v308_v59  ;;  %v310_v60 = vld [vmem:[%s3107_s7 + $0xbb8] sm:$0xff]  ;;  %v316_v63 = vld [vmem:[%s3107_s7 + $0xc24] sm:$0xff] }
  0x37   : > { %v314_v62 = vld [vmem:[%s3107_s7 + $0xc1c] sm:$0xff]  ;;  %311 = vst [vmem:[%s3112_s8 + $0x258] sm:$0xff] %v310_v60  ;;  %313 = vst [vmem:[%s3112_s8 + $0x260] sm:$0xff] %v312_v61  ;;  %v2189_v0 = vld [vmem:[%s3107_s7 + $0x10] sm:$0xf] }
  0x38   : > { %315 = vst [vmem:[%s3112_s8 + $0x26c] sm:$0xff] %v314_v62  ;;  %v2191_v1 = vld [vmem:[%s3107_s7 + $0x74] sm:$0xf]  ;;  %317 = vst [vmem:[%s3112_s8 + $0x274] sm:$0xff] %v316_v63  ;;  %v2193_v2 = vld [vmem:[%s3107_s7 + $0xd8] sm:$0xf] }
  0x39   : > { %2190 = vst [vmem:[%s3112_s8 + $0x10] sm:$0xf] %v2189_v0  ;;  %2192 = vst [vmem:[%s3112_s8 + $0x24] sm:$0xf] %v2191_v1  ;;  %v2195_v3 = vld [vmem:[%s3107_s7 + $0x13c] sm:$0xf] }
  0x3a   : > { %v2197_v4 = vld [vmem:[%s3107_s7 + $0x1a0] sm:$0xf]  ;;  %2194 = vst [vmem:[%s3112_s8 + $0x38] sm:$0xf] %v2193_v2  ;;  %2196 = vst [vmem:[%s3112_s8 + $0x4c] sm:$0xf] %v2195_v3 }
  0x3b   : > { %2198 = vst [vmem:[%s3112_s8 + $0x60] sm:$0xf] %v2197_v4  ;;  %v2199_v5 = vld [vmem:[%s3107_s7 + $0x204] sm:$0xf]  ;;  %v2201_v6 = vld [vmem:[%s3107_s7 + $0x268] sm:$0xf] }
  0x3c   : > { %v2203_v7 = vld [vmem:[%s3107_s7 + $0x2cc] sm:$0xf]  ;;  %2200 = vst [vmem:[%s3112_s8 + $0x74] sm:$0xf] %v2199_v5  ;;  %2202 = vst [vmem:[%s3112_s8 + $0x88] sm:$0xf] %v2201_v6 }
  0x3d   : > { %2204 = vst [vmem:[%s3112_s8 + $0x9c] sm:$0xf] %v2203_v7  ;;  %v2205_v8 = vld [vmem:[%s3107_s7 + $0x330] sm:$0xf]  ;;  %v2207_v9 = vld [vmem:[%s3107_s7 + $0x394] sm:$0xf] }
  0x3e   : > { %v2209_v10 = vld [vmem:[%s3107_s7 + $0x3f8] sm:$0xf]  ;;  %2206 = vst [vmem:[%s3112_s8 + $0xb0] sm:$0xf] %v2205_v8  ;;  %2208 = vst [vmem:[%s3112_s8 + $0xc4] sm:$0xf] %v2207_v9 }
  0x3f   : > { %2210 = vst [vmem:[%s3112_s8 + $0xd8] sm:$0xf] %v2209_v10  ;;  %v2211_v11 = vld [vmem:[%s3107_s7 + $0x45c] sm:$0xf]  ;;  %v2213_v12 = vld [vmem:[%s3107_s7 + $0x4c0] sm:$0xf] }
  0x40   : > { %v2215_v13 = vld [vmem:[%s3107_s7 + $0x524] sm:$0xf]  ;;  %2212 = vst [vmem:[%s3112_s8 + $0xec] sm:$0xf] %v2211_v11  ;;  %2214 = vst [vmem:[%s3112_s8 + $0x100] sm:$0xf] %v2213_v12 }
  0x41   : > { %2216 = vst [vmem:[%s3112_s8 + $0x114] sm:$0xf] %v2215_v13  ;;  %v2217_v14 = vld [vmem:[%s3107_s7 + $0x588] sm:$0xf]  ;;  %v2219_v15 = vld [vmem:[%s3107_s7 + $0x5ec] sm:$0xf] }
  0x42   : > { %v2221_v16 = vld [vmem:[%s3107_s7 + $0x650] sm:$0xf]  ;;  %2218 = vst [vmem:[%s3112_s8 + $0x128] sm:$0xf] %v2217_v14  ;;  %2220 = vst [vmem:[%s3112_s8 + $0x13c] sm:$0xf] %v2219_v15 }
  0x43   : > { %2222 = vst [vmem:[%s3112_s8 + $0x150] sm:$0xf] %v2221_v16  ;;  %v2223_v17 = vld [vmem:[%s3107_s7 + $0x6b4] sm:$0xf]  ;;  %v2225_v18 = vld [vmem:[%s3107_s7 + $0x718] sm:$0xf] }
  0x44   : > { %v2227_v19 = vld [vmem:[%s3107_s7 + $0x77c] sm:$0xf]  ;;  %2224 = vst [vmem:[%s3112_s8 + $0x164] sm:$0xf] %v2223_v17  ;;  %2226 = vst [vmem:[%s3112_s8 + $0x178] sm:$0xf] %v2225_v18 }
  0x45   : > { %2228 = vst [vmem:[%s3112_s8 + $0x18c] sm:$0xf] %v2227_v19  ;;  %v2229_v20 = vld [vmem:[%s3107_s7 + $0x7e0] sm:$0xf]  ;;  %v2231_v21 = vld [vmem:[%s3107_s7 + $0x844] sm:$0xf] }
  0x46   : > { %v2233_v22 = vld [vmem:[%s3107_s7 + $0x8a8] sm:$0xf]  ;;  %2230 = vst [vmem:[%s3112_s8 + $0x1a0] sm:$0xf] %v2229_v20  ;;  %2232 = vst [vmem:[%s3112_s8 + $0x1b4] sm:$0xf] %v2231_v21 }
  0x47   : > { %2234 = vst [vmem:[%s3112_s8 + $0x1c8] sm:$0xf] %v2233_v22  ;;  %v2235_v23 = vld [vmem:[%s3107_s7 + $0x90c] sm:$0xf]  ;;  %v2237_v24 = vld [vmem:[%s3107_s7 + $0x970] sm:$0xf] }
  0x48   : > { %v2239_v25 = vld [vmem:[%s3107_s7 + $0x9d4] sm:$0xf]  ;;  %2236 = vst [vmem:[%s3112_s8 + $0x1dc] sm:$0xf] %v2235_v23  ;;  %2238 = vst [vmem:[%s3112_s8 + $0x1f0] sm:$0xf] %v2237_v24 }
  0x49   : > { %2240 = vst [vmem:[%s3112_s8 + $0x204] sm:$0xf] %v2239_v25  ;;  %v2241_v26 = vld [vmem:[%s3107_s7 + $0xa38] sm:$0xf]  ;;  %v2243_v27 = vld [vmem:[%s3107_s7 + $0xa9c] sm:$0xf] }
  0x4a   : > { %v2245_v28 = vld [vmem:[%s3107_s7 + $0xb00] sm:$0xf]  ;;  %2242 = vst [vmem:[%s3112_s8 + $0x218] sm:$0xf] %v2241_v26  ;;  %2244 = vst [vmem:[%s3112_s8 + $0x22c] sm:$0xf] %v2243_v27 }
  0x4b   : > { %2246 = vst [vmem:[%s3112_s8 + $0x240] sm:$0xf] %v2245_v28  ;;  %v2247_v29 = vld [vmem:[%s3107_s7 + $0xb64] sm:$0xf]  ;;  %v2249_v30 = vld [vmem:[%s3107_s7 + $0xbc8] sm:$0xf] }
  0x4c   : > { %v2251_v31 = vld [vmem:[%s3107_s7 + $0xc2c] sm:$0xf]  ;;  %2248 = vst [vmem:[%s3112_s8 + $0x254] sm:$0xf] %v2247_v29  ;;  %2250 = vst [vmem:[%s3112_s8 + $0x268] sm:$0xf] %v2249_v30 }
  0x4d   : > { %2252 = vst [vmem:[%s3112_s8 + $0x27c] sm:$0xf] %v2251_v31 }
  0x4e PF: > { %p2253_p7 = scmp.ge.s32.totalorder %s3024_s18, 1  ;;  %p406_p8 = scmp.lt.s32.totalorder %s3024_s18, 11 }
  0x50   : > { %p407_p9 = pnand %p2253_p7, %p406_p8 }
  0x52   : > { %410 = sbr.rel (%p407_p9) target bundleno = 558 (0x22e), region = 54 }
  0x57   : > { %s413_s9 = sand.u32 1, %s3000_s12   ;;  %s452_s10 = smul.u32 80, %s3008_s14 }
  0x58   : > { %s2696_s11 = smul.u32 640, %s413_s9  ;;  %s2255_s21 = sshll.u32 %s3012_s15, 5 }
  0x59   : > { %p453_p10 = scmp.lt.s32.totalorder %s452_s10, 399  ;;  %p465_p11 = scmp.lt.s32.totalorder %s2255_s21, 63 }
  0x5a   : > { %s3318_s12 = scalar_lea.vmem [#allocation3], %s2696_s11  ;;  %p2257_p12 = scmp.ne.s32.totalorder %s3008_s14, 0 }
  0x5b   : > { %s3832_s10 = smov (!%p453_p10, %s452_s10), 399  ;;  %s3834_s21 = smov (!%p465_p11, %s2255_s21), 63 }
  0x5c   : > { %s2254_s22 = sshll.u32 %s3832_s10, 2  ;;  %s2256_s27 = sshll.u32 %s3834_s21, 3 }
  0x5d   : > { %s3311_s26 = scalar_lea.vmem %s3770_s1, %s2254_s22  ;;  %s3316_s30 = scalar_lea.vmem %s3772_s3, %s2256_s27 }
  0x5e   : > { %477 = sbr.rel (%p2257_p12) target bundleno = 116 (0x74), region = 62 }
  0x63   : > { %v3026_v32 = vmov 0.0  }
  0x64   : > { %478 = vst [vmem:[#allocation2 + $0xb0] sm:$0xff] %v3026_v32  ;;  %479 = vst [vmem:[#allocation2] sm:$0xff] %v3026_v32 }
  0x65   : > { %480 = vst [vmem:[#allocation2 + $0xd8] sm:$0xff] %v3026_v32  ;;  %481 = vst [vmem:[#allocation2 + $0x18] sm:$0xff] %v3026_v32 }
  0x66   : > { %482 = vst [vmem:[#allocation2 + $0x50] sm:$0xff] %v3026_v32  ;;  %483 = vst [vmem:[#allocation2 + $0x68] sm:$0xff] %v3026_v32 }
  0x67   : > { %484 = vst [vmem:[#allocation2 + $0x30] sm:$0xff] %v3026_v32  ;;  %485 = vst [vmem:[#allocation2 + $0x48] sm:$0xff] %v3026_v32 }
  0x68   : > { %486 = vst [vmem:[#allocation2 + $0x80] sm:$0xff] %v3026_v32  ;;  %487 = vst [vmem:[#allocation2 + $0x88] sm:$0xff] %v3026_v32 }
  0x69   : > { %488 = vst [vmem:[#allocation2 + $0xe8] sm:$0xff] %v3026_v32  ;;  %489 = vst [vmem:[#allocation2 + $0xb8] sm:$0xff] %v3026_v32 }
  0x6a   : > { %490 = vst [vmem:[#allocation2 + $0x60] sm:$0xff] %v3026_v32  ;;  %491 = vst [vmem:[#allocation2 + $0xf0] sm:$0xff] %v3026_v32 }
  0x6b   : > { %492 = vst [vmem:[#allocation2 + $0x8] sm:$0xff] %v3026_v32  ;;  %493 = vst [vmem:[#allocation2 + $0x78] sm:$0xff] %v3026_v32 }
  0x6c   : > { %494 = vst [vmem:[#allocation2 + $0x38] sm:$0xff] %v3026_v32  ;;  %495 = vst [vmem:[#allocation2 + $0x58] sm:$0xff] %v3026_v32 }
  0x6d   : > { %496 = vst [vmem:[#allocation2 + $0x40] sm:$0xff] %v3026_v32  ;;  %497 = vst [vmem:[#allocation2 + $0xc8] sm:$0xff] %v3026_v32 }
  0x6e   : > { %498 = vst [vmem:[#allocation2 + $0xe0] sm:$0xff] %v3026_v32  ;;  %499 = vst [vmem:[#allocation2 + $0x90] sm:$0xff] %v3026_v32 }
  0x6f   : > { %500 = vst [vmem:[#allocation2 + $0x70] sm:$0xff] %v3026_v32  ;;  %501 = vst [vmem:[#allocation2 + $0xc0] sm:$0xff] %v3026_v32 }
  0x70   : > { %502 = vst [vmem:[#allocation2 + $0xa8] sm:$0xff] %v3026_v32  ;;  %503 = vst [vmem:[#allocation2 + $0xd0] sm:$0xff] %v3026_v32 }
  0x71   : > { %504 = vst [vmem:[#allocation2 + $0x10] sm:$0xff] %v3026_v32  ;;  %505 = vst [vmem:[#allocation2 + $0x28] sm:$0xff] %v3026_v32 }
  0x72   : > { %506 = vst [vmem:[#allocation2 + $0xa0] sm:$0xff] %v3026_v32  ;;  %507 = vst [vmem:[#allocation2 + $0xf8] sm:$0xff] %v3026_v32 }
  0x73   : > { %508 = vst [vmem:[#allocation2 + $0x20] sm:$0xff] %v3026_v32  ;;  %509 = vst [vmem:[#allocation2 + $0x98] sm:$0xff] %v3026_v32 }
  0x74 PF: > { %v2754_v33 = vld [vmem:[%s3311_s26 + $0x78] sm:$0xff]   ;;  %v2756_v35 = vld [vmem:[%s3311_s26 + $0x70] sm:$0xff]   ;;  %v2758_v37 = vld [vmem:[%s3311_s26 + $0x68] sm:$0xff]   ;;  %p2378_p13 = scmp.ne.s32.totalorder %s3008_s14, 4 }
  0x75   : > { %v2755_v34 = vld [vmem:[%s3311_s26 + $0x38] sm:$0xff]   ;;  %2382 = vmatprep.subr.bf16.mxu0 %v2754_v33  ;;  %2678 = vmatprep.subr.bf16.mxu1 %v2754_v33  ;;  %v2757_v36 = vld [vmem:[%s3311_s26 + $0x30] sm:$0xff]   ;;  %v2759_v38 = vld [vmem:[%s3311_s26 + $0x28] sm:$0xff]  }
  0x76   : > { %2383 = vmatpush3.bf16.msra.mxu0 %v2755_v34  ;;  %2686 = vmatpush3.bf16.msra.mxu1 %v2755_v34  ;;  %v2760_v39 = vld [vmem:[%s3311_s26 + $0x60] sm:$0xff]   ;;  %v2762_v41 = vld [vmem:[%s3311_s26 + $0x58] sm:$0xff]   ;;  %v2764_v43 = vld [vmem:[%s3311_s26 + $0x50] sm:$0xff]  }
  0x77   : > { %2384 = vmatprep.subr.bf16.mxu0 %v2756_v35  ;;  %2679 = vmatprep.subr.bf16.mxu1 %v2756_v35  ;;  %v2761_v40 = vld [vmem:[%s3311_s26 + $0x20] sm:$0xff]   ;;  %v2763_v42 = vld [vmem:[%s3311_s26 + $0x18] sm:$0xff]   ;;  %v2765_v46 = vld [vmem:[%s3311_s26 + $0x10] sm:$0xff]  }
  0x78   : > { %v2772_v44 = vld [vmem:[%s3318_s12 + $0x4] ss:$20 sps:$4 sm:$0xff]   ;;  %v2766_v47 = vld [vmem:[%s3311_s26 + $0x48] sm:$0xff]   ;;  %v2770_v53 = vld [vmem:[%s3318_s12] ss:$20 sps:$4 sm:$0xff]  }
  0x79   : > { %v2775_v45 = vld [vmem:[%s3318_s12 + $0x1e4] ss:$20 sps:$4 sm:$0xff]   ;;  %1406 = vmatprep.mubr.bf16.mxu0 %v2772_v44  ;;  %v2767_v48 = vld [vmem:[%s3311_s26 + $0x8] sm:$0xff]   ;;  %v2773_v54 = vld [vmem:[%s3318_s12 + $0x1e0] ss:$20 sps:$4 sm:$0xff]  }
  0x7a   : > { %2385 = vmatpush3.bf16.msra.mxu0 %v2757_v36  ;;  %2687 = vmatpush3.bf16.msra.mxu1 %v2757_v36  ;;  %v2768_v49 = vld [vmem:[%s3311_s26 + $0x40] sm:$0xff]   ;;  %v2776_v51 = vld [vmem:[%s3311_s26 + $0xf8] sm:$0xff]   ;;  %v2778_v56 = vld [vmem:[%s3311_s26 + $0xf0] sm:$0xff]  }
  0x7b   : > { %2386 = vmatprep.subr.bf16.mxu0 %v2758_v37  ;;  %2680 = vmatprep.subr.bf16.mxu1 %v2758_v37  ;;  %v2769_v50 = vld [vmem:[%s3311_s26] sm:$0xff]   ;;  %v2779_v52 = vld [vmem:[%s3311_s26 + $0x138] sm:$0xff]   ;;  %v2798_v59 = vld [vmem:[%s3311_s26 + $0x130] sm:$0xff]  }
  0x7c   : > { %1502 = vmatprep.mubr.bf16.mxu1 %v2775_v45  ;;  %v2777_v55 = vld [vmem:[%s3311_s26 + $0xb8] sm:$0xff]   ;;  %v2781_v57 = vld [vmem:[%s3318_s12 + $0x2c] ss:$20 sps:$4 sm:$0xff]   ;;  %v2780_v60 = vld [vmem:[%s3311_s26 + $0xb0] sm:$0xff]  }
  0x7d   : > { %v2783_v58 = vld [vmem:[%s3318_s12 + $0x20c] ss:$20 sps:$4 sm:$0xff]   ;;  %v2785_v61 = vld [vmem:[%s3318_s12 + $0x28] ss:$20 sps:$4 sm:$0xff]   ;;  %v2795_v6 = vld [vmem:[%s3318_s12 + $0x50] ss:$20 sps:$4 sm:$0xff]  }
  0x7e   : > { %2387 = vmatpush3.bf16.msra.mxu0 %v2759_v38  ;;  %2688 = vmatpush3.bf16.msra.mxu1 %v2759_v38  ;;  %v2787_v62 = vld [vmem:[%s3311_s26 + $0xe8] sm:$0xff]   ;;  %v2789_v2 = vld [vmem:[%s3311_s26 + $0xe0] sm:$0xff]   ;;  %v2797_v5 = vld [vmem:[%s3311_s26 + $0xd8] sm:$0xff]  }
  0x7f   : > { %2388 = vmatprep.subr.bf16.mxu0 %v2760_v39  ;;  %2681 = vmatprep.subr.bf16.mxu1 %v2760_v39  ;;  %v2786_v63 = vld [vmem:[%s3318_s12 + $0x208] ss:$20 sps:$4 sm:$0xff]   ;;  %v2790_v4 = vld [vmem:[%s3311_s26 + $0xa0] sm:$0xff]   ;;  %v2800_v10 = vld [vmem:[%s3311_s26 + $0xd0] sm:$0xff]  }
  0x80   : > { %v2788_v0 = vld [vmem:[%s3311_s26 + $0xa8] sm:$0xff]   ;;  %v2796_v8 = vld [vmem:[%s3318_s12 + $0x230] ss:$20 sps:$4 sm:$0xff]   ;;  %v2799_v9 = vld [vmem:[%s3311_s26 + $0x98] sm:$0xff]  }
  0x81   : > { %v2791_v1 = vld [vmem:[%s3318_s12 + $0x54] ss:$20 sps:$4 sm:$0xff]   ;;  %v2802_v11 = vld [vmem:[%s3318_s12 + $0x7c] ss:$20 sps:$4 sm:$0xff]   ;;  %v2825_v14 = vld [vmem:[%s3311_s26 + $0x120] sm:$0xff]  }
  0x82   : > { %2389 = vmatpush3.bf16.msra.mxu0 %v2761_v40  ;;  %2689 = vmatpush3.bf16.msra.mxu1 %v2761_v40  ;;  %v2793_v3 = vld [vmem:[%s3318_s12 + $0x234] ss:$20 sps:$4 sm:$0xff]   ;;  %v2804_v12 = vld [vmem:[%s3318_s12 + $0x25c] ss:$20 sps:$4 sm:$0xff]   ;;  %v2806_v15 = vld [vmem:[%s3318_s12 + $0x78] ss:$20 sps:$4 sm:$0xff]  }
  0x83   : > { %2390 = vmatprep.subr.bf16.mxu0 %v2762_v41  ;;  %2682 = vmatprep.subr.bf16.mxu1 %v2762_v41  ;;  %v2811_v7 = vld [vmem:[%s3311_s26 + $0x128] sm:$0xff]   ;;  %v2801_v13 = vld [vmem:[%s3311_s26 + $0x90] sm:$0xff]   ;;  %v2810_v19 = vld [vmem:[%s3311_s26 + $0xc0] sm:$0xff]  }
  0x84   : > { %v2807_v16 = vld [vmem:[%s3318_s12 + $0x258] ss:$20 sps:$4 sm:$0xff]   ;;  %v2812_v23 = vld [vmem:[%s3311_s26 + $0x80] sm:$0xff]   ;;  %v2815_v24 = vld [vmem:[%s3318_s12 + $0x8] ss:$20 sps:$4 sm:$0xff]  }
  0x85   : > { %v2808_v17 = vld [vmem:[%s3311_s26 + $0xc8] sm:$0xff]   ;;  %v2813_v20 = vld [vmem:[%s3318_s12 + $0xa4] ss:$20 sps:$4 sm:$0xff]   ;;  %v2818_v25 = vld [vmem:[%s3318_s12 + $0xa0] ss:$20 sps:$4 sm:$0xff]  }
  0x86   : > { %2391 = vmatpush3.bf16.msra.mxu0 %v2763_v42  ;;  %2690 = vmatpush3.bf16.msra.mxu1 %v2763_v42  ;;  %v2809_v18 = vld [vmem:[%s3311_s26 + $0x88] sm:$0xff]   ;;  %v2832_v21 = vld [vmem:[%s3311_s26 + $0x118] sm:$0xff]   ;;  %v2845_v26 = vld [vmem:[%s3311_s26 + $0x110] sm:$0xff]  }
  0x87   : > { %2392 = vmatprep.subr.bf16.mxu0 %v2764_v43  ;;  %2683 = vmatprep.subr.bf16.mxu1 %v2764_v43  ;;  %v2817_v22 = vld [vmem:[%s3318_s12 + $0xc] ss:$20 sps:$4 sm:$0xff]   ;;  %v2821_v28 = vld [vmem:[%s3318_s12 + $0x34] ss:$20 sps:$4 sm:$0xff]   ;;  %v2824_v31 = vld [vmem:[%s3318_s12 + $0x30] ss:$20 sps:$4 sm:$0xff]  }
  0x88   : > { %v2819_v27 = vld [vmem:[%s3318_s12 + $0xcc] ss:$20 sps:$4 sm:$0xff]   ;;  %v2823_v30 = vld [vmem:[%s3318_s12 + $0xc8] ss:$20 sps:$4 sm:$0xff]   ;;  %v2830_v35 = vld [vmem:[%s3318_s12 + $0xf0] ss:$20 sps:$4 sm:$0xff]  }
  0x89   : > { %v2852_v29 = vld [vmem:[%s3311_s26 + $0x108] sm:$0xff]   ;;  %v2828_v33 = vld [vmem:[%s3318_s12 + $0x5c] ss:$20 sps:$4 sm:$0xff]   ;;  %v2865_v34 = vld [vmem:[%s3311_s26 + $0x100] sm:$0xff]  }
  0x8a   : > { %2393 = vmatpush3.bf16.msra.mxu0 %v2765_v46  ;;  %2691 = vmatpush3.bf16.msra.mxu1 %v2765_v46  ;;  %v2826_v32 = vld [vmem:[%s3318_s12 + $0xf4] ss:$20 sps:$4 sm:$0xff]   ;;  %v2831_v36 = vld [vmem:[%s3318_s12 + $0x58] ss:$20 sps:$4 sm:$0xff]   ;;  %v2833_v37 = vld [vmem:[%s3318_s12 + $0x11c] ss:$20 sps:$4 sm:$0xff]  }
  0x8b   : > { %2394 = vmatprep.subr.bf16.mxu0 %v2766_v47  ;;  %2684 = vmatprep.subr.bf16.mxu1 %v2766_v47  ;;  %v2835_v38 = vld [vmem:[%s3318_s12 + $0x84] ss:$20 sps:$4 sm:$0xff]   ;;  %v2838_v40 = vld [vmem:[%s3318_s12 + $0x80] ss:$20 sps:$4 sm:$0xff]   ;;  %v2844_v44 = vld [vmem:[%s3318_s12 + $0xa8] ss:$20 sps:$4 sm:$0xff]  }
  0x8c   : > { %v2837_v39 = vld [vmem:[%s3318_s12 + $0x118] ss:$20 sps:$4 sm:$0xff]   ;;  %v2843_v43 = vld [vmem:[%s3318_s12 + $0x140] ss:$20 sps:$4 sm:$0xff]   ;;  %v2850_v47 = vld [vmem:[%s3318_s12 + $0x168] ss:$20 sps:$4 sm:$0xff]  }
  0x8d   : > { %v2839_v41 = vld [vmem:[%s3318_s12 + $0x144] ss:$20 sps:$4 sm:$0xff]   ;;  %v2841_v42 = vld [vmem:[%s3318_s12 + $0xac] ss:$20 sps:$4 sm:$0xff]   ;;  %v2848_v46 = vld [vmem:[%s3318_s12 + $0xd4] ss:$20 sps:$4 sm:$0xff]  }
  0x8e   : > { %2395 = vmatpush3.bf16.msra.mxu0 %v2767_v48  ;;  %2692 = vmatpush3.bf16.msra.mxu1 %v2767_v48  ;;  %v2846_v45 = vld [vmem:[%s3318_s12 + $0x16c] ss:$20 sps:$4 sm:$0xff]   ;;  %v2851_v48 = vld [vmem:[%s3318_s12 + $0xd0] ss:$20 sps:$4 sm:$0xff]  }
  0x8f   : > { %2396 = vmatprep.subr.bf16.mxu0 %v2768_v49  ;;  %2685 = vmatprep.subr.bf16.mxu1 %v2768_v49  ;;  %v2853_v49 = vld [vmem:[%s3318_s12 + $0x194] ss:$20 sps:$4 sm:$0xff]  }
  0x92   : > { %2397 = vmatpush3.bf16.msra.mxu0 %v2769_v50  ;;  %2693 = vmatpush3.bf16.msra.mxu1 %v2769_v50  ;;  %v2855_v50 = vld [vmem:[%s3318_s12 + $0xfc] ss:$20 sps:$4 sm:$0xff]  }
  0x93   : > { %2494 = vmatprep.subr.bf16.mxu1 %v2776_v51  ;;  %2630 = vmatprep.subr.bf16.mxu0 %v2779_v52  ;;  %v2857_v51 = vld [vmem:[%s3318_s12 + $0x190] ss:$20 sps:$4 sm:$0xff]  }
  0x95   : > { %1407 = vmatmul.mubr.bf16.vlgmr.msra.gmra.mxu0 %v2770_v53  ;;  %1503 = vmatmul.mubr.bf16.vlgmr.msra.gmra.mxu1 %v2773_v54  ;;  %v2859_v53 = vld [vmem:[%s3318_s12 + $0x1bc] ss:$20 sps:$4 sm:$0xff]   ;;  %v2861_v54 = vld [vmem:[%s3318_s12 + $0x124] ss:$20 sps:$4 sm:$0xff]  }
  0x96   : > { %2495 = vmatpush3.bf16.msra.mxu1 %v2777_v55  ;;  %2631 = vmatpush3.bf16.msra.mxu0 %v2779_v52  ;;  %v2858_v52 = vld [vmem:[%s3318_s12 + $0xf8] ss:$20 sps:$4 sm:$0xff]  }
  0x97   : > { %2496 = vmatprep.subr.bf16.mxu1 %v2778_v56  ;;  %1414 = vmatprep.mubr.bf16.mxu0 %v2781_v57  ;;  %v2863_v55 = vld [vmem:[%s3318_s12 + $0x1b8] ss:$20 sps:$4 sm:$0xff]   ;;  %v2864_v56 = vld [vmem:[%s3318_s12 + $0x120] ss:$20 sps:$4 sm:$0xff]  }
  0x98   : > { %1510 = vmatprep.mubr.bf16.mxu1 %v2783_v58  ;;  %2632 = vmatprep.subr.bf16.mxu0 %v2798_v59  ;;  %v2866_v57 = vld [vmem:[%s3318_s12 + $0x14c] ss:$20 sps:$4 sm:$0xff]   ;;  %v2868_v58 = vld [vmem:[%s3318_s12 + $0x10] ss:$20 sps:$4 sm:$0xff]  }
  0x9a   : > { %2497 = vmatpush3.bf16.msra.mxu1 %v2780_v60  ;;  %2633 = vmatpush3.bf16.msra.mxu0 %v2798_v59  ;;  %v2869_v59 = vld [vmem:[%s3318_s12 + $0x148] ss:$20 sps:$4 sm:$0xff]   ;;  %v2870_v60 = vld [vmem:[%s3318_s12 + $0x38] ss:$20 sps:$4 sm:$0xff]  }
  0x9b   : > { %2498 = vmatprep.subr.bf16.mxu1 %v2787_v62  ;;  %2634 = vmatprep.subr.bf16.mxu0 %v2811_v7  ;;  %v2873_v62 = vld [vmem:[%s3318_s12 + $0x60] ss:$20 sps:$4 sm:$0xff]  }
  0x9d   : > { %1415 = vmatmul.mubr.bf16.gmra.mxu0 %v2785_v61  ;;  %1511 = vmatmul.mubr.bf16.gmra.mxu1 %v2786_v63  ;;  %v2871_v61 = vld [vmem:[%s3318_s12 + $0x174] ss:$20 sps:$4 sm:$0xff]   ;;  %v2874_v63 = vld [vmem:[%s3318_s12 + $0x170] ss:$20 sps:$4 sm:$0xff]  }
  0x9e   : > { %2499 = vmatpush3.bf16.msra.mxu1 %v2788_v0  ;;  %1422 = vmatprep.mubr.bf16.mxu0 %v2791_v1  ;;  %v2875_v0 = vld [vmem:[%s3318_s12 + $0x88] ss:$20 sps:$4 sm:$0xff]  }
  0x9f   : > { %2500 = vmatprep.subr.bf16.mxu1 %v2789_v2  ;;  %1518 = vmatprep.mubr.bf16.mxu1 %v2793_v3  ;;  %v2876_v1 = vld [vmem:[%s3318_s12 + $0x19c] ss:$20 sps:$4 sm:$0xff]   ;;  %v2879_v3 = vld [vmem:[%s3318_s12 + $0x198] ss:$20 sps:$4 sm:$0xff]  }
  0xa0   : > { %2635 = vmatpush3.bf16.msra.mxu0 %v2811_v7  ;;  %v2878_v2 = vld [vmem:[%s3318_s12 + $0xb0] ss:$20 sps:$4 sm:$0xff]   ;;  %v2884_v7 = vld [vmem:[%s3318_s12 + $0x1c0] ss:$20 sps:$4 sm:$0xff]  }
  0xa1   : > { %2636 = vmatprep.subr.bf16.mxu0 %v2825_v14 }
  0xa2   : > { %2501 = vmatpush3.bf16.msra.mxu1 %v2790_v4  ;;  %v2880_v4 = vld [vmem:[%s3318_s12 + $0xd8] ss:$20 sps:$4 sm:$0xff]  }
  0xa3   : > { %2502 = vmatprep.subr.bf16.mxu1 %v2797_v5  ;;  %v2881_v5 = vld [vmem:[%s3318_s12 + $0x1c4] ss:$20 sps:$4 sm:$0xff]  }
  0xa4   : > { %2637 = vmatpush3.bf16.msra.mxu0 %v2825_v14  ;;  %v2893_v14 = vld [vmem:[%s3318_s12 + $0x1a0] ss:$20 sps:$4 sm:$0xff]  }
  0xa5   : > { %1423 = vmatmul.mubr.bf16.gmra.mxu0 %v2795_v6  ;;  %1519 = vmatmul.mubr.bf16.gmra.mxu1 %v2796_v8  ;;  %v2883_v6 = vld [vmem:[%s3318_s12 + $0x100] ss:$20 sps:$4 sm:$0xff]   ;;  %v2885_v8 = vld [vmem:[%s3318_s12 + $0x128] ss:$20 sps:$4 sm:$0xff]  }
  0xa6   : > { %2503 = vmatpush3.bf16.msra.mxu1 %v2799_v9  ;;  %1430 = vmatprep.mubr.bf16.mxu0 %v2802_v11  ;;  %v2886_v9 = vld [vmem:[%s3318_s12 + $0x1ec] ss:$20 sps:$4 sm:$0xff]   ;;  %v2889_v11 = vld [vmem:[%s3318_s12 + $0x1e8] ss:$20 sps:$4 sm:$0xff]  }
  0xa7   : > { %2504 = vmatprep.subr.bf16.mxu1 %v2800_v10  ;;  %1526 = vmatprep.mubr.bf16.mxu1 %v2804_v12  ;;  %v2888_v10 = vld [vmem:[%s3318_s12 + $0x150] ss:$20 sps:$4 sm:$0xff]   ;;  %v2890_v12 = vld [vmem:[%s3318_s12 + $0x178] ss:$20 sps:$4 sm:$0xff]  }
  0xa8   : > { %2638 = vmatprep.subr.bf16.mxu0 %v2832_v21 }
  0xa9   : > { %2639 = vmatpush3.bf16.msra.mxu0 %v2832_v21  ;;  %v2901_v21 = vld [vmem:[%s3318_s12 + $0x264] ss:$20 sps:$4 sm:$0xff]  }
  0xaa   : > { %2505 = vmatpush3.bf16.msra.mxu1 %v2801_v13  ;;  %2640 = vmatprep.subr.bf16.mxu0 %v2845_v26  ;;  %v2891_v13 = vld [vmem:[%s3318_s12 + $0x214] ss:$20 sps:$4 sm:$0xff]  }
  0xab   : > { %2506 = vmatprep.subr.bf16.mxu1 %v2808_v17  ;;  %v2896_v17 = vld [vmem:[%s3318_s12 + $0x23c] ss:$20 sps:$4 sm:$0xff]  }
  0xad   : > { %1431 = vmatmul.mubr.bf16.gmra.mxu0 %v2806_v15  ;;  %1527 = vmatmul.mubr.bf16.gmra.mxu1 %v2807_v16  ;;  %v2894_v15 = vld [vmem:[%s3318_s12 + $0x210] ss:$20 sps:$4 sm:$0xff]   ;;  %v2895_v16 = vld [vmem:[%s3318_s12 + $0x1c8] ss:$20 sps:$4 sm:$0xff]  }
  0xae   : > { %2507 = vmatpush3.bf16.msra.mxu1 %v2809_v18  ;;  %1438 = vmatprep.mubr.bf16.mxu0 %v2813_v20  ;;  %v2898_v18 = vld [vmem:[%s3318_s12 + $0x1f0] ss:$20 sps:$4 sm:$0xff]   ;;  %v2900_v20 = vld [vmem:[%s3318_s12 + $0x218] ss:$20 sps:$4 sm:$0xff]  }
  0xaf   : > { %2508 = vmatprep.subr.bf16.mxu1 %v2810_v19  ;;  %1567 = vmatprep.mubr.bf16.mxu1 %v2817_v22  ;;  %v2899_v19 = vld [vmem:[%s3318_s12 + $0x238] ss:$20 sps:$4 sm:$0xff]   ;;  %v2903_v22 = vld [vmem:[%s3318_s12 + $0x240] ss:$20 sps:$4 sm:$0xff]  }
  0xb0   : > { %2641 = vmatpush3.bf16.msra.mxu0 %v2845_v26 }
  0xb1   : > { %2642 = vmatprep.subr.bf16.mxu0 %v2852_v29 }
  0xb2   : > { %2509 = vmatpush3.bf16.msra.mxu1 %v2812_v23  ;;  %v2904_v23 = vld [vmem:[%s3318_s12 + $0x260] ss:$20 sps:$4 sm:$0xff]  }
  0xb4   : > { %2643 = vmatpush3.bf16.msra.mxu0 %v2852_v29 }
  0xb5   : > { %1439 = vmatmul.mubr.bf16.gmra.mxu0 %v2818_v25  ;;  %1568 = vmatmul.mubr.bf16.vlgmr.msra.gmra.mxu1 %v2815_v24  ;;  %v2905_v24 = vld [vmem:[%s3318_s12 + $0x268] ss:$20 sps:$4 sm:$0xff]  }
  0xb6   : > { %1446 = vmatprep.mubr.bf16.mxu0 %v2819_v27  ;;  %1575 = vmatprep.mubr.bf16.mxu1 %v2821_v28 }
  0xb7   : > { %2644 = vmatprep.subr.bf16.mxu0 %v2865_v34 }
  0xb8   : > { %2645 = vmatpush3.bf16.msra.mxu0 %v2865_v34 }
  0xbd   : > { %1447 = vmatmul.mubr.bf16.gmra.mxu0 %v2823_v30  ;;  %1576 = vmatmul.mubr.bf16.gmra.mxu1 %v2824_v31 }
  0xbe   : > { %1454 = vmatprep.mubr.bf16.mxu0 %v2826_v32  ;;  %1583 = vmatprep.mubr.bf16.mxu1 %v2828_v33 }
  0xc5   : > { %1455 = vmatmul.mubr.bf16.gmra.mxu0 %v2830_v35  ;;  %1584 = vmatmul.mubr.bf16.gmra.mxu1 %v2831_v36 }
  0xc6   : > { %1462 = vmatprep.mubr.bf16.mxu0 %v2833_v37  ;;  %1591 = vmatprep.mubr.bf16.mxu1 %v2835_v38 }
  0xcd   : > { %1463 = vmatmul.mubr.bf16.gmra.mxu0 %v2837_v39  ;;  %1592 = vmatmul.mubr.bf16.gmra.mxu1 %v2838_v40 }
  0xce   : > { %1470 = vmatprep.mubr.bf16.mxu0 %v2839_v41  ;;  %1599 = vmatprep.mubr.bf16.mxu1 %v2841_v42 }
  0xd5   : > { %1471 = vmatmul.mubr.bf16.gmra.mxu0 %v2843_v43  ;;  %1600 = vmatmul.mubr.bf16.gmra.mxu1 %v2844_v44 }
  0xd6   : > { %1478 = vmatprep.mubr.bf16.mxu0 %v2846_v45  ;;  %1607 = vmatprep.mubr.bf16.mxu1 %v2848_v46 }
  0xdd   : > { %1479 = vmatmul.mubr.bf16.gmra.mxu0 %v2850_v47  ;;  %1608 = vmatmul.mubr.bf16.gmra.mxu1 %v2851_v48 }
  0xde   : > { %1486 = vmatprep.mubr.bf16.mxu0 %v2853_v49  ;;  %1615 = vmatprep.mubr.bf16.mxu1 %v2855_v50 }
  0xe5   : > { %1487 = vmatmul.mubr.bf16.gmra.mxu0 %v2857_v51  ;;  %1616 = vmatmul.mubr.bf16.gmra.mxu1 %v2858_v52 }
  0xe6   : > { %1494 = vmatprep.mubr.bf16.mxu0 %v2859_v53  ;;  %1623 = vmatprep.mubr.bf16.mxu1 %v2861_v54 }
  0xed   : > { %1495 = vmatmul.mubr.bf16.gmra.mxu0 %v2863_v55  ;;  %1624 = vmatmul.mubr.bf16.gmra.mxu1 %v2864_v56 }
  0xee   : > { %1631 = vmatprep.mubr.bf16.mxu1 %v2866_v57  ;;  %2646 = vmatprep.mubr.bf16.mxu0 %v2868_v58 }
  0xf5   : > { %1632 = vmatmul.mubr.bf16.gmra.mxu1 %v2869_v59  ;;  %2647 = vmatmul.mubr.bf16.vlgmr.msra.gmra.mxu0 %v2870_v60 }
  0xf6   : > { %1639 = vmatprep.mubr.bf16.mxu1 %v2871_v61  ;;  %2650 = vmatprep.mubr.bf16.mxu0 %v2873_v62 }
  0xfd   : > { %1640 = vmatmul.mubr.bf16.gmra.mxu1 %v2874_v63  ;;  %2651 = vmatmul.mubr.bf16.gmra.mxu0 %v2875_v0 }
  0xfe   : > { %1647 = vmatprep.mubr.bf16.mxu1 %v2876_v1  ;;  %2654 = vmatprep.mubr.bf16.mxu0 %v2878_v2 }
 0x105   : > { %1648 = vmatmul.mubr.bf16.gmra.mxu1 %v2879_v3  ;;  %2655 = vmatmul.mubr.bf16.gmra.mxu0 %v2880_v4 }
 0x106   : > { %1655 = vmatprep.mubr.bf16.mxu1 %v2881_v5  ;;  %2658 = vmatprep.mubr.bf16.mxu0 %v2883_v6 }
 0x10d   : > { %1656 = vmatmul.mubr.bf16.gmra.mxu1 %v2884_v7  ;;  %2659 = vmatmul.mubr.bf16.gmra.mxu0 %v2885_v8 }
 0x10e   : > { %1663 = vmatprep.mubr.bf16.mxu1 %v2886_v9  ;;  %2662 = vmatprep.mubr.bf16.mxu0 %v2888_v10 }
 0x115   : > { %1664 = vmatmul.mubr.bf16.gmra.mxu1 %v2889_v11  ;;  %2663 = vmatmul.mubr.bf16.gmra.mxu0 %v2890_v12 }
 0x116   : > { %1671 = vmatprep.mubr.bf16.mxu1 %v2891_v13  ;;  %2666 = vmatprep.mubr.bf16.mxu0 %v2893_v14 }
 0x11d   : > { %1672 = vmatmul.mubr.bf16.gmra.mxu1 %v2894_v15  ;;  %2667 = vmatmul.mubr.bf16.gmra.mxu0 %v2895_v16 }
 0x11e   : > { %1679 = vmatprep.mubr.bf16.mxu1 %v2896_v17  ;;  %2670 = vmatprep.mubr.bf16.mxu0 %v2898_v18 }
 0x125   : > { %1680 = vmatmul.mubr.bf16.gmra.mxu1 %v2899_v19  ;;  %2671 = vmatmul.mubr.bf16.gmra.mxu0 %v2900_v20 }
 0x126   : > { %1687 = vmatprep.mubr.bf16.mxu1 %v2901_v21  ;;  %2674 = vmatprep.mubr.bf16.mxu0 %v2903_v22 }
 0x12d   : > { %1688 = vmatmul.mubr.bf16.gmra.mxu1 %v2904_v23  ;;  %2675 = vmatmul.mubr.bf16.gmra.mxu0 %v2905_v24 }
 0x155   : > { %v2398_v25 = vpop.f32.mrf.mxu0  ;;  %v2470_v26 = vpop.f32.mrf.mxu1 }
 0x157   : > { %v2399_v27 = vpop.f32.mrf.mxu0  ;;  %v2471_v28 = vpop.f32.mrf.mxu1 }
 0x158   : > { %v3441_v29 = vadd.f32 %v2399_v27, %v2398_v25  ;;  %v3443_v30 = vadd.f32 %v2471_v28, %v2470_v26 }
 0x159   : > { %v2401_v31 = vpop.f32.mrf.mxu0  ;;  %v2473_v32 = vpop.f32.mrf.mxu1 }
 0x15a   : > { %3773 = vst [vmem:[#allocation4_spill] sm:$0xff] %v3443_v30 }
 0x15b   : > { %v2402_v33 = vpop.f32.mrf.mxu0  ;;  %v2474_v34 = vpop.f32.mrf.mxu1 }
 0x15c   : > { %v3445_v35 = vadd.f32 %v2402_v33, %v2401_v31  ;;  %v3447_v36 = vadd.f32 %v2474_v34, %v2473_v32 }
 0x15d   : > { %v2404_v37 = vpop.f32.mrf.mxu0  ;;  %v2476_v38 = vpop.f32.mrf.mxu1 }
 0x15e   : > { %3774 = vst [vmem:[#allocation5_spill] sm:$0xff] %v3447_v36 }
 0x15f   : > { %v2405_v39 = vpop.f32.mrf.mxu0  ;;  %v2477_v40 = vpop.f32.mrf.mxu1 }
 0x160   : > { %v3449_v41 = vadd.f32 %v2405_v39, %v2404_v37  ;;  %v3451_v42 = vadd.f32 %v2477_v40, %v2476_v38 }
 0x161   : > { %v2407_v43 = vpop.f32.mrf.mxu0  ;;  %v2479_v44 = vpop.f32.mrf.mxu1 }
 0x162   : > { %3775 = vst [vmem:[#allocation6_spill] sm:$0xff] %v3451_v42 }
 0x163   : > { %v2408_v45 = vpop.f32.mrf.mxu0  ;;  %v2480_v46 = vpop.f32.mrf.mxu1 }
 0x164   : > { %v3453_v47 = vadd.f32 %v2408_v45, %v2407_v43  ;;  %v3455_v48 = vadd.f32 %v2480_v46, %v2479_v44 }
 0x165   : > { %v2410_v49 = vpop.f32.mrf.mxu0  ;;  %v2482_v50 = vpop.f32.mrf.mxu1 }
 0x166   : > { %3776 = vst [vmem:[#allocation7_spill] sm:$0xff] %v3455_v48 }
 0x167   : > { %v2411_v51 = vpop.f32.mrf.mxu0  ;;  %v2483_v52 = vpop.f32.mrf.mxu1 }
 0x168   : > { %v3457_v53 = vadd.f32 %v2411_v51, %v2410_v49  ;;  %v3459_v54 = vadd.f32 %v2483_v52, %v2482_v50 }
 0x169   : > { %v2413_v55 = vpop.f32.mrf.mxu0  ;;  %v2485_v56 = vpop.f32.mrf.mxu1 }
 0x16a   : > { %3777 = vst [vmem:[#allocation8_spill] sm:$0xff] %v3459_v54 }
 0x16b   : > { %v2414_v57 = vpop.f32.mrf.mxu0  ;;  %v2486_v58 = vpop.f32.mrf.mxu1 }
 0x16c   : > { %v3461_v59 = vadd.f32 %v2414_v57, %v2413_v55  ;;  %v3463_v60 = vadd.f32 %v2486_v58, %v2485_v56 }
 0x16d   : > { %v2416_v61 = vpop.f32.mrf.mxu0  ;;  %v2488_v62 = vpop.f32.mrf.mxu1 }
 0x16e   : > { %3778 = vst [vmem:[#allocation9_spill] sm:$0xff] %v3463_v60 }
 0x16f   : > { %v2417_v63 = vpop.f32.mrf.mxu0  ;;  %v2489_v0 = vpop.f32.mrf.mxu1 }
 0x170   : > { %v3465_v1 = vadd.f32 %v2417_v63, %v2416_v61  ;;  %v3467_v2 = vadd.f32 %v2489_v0, %v2488_v62 }
 0x171   : > { %v2419_v3 = vpop.f32.mrf.mxu0  ;;  %v2491_v4 = vpop.f32.mrf.mxu1 }
 0x172   : > { %3779 = vst [vmem:[#allocation10_spill] sm:$0xff] %v3467_v2 }
 0x173   : > { %v2420_v5 = vpop.f32.mrf.mxu0  ;;  %v2492_v6 = vpop.f32.mrf.mxu1 }
 0x174   : > { %v3469_v7 = vadd.f32 %v2420_v5, %v2419_v3  ;;  %v3471_v8 = vadd.f32 %v2492_v6, %v2491_v4 }
 0x175   : > { %v2422_v9 = vpop.f32.mrf.mxu0  ;;  %v3473_v10 = vpop.f32.mrf.mxu1 }
 0x176   : > { %3780 = vst [vmem:[#allocation11_spill] sm:$0xff] %v3471_v8 }
 0x177   : > { %v2423_v11 = vpop.f32.mrf.mxu0  ;;  %v3475_v12 = vpop.f32.mrf.mxu1 }
 0x178   : > { %v3477_v13 = vadd.f32 %v2423_v11, %v2422_v9 }
 0x179   : > { %v2425_v14 = vpop.f32.mrf.mxu0  ;;  %v3479_v15 = vpop.f32.mrf.mxu1 }
 0x17b   : > { %v2426_v16 = vpop.f32.mrf.mxu0  ;;  %v3481_v17 = vpop.f32.mrf.mxu1 }
 0x17c   : > { %v3483_v18 = vadd.f32 %v2426_v16, %v2425_v14 }
 0x17d   : > { %v2428_v19 = vpop.f32.mrf.mxu0  ;;  %v2516_v20 = vpop.f32.mrf.mxu1 }
 0x17f   : > { %v2429_v21 = vpop.f32.mrf.mxu0  ;;  %v2517_v22 = vpop.f32.mrf.mxu1 }
 0x180   : > { %v3485_v23 = vadd.f32 %v2429_v21, %v2428_v19  ;;  %v2518_v30 = vadd.f32 %v2517_v22, %v2516_v20  ;;  %v2515_v20 = vadd.f32 %v3481_v17, %v3479_v15 }
 0x181   : > { %v2431_v24 = vpop.f32.mrf.mxu0  ;;  %v2519_v25 = vpop.f32.mrf.mxu1 }
 0x183   : > { %v2432_v26 = vpop.f32.mrf.mxu0  ;;  %v2520_v27 = vpop.f32.mrf.mxu1 }
 0x184   : > { %v3487_v28 = vadd.f32 %v2432_v26, %v2431_v24 }
 0x185   : > { %v2434_v31 = vpop.f32.mrf.mxu0  ;;  %v3489_v32 = vpop.f32.mrf.mxu1 }
 0x187   : > { %v2435_v33 = vpop.f32.mrf.mxu0  ;;  %v3491_v34 = vpop.f32.mrf.mxu1 }
 0x188   : > { %v3493_v37 = vadd.f32 %v2435_v33, %v2434_v31 }
 0x189   : > { %v2437_v38 = vpop.f32.mrf.mxu0  ;;  %v3495_v39 = vpop.f32.mrf.mxu1 }
 0x18b   : > { %v2438_v40 = vpop.f32.mrf.mxu0  ;;  %v3497_v43 = vpop.f32.mrf.mxu1 }
 0x18c   : > { %v3499_v44 = vadd.f32 %v2438_v40, %v2437_v38 }
 0x18d   : > { %v3501_v45 = vpop.f32.mrf.mxu0  ;;  %v2528_v46 = vpop.f32.mrf.mxu1 }
 0x18e   : > { %3781 = vst [vmem:[#allocation12_spill] sm:$0xff] %v3499_v44  ;;  %v2524_v44 = vadd.f32 %v3491_v34, %v3489_v32  ;;  %v2527_v34 = vadd.f32 %v3497_v43, %v3495_v39  ;;  %v517_v39 = vld [vmem:[#allocation2 + $0x48] sm:$0xff] }
 0x18f   : > { %v3503_v49 = vpop.f32.mrf.mxu0  ;;  %v2529_v50 = vpop.f32.mrf.mxu1 }
 0x191   : > { %v3505_v51 = vpop.f32.mrf.mxu0  ;;  %v3507_v52 = vpop.f32.mrf.mxu1 }
 0x193   : > { %v3509_v55 = vpop.f32.mrf.mxu0  ;;  %v2532_v56 = vpop.f32.mrf.mxu1 }
 0x195   : > { %v3511_v57 = vpop.f32.mrf.mxu0  ;;  %v3513_v58 = vpop.f32.mrf.mxu1 }
 0x196   : > { %3782 = vst [vmem:[#allocation13_spill] sm:$0xff] %v3511_v57 }
 0x197   : > { %v3515_v61 = vpop.f32.mrf.mxu0  ;;  %v3517_v62 = vpop.f32.mrf.mxu1 }
 0x198   : > { %3783 = vst [vmem:[#allocation14_spill] sm:$0xff] %v3515_v61 }
 0x199   : > { %v3519_v63 = vpop.f32.mrf.mxu0  ;;  %v3521_v0 = vpop.f32.mrf.mxu1 }
 0x19a   : > { %3784 = vst [vmem:[#allocation15_spill] sm:$0xff] %v3519_v63 }
 0x19b   : > { %v3523_v3 = vpop.f32.mrf.mxu0  ;;  %v3525_v4 = vpop.f32.mrf.mxu1 }
 0x19c   : > { %3785 = vst [vmem:[#allocation16_spill] sm:$0xff] %v3523_v3  ;;  %v2521_v3 = vadd.f32 %v2520_v27, %v2519_v25 }
 0x19d   : > { %v3527_v5 = vpop.f32.mrf.mxu0  ;;  %v3529_v6 = vpop.f32.mrf.mxu1 }
 0x19e   : > { %v1581_v25 = vadd.f32 %v2521_v3, %v3453_v47 }
 0x19f   : > { %v3531_v9 = vpop.f32.mrf.mxu0  ;;  %v3533_v11 = vpop.f32.mrf.mxu1 }
 0x1a1   : > { %v3535_v14 = vpop.f32.mrf.mxu0  ;;  %v3537_v16 = vpop.f32.mrf.mxu1 }
 0x1a2   : > { %3786 = vst [vmem:[#allocation17_spill] sm:$0xff] %v3535_v14 }
 0x1a3   : > { %v3539_v19 = vpop.f32.mrf.mxu0  ;;  %v3541_v21 = vpop.f32.mrf.mxu1 }
 0x1a4   : > { %3787 = vst [vmem:[#allocation18_spill] sm:$0xff] %v3539_v19 }
 0x1a5   : > { %v3543_v24 = vpop.f32.mrf.mxu0  ;;  %v3545_v26 = vpop.f32.mrf.mxu1 }
 0x1a6   : > { %3788 = vst [vmem:[#allocation19_spill] sm:$0xff] %v3543_v24 }
 0x1a7   : > { %v3547_v31 = vpop.f32.mrf.mxu0  ;;  %v3549_v33 = vpop.f32.mrf.mxu1 }
 0x1a8   : > { %3789 = vst [vmem:[#allocation20_spill] sm:$0xff] %v3547_v31 }
 0x1a9   : > { %v3551_v38 = vpop.f32.mrf.mxu0  ;;  %v3553_v40 = vpop.f32.mrf.mxu1 }
 0x1aa   : > { %3790 = vst [vmem:[#allocation21_spill] sm:$0xff] %v3551_v38  ;;  %v2512_v38 = vadd.f32 %v3475_v12, %v3473_v10  ;;  %v510_v10 = vld [vmem:[#allocation2 + $0xb0] sm:$0xff] }
 0x1ab   : > { %v3555_v8 = vpop.f32.mrf.mxu0  ;;  %v3557_v60 = vpop.f32.mrf.mxu1 }
 0x1ac   : > { %3791 = vst [vmem:[#allocation22_spill] sm:$0xff] %v3555_v8 }
 0x1ad   : > { %v3559_v2 = vpop.f32.mrf.mxu0  ;;  %v3561_v54 = vpop.f32.mrf.mxu1 }
 0x1ae   : > { %3792 = vst [vmem:[#allocation23_spill] sm:$0xff] %v3559_v2  ;;  %v1578_v2 = vadd.f32 %v2518_v30, %v3449_v41  ;;  %v513_v41 = vld [vmem:[#allocation2 + $0x18] sm:$0xff] }
 0x1af   : > { %v3563_v36 = vpop.f32.mrf.mxu0  ;;  %v3565_v48 = vpop.f32.mrf.mxu1 }
 0x1b0   : > { %3793 = vst [vmem:[#allocation24_spill] sm:$0xff] %v3563_v36  ;;  %v512_v36 = vld [vmem:[#allocation2 + $0xd8] sm:$0xff] }
 0x1b1   : > { %v3567_v42 = vpop.f32.mrf.mxu0  ;;  %v3569_v31 = vpop.f32.mrf.mxu1 }
 0x1b2   : > { %3794 = vst [vmem:[#allocation25_spill] sm:$0xff] %v3567_v42  ;;  %v1570_v42 = vadd.f32 %v2512_v38, %v3441_v29  ;;  %v1573_v29 = vadd.f32 %v2515_v20, %v3445_v35  ;;  %v516_v38 = vld [vmem:[#allocation2 + $0x30] sm:$0xff] }
 0x1b3   : > { %v3573_v24 = vpop.f32.mrf.mxu0  ;;  %v3575_v8 = vpop.f32.mrf.mxu1 }
 0x1b4   : > { %3795 = vst [vmem:[#allocation26_spill] sm:$0xff] %v3573_v24  ;;  %v2530_v24 = vadd.f32 %v2529_v50, %v2528_v46 }
 0x1b5   : > { %v3578_v63 = vpop.f32.mrf.mxu1  ;;  %v2648_v19 = vpop.f32.mrf.mxu0 }
 0x1b6   : > { %v1739_v22 = vadd.f32 %v2648_v19, %v1578_v2  ;;  %v511_v19 = vld [vmem:[#allocation2] sm:$0xff]  ;;  %v1594_v50 = vadd.f32 %v2530_v24, %v3465_v1 }
 0x1b7   : > { %v3583_v14 = vpop.f32.mrf.mxu1  ;;  %v1730_v12 = vpop.f32.mrf.mxu0 }
 0x1b8   : > { %v1859_v61 = vadd.f32 %v1739_v22, %v512_v36  ;;  %v1731_v57 = vadd.f32 %v1730_v12, %v1570_v42  ;;  %v2533_v36 = vadd.f32 %v2532_v56, %v3507_v52  ;;  %v514_v52 = vld [vmem:[#allocation2 + $0x50] sm:$0xff]  ;;  %v2542_v22 = vadd.f32 %v3533_v11, %v3529_v6  ;;  %v515_v6 = vld [vmem:[#allocation2 + $0x68] sm:$0xff] }
 0x1b9   : > { %v3586_v30 = vpop.f32.mrf.mxu1  ;;  %v2649_v27 = vpop.f32.mrf.mxu0 }
 0x1ba   : > { %1891 = vst [vmem:[#allocation2 + $0xd8] sm:$0xff] %v1859_v61  ;;  %v1857_v2 = vadd.f32 %v1731_v57, %v510_v10  ;;  %v1742_v15 = vadd.f32 %v2649_v27, %v1581_v25  ;;  %v1586_v61 = vadd.f32 %v2524_v44, %v3457_v53  ;;  %v1597_v10 = vadd.f32 %v2533_v36, %v3469_v7 }
 0x1bb   : > { %v3591_v17 = vpop.f32.mrf.mxu1  ;;  %v1733_v46 = vpop.f32.mrf.mxu0  ;;  %v2536_v25 = vadd.f32 %v3517_v62, %v3513_v58  ;;  %v520_v58 = vld [vmem:[#allocation2 + $0xe8] sm:$0xff] }
 0x1bc   : > { %1889 = vst [vmem:[#allocation2 + $0xb0] sm:$0xff] %v1857_v2  ;;  %v1860_v42 = vadd.f32 %v1742_v15, %v513_v41  ;;  %v1734_v47 = vadd.f32 %v1733_v46, %v1573_v29  ;;  %v1589_v41 = vadd.f32 %v2527_v34, %v3461_v59  ;;  %v2545_v2 = vadd.f32 %v3541_v21, %v3537_v16  ;;  %v518_v16 = vld [vmem:[#allocation2 + $0x80] sm:$0xff]  ;;  %v521_v34 = vld [vmem:[#allocation2 + $0xb8] sm:$0xff] }
 0x1bd   : > { %v3595_v3 = vpop.f32.mrf.mxu1  ;;  %v2652_v32 = vpop.f32.mrf.mxu0  ;;  %v1610_v29 = vadd.f32 %v2542_v22, %v3485_v23  ;;  %v2539_v46 = vadd.f32 %v3525_v4, %v3521_v0  ;;  %v2442_v0 = vadd.f32 %v3503_v49, %v3501_v45 }
 0x1be   : > { %1892 = vst [vmem:[#allocation2 + $0x18] sm:$0xff] %v1860_v42  ;;  %v1858_v35 = vadd.f32 %v1734_v47, %v511_v19  ;;  %v1755_v57 = vadd.f32 %v2652_v32, %v1594_v50  ;;  %v1602_v42 = vadd.f32 %v2536_v25, %v3477_v13  ;;  %v2554_v50 = vadd.f32 %v3565_v48, %v3561_v54 }
 0x1bf   : > { %v3600_v20 = vpop.f32.mrf.mxu1  ;;  %v1746_v56 = vpop.f32.mrf.mxu0  ;;  %v1613_v32 = vadd.f32 %v2545_v2, %v3487_v28  ;;  %v2548_v13 = vadd.f32 %v3549_v33, %v3545_v26  ;;  %v1605_v48 = vadd.f32 %v2539_v46, %v3483_v18  ;;  %v2557_v28 = vadd.f32 %v3575_v8, %v3569_v31  ;;  %v524_v33 = vld [vmem:[#allocation2 + $0x8] sm:$0xff]  ;;  %v522_v8 = vld [vmem:[#allocation2 + $0x60] sm:$0xff] }
 0x1c0   : > { %1890 = vst [vmem:[#allocation2] sm:$0xff] %v1858_v35  ;;  %v1863_v1 = vadd.f32 %v1755_v57, %v516_v38  ;;  %v1747_v24 = vadd.f32 %v1746_v56, %v1586_v61  ;;  %v1626_v22 = vadd.f32 %v2554_v50, %v2442_v0  ;;  %v2551_v18 = vadd.f32 %v3557_v60, %v3553_v40  ;;  %v525_v60 = vld [vmem:[#allocation2 + $0x78] sm:$0xff] }
 0x1c1   : > { %v3605_v12 = vpop.f32.mrf.mxu1  ;;  %v2653_v43 = vpop.f32.mrf.mxu0 }
 0x1c2   : > { %1895 = vst [vmem:[#allocation2 + $0x30] sm:$0xff] %v1863_v1  ;;  %v1861_v53 = vadd.f32 %v1747_v24, %v514_v52  ;;  %v1758_v44 = vadd.f32 %v2653_v43, %v1597_v10  ;;  %v519_v52 = vld [vmem:[#allocation2 + $0x88] sm:$0xff]  ;;  %v2445_v1 = vadd.f32 %v3509_v55, %v3505_v51  ;;  %v1618_v43 = vadd.f32 %v2548_v13, %v3493_v37  ;;  %v526_v13 = vld [vmem:[#allocation2 + $0x38] sm:$0xff] }
 0x1c3   : > { %v3610_v27 = vpop.f32.mrf.mxu1  ;;  %v1749_v11 = vpop.f32.mrf.mxu0 }
 0x1c4   : > { %1893 = vst [vmem:[#allocation2 + $0x50] sm:$0xff] %v1861_v53  ;;  %v1864_v7 = vadd.f32 %v1758_v44, %v517_v39  ;;  %v1750_v15 = vadd.f32 %v1749_v11, %v1589_v41  ;;  %v2566_v53 = vadd.f32 %v3600_v20, %v3595_v3  ;;  %v1629_v55 = vadd.f32 %v2557_v28, %v2445_v1  ;;  %v3798_v3 = vld [vmem:[#allocation14_spill] sm:$0xff]  ;;  %v3803_v28 = vld [vmem:[#allocation23_spill] sm:$0xff] }
 0x1c5   : > { %v3615_v19 = vpop.f32.mrf.mxu1  ;;  %v2656_v62 = vpop.f32.mrf.mxu0  ;;  %v2454_v41 = vadd.f32 %v3531_v9, %v3527_v5  ;;  %v2560_v11 = vadd.f32 %v3583_v14, %v3578_v63  ;;  %v2569_v5 = vadd.f32 %v3610_v27, %v3605_v12  ;;  %v3800_v63 = vld [vmem:[#allocation18_spill] sm:$0xff] }
 0x1c6   : > { %1896 = vst [vmem:[#allocation2 + $0x48] sm:$0xff] %v1864_v7  ;;  %v1862_v59 = vadd.f32 %v1750_v15, %v515_v6  ;;  %v1771_v36 = vadd.f32 %v2656_v62, %v1610_v29  ;;  %v3796_v7 = vld [vmem:[#allocation12_spill] sm:$0xff]  ;;  %v3797_v29 = vld [vmem:[#allocation13_spill] sm:$0xff]  ;;  %v523_v62 = vld [vmem:[#allocation2 + $0xf0] sm:$0xff] }
 0x1c7   : > { %v3620_v47 = vpop.f32.mrf.mxu1  ;;  %v1762_v21 = vpop.f32.mrf.mxu0  ;;  %v1621_v15 = vadd.f32 %v2551_v18, %v3796_v7  ;;  %v2448_v20 = vadd.f32 %v3798_v3, %v3797_v29  ;;  %v3810_v29 = vld [vmem:[#allocation22_spill] sm:$0xff] }
 0x1c8   : > { %1894 = vst [vmem:[#allocation2 + $0x68] sm:$0xff] %v1862_v59  ;;  %v1867_v23 = vadd.f32 %v1771_v36, %v520_v58  ;;  %v1763_v38 = vadd.f32 %v1762_v21, %v1602_v42  ;;  %v1642_v36 = vadd.f32 %v2566_v53, %v2454_v41  ;;  %v3799_v42 = vld [vmem:[#allocation17_spill] sm:$0xff]  ;;  %v528_v21 = vld [vmem:[#allocation2 + $0x40] sm:$0xff]  ;;  %v2572_v1 = vadd.f32 %v3620_v47, %v3615_v19  ;;  %v3808_v41 = vld [vmem:[#allocation26_spill] sm:$0xff] }
 0x1c9   : > { %v3627_v4 = vpop.f32.mrf.mxu1  ;;  %v2657_v35 = vpop.f32.mrf.mxu0  ;;  %v2457_v14 = vadd.f32 %v3800_v63, %v3799_v42  ;;  %v1634_v0 = vadd.f32 %v2560_v11, %v2448_v20  ;;  %v532_v19 = vld [vmem:[#allocation2 + $0x70] sm:$0xff]  ;;  %v530_v20 = vld [vmem:[#allocation2 + $0xe0] sm:$0xff] }
 0x1ca   : > { %1899 = vst [vmem:[#allocation2 + $0xe8] sm:$0xff] %v1867_v23  ;;  %v1865_v57 = vadd.f32 %v1763_v38, %v518_v16  ;;  %v1774_v61 = vadd.f32 %v2657_v35, %v1613_v32  ;;  %v2563_v23 = vadd.f32 %v3591_v17, %v3586_v30  ;;  %v3802_v35 = vld [vmem:[#allocation16_spill] sm:$0xff]  ;;  %v529_v30 = vld [vmem:[#allocation2 + $0xc8] sm:$0xff] }
 0x1cb   : > { %v3632_v54 = vpop.f32.mrf.mxu1  ;;  %v1765_v56 = vpop.f32.mrf.mxu0 }
 0x1cc   : > { %1897 = vst [vmem:[#allocation2 + $0x80] sm:$0xff] %v1865_v57  ;;  %v1868_v45 = vadd.f32 %v1774_v61, %v521_v34  ;;  %v1766_v49 = vadd.f32 %v1765_v56, %v1605_v48  ;;  %v3801_v34 = vld [vmem:[#allocation15_spill] sm:$0xff]  ;;  %v1645_v56 = vadd.f32 %v2569_v5, %v2457_v14  ;;  %v2575_v11 = vadd.f32 %v3632_v54, %v3627_v4 }
 0x1cd   : > { %v2576_v26 = vpop.f32.mrf.mxu1  ;;  %v2660_v24 = vpop.f32.mrf.mxu0  ;;  %v2451_v12 = vadd.f32 %v3802_v35, %v3801_v34  ;;  %v3811_v34 = vld [vmem:[#allocation6_spill] sm:$0xff] }
 0x1ce   : > { %1900 = vst [vmem:[#allocation2 + $0xb8] sm:$0xff] %v1868_v45  ;;  %v1866_v10 = vadd.f32 %v1766_v49, %v519_v52  ;;  %v1787_v39 = vadd.f32 %v2660_v24, %v1626_v22  ;;  %v3804_v45 = vld [vmem:[#allocation24_spill] sm:$0xff] }
 0x1cf   : > { %v2577_v25 = vpop.f32.mrf.mxu1  ;;  %v1778_v31 = vpop.f32.mrf.mxu0  ;;  %v2466_v49 = vadd.f32 %v3804_v45, %v3803_v28  ;;  %v1637_v18 = vadd.f32 %v2563_v23, %v2451_v12  ;;  %v534_v28 = vld [vmem:[#allocation2 + $0xa8] sm:$0xff] }
 0x1d0   : > { %1898 = vst [vmem:[#allocation2 + $0x88] sm:$0xff] %v1866_v10  ;;  %v1871_v44 = vadd.f32 %v1787_v39, %v524_v33  ;;  %v1779_v51 = vadd.f32 %v1778_v31, %v1618_v43  ;;  %v2578_v61 = vadd.f32 %v2577_v25, %v2576_v26  ;;  %v3805_v10 = vld [vmem:[#allocation19_spill] sm:$0xff]  ;;  %v3806_v39 = vld [vmem:[#allocation20_spill] sm:$0xff] }
 0x1d1   : > { %v2579_v6 = vpop.f32.mrf.mxu1  ;;  %v2661_v40 = vpop.f32.mrf.mxu0  ;;  %v2460_v26 = vadd.f32 %v3806_v39, %v3805_v10  ;;  %v527_v25 = vld [vmem:[#allocation2 + $0x58] sm:$0xff] }
 0x1d2   : > { %1903 = vst [vmem:[#allocation2 + $0x8] sm:$0xff] %v1871_v44  ;;  %v1869_v37 = vadd.f32 %v1779_v51, %v522_v8  ;;  %v1790_v2 = vadd.f32 %v2661_v40, %v1629_v55  ;;  %v1658_v51 = vadd.f32 %v2578_v61, %v2466_v49  ;;  %v3807_v55 = vld [vmem:[#allocation25_spill] sm:$0xff] }
 0x1d3   : > { %v2580_v58 = vpop.f32.mrf.mxu1  ;;  %v1781_v46 = vpop.f32.mrf.mxu0  ;;  %v1650_v7 = vadd.f32 %v2572_v1, %v2460_v26  ;;  %v3814_v26 = vld [vmem:[#allocation5_spill] sm:$0xff] }
 0x1d4   : > { %1901 = vst [vmem:[#allocation2 + $0x60] sm:$0xff] %v1869_v37  ;;  %v1872_v9 = vadd.f32 %v1790_v2, %v525_v60  ;;  %v1782_v59 = vadd.f32 %v1781_v46, %v1621_v15  ;;  %v2581_v31 = vadd.f32 %v2580_v58, %v2579_v6  ;;  %v2469_v60 = vadd.f32 %v3808_v41, %v3807_v55  ;;  %v3809_v15 = vld [vmem:[#allocation21_spill] sm:$0xff] }
 0x1d5   : > { %v2582_v16 = vpop.f32.mrf.mxu1  ;;  %v2664_v50 = vpop.f32.mrf.mxu0  ;;  %v2463_v6 = vadd.f32 %v3810_v29, %v3809_v15 }
 0x1d6   : > { %1904 = vst [vmem:[#allocation2 + $0x78] sm:$0xff] %v1872_v9  ;;  %v1870_v38 = vadd.f32 %v1782_v59, %v523_v62  ;;  %v1803_v32 = vadd.f32 %v2664_v50, %v1642_v36  ;;  %v1661_v9 = vadd.f32 %v2581_v31, %v2469_v60  ;;  %v533_v36 = vld [vmem:[#allocation2 + $0xc0] sm:$0xff]  ;;  %v531_v50 = vld [vmem:[#allocation2 + $0x90] sm:$0xff] }
 0x1d7   : > { %v2583_v27 = vpop.f32.mrf.mxu1  ;;  %v1794_v57 = vpop.f32.mrf.mxu0  ;;  %v1653_v14 = vadd.f32 %v2575_v11, %v2463_v6  ;;  %v538_v11 = vld [vmem:[#allocation2 + $0xa0] sm:$0xff]  ;;  %v3816_v6 = vld [vmem:[#allocation10_spill] sm:$0xff] }
 0x1d8   : > { %1902 = vst [vmem:[#allocation2 + $0xf0] sm:$0xff] %v1870_v38  ;;  %v1875_v48 = vadd.f32 %v1803_v32, %v528_v21  ;;  %v1795_v52 = vadd.f32 %v1794_v57, %v1634_v0  ;;  %v2584_v63 = vadd.f32 %v2583_v27, %v2582_v16  ;;  %v3812_v27 = vld [vmem:[#allocation4_spill] sm:$0xff] }
 0x1d9   : > { %v2585_v22 = vpop.f32.mrf.mxu1  ;;  %v2665_v17 = vpop.f32.mrf.mxu0 }
 0x1da   : > { %1907 = vst [vmem:[#allocation2 + $0x40] sm:$0xff] %v1875_v48  ;;  %v1873_v33 = vadd.f32 %v1795_v52, %v526_v13  ;;  %v1806_v24 = vadd.f32 %v2665_v17, %v1645_v56  ;;  %v536_v13 = vld [vmem:[#allocation2 + $0x10] sm:$0xff]  ;;  %v1666_v52 = vadd.f32 %v2584_v63, %v3812_v27  ;;  %v3813_v17 = vld [vmem:[#allocation7_spill] sm:$0xff] }
 0x1db   : > { %v2586_v43 = vpop.f32.mrf.mxu1  ;;  %v1797_v8 = vpop.f32.mrf.mxu0 }
 0x1dc   : > { %1905 = vst [vmem:[#allocation2 + $0x38] sm:$0xff] %v1873_v33  ;;  %v1876_v53 = vadd.f32 %v1806_v24, %v529_v30  ;;  %v1798_v44 = vadd.f32 %v1797_v8, %v1637_v18  ;;  %v2587_v61 = vadd.f32 %v2586_v43, %v2585_v22  ;;  %v537_v24 = vld [vmem:[#allocation2 + $0x28] sm:$0xff]  ;;  %v535_v8 = vld [vmem:[#allocation2 + $0xd0] sm:$0xff] }
 0x1dd   : > { %v2588_v40 = vpop.f32.mrf.mxu1  ;;  %v2668_v47 = vpop.f32.mrf.mxu0 }
 0x1de   : > { %1908 = vst [vmem:[#allocation2 + $0xc8] sm:$0xff] %v1876_v53  ;;  %v1874_v37 = vadd.f32 %v1798_v44, %v527_v25  ;;  %v1819_v2 = vadd.f32 %v2668_v47, %v1658_v51  ;;  %v1669_v43 = vadd.f32 %v2587_v61, %v3814_v26 }
 0x1df   : > { %v2589_v3 = vpop.f32.mrf.mxu1  ;;  %v1810_v58 = vpop.f32.mrf.mxu0 }
 0x1e0   : > { %1906 = vst [vmem:[#allocation2 + $0x58] sm:$0xff] %v1874_v37  ;;  %v1879_v62 = vadd.f32 %v1819_v2, %v532_v19  ;;  %v2590_v46 = vadd.f32 %v2589_v3, %v2588_v40  ;;  %v1811_v5 = vadd.f32 %v1810_v58, %v1650_v7  ;;  %v3815_v40 = vld [vmem:[#allocation8_spill] sm:$0xff]  ;;  %v3817_v58 = vld [vmem:[#allocation9_spill] sm:$0xff] }
 0x1e1   : > { %v2591_v59 = vpop.f32.mrf.mxu1  ;;  %v2669_v42 = vpop.f32.mrf.mxu0 }
 0x1e2   : > { %1911 = vst [vmem:[#allocation2 + $0x70] sm:$0xff] %v1879_v62  ;;  %v1877_v4 = vadd.f32 %v1811_v5, %v530_v20  ;;  %v1822_v54 = vadd.f32 %v2669_v42, %v1661_v9  ;;  %v1674_v35 = vadd.f32 %v2590_v46, %v3811_v34  ;;  %v540_v46 = vld [vmem:[#allocation2 + $0x20] sm:$0xff]  ;;  %v539_v9 = vld [vmem:[#allocation2 + $0xf8] sm:$0xff] }
 0x1e3   : > { %v2592_v21 = vpop.f32.mrf.mxu1  ;;  %v1813_v23 = vpop.f32.mrf.mxu0 }
 0x1e4   : > { %1909 = vst [vmem:[#allocation2 + $0xe0] sm:$0xff] %v1877_v4  ;;  %v1880_v38 = vadd.f32 %v1822_v54, %v533_v36  ;;  %v2593_v32 = vadd.f32 %v2592_v21, %v2591_v59  ;;  %v1814_v0 = vadd.f32 %v1813_v23, %v1653_v14  ;;  %v3818_v54 = vld [vmem:[#allocation11_spill] sm:$0xff] }
 0x1e5   : > { %v2594_v12 = vpop.f32.mrf.mxu1  ;;  %v2672_v57 = vpop.f32.mrf.mxu0 }
 0x1e6   : > { %1912 = vst [vmem:[#allocation2 + $0xc0] sm:$0xff] %v1880_v38  ;;  %v1878_v48 = vadd.f32 %v1814_v0, %v531_v50  ;;  %v1835_v16 = vadd.f32 %v2672_v57, %v1674_v35  ;;  %v1677_v1 = vadd.f32 %v2593_v32, %v3813_v17  ;;  %v541_v50 = vld [vmem:[#allocation2 + $0x98] sm:$0xff] }
 0x1e7   : > { %v2595_v56 = vpop.f32.mrf.mxu1  ;;  %v1826_v45 = vpop.f32.mrf.mxu0 }
 0x1e8   : > { %1910 = vst [vmem:[#allocation2 + $0x90] sm:$0xff] %v1878_v48  ;;  %v1883_v49 = vadd.f32 %v1835_v16, %v536_v13  ;;  %v1827_v30 = vadd.f32 %v1826_v45, %v1666_v52  ;;  %v2596_v10 = vadd.f32 %v2595_v56, %v2594_v12 }
 0x1e9   : > { %v2597_v33 = vpop.f32.mrf.mxu1  ;;  %v2673_v18 = vpop.f32.mrf.mxu0 }
 0x1ea   : > { %1915 = vst [vmem:[#allocation2 + $0x10] sm:$0xff] %v1883_v49  ;;  %v1881_v39 = vadd.f32 %v1827_v30, %v534_v28  ;;  %v1838_v22 = vadd.f32 %v2673_v18, %v1677_v1  ;;  %v1682_v19 = vadd.f32 %v2596_v10, %v3815_v40 }
 0x1eb   : > { %v2598_v25 = vpop.f32.mrf.mxu1  ;;  %v1829_v31 = vpop.f32.mrf.mxu0 }
 0x1ec   : > { %1913 = vst [vmem:[#allocation2 + $0xa8] sm:$0xff] %v1881_v39  ;;  %v1884_v53 = vadd.f32 %v1838_v22, %v537_v24  ;;  %v1830_v44 = vadd.f32 %v1829_v31, %v1669_v43  ;;  %v2599_v41 = vadd.f32 %v2598_v25, %v2597_v33 }
 0x1ed   : > { %v2600_v51 = vpop.f32.mrf.mxu1  ;;  %v2676_v55 = vpop.f32.mrf.mxu0 }
 0x1ee   : > { %1916 = vst [vmem:[#allocation2 + $0x28] sm:$0xff] %v1884_v53  ;;  %v1882_v60 = vadd.f32 %v1830_v44, %v535_v8  ;;  %v1685_v62 = vadd.f32 %v2599_v41, %v3817_v58 }
 0x1ef   : > { %v2601_v47 = vpop.f32.mrf.mxu1  ;;  %v1842_v37 = vpop.f32.mrf.mxu0 }
 0x1f0   : > { %1914 = vst [vmem:[#allocation2 + $0xd0] sm:$0xff] %v1882_v60  ;;  %v2602_v2 = vadd.f32 %v2601_v47, %v2600_v51  ;;  %v1843_v7 = vadd.f32 %v1842_v37, %v1682_v19 }
 0x1f1   : > { %v2603_v15 = vpop.f32.mrf.mxu1  ;;  %v2677_v29 = vpop.f32.mrf.mxu0 }
 0x1f2   : > { %v1690_v3 = vadd.f32 %v2602_v2, %v3816_v6  ;;  %v1885_v20 = vadd.f32 %v1843_v7, %v538_v11 }
 0x1f3   : > { %v2604_v5 = vpop.f32.mrf.mxu1  ;;  %v1845_v59 = vpop.f32.mrf.mxu0 }
 0x1f4   : > { %v1851_v36 = vadd.f32 %v2676_v55, %v1690_v3  ;;  %1917 = vst [vmem:[#allocation2 + $0xa0] sm:$0xff] %v1885_v20  ;;  %v2605_v42 = vadd.f32 %v2604_v5, %v2603_v15  ;;  %v1846_v63 = vadd.f32 %v1845_v59, %v1685_v62 }
 0x1f6   : > { %v1887_v4 = vadd.f32 %v1851_v36, %v540_v46  ;;  %v1693_v14 = vadd.f32 %v2605_v42, %v3818_v54  ;;  %v1886_v21 = vadd.f32 %v1846_v63, %v539_v9 }
 0x1f8   : > { %1919 = vst [vmem:[#allocation2 + $0x20] sm:$0xff] %v1887_v4  ;;  %v1854_v23 = vadd.f32 %v2677_v29, %v1693_v14  ;;  %1918 = vst [vmem:[#allocation2 + $0xf8] sm:$0xff] %v1886_v21  ;;  %1924 = sbr.rel (%p2378_p13) target bundleno = 558 (0x22e), region = 66 }
 0x1fa   : > { %v1888_v38 = vadd.f32 %v1854_v23, %v541_v50 }
 0x1fc   : > { %1920 = vst [vmem:[#allocation2 + $0x98] sm:$0xff] %v1888_v38 }
 0x1fd   : > { %v1925_v32 = vld [vmem:[#allocation2 + $0xb0] sm:$0xff]  ;;  %v3682_v0 = vld [vmem:[%s3771_s2] ss:$0 sm:$0xff]  ;;  %v1927_v13 = vld [vmem:[#allocation2 + $0xd8] sm:$0xff] }
 0x1fe   : > { %v1926_v34 = vld [vmem:[#allocation2] sm:$0xff]  ;;  %v1964_v35 = vadd.f32 %v3682_v0, %v1925_v32  ;;  %v1928_v57 = vld [vmem:[#allocation2 + $0x18] sm:$0xff]  ;;  %v1929_v61 = vld [vmem:[#allocation2 + $0x50] sm:$0xff]  ;;  %v1966_v48 = vadd.f32 %v3682_v0, %v1927_v13 }
 0x1ff   : > { %v1965_v12 = vadd.f32 %v3682_v0, %v1926_v34  ;;  %v1967_v16 = vadd.f32 %v3682_v0, %v1928_v57  ;;  %v1930_v27 = vld [vmem:[#allocation2 + $0x68] sm:$0xff]  ;;  %v1931_v52 = vld [vmem:[#allocation2 + $0x30] sm:$0xff]  ;;  %v1968_v56 = vadd.f32 %v3682_v0, %v1929_v61  ;;  %v1933_v49 = vld [vmem:[#allocation2 + $0x80] sm:$0xff] }
 0x200   : > { %2906 = vtanh.f32 %v1964_v35  ;;  %v1932_v28 = vld [vmem:[#allocation2 + $0x48] sm:$0xff]  ;;  %v1969_v45 = vadd.f32 %v3682_v0, %v1930_v27  ;;  %v1970_v30 = vadd.f32 %v3682_v0, %v1931_v52  ;;  %v1972_v24 = vadd.f32 %v3682_v0, %v1933_v49  ;;  %v1936_v18 = vld [vmem:[#allocation2 + $0xb8] sm:$0xff]  ;;  %v1937_v39 = vld [vmem:[#allocation2 + $0x60] sm:$0xff] }
 0x201   : > { %2908 = vtanh.f32 %v1965_v12  ;;  %v1934_v17 = vld [vmem:[#allocation2 + $0x88] sm:$0xff]  ;;  %v1971_v1 = vadd.f32 %v3682_v0, %v1932_v28  ;;  %v1938_v26 = vld [vmem:[#allocation2 + $0xf0] sm:$0xff]  ;;  %v1975_v43 = vadd.f32 %v3682_v0, %v1936_v18  ;;  %v1976_v8 = vadd.f32 %v3682_v0, %v1937_v39  ;;  %v1940_v31 = vld [vmem:[#allocation2 + $0x78] sm:$0xff] }
 0x202   : > { %2910 = vtanh.f32 %v1966_v48  ;;  %v1935_v33 = vld [vmem:[#allocation2 + $0xe8] sm:$0xff]  ;;  %v1973_v10 = vadd.f32 %v3682_v0, %v1934_v17  ;;  %v1977_v53 = vadd.f32 %v3682_v0, %v1938_v26  ;;  %v1941_v44 = vld [vmem:[#allocation2 + $0x38] sm:$0xff]  ;;  %v1979_v41 = vadd.f32 %v3682_v0, %v1940_v31  ;;  %v1943_v60 = vld [vmem:[#allocation2 + $0x40] sm:$0xff] }
 0x203   : > { %2912 = vtanh.f32 %v1967_v16  ;;  %v1974_v22 = vadd.f32 %v3682_v0, %v1935_v33  ;;  %v1939_v25 = vld [vmem:[#allocation2 + $0x8] sm:$0xff]  ;;  %v1942_v55 = vld [vmem:[#allocation2 + $0x58] sm:$0xff]  ;;  %v1980_v40 = vadd.f32 %v3682_v0, %v1941_v44  ;;  %v1945_v37 = vld [vmem:[#allocation2 + $0xe0] sm:$0xff]  ;;  %v1982_v7 = vadd.f32 %v3682_v0, %v1943_v60 }
 0x204   : > { %2914 = vtanh.f32 %v1968_v56  ;;  %v1978_v51 = vadd.f32 %v3682_v0, %v1939_v25  ;;  %v1944_v19 = vld [vmem:[#allocation2 + $0xc8] sm:$0xff]  ;;  %v1981_v11 = vadd.f32 %v3682_v0, %v1942_v55  ;;  %v1946_v15 = vld [vmem:[#allocation2 + $0x90] sm:$0xff]  ;;  %v1984_v58 = vadd.f32 %v3682_v0, %v1945_v37  ;;  %v1948_v62 = vld [vmem:[#allocation2 + $0xc0] sm:$0xff] }
 0x205   : > { %2916 = vtanh.f32 %v1969_v45  ;;  %v1983_v6 = vadd.f32 %v3682_v0, %v1944_v19  ;;  %v1947_v3 = vld [vmem:[#allocation2 + $0x70] sm:$0xff]  ;;  %v1985_v5 = vadd.f32 %v3682_v0, %v1946_v15  ;;  %v1949_v9 = vld [vmem:[#allocation2 + $0xa8] sm:$0xff]  ;;  %v1987_v4 = vadd.f32 %v3682_v0, %v1948_v62  ;;  %v1953_v32 = vld [vmem:[#allocation2 + $0xa0] sm:$0xff] }
 0x206   : > { %2918 = vtanh.f32 %v1970_v30  ;;  %v1986_v36 = vadd.f32 %v3682_v0, %v1947_v3  ;;  %v1950_v42 = vld [vmem:[#allocation2 + $0xd0] sm:$0xff]  ;;  %v1988_v21 = vadd.f32 %v3682_v0, %v1949_v9  ;;  %v1952_v50 = vld [vmem:[#allocation2 + $0x28] sm:$0xff]  ;;  %v1954_v12 = vld [vmem:[#allocation2 + $0xf8] sm:$0xff]  ;;  %v1992_v16 = vadd.f32 %v3682_v0, %v1953_v32 }
 0x207   : > { %2920 = vtanh.f32 %v1971_v1  ;;  %v1951_v54 = vld [vmem:[#allocation2 + $0x10] sm:$0xff]  ;;  %v1989_v38 = vadd.f32 %v3682_v0, %v1950_v42  ;;  %v1991_v57 = vadd.f32 %v3682_v0, %v1952_v50  ;;  %v1955_v61 = vld [vmem:[#allocation2 + $0x20] sm:$0xff]  ;;  %v1956_v27 = vld [vmem:[#allocation2 + $0x98] sm:$0xff]  ;;  %v1993_v56 = vadd.f32 %v3682_v0, %v1954_v12 }
 0x208   : > { %2922 = vtanh.f32 %v1972_v24  ;;  %v1990_v35 = vadd.f32 %v3682_v0, %v1951_v54  ;;  %v1994_v45 = vadd.f32 %v3682_v0, %v1955_v61  ;;  %v1995_v30 = vadd.f32 %v3682_v0, %v1956_v27 }
 0x209   : > { %2924 = vtanh.f32 %v1973_v10 }
 0x20a   : > { %2926 = vtanh.f32 %v1974_v22 }
 0x20b   : > { %2928 = vtanh.f32 %v1975_v43 }
 0x20c   : > { %2930 = vtanh.f32 %v1976_v8 }
 0x20d   : > { %v2907_v47 = vpop.eup %2906  ;;  %2932 = vtanh.f32 %v1977_v53 }
 0x20e   : > { %v2909_v2 = vpop.eup %2908  ;;  %2028 = vst [vmem:[%s3316_s30] sm:$0xff] %v2907_v47  ;;  %2934 = vtanh.f32 %v1978_v51 }
 0x20f   : > { %v2911_v29 = vpop.eup %2910  ;;  %2029 = vst [vmem:[%s3316_s30 + $0x8] sm:$0xff] %v2909_v2  ;;  %2936 = vtanh.f32 %v1979_v41 }
 0x210   : > { %v2913_v20 = vpop.eup %2912  ;;  %2030 = vst [vmem:[%s3316_s30 + $0x10] sm:$0xff] %v2911_v29  ;;  %2938 = vtanh.f32 %v1980_v40 }
 0x211   : > { %v2915_v46 = vpop.eup %2914  ;;  %2031 = vst [vmem:[%s3316_s30 + $0x18] sm:$0xff] %v2913_v20  ;;  %2940 = vtanh.f32 %v1981_v11 }
 0x212   : > { %v2917_v59 = vpop.eup %2916  ;;  %2032 = vst [vmem:[%s3316_s30 + $0x20] sm:$0xff] %v2915_v46  ;;  %2942 = vtanh.f32 %v1982_v7 }
 0x213   : > { %v2919_v63 = vpop.eup %2918  ;;  %2033 = vst [vmem:[%s3316_s30 + $0x28] sm:$0xff] %v2917_v59  ;;  %2944 = vtanh.f32 %v1983_v6 }
 0x214   : > { %v2921_v14 = vpop.eup %2920  ;;  %2034 = vst [vmem:[%s3316_s30 + $0x30] sm:$0xff] %v2919_v63  ;;  %2946 = vtanh.f32 %v1984_v58 }
 0x215   : > { %v2923_v23 = vpop.eup %2922  ;;  %2035 = vst [vmem:[%s3316_s30 + $0x38] sm:$0xff] %v2921_v14  ;;  %2948 = vtanh.f32 %v1985_v5 }
 0x216   : > { %v2925_v34 = vpop.eup %2924  ;;  %2036 = vst [vmem:[%s3316_s30 + $0x40] sm:$0xff] %v2923_v23  ;;  %2950 = vtanh.f32 %v1986_v36 }
 0x217   : > { %v2927_v13 = vpop.eup %2926  ;;  %2037 = vst [vmem:[%s3316_s30 + $0x48] sm:$0xff] %v2925_v34  ;;  %2952 = vtanh.f32 %v1987_v4 }
 0x218   : > { %v2929_v48 = vpop.eup %2928  ;;  %2038 = vst [vmem:[%s3316_s30 + $0x50] sm:$0xff] %v2927_v13  ;;  %2954 = vtanh.f32 %v1988_v21 }
 0x219   : > { %v2931_v52 = vpop.eup %2930  ;;  %2039 = vst [vmem:[%s3316_s30 + $0x58] sm:$0xff] %v2929_v48  ;;  %2956 = vtanh.f32 %v1989_v38 }
 0x21a   : > { %v2933_v28 = vpop.eup %2932  ;;  %2040 = vst [vmem:[%s3316_s30 + $0x60] sm:$0xff] %v2931_v52  ;;  %2958 = vtanh.f32 %v1990_v35 }
 0x21b   : > { %v2935_v49 = vpop.eup %2934  ;;  %2041 = vst [vmem:[%s3316_s30 + $0x68] sm:$0xff] %v2933_v28  ;;  %2960 = vtanh.f32 %v1991_v57 }
 0x21c   : > { %v2937_v17 = vpop.eup %2936  ;;  %2042 = vst [vmem:[%s3316_s30 + $0x70] sm:$0xff] %v2935_v49  ;;  %2962 = vtanh.f32 %v1992_v16 }
 0x21d   : > { %v2939_v1 = vpop.eup %2938  ;;  %2043 = vst [vmem:[%s3316_s30 + $0x78] sm:$0xff] %v2937_v17  ;;  %2964 = vtanh.f32 %v1993_v56 }
 0x21e   : > { %v2941_v33 = vpop.eup %2940  ;;  %2044 = vst [vmem:[%s3316_s30 + $0x80] sm:$0xff] %v2939_v1  ;;  %2966 = vtanh.f32 %v1994_v45 }
 0x21f   : > { %v2943_v24 = vpop.eup %2942  ;;  %2045 = vst [vmem:[%s3316_s30 + $0x88] sm:$0xff] %v2941_v33  ;;  %2968 = vtanh.f32 %v1995_v30 }
 0x220   : > { %v2945_v0 = vpop.eup %2944  ;;  %2046 = vst [vmem:[%s3316_s30 + $0x90] sm:$0xff] %v2943_v24 }
 0x221   : > { %v2947_v18 = vpop.eup %2946  ;;  %2047 = vst [vmem:[%s3316_s30 + $0x98] sm:$0xff] %v2945_v0 }
 0x222   : > { %v2949_v10 = vpop.eup %2948  ;;  %2048 = vst [vmem:[%s3316_s30 + $0xa0] sm:$0xff] %v2947_v18 }
 0x223   : > { %v2951_v39 = vpop.eup %2950  ;;  %2049 = vst [vmem:[%s3316_s30 + $0xa8] sm:$0xff] %v2949_v10 }
 0x224   : > { %v2953_v22 = vpop.eup %2952  ;;  %2050 = vst [vmem:[%s3316_s30 + $0xb0] sm:$0xff] %v2951_v39 }
 0x225   : > { %v2955_v26 = vpop.eup %2954  ;;  %2051 = vst [vmem:[%s3316_s30 + $0xb8] sm:$0xff] %v2953_v22 }
 0x226   : > { %v2957_v43 = vpop.eup %2956  ;;  %2052 = vst [vmem:[%s3316_s30 + $0xc0] sm:$0xff] %v2955_v26 }
 0x227   : > { %v2959_v25 = vpop.eup %2958  ;;  %2053 = vst [vmem:[%s3316_s30 + $0xc8] sm:$0xff] %v2957_v43 }
 0x228   : > { %v2961_v8 = vpop.eup %2960  ;;  %2054 = vst [vmem:[%s3316_s30 + $0xd0] sm:$0xff] %v2959_v25 }
 0x229   : > { %v2963_v31 = vpop.eup %2962  ;;  %2055 = vst [vmem:[%s3316_s30 + $0xd8] sm:$0xff] %v2961_v8 }
 0x22a   : > { %v2965_v53 = vpop.eup %2964  ;;  %2056 = vst [vmem:[%s3316_s30 + $0xe0] sm:$0xff] %v2963_v31 }
 0x22b   : > { %v2967_v44 = vpop.eup %2966  ;;  %2057 = vst [vmem:[%s3316_s30 + $0xe8] sm:$0xff] %v2965_v53 }
 0x22c   : > { %v2969_v51 = vpop.eup %2968  ;;  %2058 = vst [vmem:[%s3316_s30 + $0xf0] sm:$0xff] %v2967_v44 }
 0x22d   : > { %2059 = vst [vmem:[%s3316_s30 + $0xf8] sm:$0xff] %v2969_v51 }
 0x22e PF: > { %s13_s18 = sadd.s32 1, %s3024_s18   ;;  %s3819_s12 = smov %s3004_s13 }
 0x22f   : > { %p10_p0 = scmp.ge.s32.totalorder %s13_s18, 12   ;;  %s3820_s13 = smov %s3098_s25 }
 0x230   : > { %s3821_s14 = smov %s3016_s16  ;;  %s3822_s15 = smov %s3020_s17 }
 0x231   : > { %s3823_s16 = smov %s3826_s19  ;;  %s3824_s17 = smov %s3830_s20 }
 0x232   :  { %12 = sbr.rel (!%p10_p0) target bundleno = 4 (0x4), region = 113 }

</bundles_post_ra>
